<compile_context>
chip_gen: v7x
topology: tpu7x:2x2x1
jax: 0.10.0
libtpu: 0.0.40
codegen_flags: <defaults>
</compile_context>

<pallas_src>
from functools import partial

import numpy as np
import jax
import jax.numpy as jnp
from jax import lax
from jax.experimental import pallas as pl
from jax.experimental.pallas import tpu as pltpu


def _default_merged_conv2():
    """True on 256-wide-MXU generations (v6e/v7x); False keeps the v5e-friendly split."""
    kind = jax.devices()[0].device_kind.lower()
    return any(t in kind for t in ("v6", "v7", "7x"))


def lenet_kernel(x_ref, w1m_ref, b1e_ref, w2k_ref, b2e_ref,
                 wfc1_ref, bfc1_ref, wfc2_ref, bfc2_ref, wfc3_ref, bfc3_ref,
                 out_ref, p1_scr, xfc_scr, *, conv2_merged):
    f32 = jnp.float32
    bf16 = jnp.bfloat16
    B = x_ref.shape[1]

    # ---- conv1 (5x5, 1->6) + 2x2 maxpool + bias + relu: one merged MXU dot per pooled
    # output row.  w1m rows [0:72]/[72:144] = even/odd output cols at image row 2p,
    # rows [144:216]/[216:288] = even/odd output cols at image row 2p+1.
    b1b = jnp.broadcast_to(b1e_ref[...], (72, B))             # hoisted lane-broadcast
    for p in range(12):
        r = jnp.dot(w1m_ref[...], x_ref[pl.ds(64 * p, 192), :],
                    preferred_element_type=f32)               # (288, B) f32 accum
        m4 = jnp.maximum(jnp.maximum(r[:72], r[72:144]),
                         jnp.maximum(r[144:216], r[216:288])) # 2x2 window max (72, B)
        p1_scr[pl.ds(72 * p, 72), :] = jnp.maximum(m4 + b1b, 0.0)

    # ---- conv2 (5x5, 6->16) + 2x2 maxpool + bias + relu.
    b2b = jnp.broadcast_to(b2e_ref[...], (64, B))
    for p in range(4):
        if conv2_merged:
            # v6e/v7x: one M=256 dot fills the 256-row MXU tile.
            win = p1_scr[pl.ds(144 * p, 432), :].astype(bf16)            # (432, B)
            r = jnp.dot(w2k_ref[...], win, preferred_element_type=f32)   # (256, B)
            m4 = jnp.maximum(jnp.maximum(r[:64], r[64:128]),
                             jnp.maximum(r[128:192], r[192:256]))
        else:
            # v5e (128x128 MXU): two tile-aligned (128,360) dots.
            pa = p1_scr[pl.ds(72 * (2 * p), 360), :].astype(bf16)
            pb = p1_scr[pl.ds(72 * (2 * p + 1), 360), :].astype(bf16)
            ra = jnp.dot(w2k_ref[...], pa, preferred_element_type=f32)   # (128, B)
            rb = jnp.dot(w2k_ref[...], pb, preferred_element_type=f32)
            m4 = jnp.maximum(jnp.maximum(ra[:64], ra[64:]),
                             jnp.maximum(rb[:64], rb[64:]))
        xfc_scr[pl.ds(64 * p, 64), :] = jnp.maximum(m4 + b2b, 0.0).astype(bf16)

    # ---- fully-connected head, batch on lanes: (out, K) @ (K, B), bf16 ops / f32 accum.
    h = jnp.dot(wfc1_ref[...], xfc_scr[...], preferred_element_type=f32) + bfc1_ref[...]
    h = jnp.maximum(h, 0.0).astype(bf16)                      # (120, B)
    h = jnp.dot(wfc2_ref[...], h, preferred_element_type=f32) + bfc2_ref[...]
    h = jnp.maximum(h, 0.0).astype(bf16)                      # (84, B)
    out_ref[...] = jnp.dot(wfc3_ref[...], h, preferred_element_type=f32) + bfc3_ref[...]


def _prepare_weights(params, conv2_merged):
    """Toeplitz-expand conv weights (bf16), permute fc1 for the batch-last layout."""
    f32 = jnp.float32
    bf16 = jnp.bfloat16
    jp = np.arange(12)[:, None, None]
    kj = np.arange(5)[None, :, None]
    w32 = np.arange(32)[None, None, :]

    # conv1: (144,160) Toeplitz over the width-padded (32) row; row o*12+jp (even col)
    # or 72+o*12+jp (odd col), col ki*32 + w.  Merged even/odd-image-row form (288,192).
    w1 = params['w1'][:, 0].astype(f32)                       # (6, 5, 5) [o, ki, kj]
    s1e = jnp.asarray(w32 == 2 * jp + kj, f32)                # (12, 5, 32)
    s1o = jnp.asarray(w32 == 2 * jp + 1 + kj, f32)
    w1se = jnp.einsum('oks,jsw->ojkw', w1, s1e).reshape(72, 160)
    w1so = jnp.einsum('oks,jsw->ojkw', w1, s1o).reshape(72, 160)
    w1s = jnp.concatenate([w1se, w1so], axis=0)               # (144, 160)
    w1m = jnp.concatenate([jnp.pad(w1s, ((0, 0), (0, 32))),   # image rows 2p..2p+4
                           jnp.pad(w1s, ((0, 0), (32, 0)))],  # image rows 2p+1..2p+5
                          axis=0).astype(bf16)                # (288, 192)
    b1e = jnp.repeat(params['b1'].astype(f32), 12).reshape(72, 1)

    # conv2: (128,360) Toeplitz over the compact pooled map; row oc*4+j2 (even) or
    # 64+oc*4+j2 (odd), col ki*72 + c*12 + jp.  Optionally merged to (256,432).
    w2 = params['w2'].astype(f32)                             # (16, 6, 5, 5) [oc,c,ki,kj]
    j2 = np.arange(4)[:, None, None]
    w12 = np.arange(12)[None, None, :]
    s2e = jnp.asarray(w12 == 2 * j2 + kj, f32)                # (4, 5, 12)
    s2o = jnp.asarray(w12 == 2 * j2 + 1 + kj, f32)
    w2se = jnp.einsum('ocks,jsw->ojkcw', w2, s2e).reshape(64, 360)
    w2so = jnp.einsum('ocks,jsw->ojkcw', w2, s2o).reshape(64, 360)
    w2s = jnp.concatenate([w2se, w2so], axis=0)               # (128, 360)
    if conv2_merged:
        w2k = jnp.concatenate([jnp.pad(w2s, ((0, 0), (0, 72))),   # pooled rows 2p..2p+4
                               jnp.pad(w2s, ((0, 0), (72, 0)))],  # pooled rows 2p+1..2p+5
                              axis=0)                             # (256, 432)
    else:
        w2k = w2s                                                 # (128, 360)
    w2k = w2k.astype(bf16)
    b2e = jnp.repeat(params['b2'].astype(f32), 4).reshape(64, 1)

    # fc1: torch flatten order oc*16 + i*4 + j  ->  kernel order i*64 + oc*4 + j
    wfc1 = params['wfc1'].astype(f32).reshape(120, 16, 4, 4)
    wfc1 = jnp.transpose(wfc1, (0, 2, 1, 3)).reshape(120, 256).astype(bf16)

    return (w1m, b1e, w2k, b2e,
            wfc1, params['bfc1'].astype(f32).reshape(120, 1),
            params['wfc2'].astype(bf16), params['bfc2'].astype(f32).reshape(84, 1),
            params['wfc3'].astype(bf16), params['bfc3'].astype(f32).reshape(10, 1))


def lenet_forward(x_nchw, params, conv2_merged=None):
    f32 = jnp.float32
    bf16 = jnp.bfloat16
    if conv2_merged is None:
        conv2_merged = _default_merged_conv2()

    n = x_nchw.shape[0]
    # 256-lane blocks fill the v6e/v7x 256-wide MXU; keep >=2 grid steps (v7x megacore)
    # and fall back to 128 lanes for small batches to limit padding waste.
    BB = 256 if n >= 512 else 128
    n_pad = ((n + BB - 1) // BB) * BB

    # (N,1,28,28) -> (28,32,N_pad) -> (896,N_pad): batch on lanes, bf16, width padded to
    # 32 so every conv1 slice start (64*p) stays 16-row aligned for packed bf16 loads.
    # TODO(synk): emit this batch-last layout upstream to avoid the wrapper-side copy.
    x = jnp.transpose(x_nchw[:, 0], (1, 2, 0)).astype(bf16)   # (28, 28, N)
    x = jnp.pad(x, ((0, 0), (0, 4), (0, n_pad - n)))          # (28, 32, N_pad)
    x = x.reshape(28 * 32, n_pad)                             # (896, N_pad)

    weights = _prepare_weights(params, conv2_merged)

    def const_spec(w):
        return pl.BlockSpec(w.shape, lambda i: (0, 0))

    out_t = pl.pallas_call(
        partial(lenet_kernel, conv2_merged=conv2_merged),
        out_shape=jax.ShapeDtypeStruct((10, n_pad), f32),
        grid=(n_pad // BB,),
        in_specs=[pl.BlockSpec((896, BB), lambda i: (0, i))] +
                 [const_spec(w) for w in weights],
        out_specs=pl.BlockSpec((10, BB), lambda i: (0, i)),
        scratch_shapes=[
            pltpu.VMEM((12 * 72, BB), f32),   # pooled conv1 map (f32: 72-row stores aligned)
            pltpu.VMEM((4 * 64, BB), bf16),   # pooled conv2 map == fc1 input (256, B)
        ],
        compiler_params=pltpu.CompilerParams(
            dimension_semantics=("parallel",)),
    )(x, *weights)

    return out_t[:, :n].T                                     # (N, 10) f32


def reference(x_nchw, p):
    """Pure-JAX reference matching the PyTorch module exactly (NCHW, f32)."""
    dn = ('NCHW', 'OIHW', 'NCHW')
    y = lax.conv_general_dilated(x_nchw, p['w1'], (1, 1), 'VALID', dimension_numbers=dn)
    y = jnp.maximum(y + p['b1'][None, :, None, None], 0.0)
    y = lax.reduce_window(y, -jnp.inf, lax.max, (1, 1, 2, 2), (1, 1, 2, 2), 'VALID')
    y = lax.conv_general_dilated(y, p['w2'], (1, 1), 'VALID', dimension_numbers=dn)
    y = jnp.maximum(y + p['b2'][None, :, None, None], 0.0)
    y = lax.reduce_window(y, -jnp.inf, lax.max, (1, 1, 2, 2), (1, 1, 2, 2), 'VALID')
    y = y.reshape(y.shape[0], -1)                             # torch .view(-1, 256)
    y = jnp.maximum(y @ p['wfc1'].T + p['bfc1'], 0.0)
    y = jnp.maximum(y @ p['wfc2'].T + p['bfc2'], 0.0)
    return y @ p['wfc3'].T + p['bfc3']


def init_params(key):
    def uni(k, shape, fan_in):
        bound = 1.0 / np.sqrt(fan_in)
        return jax.random.uniform(k, shape, jnp.float32, -bound, bound)
    ks = jax.random.split(key, 10)
    return dict(
        w1=uni(ks[0], (6, 1, 5, 5), 25),     b1=uni(ks[1], (6,), 25),
        w2=uni(ks[2], (16, 6, 5, 5), 150),   b2=uni(ks[3], (16,), 150),
        wfc1=uni(ks[4], (120, 256), 256),    bfc1=uni(ks[5], (120,), 256),
        wfc2=uni(ks[6], (84, 120), 120),     bfc2=uni(ks[7], (84,), 120),
        wfc3=uni(ks[8], (10, 84), 84),       bfc3=uni(ks[9], (10,), 84),
    )


if __name__ == "__main__":
    key = jax.random.PRNGKey(0)
    kx1, kx2, kp = jax.random.split(key, 3)
    params = init_params(kp)
    auto_merged = _default_merged_conv2()

    # 200 MNIST-sized images: BB=128 path, one full block + a padded remainder block,
    # conv2 layout auto-selected for the local chip generation.
    x1 = jax.random.normal(kx1, (200, 1, 28, 28), jnp.float32)
    y1 = jax.block_until_ready(jax.jit(lenet_forward)(x1, params))
    assert y1.shape == (200, 10) and y1.dtype == jnp.float32
    r1 = np.asarray(reference(x1, params))
    if not np.allclose(np.asarray(y1), r1, atol=5e-2, rtol=5e-2):
        raise AssertionError(
            f"Pallas kernel mismatch (batch 200): max abs diff "
            f"{np.max(np.abs(np.asarray(y1) - r1))}")

    # 512 images: exercises the BB=256 lane block (fills a 256-wide MXU, still 2 grid
    # steps for the v7x megacore) and the *other* conv2 layout, so both paths are checked.
    x2 = jax.random.normal(kx2, (512, 1, 28, 28), jnp.float32)
    fwd_alt = jax.jit(lambda xx, pp: lenet_forward(xx, pp, conv2_merged=not auto_merged))
    y2 = jax.block_until_ready(fwd_alt(x2, params))
    assert y2.shape == (512, 10) and y2.dtype == jnp.float32
    r2 = np.asarray(reference(x2, params))
    if not np.allclose(np.asarray(y2), r2, atol=5e-2, rtol=5e-2):
        raise AssertionError(
            f"Pallas kernel mismatch (batch 512): max abs diff "
            f"{np.max(np.abs(np.asarray(y2) - r2))}")

    print("KERNEL_OK")
</pallas_src>

<mosaic_0001>
module attributes {stable_mosaic.version = 11 : i64} {
  func.func @lenet_kernel(%arg0: i32, %arg1: memref<896x128xbf16, #tpu.memory_space<vmem>>, %arg2: memref<288x192xbf16, #tpu.memory_space<vmem>>, %arg3: memref<72x1xf32, #tpu.memory_space<vmem>>, %arg4: memref<128x360xbf16, #tpu.memory_space<vmem>>, %arg5: memref<64x1xf32, #tpu.memory_space<vmem>>, %arg6: memref<120x256xbf16, #tpu.memory_space<vmem>>, %arg7: memref<120x1xf32, #tpu.memory_space<vmem>>, %arg8: memref<84x120xbf16, #tpu.memory_space<vmem>>, %arg9: memref<84x1xf32, #tpu.memory_space<vmem>>, %arg10: memref<10x84xbf16, #tpu.memory_space<vmem>>, %arg11: memref<10x1xf32, #tpu.memory_space<vmem>>, %arg12: memref<10x128xf32, #tpu.memory_space<vmem>>, %arg13: memref<864x128xf32, #tpu.memory_space<vmem>>, %arg14: memref<256x128xbf16, #tpu.memory_space<vmem>>) attributes {dimension_semantics = [#tpu.dimension_semantics<parallel>], iteration_bounds = array<i64: 2>, scalar_prefetch = 0 : i64, scratch_operands = 2 : i64, tpu.core_type = #tpu.core_type<tc>, window_params = [{transform_indices = @transform_0, window_bounds = array<i64: 896, 128>}, {pipeline_mode = #tpu.pipeline_mode<synchronous>, transform_indices = @transform_1, window_bounds = array<i64: 288, 192>}, {pipeline_mode = #tpu.pipeline_mode<synchronous>, transform_indices = @transform_2, window_bounds = array<i64: 72, 1>}, {pipeline_mode = #tpu.pipeline_mode<synchronous>, transform_indices = @transform_3, window_bounds = array<i64: 128, 360>}, {pipeline_mode = #tpu.pipeline_mode<synchronous>, transform_indices = @transform_4, window_bounds = array<i64: 64, 1>}, {pipeline_mode = #tpu.pipeline_mode<synchronous>, transform_indices = @transform_5, window_bounds = array<i64: 120, 256>}, {pipeline_mode = #tpu.pipeline_mode<synchronous>, transform_indices = @transform_6, window_bounds = array<i64: 120, 1>}, {pipeline_mode = #tpu.pipeline_mode<synchronous>, transform_indices = @transform_7, window_bounds = array<i64: 84, 120>}, {pipeline_mode = #tpu.pipeline_mode<synchronous>, transform_indices = @transform_8, window_bounds = array<i64: 84, 1>}, {pipeline_mode = #tpu.pipeline_mode<synchronous>, transform_indices = @transform_9, window_bounds = array<i64: 10, 84>}, {pipeline_mode = #tpu.pipeline_mode<synchronous>, transform_indices = @transform_10, window_bounds = array<i64: 10, 1>}, {transform_indices = @transform_11, window_bounds = array<i64: 10, 128>}]} {
    %c0 = arith.constant 0 : index
    %c0_0 = arith.constant 0 : index
    %0 = vector.load %arg3[%c0, %c0_0] : memref<72x1xf32, #tpu.memory_space<vmem>>, vector<72x1xf32>
    %1 = vector.shape_cast %0 : vector<72x1xf32> to vector<72x1xf32>
    %2 = vector.broadcast %1 : vector<72x1xf32> to vector<72x128xf32>
    %c0_1 = arith.constant 0 : index
    %c0_2 = arith.constant 0 : index
    %3 = vector.load %arg2[%c0_1, %c0_2] : memref<288x192xbf16, #tpu.memory_space<vmem>>, vector<288x192xbf16>
    %c0_3 = arith.constant 0 : index
    %c0_4 = arith.constant 0 : index
    %4 = vector.load %arg1[%c0_3, %c0_4] : memref<896x128xbf16, #tpu.memory_space<vmem>>, vector<192x128xbf16>
    %cst = arith.constant dense<0.000000e+00> : vector<288x128xf32>
    %5 = tpu.matmul %3, %4, %cst {dimension_numbers = #tpu.dot_dimension_numbers<[1], [0], [0], [1], [0, 0, 1, 1], [], []>} : vector<288x192xbf16>, vector<192x128xbf16>, vector<288x128xf32> -> vector<288x128xf32>
    %6 = vector.extract_strided_slice %5 {offsets = [0, 0], sizes = [72, 128], strides = [1, 1]} : vector<288x128xf32> to vector<72x128xf32>
    %7 = vector.extract_strided_slice %5 {offsets = [72, 0], sizes = [72, 128], strides = [1, 1]} : vector<288x128xf32> to vector<72x128xf32>
    %8 = arith.maximumf %6, %7 : vector<72x128xf32>
    %9 = vector.extract_strided_slice %5 {offsets = [144, 0], sizes = [72, 128], strides = [1, 1]} : vector<288x128xf32> to vector<72x128xf32>
    %10 = vector.extract_strided_slice %5 {offsets = [216, 0], sizes = [72, 128], strides = [1, 1]} : vector<288x128xf32> to vector<72x128xf32>
    %11 = arith.maximumf %9, %10 : vector<72x128xf32>
    %12 = arith.maximumf %8, %11 : vector<72x128xf32>
    %13 = arith.addf %12, %2 : vector<72x128xf32>
    %cst_5 = arith.constant 0.000000e+00 : f32
    %14 = vector.broadcast %cst_5 : f32 to vector<72x128xf32>
    %15 = arith.maximumf %13, %14 : vector<72x128xf32>
    %c0_6 = arith.constant 0 : index
    %c0_7 = arith.constant 0 : index
    %16 = vector.load %arg13[%c0_6, %c0_7] : memref<864x128xf32, #tpu.memory_space<vmem>>, vector<72x128xf32>
    tpu.vector_store %arg13[%c0_6, %c0_7], %15 {strides = array<i32>} : memref<864x128xf32, #tpu.memory_space<vmem>>, vector<72x128xf32>,
    %c0_8 = arith.constant 0 : index
    %c0_9 = arith.constant 0 : index
    %17 = vector.load %arg2[%c0_8, %c0_9] : memref<288x192xbf16, #tpu.memory_space<vmem>>, vector<288x192xbf16>
    %c64 = arith.constant 64 : index
    %c0_10 = arith.constant 0 : index
    %18 = vector.load %arg1[%c64, %c0_10] : memref<896x128xbf16, #tpu.memory_space<vmem>>, vector<192x128xbf16>
    %cst_11 = arith.constant dense<0.000000e+00> : vector<288x128xf32>
    %19 = tpu.matmul %17, %18, %cst_11 {dimension_numbers = #tpu.dot_dimension_numbers<[1], [0], [0], [1], [0, 0, 1, 1], [], []>} : vector<288x192xbf16>, vector<192x128xbf16>, vector<288x128xf32> -> vector<288x128xf32>
    %20 = vector.extract_strided_slice %19 {offsets = [0, 0], sizes = [72, 128], strides = [1, 1]} : vector<288x128xf32> to vector<72x128xf32>
    %21 = vector.extract_strided_slice %19 {offsets = [72, 0], sizes = [72, 128], strides = [1, 1]} : vector<288x128xf32> to vector<72x128xf32>
    %22 = arith.maximumf %20, %21 : vector<72x128xf32>
    %23 = vector.extract_strided_slice %19 {offsets = [144, 0], sizes = [72, 128], strides = [1, 1]} : vector<288x128xf32> to vector<72x128xf32>
    %24 = vector.extract_strided_slice %19 {offsets = [216, 0], sizes = [72, 128], strides = [1, 1]} : vector<288x128xf32> to vector<72x128xf32>
    %25 = arith.maximumf %23, %24 : vector<72x128xf32>
    %26 = arith.maximumf %22, %25 : vector<72x128xf32>
    %27 = arith.addf %26, %2 : vector<72x128xf32>
    %cst_12 = arith.constant 0.000000e+00 : f32
    %28 = vector.broadcast %cst_12 : f32 to vector<72x128xf32>
    %29 = arith.maximumf %27, %28 : vector<72x128xf32>
    %c72 = arith.constant 72 : index
    %c0_13 = arith.constant 0 : index
    %30 = vector.load %arg13[%c72, %c0_13] : memref<864x128xf32, #tpu.memory_space<vmem>>, vector<72x128xf32>
    tpu.vector_store %arg13[%c72, %c0_13], %29 {strides = array<i32>} : memref<864x128xf32, #tpu.memory_space<vmem>>, vector<72x128xf32>,
    %c0_14 = arith.constant 0 : index
    %c0_15 = arith.constant 0 : index
    %31 = vector.load %arg2[%c0_14, %c0_15] : memref<288x192xbf16, #tpu.memory_space<vmem>>, vector<288x192xbf16>
    %c128 = arith.constant 128 : index
    %c0_16 = arith.constant 0 : index
    %32 = vector.load %arg1[%c128, %c0_16] : memref<896x128xbf16, #tpu.memory_space<vmem>>, vector<192x128xbf16>
    %cst_17 = arith.constant dense<0.000000e+00> : vector<288x128xf32>
    %33 = tpu.matmul %31, %32, %cst_17 {dimension_numbers = #tpu.dot_dimension_numbers<[1], [0], [0], [1], [0, 0, 1, 1], [], []>} : vector<288x192xbf16>, vector<192x128xbf16>, vector<288x128xf32> -> vector<288x128xf32>
    %34 = vector.extract_strided_slice %33 {offsets = [0, 0], sizes = [72, 128], strides = [1, 1]} : vector<288x128xf32> to vector<72x128xf32>
    %35 = vector.extract_strided_slice %33 {offsets = [72, 0], sizes = [72, 128], strides = [1, 1]} : vector<288x128xf32> to vector<72x128xf32>
    %36 = arith.maximumf %34, %35 : vector<72x128xf32>
    %37 = vector.extract_strided_slice %33 {offsets = [144, 0], sizes = [72, 128], strides = [1, 1]} : vector<288x128xf32> to vector<72x128xf32>
    %38 = vector.extract_strided_slice %33 {offsets = [216, 0], sizes = [72, 128], strides = [1, 1]} : vector<288x128xf32> to vector<72x128xf32>
    %39 = arith.maximumf %37, %38 : vector<72x128xf32>
    %40 = arith.maximumf %36, %39 : vector<72x128xf32>
    %41 = arith.addf %40, %2 : vector<72x128xf32>
    %cst_18 = arith.constant 0.000000e+00 : f32
    %42 = vector.broadcast %cst_18 : f32 to vector<72x128xf32>
    %43 = arith.maximumf %41, %42 : vector<72x128xf32>
    %c144 = arith.constant 144 : index
    %c0_19 = arith.constant 0 : index
    %44 = vector.load %arg13[%c144, %c0_19] : memref<864x128xf32, #tpu.memory_space<vmem>>, vector<72x128xf32>
    tpu.vector_store %arg13[%c144, %c0_19], %43 {strides = array<i32>} : memref<864x128xf32, #tpu.memory_space<vmem>>, vector<72x128xf32>,
    %c0_20 = arith.constant 0 : index
    %c0_21 = arith.constant 0 : index
    %45 = vector.load %arg2[%c0_20, %c0_21] : memref<288x192xbf16, #tpu.memory_space<vmem>>, vector<288x192xbf16>
    %c192 = arith.constant 192 : index
    %c0_22 = arith.constant 0 : index
    %46 = vector.load %arg1[%c192, %c0_22] : memref<896x128xbf16, #tpu.memory_space<vmem>>, vector<192x128xbf16>
    %cst_23 = arith.constant dense<0.000000e+00> : vector<288x128xf32>
    %47 = tpu.matmul %45, %46, %cst_23 {dimension_numbers = #tpu.dot_dimension_numbers<[1], [0], [0], [1], [0, 0, 1, 1], [], []>} : vector<288x192xbf16>, vector<192x128xbf16>, vector<288x128xf32> -> vector<288x128xf32>
    %48 = vector.extract_strided_slice %47 {offsets = [0, 0], sizes = [72, 128], strides = [1, 1]} : vector<288x128xf32> to vector<72x128xf32>
    %49 = vector.extract_strided_slice %47 {offsets = [72, 0], sizes = [72, 128], strides = [1, 1]} : vector<288x128xf32> to vector<72x128xf32>
    %50 = arith.maximumf %48, %49 : vector<72x128xf32>
    %51 = vector.extract_strided_slice %47 {offsets = [144, 0], sizes = [72, 128], strides = [1, 1]} : vector<288x128xf32> to vector<72x128xf32>
    %52 = vector.extract_strided_slice %47 {offsets = [216, 0], sizes = [72, 128], strides = [1, 1]} : vector<288x128xf32> to vector<72x128xf32>
    %53 = arith.maximumf %51, %52 : vector<72x128xf32>
    %54 = arith.maximumf %50, %53 : vector<72x128xf32>
    %55 = arith.addf %54, %2 : vector<72x128xf32>
    %cst_24 = arith.constant 0.000000e+00 : f32
    %56 = vector.broadcast %cst_24 : f32 to vector<72x128xf32>
    %57 = arith.maximumf %55, %56 : vector<72x128xf32>
    %c216 = arith.constant 216 : index
    %c0_25 = arith.constant 0 : index
    %58 = vector.load %arg13[%c216, %c0_25] : memref<864x128xf32, #tpu.memory_space<vmem>>, vector<72x128xf32>
    tpu.vector_store %arg13[%c216, %c0_25], %57 {strides = array<i32>} : memref<864x128xf32, #tpu.memory_space<vmem>>, vector<72x128xf32>,
    %c0_26 = arith.constant 0 : index
    %c0_27 = arith.constant 0 : index
    %59 = vector.load %arg2[%c0_26, %c0_27] : memref<288x192xbf16, #tpu.memory_space<vmem>>, vector<288x192xbf16>
    %c256 = arith.constant 256 : index
    %c0_28 = arith.constant 0 : index
    %60 = vector.load %arg1[%c256, %c0_28] : memref<896x128xbf16, #tpu.memory_space<vmem>>, vector<192x128xbf16>
    %cst_29 = arith.constant dense<0.000000e+00> : vector<288x128xf32>
    %61 = tpu.matmul %59, %60, %cst_29 {dimension_numbers = #tpu.dot_dimension_numbers<[1], [0], [0], [1], [0, 0, 1, 1], [], []>} : vector<288x192xbf16>, vector<192x128xbf16>, vector<288x128xf32> -> vector<288x128xf32>
    %62 = vector.extract_strided_slice %61 {offsets = [0, 0], sizes = [72, 128], strides = [1, 1]} : vector<288x128xf32> to vector<72x128xf32>
    %63 = vector.extract_strided_slice %61 {offsets = [72, 0], sizes = [72, 128], strides = [1, 1]} : vector<288x128xf32> to vector<72x128xf32>
    %64 = arith.maximumf %62, %63 : vector<72x128xf32>
    %65 = vector.extract_strided_slice %61 {offsets = [144, 0], sizes = [72, 128], strides = [1, 1]} : vector<288x128xf32> to vector<72x128xf32>
    %66 = vector.extract_strided_slice %61 {offsets = [216, 0], sizes = [72, 128], strides = [1, 1]} : vector<288x128xf32> to vector<72x128xf32>
    %67 = arith.maximumf %65, %66 : vector<72x128xf32>
    %68 = arith.maximumf %64, %67 : vector<72x128xf32>
    %69 = arith.addf %68, %2 : vector<72x128xf32>
    %cst_30 = arith.constant 0.000000e+00 : f32
    %70 = vector.broadcast %cst_30 : f32 to vector<72x128xf32>
    %71 = arith.maximumf %69, %70 : vector<72x128xf32>
    %c288 = arith.constant 288 : index
    %c0_31 = arith.constant 0 : index
    %72 = vector.load %arg13[%c288, %c0_31] : memref<864x128xf32, #tpu.memory_space<vmem>>, vector<72x128xf32>
    tpu.vector_store %arg13[%c288, %c0_31], %71 {strides = array<i32>} : memref<864x128xf32, #tpu.memory_space<vmem>>, vector<72x128xf32>,
    %c0_32 = arith.constant 0 : index
    %c0_33 = arith.constant 0 : index
    %73 = vector.load %arg2[%c0_32, %c0_33] : memref<288x192xbf16, #tpu.memory_space<vmem>>, vector<288x192xbf16>
    %c320 = arith.constant 320 : index
    %c0_34 = arith.constant 0 : index
    %74 = vector.load %arg1[%c320, %c0_34] : memref<896x128xbf16, #tpu.memory_space<vmem>>, vector<192x128xbf16>
    %cst_35 = arith.constant dense<0.000000e+00> : vector<288x128xf32>
    %75 = tpu.matmul %73, %74, %cst_35 {dimension_numbers = #tpu.dot_dimension_numbers<[1], [0], [0], [1], [0, 0, 1, 1], [], []>} : vector<288x192xbf16>, vector<192x128xbf16>, vector<288x128xf32> -> vector<288x128xf32>
    %76 = vector.extract_strided_slice %75 {offsets = [0, 0], sizes = [72, 128], strides = [1, 1]} : vector<288x128xf32> to vector<72x128xf32>
    %77 = vector.extract_strided_slice %75 {offsets = [72, 0], sizes = [72, 128], strides = [1, 1]} : vector<288x128xf32> to vector<72x128xf32>
    %78 = arith.maximumf %76, %77 : vector<72x128xf32>
    %79 = vector.extract_strided_slice %75 {offsets = [144, 0], sizes = [72, 128], strides = [1, 1]} : vector<288x128xf32> to vector<72x128xf32>
    %80 = vector.extract_strided_slice %75 {offsets = [216, 0], sizes = [72, 128], strides = [1, 1]} : vector<288x128xf32> to vector<72x128xf32>
    %81 = arith.maximumf %79, %80 : vector<72x128xf32>
    %82 = arith.maximumf %78, %81 : vector<72x128xf32>
    %83 = arith.addf %82, %2 : vector<72x128xf32>
    %cst_36 = arith.constant 0.000000e+00 : f32
    %84 = vector.broadcast %cst_36 : f32 to vector<72x128xf32>
    %85 = arith.maximumf %83, %84 : vector<72x128xf32>
    %c360 = arith.constant 360 : index
    %c0_37 = arith.constant 0 : index
    %86 = vector.load %arg13[%c360, %c0_37] : memref<864x128xf32, #tpu.memory_space<vmem>>, vector<72x128xf32>
    tpu.vector_store %arg13[%c360, %c0_37], %85 {strides = array<i32>} : memref<864x128xf32, #tpu.memory_space<vmem>>, vector<72x128xf32>,
    %c0_38 = arith.constant 0 : index
    %c0_39 = arith.constant 0 : index
    %87 = vector.load %arg2[%c0_38, %c0_39] : memref<288x192xbf16, #tpu.memory_space<vmem>>, vector<288x192xbf16>
    %c384 = arith.constant 384 : index
    %c0_40 = arith.constant 0 : index
    %88 = vector.load %arg1[%c384, %c0_40] : memref<896x128xbf16, #tpu.memory_space<vmem>>, vector<192x128xbf16>
    %cst_41 = arith.constant dense<0.000000e+00> : vector<288x128xf32>
    %89 = tpu.matmul %87, %88, %cst_41 {dimension_numbers = #tpu.dot_dimension_numbers<[1], [0], [0], [1], [0, 0, 1, 1], [], []>} : vector<288x192xbf16>, vector<192x128xbf16>, vector<288x128xf32> -> vector<288x128xf32>
    %90 = vector.extract_strided_slice %89 {offsets = [0, 0], sizes = [72, 128], strides = [1, 1]} : vector<288x128xf32> to vector<72x128xf32>
    %91 = vector.extract_strided_slice %89 {offsets = [72, 0], sizes = [72, 128], strides = [1, 1]} : vector<288x128xf32> to vector<72x128xf32>
    %92 = arith.maximumf %90, %91 : vector<72x128xf32>
    %93 = vector.extract_strided_slice %89 {offsets = [144, 0], sizes = [72, 128], strides = [1, 1]} : vector<288x128xf32> to vector<72x128xf32>
    %94 = vector.extract_strided_slice %89 {offsets = [216, 0], sizes = [72, 128], strides = [1, 1]} : vector<288x128xf32> to vector<72x128xf32>
    %95 = arith.maximumf %93, %94 : vector<72x128xf32>
    %96 = arith.maximumf %92, %95 : vector<72x128xf32>
    %97 = arith.addf %96, %2 : vector<72x128xf32>
    %cst_42 = arith.constant 0.000000e+00 : f32
    %98 = vector.broadcast %cst_42 : f32 to vector<72x128xf32>
    %99 = arith.maximumf %97, %98 : vector<72x128xf32>
    %c432 = arith.constant 432 : index
    %c0_43 = arith.constant 0 : index
    %100 = vector.load %arg13[%c432, %c0_43] : memref<864x128xf32, #tpu.memory_space<vmem>>, vector<72x128xf32>
    tpu.vector_store %arg13[%c432, %c0_43], %99 {strides = array<i32>} : memref<864x128xf32, #tpu.memory_space<vmem>>, vector<72x128xf32>,
    %c0_44 = arith.constant 0 : index
    %c0_45 = arith.constant 0 : index
    %101 = vector.load %arg2[%c0_44, %c0_45] : memref<288x192xbf16, #tpu.memory_space<vmem>>, vector<288x192xbf16>
    %c448 = arith.constant 448 : index
    %c0_46 = arith.constant 0 : index
    %102 = vector.load %arg1[%c448, %c0_46] : memref<896x128xbf16, #tpu.memory_space<vmem>>, vector<192x128xbf16>
    %cst_47 = arith.constant dense<0.000000e+00> : vector<288x128xf32>
    %103 = tpu.matmul %101, %102, %cst_47 {dimension_numbers = #tpu.dot_dimension_numbers<[1], [0], [0], [1], [0, 0, 1, 1], [], []>} : vector<288x192xbf16>, vector<192x128xbf16>, vector<288x128xf32> -> vector<288x128xf32>
    %104 = vector.extract_strided_slice %103 {offsets = [0, 0], sizes = [72, 128], strides = [1, 1]} : vector<288x128xf32> to vector<72x128xf32>
    %105 = vector.extract_strided_slice %103 {offsets = [72, 0], sizes = [72, 128], strides = [1, 1]} : vector<288x128xf32> to vector<72x128xf32>
    %106 = arith.maximumf %104, %105 : vector<72x128xf32>
    %107 = vector.extract_strided_slice %103 {offsets = [144, 0], sizes = [72, 128], strides = [1, 1]} : vector<288x128xf32> to vector<72x128xf32>
    %108 = vector.extract_strided_slice %103 {offsets = [216, 0], sizes = [72, 128], strides = [1, 1]} : vector<288x128xf32> to vector<72x128xf32>
    %109 = arith.maximumf %107, %108 : vector<72x128xf32>
    %110 = arith.maximumf %106, %109 : vector<72x128xf32>
    %111 = arith.addf %110, %2 : vector<72x128xf32>
    %cst_48 = arith.constant 0.000000e+00 : f32
    %112 = vector.broadcast %cst_48 : f32 to vector<72x128xf32>
    %113 = arith.maximumf %111, %112 : vector<72x128xf32>
    %c504 = arith.constant 504 : index
    %c0_49 = arith.constant 0 : index
    %114 = vector.load %arg13[%c504, %c0_49] : memref<864x128xf32, #tpu.memory_space<vmem>>, vector<72x128xf32>
    tpu.vector_store %arg13[%c504, %c0_49], %113 {strides = array<i32>} : memref<864x128xf32, #tpu.memory_space<vmem>>, vector<72x128xf32>,
    %c0_50 = arith.constant 0 : index
    %c0_51 = arith.constant 0 : index
    %115 = vector.load %arg2[%c0_50, %c0_51] : memref<288x192xbf16, #tpu.memory_space<vmem>>, vector<288x192xbf16>
    %c512 = arith.constant 512 : index
    %c0_52 = arith.constant 0 : index
    %116 = vector.load %arg1[%c512, %c0_52] : memref<896x128xbf16, #tpu.memory_space<vmem>>, vector<192x128xbf16>
    %cst_53 = arith.constant dense<0.000000e+00> : vector<288x128xf32>
    %117 = tpu.matmul %115, %116, %cst_53 {dimension_numbers = #tpu.dot_dimension_numbers<[1], [0], [0], [1], [0, 0, 1, 1], [], []>} : vector<288x192xbf16>, vector<192x128xbf16>, vector<288x128xf32> -> vector<288x128xf32>
    %118 = vector.extract_strided_slice %117 {offsets = [0, 0], sizes = [72, 128], strides = [1, 1]} : vector<288x128xf32> to vector<72x128xf32>
    %119 = vector.extract_strided_slice %117 {offsets = [72, 0], sizes = [72, 128], strides = [1, 1]} : vector<288x128xf32> to vector<72x128xf32>
    %120 = arith.maximumf %118, %119 : vector<72x128xf32>
    %121 = vector.extract_strided_slice %117 {offsets = [144, 0], sizes = [72, 128], strides = [1, 1]} : vector<288x128xf32> to vector<72x128xf32>
    %122 = vector.extract_strided_slice %117 {offsets = [216, 0], sizes = [72, 128], strides = [1, 1]} : vector<288x128xf32> to vector<72x128xf32>
    %123 = arith.maximumf %121, %122 : vector<72x128xf32>
    %124 = arith.maximumf %120, %123 : vector<72x128xf32>
    %125 = arith.addf %124, %2 : vector<72x128xf32>
    %cst_54 = arith.constant 0.000000e+00 : f32
    %126 = vector.broadcast %cst_54 : f32 to vector<72x128xf32>
    %127 = arith.maximumf %125, %126 : vector<72x128xf32>
    %c576 = arith.constant 576 : index
    %c0_55 = arith.constant 0 : index
    %128 = vector.load %arg13[%c576, %c0_55] : memref<864x128xf32, #tpu.memory_space<vmem>>, vector<72x128xf32>
    tpu.vector_store %arg13[%c576, %c0_55], %127 {strides = array<i32>} : memref<864x128xf32, #tpu.memory_space<vmem>>, vector<72x128xf32>,
    %c0_56 = arith.constant 0 : index
    %c0_57 = arith.constant 0 : index
    %129 = vector.load %arg2[%c0_56, %c0_57] : memref<288x192xbf16, #tpu.memory_space<vmem>>, vector<288x192xbf16>
    %c576_58 = arith.constant 576 : index
    %c0_59 = arith.constant 0 : index
    %130 = vector.load %arg1[%c576_58, %c0_59] : memref<896x128xbf16, #tpu.memory_space<vmem>>, vector<192x128xbf16>
    %cst_60 = arith.constant dense<0.000000e+00> : vector<288x128xf32>
    %131 = tpu.matmul %129, %130, %cst_60 {dimension_numbers = #tpu.dot_dimension_numbers<[1], [0], [0], [1], [0, 0, 1, 1], [], []>} : vector<288x192xbf16>, vector<192x128xbf16>, vector<288x128xf32> -> vector<288x128xf32>
    %132 = vector.extract_strided_slice %131 {offsets = [0, 0], sizes = [72, 128], strides = [1, 1]} : vector<288x128xf32> to vector<72x128xf32>
    %133 = vector.extract_strided_slice %131 {offsets = [72, 0], sizes = [72, 128], strides = [1, 1]} : vector<288x128xf32> to vector<72x128xf32>
    %134 = arith.maximumf %132, %133 : vector<72x128xf32>
    %135 = vector.extract_strided_slice %131 {offsets = [144, 0], sizes = [72, 128], strides = [1, 1]} : vector<288x128xf32> to vector<72x128xf32>
    %136 = vector.extract_strided_slice %131 {offsets = [216, 0], sizes = [72, 128], strides = [1, 1]} : vector<288x128xf32> to vector<72x128xf32>
    %137 = arith.maximumf %135, %136 : vector<72x128xf32>
    %138 = arith.maximumf %134, %137 : vector<72x128xf32>
    %139 = arith.addf %138, %2 : vector<72x128xf32>
    %cst_61 = arith.constant 0.000000e+00 : f32
    %140 = vector.broadcast %cst_61 : f32 to vector<72x128xf32>
    %141 = arith.maximumf %139, %140 : vector<72x128xf32>
    %c648 = arith.constant 648 : index
    %c0_62 = arith.constant 0 : index
    %142 = vector.load %arg13[%c648, %c0_62] : memref<864x128xf32, #tpu.memory_space<vmem>>, vector<72x128xf32>
    tpu.vector_store %arg13[%c648, %c0_62], %141 {strides = array<i32>} : memref<864x128xf32, #tpu.memory_space<vmem>>, vector<72x128xf32>,
    %c0_63 = arith.constant 0 : index
    %c0_64 = arith.constant 0 : index
    %143 = vector.load %arg2[%c0_63, %c0_64] : memref<288x192xbf16, #tpu.memory_space<vmem>>, vector<288x192xbf16>
    %c640 = arith.constant 640 : index
    %c0_65 = arith.constant 0 : index
    %144 = vector.load %arg1[%c640, %c0_65] : memref<896x128xbf16, #tpu.memory_space<vmem>>, vector<192x128xbf16>
    %cst_66 = arith.constant dense<0.000000e+00> : vector<288x128xf32>
    %145 = tpu.matmul %143, %144, %cst_66 {dimension_numbers = #tpu.dot_dimension_numbers<[1], [0], [0], [1], [0, 0, 1, 1], [], []>} : vector<288x192xbf16>, vector<192x128xbf16>, vector<288x128xf32> -> vector<288x128xf32>
    %146 = vector.extract_strided_slice %145 {offsets = [0, 0], sizes = [72, 128], strides = [1, 1]} : vector<288x128xf32> to vector<72x128xf32>
    %147 = vector.extract_strided_slice %145 {offsets = [72, 0], sizes = [72, 128], strides = [1, 1]} : vector<288x128xf32> to vector<72x128xf32>
    %148 = arith.maximumf %146, %147 : vector<72x128xf32>
    %149 = vector.extract_strided_slice %145 {offsets = [144, 0], sizes = [72, 128], strides = [1, 1]} : vector<288x128xf32> to vector<72x128xf32>
    %150 = vector.extract_strided_slice %145 {offsets = [216, 0], sizes = [72, 128], strides = [1, 1]} : vector<288x128xf32> to vector<72x128xf32>
    %151 = arith.maximumf %149, %150 : vector<72x128xf32>
    %152 = arith.maximumf %148, %151 : vector<72x128xf32>
    %153 = arith.addf %152, %2 : vector<72x128xf32>
    %cst_67 = arith.constant 0.000000e+00 : f32
    %154 = vector.broadcast %cst_67 : f32 to vector<72x128xf32>
    %155 = arith.maximumf %153, %154 : vector<72x128xf32>
    %c720 = arith.constant 720 : index
    %c0_68 = arith.constant 0 : index
    %156 = vector.load %arg13[%c720, %c0_68] : memref<864x128xf32, #tpu.memory_space<vmem>>, vector<72x128xf32>
    tpu.vector_store %arg13[%c720, %c0_68], %155 {strides = array<i32>} : memref<864x128xf32, #tpu.memory_space<vmem>>, vector<72x128xf32>,
    %c0_69 = arith.constant 0 : index
    %c0_70 = arith.constant 0 : index
    %157 = vector.load %arg2[%c0_69, %c0_70] : memref<288x192xbf16, #tpu.memory_space<vmem>>, vector<288x192xbf16>
    %c704 = arith.constant 704 : index
    %c0_71 = arith.constant 0 : index
    %158 = vector.load %arg1[%c704, %c0_71] : memref<896x128xbf16, #tpu.memory_space<vmem>>, vector<192x128xbf16>
    %cst_72 = arith.constant dense<0.000000e+00> : vector<288x128xf32>
    %159 = tpu.matmul %157, %158, %cst_72 {dimension_numbers = #tpu.dot_dimension_numbers<[1], [0], [0], [1], [0, 0, 1, 1], [], []>} : vector<288x192xbf16>, vector<192x128xbf16>, vector<288x128xf32> -> vector<288x128xf32>
    %160 = vector.extract_strided_slice %159 {offsets = [0, 0], sizes = [72, 128], strides = [1, 1]} : vector<288x128xf32> to vector<72x128xf32>
    %161 = vector.extract_strided_slice %159 {offsets = [72, 0], sizes = [72, 128], strides = [1, 1]} : vector<288x128xf32> to vector<72x128xf32>
    %162 = arith.maximumf %160, %161 : vector<72x128xf32>
    %163 = vector.extract_strided_slice %159 {offsets = [144, 0], sizes = [72, 128], strides = [1, 1]} : vector<288x128xf32> to vector<72x128xf32>
    %164 = vector.extract_strided_slice %159 {offsets = [216, 0], sizes = [72, 128], strides = [1, 1]} : vector<288x128xf32> to vector<72x128xf32>
    %165 = arith.maximumf %163, %164 : vector<72x128xf32>
    %166 = arith.maximumf %162, %165 : vector<72x128xf32>
    %167 = arith.addf %166, %2 : vector<72x128xf32>
    %cst_73 = arith.constant 0.000000e+00 : f32
    %168 = vector.broadcast %cst_73 : f32 to vector<72x128xf32>
    %169 = arith.maximumf %167, %168 : vector<72x128xf32>
    %c792 = arith.constant 792 : index
    %c0_74 = arith.constant 0 : index
    %170 = vector.load %arg13[%c792, %c0_74] : memref<864x128xf32, #tpu.memory_space<vmem>>, vector<72x128xf32>
    tpu.vector_store %arg13[%c792, %c0_74], %169 {strides = array<i32>} : memref<864x128xf32, #tpu.memory_space<vmem>>, vector<72x128xf32>,
    %c0_75 = arith.constant 0 : index
    %c0_76 = arith.constant 0 : index
    %171 = vector.load %arg5[%c0_75, %c0_76] : memref<64x1xf32, #tpu.memory_space<vmem>>, vector<64x1xf32>
    %172 = vector.shape_cast %171 : vector<64x1xf32> to vector<64x1xf32>
    %173 = vector.broadcast %172 : vector<64x1xf32> to vector<64x128xf32>
    %c0_77 = arith.constant 0 : index
    %c0_78 = arith.constant 0 : index
    %174 = vector.load %arg13[%c0_77, %c0_78] : memref<864x128xf32, #tpu.memory_space<vmem>>, vector<360x128xf32>
    %175 = arith.truncf %174 : vector<360x128xf32> to vector<360x128xbf16>
    %c72_79 = arith.constant 72 : index
    %c0_80 = arith.constant 0 : index
    %176 = vector.load %arg13[%c72_79, %c0_80] : memref<864x128xf32, #tpu.memory_space<vmem>>, vector<360x128xf32>
    %177 = arith.truncf %176 : vector<360x128xf32> to vector<360x128xbf16>
    %c0_81 = arith.constant 0 : index
    %c0_82 = arith.constant 0 : index
    %178 = vector.load %arg4[%c0_81, %c0_82] : memref<128x360xbf16, #tpu.memory_space<vmem>>, vector<128x360xbf16>
    %cst_83 = arith.constant dense<0.000000e+00> : vector<128x128xf32>
    %179 = tpu.matmul %178, %175, %cst_83 {dimension_numbers = #tpu.dot_dimension_numbers<[1], [0], [0], [1], [0, 0, 1, 1], [], []>} : vector<128x360xbf16>, vector<360x128xbf16>, vector<128x128xf32> -> vector<128x128xf32>
    %c0_84 = arith.constant 0 : index
    %c0_85 = arith.constant 0 : index
    %180 = vector.load %arg4[%c0_84, %c0_85] : memref<128x360xbf16, #tpu.memory_space<vmem>>, vector<128x360xbf16>
    %cst_86 = arith.constant dense<0.000000e+00> : vector<128x128xf32>
    %181 = tpu.matmul %180, %177, %cst_86 {dimension_numbers = #tpu.dot_dimension_numbers<[1], [0], [0], [1], [0, 0, 1, 1], [], []>} : vector<128x360xbf16>, vector<360x128xbf16>, vector<128x128xf32> -> vector<128x128xf32>
    %182 = vector.extract_strided_slice %179 {offsets = [0, 0], sizes = [64, 128], strides = [1, 1]} : vector<128x128xf32> to vector<64x128xf32>
    %183 = vector.extract_strided_slice %179 {offsets = [64, 0], sizes = [64, 128], strides = [1, 1]} : vector<128x128xf32> to vector<64x128xf32>
    %184 = arith.maximumf %182, %183 : vector<64x128xf32>
    %185 = vector.extract_strided_slice %181 {offsets = [0, 0], sizes = [64, 128], strides = [1, 1]} : vector<128x128xf32> to vector<64x128xf32>
    %186 = vector.extract_strided_slice %181 {offsets = [64, 0], sizes = [64, 128], strides = [1, 1]} : vector<128x128xf32> to vector<64x128xf32>
    %187 = arith.maximumf %185, %186 : vector<64x128xf32>
    %188 = arith.maximumf %184, %187 : vector<64x128xf32>
    %189 = arith.addf %188, %173 : vector<64x128xf32>
    %cst_87 = arith.constant 0.000000e+00 : f32
    %190 = vector.broadcast %cst_87 : f32 to vector<64x128xf32>
    %191 = arith.maximumf %189, %190 : vector<64x128xf32>
    %192 = arith.truncf %191 : vector<64x128xf32> to vector<64x128xbf16>
    %c0_88 = arith.constant 0 : index
    %c0_89 = arith.constant 0 : index
    %193 = vector.load %arg14[%c0_88, %c0_89] : memref<256x128xbf16, #tpu.memory_space<vmem>>, vector<64x128xbf16>
    tpu.vector_store %arg14[%c0_88, %c0_89], %192 {strides = array<i32>} : memref<256x128xbf16, #tpu.memory_space<vmem>>, vector<64x128xbf16>,
    %c144_90 = arith.constant 144 : index
    %c0_91 = arith.constant 0 : index
    %194 = vector.load %arg13[%c144_90, %c0_91] : memref<864x128xf32, #tpu.memory_space<vmem>>, vector<360x128xf32>
    %195 = arith.truncf %194 : vector<360x128xf32> to vector<360x128xbf16>
    %c216_92 = arith.constant 216 : index
    %c0_93 = arith.constant 0 : index
    %196 = vector.load %arg13[%c216_92, %c0_93] : memref<864x128xf32, #tpu.memory_space<vmem>>, vector<360x128xf32>
    %197 = arith.truncf %196 : vector<360x128xf32> to vector<360x128xbf16>
    %c0_94 = arith.constant 0 : index
    %c0_95 = arith.constant 0 : index
    %198 = vector.load %arg4[%c0_94, %c0_95] : memref<128x360xbf16, #tpu.memory_space<vmem>>, vector<128x360xbf16>
    %cst_96 = arith.constant dense<0.000000e+00> : vector<128x128xf32>
    %199 = tpu.matmul %198, %195, %cst_96 {dimension_numbers = #tpu.dot_dimension_numbers<[1], [0], [0], [1], [0, 0, 1, 1], [], []>} : vector<128x360xbf16>, vector<360x128xbf16>, vector<128x128xf32> -> vector<128x128xf32>
    %c0_97 = arith.constant 0 : index
    %c0_98 = arith.constant 0 : index
    %200 = vector.load %arg4[%c0_97, %c0_98] : memref<128x360xbf16, #tpu.memory_space<vmem>>, vector<128x360xbf16>
    %cst_99 = arith.constant dense<0.000000e+00> : vector<128x128xf32>
    %201 = tpu.matmul %200, %197, %cst_99 {dimension_numbers = #tpu.dot_dimension_numbers<[1], [0], [0], [1], [0, 0, 1, 1], [], []>} : vector<128x360xbf16>, vector<360x128xbf16>, vector<128x128xf32> -> vector<128x128xf32>
    %202 = vector.extract_strided_slice %199 {offsets = [0, 0], sizes = [64, 128], strides = [1, 1]} : vector<128x128xf32> to vector<64x128xf32>
    %203 = vector.extract_strided_slice %199 {offsets = [64, 0], sizes = [64, 128], strides = [1, 1]} : vector<128x128xf32> to vector<64x128xf32>
    %204 = arith.maximumf %202, %203 : vector<64x128xf32>
    %205 = vector.extract_strided_slice %201 {offsets = [0, 0], sizes = [64, 128], strides = [1, 1]} : vector<128x128xf32> to vector<64x128xf32>
    %206 = vector.extract_strided_slice %201 {offsets = [64, 0], sizes = [64, 128], strides = [1, 1]} : vector<128x128xf32> to vector<64x128xf32>
    %207 = arith.maximumf %205, %206 : vector<64x128xf32>
    %208 = arith.maximumf %204, %207 : vector<64x128xf32>
    %209 = arith.addf %208, %173 : vector<64x128xf32>
    %cst_100 = arith.constant 0.000000e+00 : f32
    %210 = vector.broadcast %cst_100 : f32 to vector<64x128xf32>
    %211 = arith.maximumf %209, %210 : vector<64x128xf32>
    %212 = arith.truncf %211 : vector<64x128xf32> to vector<64x128xbf16>
    %c64_101 = arith.constant 64 : index
    %c0_102 = arith.constant 0 : index
    %213 = vector.load %arg14[%c64_101, %c0_102] : memref<256x128xbf16, #tpu.memory_space<vmem>>, vector<64x128xbf16>
    tpu.vector_store %arg14[%c64_101, %c0_102], %212 {strides = array<i32>} : memref<256x128xbf16, #tpu.memory_space<vmem>>, vector<64x128xbf16>,
    %c288_103 = arith.constant 288 : index
    %c0_104 = arith.constant 0 : index
    %214 = vector.load %arg13[%c288_103, %c0_104] : memref<864x128xf32, #tpu.memory_space<vmem>>, vector<360x128xf32>
    %215 = arith.truncf %214 : vector<360x128xf32> to vector<360x128xbf16>
    %c360_105 = arith.constant 360 : index
    %c0_106 = arith.constant 0 : index
    %216 = vector.load %arg13[%c360_105, %c0_106] : memref<864x128xf32, #tpu.memory_space<vmem>>, vector<360x128xf32>
    %217 = arith.truncf %216 : vector<360x128xf32> to vector<360x128xbf16>
    %c0_107 = arith.constant 0 : index
    %c0_108 = arith.constant 0 : index
    %218 = vector.load %arg4[%c0_107, %c0_108] : memref<128x360xbf16, #tpu.memory_space<vmem>>, vector<128x360xbf16>
    %cst_109 = arith.constant dense<0.000000e+00> : vector<128x128xf32>
    %219 = tpu.matmul %218, %215, %cst_109 {dimension_numbers = #tpu.dot_dimension_numbers<[1], [0], [0], [1], [0, 0, 1, 1], [], []>} : vector<128x360xbf16>, vector<360x128xbf16>, vector<128x128xf32> -> vector<128x128xf32>
    %c0_110 = arith.constant 0 : index
    %c0_111 = arith.constant 0 : index
    %220 = vector.load %arg4[%c0_110, %c0_111] : memref<128x360xbf16, #tpu.memory_space<vmem>>, vector<128x360xbf16>
    %cst_112 = arith.constant dense<0.000000e+00> : vector<128x128xf32>
    %221 = tpu.matmul %220, %217, %cst_112 {dimension_numbers = #tpu.dot_dimension_numbers<[1], [0], [0], [1], [0, 0, 1, 1], [], []>} : vector<128x360xbf16>, vector<360x128xbf16>, vector<128x128xf32> -> vector<128x128xf32>
    %222 = vector.extract_strided_slice %219 {offsets = [0, 0], sizes = [64, 128], strides = [1, 1]} : vector<128x128xf32> to vector<64x128xf32>
    %223 = vector.extract_strided_slice %219 {offsets = [64, 0], sizes = [64, 128], strides = [1, 1]} : vector<128x128xf32> to vector<64x128xf32>
    %224 = arith.maximumf %222, %223 : vector<64x128xf32>
    %225 = vector.extract_strided_slice %221 {offsets = [0, 0], sizes = [64, 128], strides = [1, 1]} : vector<128x128xf32> to vector<64x128xf32>
    %226 = vector.extract_strided_slice %221 {offsets = [64, 0], sizes = [64, 128], strides = [1, 1]} : vector<128x128xf32> to vector<64x128xf32>
    %227 = arith.maximumf %225, %226 : vector<64x128xf32>
    %228 = arith.maximumf %224, %227 : vector<64x128xf32>
    %229 = arith.addf %228, %173 : vector<64x128xf32>
    %cst_113 = arith.constant 0.000000e+00 : f32
    %230 = vector.broadcast %cst_113 : f32 to vector<64x128xf32>
    %231 = arith.maximumf %229, %230 : vector<64x128xf32>
    %232 = arith.truncf %231 : vector<64x128xf32> to vector<64x128xbf16>
    %c128_114 = arith.constant 128 : index
    %c0_115 = arith.constant 0 : index
    %233 = vector.load %arg14[%c128_114, %c0_115] : memref<256x128xbf16, #tpu.memory_space<vmem>>, vector<64x128xbf16>
    tpu.vector_store %arg14[%c128_114, %c0_115], %232 {strides = array<i32>} : memref<256x128xbf16, #tpu.memory_space<vmem>>, vector<64x128xbf16>,
    %c432_116 = arith.constant 432 : index
    %c0_117 = arith.constant 0 : index
    %234 = vector.load %arg13[%c432_116, %c0_117] : memref<864x128xf32, #tpu.memory_space<vmem>>, vector<360x128xf32>
    %235 = arith.truncf %234 : vector<360x128xf32> to vector<360x128xbf16>
    %c504_118 = arith.constant 504 : index
    %c0_119 = arith.constant 0 : index
    %236 = vector.load %arg13[%c504_118, %c0_119] : memref<864x128xf32, #tpu.memory_space<vmem>>, vector<360x128xf32>
    %237 = arith.truncf %236 : vector<360x128xf32> to vector<360x128xbf16>
    %c0_120 = arith.constant 0 : index
    %c0_121 = arith.constant 0 : index
    %238 = vector.load %arg4[%c0_120, %c0_121] : memref<128x360xbf16, #tpu.memory_space<vmem>>, vector<128x360xbf16>
    %cst_122 = arith.constant dense<0.000000e+00> : vector<128x128xf32>
    %239 = tpu.matmul %238, %235, %cst_122 {dimension_numbers = #tpu.dot_dimension_numbers<[1], [0], [0], [1], [0, 0, 1, 1], [], []>} : vector<128x360xbf16>, vector<360x128xbf16>, vector<128x128xf32> -> vector<128x128xf32>
    %c0_123 = arith.constant 0 : index
    %c0_124 = arith.constant 0 : index
    %240 = vector.load %arg4[%c0_123, %c0_124] : memref<128x360xbf16, #tpu.memory_space<vmem>>, vector<128x360xbf16>
    %cst_125 = arith.constant dense<0.000000e+00> : vector<128x128xf32>
    %241 = tpu.matmul %240, %237, %cst_125 {dimension_numbers = #tpu.dot_dimension_numbers<[1], [0], [0], [1], [0, 0, 1, 1], [], []>} : vector<128x360xbf16>, vector<360x128xbf16>, vector<128x128xf32> -> vector<128x128xf32>
    %242 = vector.extract_strided_slice %239 {offsets = [0, 0], sizes = [64, 128], strides = [1, 1]} : vector<128x128xf32> to vector<64x128xf32>
    %243 = vector.extract_strided_slice %239 {offsets = [64, 0], sizes = [64, 128], strides = [1, 1]} : vector<128x128xf32> to vector<64x128xf32>
    %244 = arith.maximumf %242, %243 : vector<64x128xf32>
    %245 = vector.extract_strided_slice %241 {offsets = [0, 0], sizes = [64, 128], strides = [1, 1]} : vector<128x128xf32> to vector<64x128xf32>
    %246 = vector.extract_strided_slice %241 {offsets = [64, 0], sizes = [64, 128], strides = [1, 1]} : vector<128x128xf32> to vector<64x128xf32>
    %247 = arith.maximumf %245, %246 : vector<64x128xf32>
    %248 = arith.maximumf %244, %247 : vector<64x128xf32>
    %249 = arith.addf %248, %173 : vector<64x128xf32>
    %cst_126 = arith.constant 0.000000e+00 : f32
    %250 = vector.broadcast %cst_126 : f32 to vector<64x128xf32>
    %251 = arith.maximumf %249, %250 : vector<64x128xf32>
    %252 = arith.truncf %251 : vector<64x128xf32> to vector<64x128xbf16>
    %c192_127 = arith.constant 192 : index
    %c0_128 = arith.constant 0 : index
    %253 = vector.load %arg14[%c192_127, %c0_128] : memref<256x128xbf16, #tpu.memory_space<vmem>>, vector<64x128xbf16>
    tpu.vector_store %arg14[%c192_127, %c0_128], %252 {strides = array<i32>} : memref<256x128xbf16, #tpu.memory_space<vmem>>, vector<64x128xbf16>,
    %c0_129 = arith.constant 0 : index
    %c0_130 = arith.constant 0 : index
    %254 = vector.load %arg6[%c0_129, %c0_130] : memref<120x256xbf16, #tpu.memory_space<vmem>>, vector<120x256xbf16>
    %c0_131 = arith.constant 0 : index
    %c0_132 = arith.constant 0 : index
    %255 = vector.load %arg14[%c0_131, %c0_132] : memref<256x128xbf16, #tpu.memory_space<vmem>>, vector<256x128xbf16>
    %cst_133 = arith.constant dense<0.000000e+00> : vector<120x128xf32>
    %256 = tpu.matmul %254, %255, %cst_133 {dimension_numbers = #tpu.dot_dimension_numbers<[1], [0], [0], [1], [0, 0, 1, 1], [], []>} : vector<120x256xbf16>, vector<256x128xbf16>, vector<120x128xf32> -> vector<120x128xf32>
    %c0_134 = arith.constant 0 : index
    %c0_135 = arith.constant 0 : index
    %257 = vector.load %arg7[%c0_134, %c0_135] : memref<120x1xf32, #tpu.memory_space<vmem>>, vector<120x1xf32>
    %258 = vector.broadcast %257 : vector<120x1xf32> to vector<120x128xf32>
    %259 = arith.addf %256, %258 : vector<120x128xf32>
    %cst_136 = arith.constant 0.000000e+00 : f32
    %260 = vector.broadcast %cst_136 : f32 to vector<120x128xf32>
    %261 = arith.maximumf %259, %260 : vector<120x128xf32>
    %262 = arith.truncf %261 : vector<120x128xf32> to vector<120x128xbf16>
    %c0_137 = arith.constant 0 : index
    %c0_138 = arith.constant 0 : index
    %263 = vector.load %arg8[%c0_137, %c0_138] : memref<84x120xbf16, #tpu.memory_space<vmem>>, vector<84x120xbf16>
    %cst_139 = arith.constant dense<0.000000e+00> : vector<84x128xf32>
    %264 = tpu.matmul %263, %262, %cst_139 {dimension_numbers = #tpu.dot_dimension_numbers<[1], [0], [0], [1], [0, 0, 1, 1], [], []>} : vector<84x120xbf16>, vector<120x128xbf16>, vector<84x128xf32> -> vector<84x128xf32>
    %c0_140 = arith.constant 0 : index
    %c0_141 = arith.constant 0 : index
    %265 = vector.load %arg9[%c0_140, %c0_141] : memref<84x1xf32, #tpu.memory_space<vmem>>, vector<84x1xf32>
    %266 = vector.broadcast %265 : vector<84x1xf32> to vector<84x128xf32>
    %267 = arith.addf %264, %266 : vector<84x128xf32>
    %cst_142 = arith.constant 0.000000e+00 : f32
    %268 = vector.broadcast %cst_142 : f32 to vector<84x128xf32>
    %269 = arith.maximumf %267, %268 : vector<84x128xf32>
    %270 = arith.truncf %269 : vector<84x128xf32> to vector<84x128xbf16>
    %c0_143 = arith.constant 0 : index
    %c0_144 = arith.constant 0 : index
    %271 = vector.load %arg10[%c0_143, %c0_144] : memref<10x84xbf16, #tpu.memory_space<vmem>>, vector<10x84xbf16>
    %cst_145 = arith.constant dense<0.000000e+00> : vector<10x128xf32>
    %272 = tpu.matmul %271, %270, %cst_145 {dimension_numbers = #tpu.dot_dimension_numbers<[1], [0], [0], [1], [0, 0, 1, 1], [], []>} : vector<10x84xbf16>, vector<84x128xbf16>, vector<10x128xf32> -> vector<10x128xf32>
    %c0_146 = arith.constant 0 : index
    %c0_147 = arith.constant 0 : index
    %273 = vector.load %arg11[%c0_146, %c0_147] : memref<10x1xf32, #tpu.memory_space<vmem>>, vector<10x1xf32>
    %274 = vector.broadcast %273 : vector<10x1xf32> to vector<10x128xf32>
    %275 = arith.addf %272, %274 : vector<10x128xf32>
    %c0_148 = arith.constant 0 : index
    %c0_149 = arith.constant 0 : index
    %276 = vector.load %arg12[%c0_148, %c0_149] : memref<10x128xf32, #tpu.memory_space<vmem>>, vector<10x128xf32>
    tpu.vector_store %arg12[%c0_148, %c0_149], %275 {strides = array<i32>} : memref<10x128xf32, #tpu.memory_space<vmem>>, vector<10x128xf32>,
    return
  }
  func.func @transform_0(%arg0: i32) -> (i32, i32) {
    %c0_i32 = arith.constant 0 : i32
    %c0_i32_0 = arith.constant 0 : i32
    return %c0_i32, %arg0 : i32, i32
  }
  func.func @transform_1(%arg0: i32) -> (i32, i32) {
    %c0_i32 = arith.constant 0 : i32
    %c0_i32_0 = arith.constant 0 : i32
    %c0_i32_1 = arith.constant 0 : i32
    return %c0_i32, %c0_i32_0 : i32, i32
  }
  func.func @transform_2(%arg0: i32) -> (i32, i32) {
    %c0_i32 = arith.constant 0 : i32
    %c0_i32_0 = arith.constant 0 : i32
    %c0_i32_1 = arith.constant 0 : i32
    return %c0_i32, %c0_i32_0 : i32, i32
  }
  func.func @transform_3(%arg0: i32) -> (i32, i32) {
    %c0_i32 = arith.constant 0 : i32
    %c0_i32_0 = arith.constant 0 : i32
    %c0_i32_1 = arith.constant 0 : i32
    return %c0_i32, %c0_i32_0 : i32, i32
  }
  func.func @transform_4(%arg0: i32) -> (i32, i32) {
    %c0_i32 = arith.constant 0 : i32
    %c0_i32_0 = arith.constant 0 : i32
    %c0_i32_1 = arith.constant 0 : i32
    return %c0_i32, %c0_i32_0 : i32, i32
  }
  func.func @transform_5(%arg0: i32) -> (i32, i32) {
    %c0_i32 = arith.constant 0 : i32
    %c0_i32_0 = arith.constant 0 : i32
    %c0_i32_1 = arith.constant 0 : i32
    return %c0_i32, %c0_i32_0 : i32, i32
  }
  func.func @transform_6(%arg0: i32) -> (i32, i32) {
    %c0_i32 = arith.constant 0 : i32
    %c0_i32_0 = arith.constant 0 : i32
    %c0_i32_1 = arith.constant 0 : i32
    return %c0_i32, %c0_i32_0 : i32, i32
  }
  func.func @transform_7(%arg0: i32) -> (i32, i32) {
    %c0_i32 = arith.constant 0 : i32
    %c0_i32_0 = arith.constant 0 : i32
    %c0_i32_1 = arith.constant 0 : i32
    return %c0_i32, %c0_i32_0 : i32, i32
  }
  func.func @transform_8(%arg0: i32) -> (i32, i32) {
    %c0_i32 = arith.constant 0 : i32
    %c0_i32_0 = arith.constant 0 : i32
    %c0_i32_1 = arith.constant 0 : i32
    return %c0_i32, %c0_i32_0 : i32, i32
  }
  func.func @transform_9(%arg0: i32) -> (i32, i32) {
    %c0_i32 = arith.constant 0 : i32
    %c0_i32_0 = arith.constant 0 : i32
    %c0_i32_1 = arith.constant 0 : i32
    return %c0_i32, %c0_i32_0 : i32, i32
  }
  func.func @transform_10(%arg0: i32) -> (i32, i32) {
    %c0_i32 = arith.constant 0 : i32
    %c0_i32_0 = arith.constant 0 : i32
    %c0_i32_1 = arith.constant 0 : i32
    return %c0_i32, %c0_i32_0 : i32, i32
  }
  func.func @transform_11(%arg0: i32) -> (i32, i32) {
    %c0_i32 = arith.constant 0 : i32
    %c0_i32_0 = arith.constant 0 : i32
    return %c0_i32, %arg0 : i32, i32
  }
}

</mosaic_0001>

<bundles_post_ra>
// kernel: lenet_forward.1
= control target key start
LH: loop header
LB: loop body
LE: loop exit
PB: predicated region body
PF: predicated region fallthrough
CT: control target
= control target key end

     0   :  { %s14208_s17 = smov 0   ;;  %s14210_s18 = smov 0   ;;  %s18999_s0 = inlined_call_operand.vmem [shape: bf16[896,256], index: 0, kind: input, shape index: {}]   ;;  %s19000_s1 = inlined_call_operand.vmem [shape: bf16[288,192], index: 1, kind: input, shape index: {}]   ;;  %s19001_s2 = inlined_call_operand.vmem [shape: f32[72,1], index: 2, kind: input, shape index: {}]   ;;  %s19002_s3 = inlined_call_operand.vmem [shape: bf16[128,360], index: 3, kind: input, shape index: {}]   ;;  %s19003_s4 = inlined_call_operand.vmem [shape: f32[64,1], index: 4, kind: input, shape index: {}]   ;;  %s19004_s5 = inlined_call_operand.vmem [shape: bf16[120,256], index: 5, kind: input, shape index: {}]   ;;  %s19005_s6 = inlined_call_operand.vmem [shape: f32[120,1], index: 6, kind: input, shape index: {}]   ;;  %s19006_s7 = inlined_call_operand.vmem [shape: bf16[84,120], index: 7, kind: input, shape index: {}]   ;;  %s19007_s8 = inlined_call_operand.vmem [shape: f32[84,1], index: 8, kind: input, shape index: {}]   ;;  %s19008_s9 = inlined_call_operand.vmem [shape: bf16[10,84], index: 9, kind: input, shape index: {}]   ;;  %s19009_s10 = inlined_call_operand.vmem [shape: f32[10,1], index: 10, kind: input, shape index: {}]   ;;  %s19010_s11 = inlined_call_operand.vmem [shape: f32[10,256], index: 11, kind: output, shape index: {}]  }
   0x1   :  { %s14212_s19 = smov 0  }
   0x2 LB: > { %s11540_s20 = sadd.s32 4294967295, %s14143_s19   ;;  %s14225_s21 = sadd.s32 1, %s14143_s19   ;;  %s14143_s19 = sphi %s14212_s19, %s19836_s19   ;;  %s14139_s18 = sphi %s14210_s18, %s19835_s18   ;;  %s14135_s17 = sphi %s14208_s17, %s19834_s17  }
   0x3   : > { %s25_s22 = ssub.s32 %s14143_s19, %s14225_s21  ;;  %s28_s23 = sadd.s32 1, %s14139_s18 }
   0x4   : > { %p26_p0 = scmp.eq.s32.totalorder %s25_s22, 0  ;;  %p35_p1 = scmp.ne.s32.totalorder %s14139_s18, %s14135_s17 }
   0x5   : > { %p36_p2 = scmp.eq.s32.totalorder %s14143_s19, 0  ;;  %p275_p3 = scmp.eq.s32.totalorder %s11540_s20, 1 }
   0x6   : > { %s14236_s24 = scalar_select %p26_p0, %s14139_s18, %s28_s23  }
   0x7   : > { %p37_p4 = por %p36_p2, %p35_p1  ;;  %p14238_p5 = por %p275_p3, %p35_p1 }
   0x8   : > { %p11543_p6 = scmp.ge.s32.totalorder %s14143_s19, 2 }
   0xa   : > { %327 = sbr.rel (%p11543_p6) target bundleno = 96 (0x60), region = 56 }
  0x11   : > { %330 = sbr.rel (!%p37_p4) target bundleno = 96 (0x60), region = 60  ;;  %s332_s26 = sand.u32 (%p37_p4), 1, %s14139_s18  }
  0x12   : > { %s11544_s27 = sshll.u32 (%p37_p4), %s14143_s19, 2  ;;  %s13543_s28 = smul.u32 (%p37_p4), 448, %s332_s26 }
  0x13   : > { %s14248_s12 = scalar_lea.vmem (%p37_p4), %s18999_s0, %s11544_s27 }
  0x14   : > { %v352_v0 = vld [vmem:[%s14248_s12] sm:$0xf] (%p37_p4)  ;;  %v354_v1 = vld [vmem:[%s14248_s12 + $0x8] sm:$0xf] (%p37_p4)  ;;  %v356_v2 = vld [vmem:[%s14248_s12 + $0x10] sm:$0xf] (%p37_p4) }
  0x15   : > { %v358_v3 = vld [vmem:[%s14248_s12 + $0x18] sm:$0xf] (%p37_p4)  ;;  %v360_v4 = vld [vmem:[%s14248_s12 + $0x20] sm:$0xf] (%p37_p4)  ;;  %s14255_s13 = scalar_lea.vmem (%p37_p4), [#allocation4], %s13543_s28 }
  0x16   : > { %353 = vst [vmem:[%s14255_s13] sm:$0xf] (%p37_p4), %v352_v0  ;;  %355 = vst [vmem:[%s14255_s13 + $0x4] sm:$0xf] (%p37_p4), %v354_v1  ;;  %v362_v5 = vld [vmem:[%s14248_s12 + $0x28] sm:$0xf] (%p37_p4) }
  0x17   : > { %357 = vst [vmem:[%s14255_s13 + $0x8] sm:$0xf] (%p37_p4), %v356_v2  ;;  %359 = vst [vmem:[%s14255_s13 + $0xc] sm:$0xf] (%p37_p4), %v358_v3  ;;  %v364_v6 = vld [vmem:[%s14248_s12 + $0x30] sm:$0xf] (%p37_p4) }
  0x18   : > { %361 = vst [vmem:[%s14255_s13 + $0x10] sm:$0xf] %v360_v4  ;;  %v366_v7 = vld [vmem:[%s14248_s12 + $0x38] sm:$0xf]  ;;  %363 = vst [vmem:[%s14255_s13 + $0x14] sm:$0xf] %v362_v5 }
  0x19   : > { %365 = vst [vmem:[%s14255_s13 + $0x18] sm:$0xf] %v364_v6  ;;  %367 = vst [vmem:[%s14255_s13 + $0x1c] sm:$0xf] %v366_v7  ;;  %v368_v8 = vld [vmem:[%s14248_s12 + $0x40] sm:$0xf] }
  0x1a   : > { %v370_v9 = vld [vmem:[%s14248_s12 + $0x48] sm:$0xf]  ;;  %v372_v10 = vld [vmem:[%s14248_s12 + $0x50] sm:$0xf]  ;;  %369 = vst [vmem:[%s14255_s13 + $0x20] sm:$0xf] %v368_v8 }
  0x1b   : > { %371 = vst [vmem:[%s14255_s13 + $0x24] sm:$0xf] %v370_v9  ;;  %373 = vst [vmem:[%s14255_s13 + $0x28] sm:$0xf] %v372_v10  ;;  %v374_v11 = vld [vmem:[%s14248_s12 + $0x58] sm:$0xf] }
  0x1c   : > { %v376_v12 = vld [vmem:[%s14248_s12 + $0x60] sm:$0xf]  ;;  %v378_v13 = vld [vmem:[%s14248_s12 + $0x68] sm:$0xf]  ;;  %375 = vst [vmem:[%s14255_s13 + $0x2c] sm:$0xf] %v374_v11 }
  0x1d   : > { %377 = vst [vmem:[%s14255_s13 + $0x30] sm:$0xf] %v376_v12  ;;  %379 = vst [vmem:[%s14255_s13 + $0x34] sm:$0xf] %v378_v13  ;;  %v380_v14 = vld [vmem:[%s14248_s12 + $0x70] sm:$0xf] }
  0x1e   : > { %v382_v15 = vld [vmem:[%s14248_s12 + $0x78] sm:$0xf]  ;;  %v384_v16 = vld [vmem:[%s14248_s12 + $0x80] sm:$0xf]  ;;  %381 = vst [vmem:[%s14255_s13 + $0x38] sm:$0xf] %v380_v14 }
  0x1f   : > { %383 = vst [vmem:[%s14255_s13 + $0x3c] sm:$0xf] %v382_v15  ;;  %385 = vst [vmem:[%s14255_s13 + $0x40] sm:$0xf] %v384_v16  ;;  %v386_v17 = vld [vmem:[%s14248_s12 + $0x88] sm:$0xf] }
  0x20   : > { %v388_v18 = vld [vmem:[%s14248_s12 + $0x90] sm:$0xf]  ;;  %v390_v19 = vld [vmem:[%s14248_s12 + $0x98] sm:$0xf]  ;;  %387 = vst [vmem:[%s14255_s13 + $0x44] sm:$0xf] %v386_v17 }
  0x21   : > { %389 = vst [vmem:[%s14255_s13 + $0x48] sm:$0xf] %v388_v18  ;;  %391 = vst [vmem:[%s14255_s13 + $0x4c] sm:$0xf] %v390_v19  ;;  %v392_v20 = vld [vmem:[%s14248_s12 + $0xa0] sm:$0xf] }
  0x22   : > { %v394_v21 = vld [vmem:[%s14248_s12 + $0xa8] sm:$0xf]  ;;  %v396_v22 = vld [vmem:[%s14248_s12 + $0xb0] sm:$0xf]  ;;  %393 = vst [vmem:[%s14255_s13 + $0x50] sm:$0xf] %v392_v20 }
  0x23   : > { %395 = vst [vmem:[%s14255_s13 + $0x54] sm:$0xf] %v394_v21  ;;  %397 = vst [vmem:[%s14255_s13 + $0x58] sm:$0xf] %v396_v22  ;;  %v398_v23 = vld [vmem:[%s14248_s12 + $0xb8] sm:$0xf] }
  0x24   : > { %v400_v24 = vld [vmem:[%s14248_s12 + $0xc0] sm:$0xf]  ;;  %v402_v25 = vld [vmem:[%s14248_s12 + $0xc8] sm:$0xf]  ;;  %399 = vst [vmem:[%s14255_s13 + $0x5c] sm:$0xf] %v398_v23 }
  0x25   : > { %401 = vst [vmem:[%s14255_s13 + $0x60] sm:$0xf] %v400_v24  ;;  %403 = vst [vmem:[%s14255_s13 + $0x64] sm:$0xf] %v402_v25  ;;  %v404_v26 = vld [vmem:[%s14248_s12 + $0xd0] sm:$0xf] }
  0x26   : > { %v406_v27 = vld [vmem:[%s14248_s12 + $0xd8] sm:$0xf]  ;;  %v408_v28 = vld [vmem:[%s14248_s12 + $0xe0] sm:$0xf]  ;;  %405 = vst [vmem:[%s14255_s13 + $0x68] sm:$0xf] %v404_v26 }
  0x27   : > { %407 = vst [vmem:[%s14255_s13 + $0x6c] sm:$0xf] %v406_v27  ;;  %409 = vst [vmem:[%s14255_s13 + $0x70] sm:$0xf] %v408_v28  ;;  %v410_v29 = vld [vmem:[%s14248_s12 + $0xe8] sm:$0xf] }
  0x28   : > { %v412_v30 = vld [vmem:[%s14248_s12 + $0xf0] sm:$0xf]  ;;  %v414_v31 = vld [vmem:[%s14248_s12 + $0xf8] sm:$0xf]  ;;  %411 = vst [vmem:[%s14255_s13 + $0x74] sm:$0xf] %v410_v29 }
  0x29   : > { %413 = vst [vmem:[%s14255_s13 + $0x78] sm:$0xf] %v412_v30  ;;  %415 = vst [vmem:[%s14255_s13 + $0x7c] sm:$0xf] %v414_v31  ;;  %v416_v32 = vld [vmem:[%s14248_s12 + $0x100] sm:$0xf] }
  0x2a   : > { %v418_v33 = vld [vmem:[%s14248_s12 + $0x108] sm:$0xf]  ;;  %v420_v34 = vld [vmem:[%s14248_s12 + $0x110] sm:$0xf]  ;;  %417 = vst [vmem:[%s14255_s13 + $0x80] sm:$0xf] %v416_v32 }
  0x2b   : > { %419 = vst [vmem:[%s14255_s13 + $0x84] sm:$0xf] %v418_v33  ;;  %421 = vst [vmem:[%s14255_s13 + $0x88] sm:$0xf] %v420_v34  ;;  %v422_v35 = vld [vmem:[%s14248_s12 + $0x118] sm:$0xf] }
  0x2c   : > { %v424_v36 = vld [vmem:[%s14248_s12 + $0x120] sm:$0xf]  ;;  %v426_v37 = vld [vmem:[%s14248_s12 + $0x128] sm:$0xf]  ;;  %423 = vst [vmem:[%s14255_s13 + $0x8c] sm:$0xf] %v422_v35 }
  0x2d   : > { %425 = vst [vmem:[%s14255_s13 + $0x90] sm:$0xf] %v424_v36  ;;  %427 = vst [vmem:[%s14255_s13 + $0x94] sm:$0xf] %v426_v37  ;;  %v428_v38 = vld [vmem:[%s14248_s12 + $0x130] sm:$0xf] }
  0x2e   : > { %v430_v39 = vld [vmem:[%s14248_s12 + $0x138] sm:$0xf]  ;;  %v432_v40 = vld [vmem:[%s14248_s12 + $0x140] sm:$0xf]  ;;  %429 = vst [vmem:[%s14255_s13 + $0x98] sm:$0xf] %v428_v38 }
  0x2f   : > { %431 = vst [vmem:[%s14255_s13 + $0x9c] sm:$0xf] %v430_v39  ;;  %433 = vst [vmem:[%s14255_s13 + $0xa0] sm:$0xf] %v432_v40  ;;  %v434_v41 = vld [vmem:[%s14248_s12 + $0x148] sm:$0xf] }
  0x30   : > { %v436_v42 = vld [vmem:[%s14248_s12 + $0x150] sm:$0xf]  ;;  %v438_v43 = vld [vmem:[%s14248_s12 + $0x158] sm:$0xf]  ;;  %435 = vst [vmem:[%s14255_s13 + $0xa4] sm:$0xf] %v434_v41 }
  0x31   : > { %437 = vst [vmem:[%s14255_s13 + $0xa8] sm:$0xf] %v436_v42  ;;  %439 = vst [vmem:[%s14255_s13 + $0xac] sm:$0xf] %v438_v43  ;;  %v440_v44 = vld [vmem:[%s14248_s12 + $0x160] sm:$0xf] }
  0x32   : > { %v442_v45 = vld [vmem:[%s14248_s12 + $0x168] sm:$0xf]  ;;  %v444_v46 = vld [vmem:[%s14248_s12 + $0x170] sm:$0xf]  ;;  %441 = vst [vmem:[%s14255_s13 + $0xb0] sm:$0xf] %v440_v44 }
  0x33   : > { %443 = vst [vmem:[%s14255_s13 + $0xb4] sm:$0xf] %v442_v45  ;;  %445 = vst [vmem:[%s14255_s13 + $0xb8] sm:$0xf] %v444_v46  ;;  %v446_v47 = vld [vmem:[%s14248_s12 + $0x178] sm:$0xf] }
  0x34   : > { %v448_v48 = vld [vmem:[%s14248_s12 + $0x180] sm:$0xf]  ;;  %v450_v49 = vld [vmem:[%s14248_s12 + $0x188] sm:$0xf]  ;;  %447 = vst [vmem:[%s14255_s13 + $0xbc] sm:$0xf] %v446_v47 }
  0x35   : > { %449 = vst [vmem:[%s14255_s13 + $0xc0] sm:$0xf] %v448_v48  ;;  %451 = vst [vmem:[%s14255_s13 + $0xc4] sm:$0xf] %v450_v49  ;;  %v452_v50 = vld [vmem:[%s14248_s12 + $0x190] sm:$0xf] }
  0x36   : > { %v454_v51 = vld [vmem:[%s14248_s12 + $0x198] sm:$0xf]  ;;  %v456_v52 = vld [vmem:[%s14248_s12 + $0x1a0] sm:$0xf]  ;;  %453 = vst [vmem:[%s14255_s13 + $0xc8] sm:$0xf] %v452_v50 }
  0x37   : > { %455 = vst [vmem:[%s14255_s13 + $0xcc] sm:$0xf] %v454_v51  ;;  %457 = vst [vmem:[%s14255_s13 + $0xd0] sm:$0xf] %v456_v52  ;;  %v458_v53 = vld [vmem:[%s14248_s12 + $0x1a8] sm:$0xf] }
  0x38   : > { %v460_v54 = vld [vmem:[%s14248_s12 + $0x1b0] sm:$0xf]  ;;  %v462_v55 = vld [vmem:[%s14248_s12 + $0x1b8] sm:$0xf]  ;;  %459 = vst [vmem:[%s14255_s13 + $0xd4] sm:$0xf] %v458_v53 }
  0x39   : > { %461 = vst [vmem:[%s14255_s13 + $0xd8] sm:$0xf] %v460_v54  ;;  %463 = vst [vmem:[%s14255_s13 + $0xdc] sm:$0xf] %v462_v55  ;;  %v464_v56 = vld [vmem:[%s14248_s12 + $0x1c0] sm:$0xf] }
  0x3a   : > { %v466_v57 = vld [vmem:[%s14248_s12 + $0x1c8] sm:$0xf]  ;;  %v468_v58 = vld [vmem:[%s14248_s12 + $0x1d0] sm:$0xf]  ;;  %465 = vst [vmem:[%s14255_s13 + $0xe0] sm:$0xf] %v464_v56 }
  0x3b   : > { %467 = vst [vmem:[%s14255_s13 + $0xe4] sm:$0xf] %v466_v57  ;;  %469 = vst [vmem:[%s14255_s13 + $0xe8] sm:$0xf] %v468_v58  ;;  %v470_v59 = vld [vmem:[%s14248_s12 + $0x1d8] sm:$0xf] }
  0x3c   : > { %v472_v60 = vld [vmem:[%s14248_s12 + $0x1e0] sm:$0xf]  ;;  %v474_v61 = vld [vmem:[%s14248_s12 + $0x1e8] sm:$0xf]  ;;  %471 = vst [vmem:[%s14255_s13 + $0xec] sm:$0xf] %v470_v59 }
  0x3d   : > { %473 = vst [vmem:[%s14255_s13 + $0xf0] sm:$0xf] %v472_v60  ;;  %475 = vst [vmem:[%s14255_s13 + $0xf4] sm:$0xf] %v474_v61  ;;  %v476_v62 = vld [vmem:[%s14248_s12 + $0x1f0] sm:$0xf] }
  0x3e   : > { %v478_v63 = vld [vmem:[%s14248_s12 + $0x1f8] sm:$0xf]  ;;  %v480_v0 = vld [vmem:[%s14248_s12 + $0x200] sm:$0xf]  ;;  %477 = vst [vmem:[%s14255_s13 + $0xf8] sm:$0xf] %v476_v62 }
  0x3f   : > { %479 = vst [vmem:[%s14255_s13 + $0xfc] sm:$0xf] %v478_v63  ;;  %481 = vst [vmem:[%s14255_s13 + $0x100] sm:$0xf] %v480_v0  ;;  %v482_v1 = vld [vmem:[%s14248_s12 + $0x208] sm:$0xf] }
  0x40   : > { %v484_v2 = vld [vmem:[%s14248_s12 + $0x210] sm:$0xf]  ;;  %v486_v3 = vld [vmem:[%s14248_s12 + $0x218] sm:$0xf]  ;;  %483 = vst [vmem:[%s14255_s13 + $0x104] sm:$0xf] %v482_v1 }
  0x41   : > { %485 = vst [vmem:[%s14255_s13 + $0x108] sm:$0xf] %v484_v2  ;;  %487 = vst [vmem:[%s14255_s13 + $0x10c] sm:$0xf] %v486_v3  ;;  %v488_v4 = vld [vmem:[%s14248_s12 + $0x220] sm:$0xf] }
  0x42   : > { %v490_v5 = vld [vmem:[%s14248_s12 + $0x228] sm:$0xf]  ;;  %v492_v6 = vld [vmem:[%s14248_s12 + $0x230] sm:$0xf]  ;;  %489 = vst [vmem:[%s14255_s13 + $0x110] sm:$0xf] %v488_v4 }
  0x43   : > { %491 = vst [vmem:[%s14255_s13 + $0x114] sm:$0xf] %v490_v5  ;;  %493 = vst [vmem:[%s14255_s13 + $0x118] sm:$0xf] %v492_v6  ;;  %v494_v7 = vld [vmem:[%s14248_s12 + $0x238] sm:$0xf] }
  0x44   : > { %v496_v8 = vld [vmem:[%s14248_s12 + $0x240] sm:$0xf]  ;;  %v498_v9 = vld [vmem:[%s14248_s12 + $0x248] sm:$0xf]  ;;  %495 = vst [vmem:[%s14255_s13 + $0x11c] sm:$0xf] %v494_v7 }
  0x45   : > { %497 = vst [vmem:[%s14255_s13 + $0x120] sm:$0xf] %v496_v8  ;;  %499 = vst [vmem:[%s14255_s13 + $0x124] sm:$0xf] %v498_v9  ;;  %v500_v10 = vld [vmem:[%s14248_s12 + $0x250] sm:$0xf] }
  0x46   : > { %v502_v11 = vld [vmem:[%s14248_s12 + $0x258] sm:$0xf]  ;;  %v504_v12 = vld [vmem:[%s14248_s12 + $0x260] sm:$0xf]  ;;  %501 = vst [vmem:[%s14255_s13 + $0x128] sm:$0xf] %v500_v10 }
  0x47   : > { %503 = vst [vmem:[%s14255_s13 + $0x12c] sm:$0xf] %v502_v11  ;;  %505 = vst [vmem:[%s14255_s13 + $0x130] sm:$0xf] %v504_v12  ;;  %v506_v13 = vld [vmem:[%s14248_s12 + $0x268] sm:$0xf] }
  0x48   : > { %v508_v14 = vld [vmem:[%s14248_s12 + $0x270] sm:$0xf]  ;;  %v510_v15 = vld [vmem:[%s14248_s12 + $0x278] sm:$0xf]  ;;  %507 = vst [vmem:[%s14255_s13 + $0x134] sm:$0xf] %v506_v13 }
  0x49   : > { %509 = vst [vmem:[%s14255_s13 + $0x138] sm:$0xf] %v508_v14  ;;  %511 = vst [vmem:[%s14255_s13 + $0x13c] sm:$0xf] %v510_v15  ;;  %v512_v16 = vld [vmem:[%s14248_s12 + $0x280] sm:$0xf] }
  0x4a   : > { %v514_v17 = vld [vmem:[%s14248_s12 + $0x288] sm:$0xf]  ;;  %v516_v18 = vld [vmem:[%s14248_s12 + $0x290] sm:$0xf]  ;;  %513 = vst [vmem:[%s14255_s13 + $0x140] sm:$0xf] %v512_v16 }
  0x4b   : > { %515 = vst [vmem:[%s14255_s13 + $0x144] sm:$0xf] %v514_v17  ;;  %517 = vst [vmem:[%s14255_s13 + $0x148] sm:$0xf] %v516_v18  ;;  %v518_v19 = vld [vmem:[%s14248_s12 + $0x298] sm:$0xf] }
  0x4c   : > { %v520_v20 = vld [vmem:[%s14248_s12 + $0x2a0] sm:$0xf]  ;;  %v522_v21 = vld [vmem:[%s14248_s12 + $0x2a8] sm:$0xf]  ;;  %519 = vst [vmem:[%s14255_s13 + $0x14c] sm:$0xf] %v518_v19 }
  0x4d   : > { %521 = vst [vmem:[%s14255_s13 + $0x150] sm:$0xf] %v520_v20  ;;  %523 = vst [vmem:[%s14255_s13 + $0x154] sm:$0xf] %v522_v21  ;;  %v524_v22 = vld [vmem:[%s14248_s12 + $0x2b0] sm:$0xf] }
  0x4e   : > { %v526_v23 = vld [vmem:[%s14248_s12 + $0x2b8] sm:$0xf]  ;;  %v528_v24 = vld [vmem:[%s14248_s12 + $0x2c0] sm:$0xf]  ;;  %525 = vst [vmem:[%s14255_s13 + $0x158] sm:$0xf] %v524_v22 }
  0x4f   : > { %527 = vst [vmem:[%s14255_s13 + $0x15c] sm:$0xf] %v526_v23  ;;  %529 = vst [vmem:[%s14255_s13 + $0x160] sm:$0xf] %v528_v24  ;;  %v530_v25 = vld [vmem:[%s14248_s12 + $0x2c8] sm:$0xf] }
  0x50   : > { %v532_v26 = vld [vmem:[%s14248_s12 + $0x2d0] sm:$0xf]  ;;  %v534_v27 = vld [vmem:[%s14248_s12 + $0x2d8] sm:$0xf]  ;;  %531 = vst [vmem:[%s14255_s13 + $0x164] sm:$0xf] %v530_v25 }
  0x51   : > { %533 = vst [vmem:[%s14255_s13 + $0x168] sm:$0xf] %v532_v26  ;;  %535 = vst [vmem:[%s14255_s13 + $0x16c] sm:$0xf] %v534_v27  ;;  %v536_v28 = vld [vmem:[%s14248_s12 + $0x2e0] sm:$0xf] }
  0x52   : > { %v538_v29 = vld [vmem:[%s14248_s12 + $0x2e8] sm:$0xf]  ;;  %v540_v30 = vld [vmem:[%s14248_s12 + $0x2f0] sm:$0xf]  ;;  %537 = vst [vmem:[%s14255_s13 + $0x170] sm:$0xf] %v536_v28 }
  0x53   : > { %539 = vst [vmem:[%s14255_s13 + $0x174] sm:$0xf] %v538_v29  ;;  %541 = vst [vmem:[%s14255_s13 + $0x178] sm:$0xf] %v540_v30  ;;  %v542_v31 = vld [vmem:[%s14248_s12 + $0x2f8] sm:$0xf] }
  0x54   : > { %v544_v32 = vld [vmem:[%s14248_s12 + $0x300] sm:$0xf]  ;;  %v546_v33 = vld [vmem:[%s14248_s12 + $0x308] sm:$0xf]  ;;  %543 = vst [vmem:[%s14255_s13 + $0x17c] sm:$0xf] %v542_v31 }
  0x55   : > { %545 = vst [vmem:[%s14255_s13 + $0x180] sm:$0xf] %v544_v32  ;;  %547 = vst [vmem:[%s14255_s13 + $0x184] sm:$0xf] %v546_v33  ;;  %v548_v34 = vld [vmem:[%s14248_s12 + $0x310] sm:$0xf] }
  0x56   : > { %v550_v35 = vld [vmem:[%s14248_s12 + $0x318] sm:$0xf]  ;;  %v552_v36 = vld [vmem:[%s14248_s12 + $0x320] sm:$0xf]  ;;  %549 = vst [vmem:[%s14255_s13 + $0x188] sm:$0xf] %v548_v34 }
  0x57   : > { %551 = vst [vmem:[%s14255_s13 + $0x18c] sm:$0xf] %v550_v35  ;;  %553 = vst [vmem:[%s14255_s13 + $0x190] sm:$0xf] %v552_v36  ;;  %v554_v37 = vld [vmem:[%s14248_s12 + $0x328] sm:$0xf] }
  0x58   : > { %v556_v38 = vld [vmem:[%s14248_s12 + $0x330] sm:$0xf]  ;;  %v558_v39 = vld [vmem:[%s14248_s12 + $0x338] sm:$0xf]  ;;  %555 = vst [vmem:[%s14255_s13 + $0x194] sm:$0xf] %v554_v37 }
  0x59   : > { %557 = vst [vmem:[%s14255_s13 + $0x198] sm:$0xf] %v556_v38  ;;  %559 = vst [vmem:[%s14255_s13 + $0x19c] sm:$0xf] %v558_v39  ;;  %v560_v40 = vld [vmem:[%s14248_s12 + $0x340] sm:$0xf] }
  0x5a   : > { %v562_v41 = vld [vmem:[%s14248_s12 + $0x348] sm:$0xf]  ;;  %v564_v42 = vld [vmem:[%s14248_s12 + $0x350] sm:$0xf]  ;;  %561 = vst [vmem:[%s14255_s13 + $0x1a0] sm:$0xf] %v560_v40 }
  0x5b   : > { %563 = vst [vmem:[%s14255_s13 + $0x1a4] sm:$0xf] %v562_v41  ;;  %565 = vst [vmem:[%s14255_s13 + $0x1a8] sm:$0xf] %v564_v42  ;;  %v566_v43 = vld [vmem:[%s14248_s12 + $0x358] sm:$0xf] }
  0x5c   : > { %v568_v44 = vld [vmem:[%s14248_s12 + $0x360] sm:$0xf]  ;;  %v570_v45 = vld [vmem:[%s14248_s12 + $0x368] sm:$0xf]  ;;  %567 = vst [vmem:[%s14255_s13 + $0x1ac] sm:$0xf] %v566_v43 }
  0x5d   : > { %569 = vst [vmem:[%s14255_s13 + $0x1b0] sm:$0xf] %v568_v44  ;;  %571 = vst [vmem:[%s14255_s13 + $0x1b4] sm:$0xf] %v570_v45  ;;  %v572_v46 = vld [vmem:[%s14248_s12 + $0x370] sm:$0xf] }
  0x5e   : > { %v574_v47 = vld [vmem:[%s14248_s12 + $0x378] sm:$0xf]  ;;  %573 = vst [vmem:[%s14255_s13 + $0x1b8] sm:$0xf] %v572_v46 }
  0x5f   : > { %575 = vst [vmem:[%s14255_s13 + $0x1bc] sm:$0xf] %v574_v47 }
  0x60 PF: > { %p11545_p7 = scmp.ge.s32.totalorder %s14143_s19, 1  ;;  %p821_p8 = scmp.lt.s32.totalorder %s14143_s19, 3 }
  0x62   : > { %p822_p9 = pnand %p11545_p7, %p821_p8 }
  0x64   : > { %825 = sbr.rel (%p822_p9) target bundleno = 2386 (0x952), region = 101 }
  0x6b   : > { %s828_s14 = sand.u32 1, %s14135_s17   ;;  %v19019_v48 = vmov 0   ;;  %v13600_v49 = vld [vmem:[%s19000_s1 + $0x4] ss:$8 sps:$4 sm:$0xff]   ;;  %vm1215_vm0 = vcmask 523264   ;;  %vm8195_vm1 = vcmask 1043456  }
  0x6c   : > { %1270 = vmatprep.subr.bf16.mxu0 %v19019_v48  ;;  %1849 = vmatprep.subr.bf16.mxu1 %v19019_v48  ;;  %s13544_s15 = smul.u32 448, %s828_s14  ;;  %v13598_v10 = vld [vmem:[%s19000_s1] ss:$8 sps:$4 sm:$0xff]   ;;  %v13601_v11 = vld [vmem:[%s19000_s1 + $0x14] ss:$8 sps:$4 sm:$0xff]   ;;  %vm8170_vm2 = vcmask 850944  }
  0x6d   : > { %13573 = vset.pattern.permute.xlu1 %v19019_v48  ;;  %13572 = vset.pattern.permute.xlu0 %v19019_v48  ;;  %v13604_v16 = vld [vmem:[%s19000_s1 + $0x10] ss:$8 sps:$4 sm:$0xff]   ;;  %v13606_v17 = vld [vmem:[%s19000_s1 + $0x24] ss:$8 sps:$4 sm:$0xff]   ;;  %v13608_v22 = vld [vmem:[%s19000_s1 + $0x20] ss:$8 sps:$4 sm:$0xff]  }
  0x6e   : > { %11595 = vmatprep.mubr.msk.bf16.mxu0 %vm1215_vm0, %v13600_v49  ;;  %11661 = vmatprep.mubr.msk.bf16.mxu1 %vm1215_vm0, %v13600_v49  ;;  %s14490_s23 = scalar_lea.vmem [#allocation4], %s13544_s15  ;;  %v13611_v23 = vld [vmem:[%s19000_s1 + $0x34] ss:$8 sps:$4 sm:$0xff]   ;;  %v13613_v26 = vld [vmem:[%s19000_s1 + $0x30] ss:$8 sps:$4 sm:$0xff]   ;;  %vm11250_vm3 = vcmask 982016  }
  0x6f   : > { %v13574_v50 = vld [vmem:[%s14490_s23] sm:$0xff]   ;;  %v13576_v52 = vld [vmem:[%s14490_s23 + $0x8] sm:$0xff]   ;;  %v13578_v54 = vld [vmem:[%s14490_s23 + $0x10] sm:$0xff]   ;;  %vm14147_vm4 = vmmov 0   ;;  %vm11392_vm5 = vcmask 1041408   ;;  %vm11388_vm6 = vcmask 687104  }
  0x70   : > { %v13575_v51 = vld [vmem:[%s14490_s23 + $0x20] sm:$0xff]   ;;  %1271 = vmatpush1.bf16.msra.mxu0 %v13574_v50  ;;  %v13577_v53 = vld [vmem:[%s14490_s23 + $0x28] sm:$0xff]   ;;  %v13579_v55 = vld [vmem:[%s14490_s23 + $0x30] sm:$0xff]   ;;  %s11546_s22 = sshll.u32 %s828_s14, 4  ;;  %s12530_s27 = sshll.u32 (%p14238_p5), %s11540_s20, 3 }
  0x71   : > { %1850 = vmatpush1.bf16.msra.mxu1 %v13575_v51  ;;  %1272 = vmatprep.subr.bf16.mxu0 %v19019_v48  ;;  %v13580_v56 = vld [vmem:[%s14490_s23 + $0x18] sm:$0xff]   ;;  %v13582_v58 = vld [vmem:[%s14490_s23 + $0x20] sm:$0xff]   ;;  %v13584_v60 = vld [vmem:[%s14490_s23 + $0x28] sm:$0xff]   ;;  %s865_s26 = scalar_lea.vmem [#allocation5], %s11546_s22 }
  0x72   : > { %1851 = vmatprep.subr.bf16.mxu1 %v19019_v48  ;;  %v13581_v57 = vld [vmem:[%s14490_s23 + $0x38] sm:$0xff]   ;;  %v13583_v59 = vld [vmem:[%s14490_s23 + $0x40] sm:$0xff]   ;;  %v13585_v61 = vld [vmem:[%s14490_s23 + $0x48] sm:$0xff]  }
  0x73   : > { %v13586_v62 = vld [vmem:[%s14490_s23 + $0x30] sm:$0xff]   ;;  %v13588_v0 = vld [vmem:[%s14490_s23 + $0x38] sm:$0xff]   ;;  %v13590_v2 = vld [vmem:[%s14490_s23 + $0x40] sm:$0xff]  }
  0x74   : > { %1273 = vmatpush1.bf16.msra.mxu0 %v13576_v52  ;;  %v13587_v63 = vld [vmem:[%s14490_s23 + $0x50] sm:$0xff]   ;;  %v13589_v1 = vld [vmem:[%s14490_s23 + $0x58] sm:$0xff]   ;;  %v13591_v3 = vld [vmem:[%s14490_s23 + $0x60] sm:$0xff]  }
  0x75   : > { %1852 = vmatpush1.bf16.msra.mxu1 %v13577_v53  ;;  %1274 = vmatprep.subr.bf16.mxu0 %v19019_v48  ;;  %v13592_v4 = vld [vmem:[%s14490_s23 + $0x48] sm:$0xff]   ;;  %v13594_v6 = vld [vmem:[%s14490_s23 + $0x50] sm:$0xff]   ;;  %v13596_v8 = vld [vmem:[%s14490_s23 + $0x58] sm:$0xff]  }
  0x76   : > { %1853 = vmatprep.subr.bf16.mxu1 %v19019_v48  ;;  %v13593_v5 = vld [vmem:[%s14490_s23 + $0x68] sm:$0xff]   ;;  %v13595_v7 = vld [vmem:[%s14490_s23 + $0x70] sm:$0xff]   ;;  %v13597_v9 = vld [vmem:[%s14490_s23 + $0x78] sm:$0xff]  }
  0x77   : > { %v13603_v12 = vld [vmem:[%s14490_s23 + $0x40] sm:$0xff]   ;;  %v13609_v14 = vld [vmem:[%s14490_s23 + $0x48] sm:$0xff]   ;;  %v13616_v18 = vld [vmem:[%s14490_s23 + $0x50] sm:$0xff]  }
  0x78   : > { %1275 = vmatpush1.bf16.msra.mxu0 %v13578_v54  ;;  %v13605_v13 = vld [vmem:[%s14490_s23 + $0x60] sm:$0xff]   ;;  %v13610_v15 = vld [vmem:[%s14490_s23 + $0x68] sm:$0xff]   ;;  %v13618_v19 = vld [vmem:[%s14490_s23 + $0x70] sm:$0xff]  }
  0x79   : > { %1854 = vmatpush1.bf16.msra.mxu1 %v13579_v55  ;;  %1276 = vmatprep.subr.bf16.mxu0 %v19019_v48  ;;  %v13622_v20 = vld [vmem:[%s14490_s23 + $0x58] sm:$0xff]   ;;  %v13629_v24 = vld [vmem:[%s14490_s23 + $0x60] sm:$0xff]   ;;  %v13635_v27 = vld [vmem:[%s14490_s23 + $0x68] sm:$0xff]  }
  0x7a   : > { %1855 = vmatprep.subr.bf16.mxu1 %v19019_v48  ;;  %v13623_v21 = vld [vmem:[%s14490_s23 + $0x78] sm:$0xff]   ;;  %v13631_v25 = vld [vmem:[%s14490_s23 + $0x80] sm:$0xff]   ;;  %v13636_v29 = vld [vmem:[%s14490_s23 + $0x88] sm:$0xff]  }
  0x7b   : > { %v13614_v28 = vld [vmem:[%s19000_s1 + $0x44] ss:$8 sps:$4 sm:$0xff]   ;;  %v13642_v30 = vld [vmem:[%s14490_s23 + $0x70] sm:$0xff]   ;;  %v13648_v32 = vld [vmem:[%s14490_s23 + $0x78] sm:$0xff]  }
  0x7c   : > { %1277 = vmatpush1.bf16.msra.mxu0 %v13580_v56  ;;  %v13644_v31 = vld [vmem:[%s14490_s23 + $0x90] sm:$0xff]   ;;  %v13649_v33 = vld [vmem:[%s14490_s23 + $0x98] sm:$0xff]   ;;  %v13617_v34 = vld [vmem:[%s19000_s1 + $0x40] ss:$8 sps:$4 sm:$0xff]  }
  0x7d   : > { %1856 = vmatpush1.bf16.msra.mxu1 %v13581_v57  ;;  %1278 = vmatprep.subr.bf16.mxu0 %v19019_v48  ;;  %v13619_v35 = vld [vmem:[%s19000_s1 + $0x54] ss:$8 sps:$4 sm:$0xff]   ;;  %v13655_v36 = vld [vmem:[%s14490_s23 + $0x80] sm:$0xff]   ;;  %v13661_v38 = vld [vmem:[%s14490_s23 + $0x88] sm:$0xff]  }
  0x7e   : > { %1857 = vmatprep.subr.bf16.mxu1 %v19019_v48  ;;  %v13657_v37 = vld [vmem:[%s14490_s23 + $0xa0] sm:$0xff]   ;;  %v13662_v39 = vld [vmem:[%s14490_s23 + $0xa8] sm:$0xff]   ;;  %v13621_v40 = vld [vmem:[%s19000_s1 + $0x50] ss:$8 sps:$4 sm:$0xff]  }
  0x7f   : > { %v13624_v41 = vld [vmem:[%s19000_s1 + $0x64] ss:$8 sps:$4 sm:$0xff]   ;;  %v13668_v42 = vld [vmem:[%s14490_s23 + $0x90] sm:$0xff]   ;;  %v13674_v44 = vld [vmem:[%s14490_s23 + $0x98] sm:$0xff]  }
  0x80   : > { %1279 = vmatpush1.bf16.msra.mxu0 %v13582_v58  ;;  %v13670_v43 = vld [vmem:[%s14490_s23 + $0xb0] sm:$0xff]   ;;  %v13626_v45 = vld [vmem:[%s19000_s1 + $0x60] ss:$8 sps:$4 sm:$0xff]   ;;  %v13675_v46 = vld [vmem:[%s14490_s23 + $0xb8] sm:$0xff]  }
  0x81   : > { %1858 = vmatpush1.bf16.msra.mxu1 %v13583_v59  ;;  %1280 = vmatprep.subr.bf16.mxu0 %v19019_v48  ;;  %v13627_v47 = vld [vmem:[%s19000_s1 + $0x74] ss:$8 sps:$4 sm:$0xff]   ;;  %v13630_v49 = vld [vmem:[%s19000_s1 + $0x70] ss:$8 sps:$4 sm:$0xff]   ;;  %v13632_v50 = vld [vmem:[%s19000_s1 + $0x84] ss:$8 sps:$4 sm:$0xff]  }
  0x82   : > { %1859 = vmatprep.subr.bf16.mxu1 %v19019_v48  ;;  %v13634_v51 = vld [vmem:[%s19000_s1 + $0x80] ss:$8 sps:$4 sm:$0xff]   ;;  %v13637_v52 = vld [vmem:[%s19000_s1 + $0x94] ss:$8 sps:$4 sm:$0xff]   ;;  %v13639_v55 = vld [vmem:[%s19000_s1 + $0x90] ss:$8 sps:$4 sm:$0xff]  }
  0x83   : > { %v874_v53 = vld [vmem:[%s19001_s2 + $0x38] sm:$0xff]  ;;  %v867_v54 = vld [vmem:[%s19001_s2] sm:$0xff]  ;;  %v868_v57 = vld [vmem:[%s19001_s2 + $0x8] sm:$0xff] }
  0x84   : > { %1281 = vmatpush1.bf16.msra.mxu0 %v13584_v60  ;;  %913 = vperm.xlu0 %13572, %v874_v53   ;;  %v875_v56 = vld [vmem:[%s19001_s2 + $0x40] sm:$0xff]  ;;  %v869_v59 = vld [vmem:[%s19001_s2 + $0x10] sm:$0xff]  ;;  %v872_v60 = vld [vmem:[%s19001_s2 + $0x28] sm:$0xff] }
  0x85   : > { %1860 = vmatpush1.bf16.msra.mxu1 %v13585_v61  ;;  %1282 = vmatprep.subr.bf16.mxu0 %v19019_v48  ;;  %v14678_v58 = vld [vmem:[%s19000_s1 + $0xa4] ss:$8 sps:$4 sm:$0xff]   ;;  %v14693_v61 = vld [vmem:[%s19000_s1 + $0xa0] ss:$8 sps:$4 sm:$0xff]  }
  0x86   : > { %1861 = vmatprep.subr.bf16.mxu1 %v19019_v48  ;;  %878 = vperm.xlu1 %13573, %v867_v54   ;;  %v14111_v53 = vld [vmem:[%s19000_s1 + $0x60] ss:$8 sps:$4 sm:$0xff]   ;;  %v14112_v54 = vld [vmem:[%s19000_s1 + $0x74] ss:$8 sps:$4 sm:$0xff]  }
  0x88   : > { %1283 = vmatpush1.bf16.msra.mxu0 %v13586_v62  ;;  %918 = vperm.xlu0 %13572, %v875_v56   ;;  %v870_v62 = vld [vmem:[%s19001_s2 + $0x18] sm:$0xff]  ;;  %v14114_v56 = vld [vmem:[%s19000_s1 + $0x84] ss:$8 sps:$4 sm:$0xff]  }
  0x89   : > { %1862 = vmatpush1.bf16.msra.mxu1 %v13587_v63  ;;  %1284 = vmatprep.subr.bf16.mxu0 %v19019_v48  ;;  %v14701_v63 = vld [vmem:[%s19000_s1 + $0xb4] ss:$8 sps:$4 sm:$0xff]  }
  0x8a   : > { %1863 = vmatprep.subr.bf16.mxu1 %v19019_v48  ;;  %883 = vperm.xlu1 %13573, %v868_v57   ;;  %v14115_v57 = vld [vmem:[%s19000_s1 + $0x80] ss:$8 sps:$4 sm:$0xff]  }
  0x8c   : > { %1285 = vmatpush1.bf16.msra.mxu0 %v13588_v0  ;;  %888 = vperm.xlu0 %13572, %v869_v59   ;;  %v871_v0 = vld [vmem:[%s19001_s2 + $0x20] sm:$0xff]  ;;  %v14116_v59 = vld [vmem:[%s19000_s1 + $0x94] ss:$8 sps:$4 sm:$0xff]  }
  0x8d   : > { %1864 = vmatpush1.bf16.msra.mxu1 %v13589_v1  ;;  %1286 = vmatprep.subr.bf16.mxu0 %v19019_v48  ;;  %v14715_v1 = vld [vmem:[%s19000_s1 + $0xb0] ss:$8 sps:$4 sm:$0xff]  }
  0x8e   : > { %1865 = vmatprep.subr.bf16.mxu1 %v19019_v48  ;;  %893 = vperm.xlu1 %13573, %v870_v62  }
  0x90   : > { %1287 = vmatpush1.bf16.msra.mxu0 %v13590_v2  ;;  %903 = vperm.xlu0 %13572, %v872_v60   ;;  %v14720_v2 = vld [vmem:[%s19000_s1 + $0xc4] ss:$8 sps:$4 sm:$0xff]  }
  0x91   : > { %1866 = vmatpush1.bf16.msra.mxu1 %v13591_v3  ;;  %1288 = vmatprep.subr.bf16.mxu0 %v19019_v48  ;;  %v873_v3 = vld [vmem:[%s19001_s2 + $0x30] sm:$0xff] }
  0x92   : > { %1867 = vmatprep.subr.bf16.mxu1 %v19019_v48  ;;  %908 = vperm.xlu1 %13573, %v873_v3  }
  0x94   : > { %1289 = vmatpush1.bf16.msra.mxu0 %v13592_v4  ;;  %898 = vperm.xlu0 %13572, %v871_v0   ;;  %v14734_v4 = vld [vmem:[%s19000_s1 + $0xc0] ss:$8 sps:$4 sm:$0xff]  }
  0x95   : > { %1868 = vmatpush1.bf16.msra.mxu1 %v13593_v5  ;;  %1290 = vmatprep.subr.bf16.mxu0 %v19019_v48  ;;  %v14739_v5 = vld [vmem:[%s19000_s1 + $0xd4] ss:$8 sps:$4 sm:$0xff]  }
  0x96   : > { %1869 = vmatprep.subr.bf16.mxu1 %v19019_v48 }
  0x98   : > { %1291 = vmatpush1.bf16.msra.mxu0 %v13594_v6  ;;  %v14750_v6 = vld [vmem:[%s19000_s1 + $0xd0] ss:$8 sps:$4 sm:$0xff]  }
  0x99   : > { %1870 = vmatpush1.bf16.msra.mxu1 %v13595_v7  ;;  %1292 = vmatprep.subr.bf16.mxu0 %v19019_v48  ;;  %v14755_v7 = vld [vmem:[%s19000_s1 + $0xe4] ss:$8 sps:$4 sm:$0xff]  }
  0x9a   : > { %1871 = vmatprep.subr.bf16.mxu1 %v19019_v48 }
  0x9c   : > { %1293 = vmatpush1.bf16.msra.mxu0 %v13596_v8  ;;  %v14766_v8 = vld [vmem:[%s19000_s1 + $0xe0] ss:$8 sps:$4 sm:$0xff]  }
  0x9d   : > { %1872 = vmatpush1.bf16.msra.mxu1 %v13597_v9  ;;  %2428 = vmatprep.subr.bf16.mxu0 %v19019_v48  ;;  %v14771_v9 = vld [vmem:[%s19000_s1 + $0xf4] ss:$8 sps:$4 sm:$0xff]  }
  0x9e   : > { %3007 = vmatprep.subr.bf16.mxu1 %v19019_v48 }
  0x9f   : > { %1303 = vmatmul.mubr.bf16.vlgmr.msra.gmra.mrb[0].mxu0 %v13598_v10 }
  0xa0   : > { %1882 = vmatmul.mubr.bf16.vlgmr.msra.gmra.mrb[0].mxu1 %v13598_v10  ;;  %11596 = vmatprep.mubr.msk.bf16.mxu0 %vm1215_vm0, %v13601_v11  ;;  %v14782_v10 = vld [vmem:[%s19000_s1 + $0xf0] ss:$8 sps:$4 sm:$0xff]  }
  0xa1   : > { %11662 = vmatprep.mubr.msk.bf16.mxu1 %vm1215_vm0, %v13601_v11  ;;  %2429 = vmatpush1.bf16.msra.mxu0 %v13603_v12  ;;  %v14787_v11 = vld [vmem:[%s19000_s1 + $0x104] ss:$8 sps:$4 sm:$0xff]   ;;  %v14798_v12 = vld [vmem:[%s19000_s1 + $0x100] ss:$8 sps:$4 sm:$0xff]  }
  0xa2   : > { %3008 = vmatpush1.bf16.msra.mxu1 %v13605_v13  ;;  %2430 = vmatprep.subr.bf16.mxu0 %v19019_v48  ;;  %v14803_v13 = vld [vmem:[%s19000_s1 + $0x114] ss:$8 sps:$4 sm:$0xff]  }
  0xa3   : > { %3009 = vmatprep.subr.bf16.mxu1 %v19019_v48 }
  0xa5   : > { %2431 = vmatpush1.bf16.msra.mxu0 %v13609_v14  ;;  %v14814_v14 = vld [vmem:[%s19000_s1 + $0x110] ss:$8 sps:$4 sm:$0xff]  }
  0xa6   : > { %3010 = vmatpush1.bf16.msra.mxu1 %v13610_v15  ;;  %2432 = vmatprep.subr.bf16.mxu0 %v19019_v48  ;;  %v14098_v15 = vld [vmem:[%s19000_s1 + $0x4] ss:$8 sps:$4 sm:$0xff]  }
  0xa7   : > { %1311 = vmatmul.mubr.bf16.gmra.mrb[4].mxu0 %v13604_v16  ;;  %3011 = vmatprep.subr.bf16.mxu1 %v19019_v48 }
  0xa8   : > { %1890 = vmatmul.mubr.bf16.gmra.mrb[4].mxu1 %v13604_v16  ;;  %11597 = vmatprep.mubr.msk.bf16.mxu0 %vm1215_vm0, %v13606_v17  ;;  %v13676_v16 = vld [vmem:[%s14490_s23 + $0x80] sm:$0xff]  }
  0xa9   : > { %11663 = vmatprep.mubr.msk.bf16.mxu1 %vm1215_vm0, %v13606_v17  ;;  %2433 = vmatpush1.bf16.msra.mxu0 %v13616_v18  ;;  %v13677_v17 = vld [vmem:[%s14490_s23 + $0xa0] sm:$0xff]  }
  0xaa   : > { %3012 = vmatpush1.bf16.msra.mxu1 %v13618_v19  ;;  %2434 = vmatprep.subr.bf16.mxu0 %v19019_v48  ;;  %v14099_v18 = vld [vmem:[%s19000_s1] ss:$8 sps:$4 sm:$0xff]  }
  0xab   : > { %3013 = vmatprep.subr.bf16.mxu1 %v19019_v48  ;;  %v13678_v19 = vld [vmem:[%s14490_s23 + $0x88] sm:$0xff]  }
  0xad   : > { %2435 = vmatpush1.bf16.msra.mxu0 %v13622_v20  ;;  %v14100_v20 = vld [vmem:[%s19000_s1 + $0x14] ss:$8 sps:$4 sm:$0xff]  }
  0xae   : > { %3014 = vmatpush1.bf16.msra.mxu1 %v13623_v21  ;;  %2436 = vmatprep.subr.bf16.mxu0 %v19019_v48  ;;  %v13679_v21 = vld [vmem:[%s14490_s23 + $0xa8] sm:$0xff]  }
  0xaf   : > { %1319 = vmatmul.mubr.bf16.gmra.mrb[8].mxu0 %v13608_v22  ;;  %3015 = vmatprep.subr.bf16.mxu1 %v19019_v48 }
  0xb0   : > { %1898 = vmatmul.mubr.bf16.gmra.mrb[8].mxu1 %v13608_v22  ;;  %11598 = vmatprep.mubr.msk.bf16.mxu0 %vm1215_vm0, %v13611_v23  ;;  %v13680_v22 = vld [vmem:[%s14490_s23 + $0x90] sm:$0xff]  }
  0xb1   : > { %11664 = vmatprep.mubr.msk.bf16.mxu1 %vm1215_vm0, %v13611_v23  ;;  %2437 = vmatpush1.bf16.msra.mxu0 %v13629_v24  ;;  %v13681_v23 = vld [vmem:[%s14490_s23 + $0xb0] sm:$0xff]  }
  0xb2   : > { %3016 = vmatpush1.bf16.msra.mxu1 %v13631_v25  ;;  %2438 = vmatprep.subr.bf16.mxu0 %v19019_v48  ;;  %v14101_v24 = vld [vmem:[%s19000_s1 + $0x10] ss:$8 sps:$4 sm:$0xff]  }
  0xb3   : > { %3017 = vmatprep.subr.bf16.mxu1 %v19019_v48  ;;  %v13682_v25 = vld [vmem:[%s14490_s23 + $0x98] sm:$0xff]  }
  0xb5   : > { %2439 = vmatpush1.bf16.msra.mxu0 %v13635_v27  ;;  %v13683_v27 = vld [vmem:[%s14490_s23 + $0xb8] sm:$0xff]  }
  0xb6   : > { %3018 = vmatpush1.bf16.msra.mxu1 %v13636_v29  ;;  %2440 = vmatprep.subr.bf16.mxu0 %v19019_v48  ;;  %v13685_v29 = vld [vmem:[%s14490_s23 + $0xc0] sm:$0xff]  }
  0xb7   : > { %1327 = vmatmul.mubr.bf16.gmra.mrb[12].mxu0 %v13613_v26  ;;  %3019 = vmatprep.subr.bf16.mxu1 %v19019_v48 }
  0xb8   : > { %1906 = vmatmul.mubr.bf16.gmra.mrb[12].mxu1 %v13613_v26  ;;  %11599 = vmatprep.mubr.msk.bf16.mxu0 %vm1215_vm0, %v13614_v28  ;;  %v14102_v26 = vld [vmem:[%s19000_s1 + $0x24] ss:$8 sps:$4 sm:$0xff]  }
  0xb9   : > { %11665 = vmatprep.mubr.msk.bf16.mxu1 %vm1215_vm0, %v13614_v28  ;;  %2441 = vmatpush1.bf16.msra.mxu0 %v13642_v30  ;;  %v13684_v28 = vld [vmem:[%s14490_s23 + $0xa0] sm:$0xff]  }
  0xba   : > { %3020 = vmatpush1.bf16.msra.mxu1 %v13644_v31  ;;  %2442 = vmatprep.subr.bf16.mxu0 %v19019_v48  ;;  %v14103_v30 = vld [vmem:[%s19000_s1 + $0x20] ss:$8 sps:$4 sm:$0xff]  }
  0xbb   : > { %3021 = vmatprep.subr.bf16.mxu1 %v19019_v48  ;;  %v13686_v31 = vld [vmem:[%s14490_s23 + $0xa8] sm:$0xff]  }
  0xbd   : > { %2443 = vmatpush1.bf16.msra.mxu0 %v13648_v32  ;;  %v14104_v32 = vld [vmem:[%s19000_s1 + $0x34] ss:$8 sps:$4 sm:$0xff]  }
  0xbe   : > { %3022 = vmatpush1.bf16.msra.mxu1 %v13649_v33  ;;  %2444 = vmatprep.subr.bf16.mxu0 %v19019_v48  ;;  %v13687_v33 = vld [vmem:[%s14490_s23 + $0xc8] sm:$0xff]  }
  0xbf   : > { %1335 = vmatmul.mubr.bf16.gmra.mrb[16].mxu0 %v13617_v34  ;;  %3023 = vmatprep.subr.bf16.mxu1 %v19019_v48 }
  0xc0   : > { %1914 = vmatmul.mubr.bf16.gmra.mrb[16].mxu1 %v13617_v34  ;;  %11600 = vmatprep.mubr.msk.bf16.mxu0 %vm1215_vm0, %v13619_v35  ;;  %v13688_v34 = vld [vmem:[%s14490_s23 + $0xb0] sm:$0xff]  }
  0xc1   : > { %11666 = vmatprep.mubr.msk.bf16.mxu1 %vm1215_vm0, %v13619_v35  ;;  %2445 = vmatpush1.bf16.msra.mxu0 %v13655_v36  ;;  %v13689_v35 = vld [vmem:[%s14490_s23 + $0xd0] sm:$0xff]  }
  0xc2   : > { %3024 = vmatpush1.bf16.msra.mxu1 %v13657_v37  ;;  %2446 = vmatprep.subr.bf16.mxu0 %v19019_v48  ;;  %v14105_v36 = vld [vmem:[%s19000_s1 + $0x30] ss:$8 sps:$4 sm:$0xff]  }
  0xc3   : > { %3025 = vmatprep.subr.bf16.mxu1 %v19019_v48  ;;  %v13690_v37 = vld [vmem:[%s14490_s23 + $0xb8] sm:$0xff]  }
  0xc5   : > { %2447 = vmatpush1.bf16.msra.mxu0 %v13661_v38  ;;  %v14106_v38 = vld [vmem:[%s19000_s1 + $0x44] ss:$8 sps:$4 sm:$0xff]  }
  0xc6   : > { %3026 = vmatpush1.bf16.msra.mxu1 %v13662_v39  ;;  %2448 = vmatprep.subr.bf16.mxu0 %v19019_v48  ;;  %v13691_v39 = vld [vmem:[%s14490_s23 + $0xd8] sm:$0xff]  }
  0xc7   : > { %1343 = vmatmul.mubr.bf16.gmra.mrb[20].mxu0 %v13621_v40  ;;  %3027 = vmatprep.subr.bf16.mxu1 %v19019_v48 }
  0xc8   : > { %1922 = vmatmul.mubr.bf16.gmra.mrb[20].mxu1 %v13621_v40  ;;  %11601 = vmatprep.mubr.msk.bf16.mxu0 %vm1215_vm0, %v13624_v41  ;;  %v13692_v40 = vld [vmem:[%s14490_s23 + $0xc0] sm:$0xff]  }
  0xc9   : > { %11667 = vmatprep.mubr.msk.bf16.mxu1 %vm1215_vm0, %v13624_v41  ;;  %2449 = vmatpush1.bf16.msra.mxu0 %v13668_v42  ;;  %v13693_v41 = vld [vmem:[%s14490_s23 + $0xe0] sm:$0xff]  }
  0xca   : > { %3028 = vmatpush1.bf16.msra.mxu1 %v13670_v43  ;;  %2450 = vmatprep.subr.bf16.mxu0 %v19019_v48  ;;  %v14107_v42 = vld [vmem:[%s19000_s1 + $0x40] ss:$8 sps:$4 sm:$0xff]  }
  0xcb   : > { %3029 = vmatprep.subr.bf16.mxu1 %v19019_v48  ;;  %v13694_v43 = vld [vmem:[%s14490_s23 + $0xc8] sm:$0xff]  }
  0xcd   : > { %2451 = vmatpush1.bf16.msra.mxu0 %v13674_v44  ;;  %v14108_v44 = vld [vmem:[%s19000_s1 + $0x54] ss:$8 sps:$4 sm:$0xff]  }
  0xce   : > { %3030 = vmatpush1.bf16.msra.mxu1 %v13675_v46  ;;  %3586 = vmatprep.subr.bf16.mxu0 %v19019_v48  ;;  %v13696_v46 = vld [vmem:[%s14490_s23 + $0xd0] sm:$0xff]  }
  0xcf   : > { %1351 = vmatmul.mubr.bf16.gmra.mrb[24].mxu0 %v13626_v45  ;;  %4165 = vmatprep.subr.bf16.mxu1 %v19019_v48 }
  0xd0   : > { %1930 = vmatmul.mubr.bf16.gmra.mrb[24].mxu1 %v13626_v45  ;;  %11602 = vmatprep.mubr.msk.bf16.mxu0 %vm1215_vm0, %v13627_v47  ;;  %v13695_v45 = vld [vmem:[%s14490_s23 + $0xe8] sm:$0xff]  }
  0xd1   : > { %11668 = vmatprep.mubr.msk.bf16.mxu1 %vm1215_vm0, %v13627_v47  ;;  %v13697_v47 = vld [vmem:[%s14490_s23 + $0xf0] sm:$0xff]  }
  0xd7   : > { %1359 = vmatmul.mubr.bf16.gmra.mrb[28].mxu0 %v13630_v49 }
  0xd8   : > { %1938 = vmatmul.mubr.bf16.gmra.mrb[28].mxu1 %v13630_v49  ;;  %11603 = vmatprep.mubr.msk.bf16.mxu0 %vm1215_vm0, %v13632_v50  ;;  %v14109_v49 = vld [vmem:[%s19000_s1 + $0x50] ss:$8 sps:$4 sm:$0xff]  }
  0xd9   : > { %11669 = vmatprep.mubr.msk.bf16.mxu1 %vm1215_vm0, %v13632_v50  ;;  %v13698_v50 = vld [vmem:[%s14490_s23 + $0xd8] sm:$0xff]  }
  0xdf   : > { %1367 = vmatmul.mubr.bf16.gmra.mrb[32].mxu0 %v13634_v51 }
  0xe0   : > { %1946 = vmatmul.mubr.bf16.gmra.mrb[32].mxu1 %v13634_v51  ;;  %11604 = vmatprep.mubr.msk.bf16.mxu0 %vm1215_vm0, %v13637_v52  ;;  %v14110_v51 = vld [vmem:[%s19000_s1 + $0x64] ss:$8 sps:$4 sm:$0xff]  }
  0xe1   : > { %11670 = vmatprep.mubr.msk.bf16.mxu1 %vm1215_vm0, %v13637_v52  ;;  %v13699_v52 = vld [vmem:[%s14490_s23 + $0xf8] sm:$0xff]  }
  0xe7   : > { %1375 = vmatmul.mubr.bf16.gmra.mrb[36].mxu0 %v13639_v55 }
  0xe8   : > { %1954 = vmatmul.mubr.bf16.gmra.mrb[36].mxu1 %v13639_v55  ;;  %11605 = vmatprep.mubr.msk.bf16.mxu0 %vm1215_vm0, %v14678_v58  ;;  %v14113_v55 = vld [vmem:[%s19000_s1 + $0x70] ss:$8 sps:$4 sm:$0xff]  }
  0xe9   : > { %11671 = vmatprep.mubr.msk.bf16.mxu1 %vm1215_vm0, %v14678_v58 }
  0xef   : > { %1383 = vmatmul.mubr.bf16.gmra.mrb[40].mxu0 %v14693_v61 }
  0xf0   : > { %1962 = vmatmul.mubr.bf16.gmra.mrb[40].mxu1 %v14693_v61  ;;  %11606 = vmatprep.mubr.msk.bf16.mxu0 %vm1215_vm0, %v14701_v63 }
  0xf1   : > { %11672 = vmatprep.mubr.msk.bf16.mxu1 %vm1215_vm0, %v14701_v63 }
  0xf7   : > { %1391 = vmatmul.mubr.bf16.gmra.mrb[44].mxu0 %v14715_v1 }
  0xf8   : > { %1970 = vmatmul.mubr.bf16.gmra.mrb[44].mxu1 %v14715_v1  ;;  %11607 = vmatprep.mubr.msk.bf16.mxu0 %vm1215_vm0, %v14720_v2 }
  0xf9   : > { %11673 = vmatprep.mubr.msk.bf16.mxu1 %vm1215_vm0, %v14720_v2 }
  0xff   : > { %1399 = vmatmul.mubr.bf16.gmra.mrb[48].mxu0 %v14734_v4 }
 0x100   : > { %1978 = vmatmul.mubr.bf16.gmra.mrb[48].mxu1 %v14734_v4  ;;  %11608 = vmatprep.mubr.msk.bf16.mxu0 %vm1215_vm0, %v14739_v5 }
 0x101   : > { %11674 = vmatprep.mubr.msk.bf16.mxu1 %vm1215_vm0, %v14739_v5 }
 0x107   : > { %1407 = vmatmul.mubr.bf16.gmra.mrb[52].mxu0 %v14750_v6 }
 0x108   : > { %1986 = vmatmul.mubr.bf16.gmra.mrb[52].mxu1 %v14750_v6  ;;  %11609 = vmatprep.mubr.msk.bf16.mxu0 %vm1215_vm0, %v14755_v7 }
 0x109   : > { %11675 = vmatprep.mubr.msk.bf16.mxu1 %vm1215_vm0, %v14755_v7 }
 0x10f   : > { %1415 = vmatmul.mubr.bf16.gmra.mrb[56].mxu0 %v14766_v8 }
 0x110   : > { %1994 = vmatmul.mubr.bf16.gmra.mrb[56].mxu1 %v14766_v8  ;;  %11610 = vmatprep.mubr.msk.bf16.mxu0 %vm1215_vm0, %v14771_v9 }
 0x111   : > { %11676 = vmatprep.mubr.msk.bf16.mxu1 %vm1215_vm0, %v14771_v9 }
 0x117   : > { %1423 = vmatmul.mubr.bf16.gmra.mrb[60].mxu0 %v14782_v10 }
 0x118   : > { %2002 = vmatmul.mubr.bf16.gmra.mrb[60].mxu1 %v14782_v10  ;;  %11611 = vmatprep.mubr.msk.bf16.mxu0 %vm1215_vm0, %v14787_v11 }
 0x119   : > { %11677 = vmatprep.mubr.msk.bf16.mxu1 %vm1215_vm0, %v14787_v11 }
 0x11f   : > { %1431 = vmatmul.mubr.bf16.gmra.mrb[64].mxu0 %v14798_v12 }
 0x120   : > { %2010 = vmatmul.mubr.bf16.gmra.mrb[64].mxu1 %v14798_v12  ;;  %11612 = vmatprep.mubr.msk.bf16.mxu0 %vm1215_vm0, %v14803_v13 }
 0x121   : > { %11678 = vmatprep.mubr.msk.bf16.mxu1 %vm1215_vm0, %v14803_v13 }
 0x127   : > { %1439 = vmatmul.mubr.bf16.gmra.mrb[68].mxu0 %v14814_v14 }
 0x128   : > { %2018 = vmatmul.mubr.bf16.gmra.mrb[68].mxu1 %v14814_v14  ;;  %11727 = vmatprep.mubr.msk.bf16.mxu0 %vm1215_vm0, %v14098_v15 }
 0x129   : > { %11793 = vmatprep.mubr.msk.bf16.mxu1 %vm1215_vm0, %v14098_v15 }
 0x12f   : > { %2461 = vmatmul.mubr.bf16.vlgmr.msra.gmra.mrb[72].mxu0 %v14099_v18 }
 0x130   : > { %3040 = vmatmul.mubr.bf16.vlgmr.msra.gmra.mrb[72].mxu1 %v14099_v18  ;;  %11728 = vmatprep.mubr.msk.bf16.mxu0 %vm1215_vm0, %v14100_v20 }
 0x131   : > { %11794 = vmatprep.mubr.msk.bf16.mxu1 %vm1215_vm0, %v14100_v20  ;;  %3587 = vmatpush1.bf16.msra.mxu0 %v13676_v16  ;;  %v14118_v20 = vld [vmem:[%s19000_s1 + $0xa4] ss:$8 sps:$4 sm:$0xff]  }
 0x132   : > { %4166 = vmatpush1.bf16.msra.mxu1 %v13677_v17  ;;  %3588 = vmatprep.subr.bf16.mxu0 %v19019_v48 }
 0x133   : > { %4167 = vmatprep.subr.bf16.mxu1 %v19019_v48 }
 0x135   : > { %3589 = vmatpush1.bf16.msra.mxu0 %v13678_v19  ;;  %v14117_v19 = vld [vmem:[%s19000_s1 + $0x90] ss:$8 sps:$4 sm:$0xff]  }
 0x136   : > { %4168 = vmatpush1.bf16.msra.mxu1 %v13679_v21  ;;  %3590 = vmatprep.subr.bf16.mxu0 %v19019_v48 }
 0x137   : > { %2469 = vmatmul.mubr.bf16.gmra.mrb[76].mxu0 %v14101_v24  ;;  %4169 = vmatprep.subr.bf16.mxu1 %v19019_v48 }
 0x138   : > { %3048 = vmatmul.mubr.bf16.gmra.mrb[76].mxu1 %v14101_v24  ;;  %11729 = vmatprep.mubr.msk.bf16.mxu0 %vm1215_vm0, %v14102_v26 }
 0x139   : > { %11795 = vmatprep.mubr.msk.bf16.mxu1 %vm1215_vm0, %v14102_v26  ;;  %3591 = vmatpush1.bf16.msra.mxu0 %v13680_v22 }
 0x13a   : > { %4170 = vmatpush1.bf16.msra.mxu1 %v13681_v23  ;;  %3592 = vmatprep.subr.bf16.mxu0 %v19019_v48 }
 0x13b   : > { %4171 = vmatprep.subr.bf16.mxu1 %v19019_v48 }
 0x13d   : > { %3593 = vmatpush1.bf16.msra.mxu0 %v13682_v25 }
 0x13e   : > { %4172 = vmatpush1.bf16.msra.mxu1 %v13683_v27  ;;  %3594 = vmatprep.subr.bf16.mxu0 %v19019_v48 }
 0x13f   : > { %2477 = vmatmul.mubr.bf16.gmra.mrb[80].mxu0 %v14103_v30  ;;  %4173 = vmatprep.subr.bf16.mxu1 %v19019_v48 }
 0x140   : > { %3056 = vmatmul.mubr.bf16.gmra.mrb[80].mxu1 %v14103_v30  ;;  %11730 = vmatprep.mubr.msk.bf16.mxu0 %vm1215_vm0, %v14104_v32 }
 0x141   : > { %11796 = vmatprep.mubr.msk.bf16.mxu1 %vm1215_vm0, %v14104_v32  ;;  %3595 = vmatpush1.bf16.msra.mxu0 %v13684_v28 }
 0x142   : > { %4174 = vmatpush1.bf16.msra.mxu1 %v13685_v29  ;;  %3596 = vmatprep.subr.bf16.mxu0 %v19019_v48 }
 0x143   : > { %4175 = vmatprep.subr.bf16.mxu1 %v19019_v48 }
 0x145   : > { %3597 = vmatpush1.bf16.msra.mxu0 %v13686_v31 }
 0x146   : > { %4176 = vmatpush1.bf16.msra.mxu1 %v13687_v33  ;;  %3598 = vmatprep.subr.bf16.mxu0 %v19019_v48 }
 0x147   : > { %2485 = vmatmul.mubr.bf16.gmra.mrb[84].mxu0 %v14105_v36  ;;  %4177 = vmatprep.subr.bf16.mxu1 %v19019_v48 }
 0x148   : > { %3064 = vmatmul.mubr.bf16.gmra.mrb[84].mxu1 %v14105_v36  ;;  %11731 = vmatprep.mubr.msk.bf16.mxu0 %vm1215_vm0, %v14106_v38 }
 0x149   : > { %11797 = vmatprep.mubr.msk.bf16.mxu1 %vm1215_vm0, %v14106_v38  ;;  %3599 = vmatpush1.bf16.msra.mxu0 %v13688_v34 }
 0x14a   : > { %4178 = vmatpush1.bf16.msra.mxu1 %v13689_v35  ;;  %3600 = vmatprep.subr.bf16.mxu0 %v19019_v48 }
 0x14b   : > { %4179 = vmatprep.subr.bf16.mxu1 %v19019_v48 }
 0x14d   : > { %3601 = vmatpush1.bf16.msra.mxu0 %v13690_v37 }
 0x14e   : > { %4180 = vmatpush1.bf16.msra.mxu1 %v13691_v39  ;;  %3602 = vmatprep.subr.bf16.mxu0 %v19019_v48 }
 0x14f   : > { %2493 = vmatmul.mubr.bf16.gmra.mrb[88].mxu0 %v14107_v42  ;;  %4181 = vmatprep.subr.bf16.mxu1 %v19019_v48 }
 0x150   : > { %3072 = vmatmul.mubr.bf16.gmra.mrb[88].mxu1 %v14107_v42  ;;  %11732 = vmatprep.mubr.msk.bf16.mxu0 %vm1215_vm0, %v14108_v44 }
 0x151   : > { %11798 = vmatprep.mubr.msk.bf16.mxu1 %vm1215_vm0, %v14108_v44  ;;  %3603 = vmatpush1.bf16.msra.mxu0 %v13692_v40 }
 0x152   : > { %4182 = vmatpush1.bf16.msra.mxu1 %v13693_v41  ;;  %3604 = vmatprep.subr.bf16.mxu0 %v19019_v48 }
 0x153   : > { %4183 = vmatprep.subr.bf16.mxu1 %v19019_v48 }
 0x155   : > { %3605 = vmatpush1.bf16.msra.mxu0 %v13694_v43 }
 0x156   : > { %4184 = vmatpush1.bf16.msra.mxu1 %v13695_v45  ;;  %3606 = vmatprep.subr.bf16.mxu0 %v19019_v48 }
 0x157   : > { %2501 = vmatmul.mubr.bf16.gmra.mrb[92].mxu0 %v14109_v49  ;;  %4185 = vmatprep.subr.bf16.mxu1 %v19019_v48 }
 0x158   : > { %3080 = vmatmul.mubr.bf16.gmra.mrb[92].mxu1 %v14109_v49  ;;  %11733 = vmatprep.mubr.msk.bf16.mxu0 %vm1215_vm0, %v14110_v51 }
 0x159   : > { %11799 = vmatprep.mubr.msk.bf16.mxu1 %vm1215_vm0, %v14110_v51  ;;  %3607 = vmatpush1.bf16.msra.mxu0 %v13696_v46 }
 0x15a   : > { %4186 = vmatpush1.bf16.msra.mxu1 %v13697_v47  ;;  %3608 = vmatprep.subr.bf16.mxu0 %v19019_v48  ;;  %v13746_v47 = vld [vmem:[%s14490_s23 + $0x110] sm:$0xff]  }
 0x15b   : > { %4187 = vmatprep.subr.bf16.mxu1 %v19019_v48 }
 0x15d   : > { %3609 = vmatpush1.bf16.msra.mxu0 %v13698_v50  ;;  %v13744_v50 = vld [vmem:[%s14490_s23 + $0xf0] sm:$0xff]  }
 0x15e   : > { %4188 = vmatpush1.bf16.msra.mxu1 %v13699_v52  ;;  %4744 = vmatprep.subr.bf16.mxu0 %v19019_v48 }
 0x15f   : > { %2509 = vmatmul.mubr.bf16.gmra.mrb[96].mxu0 %v14111_v53  ;;  %5323 = vmatprep.subr.bf16.mxu1 %v19019_v48 }
 0x160   : > { %3088 = vmatmul.mubr.bf16.gmra.mrb[96].mxu1 %v14111_v53  ;;  %11734 = vmatprep.mubr.msk.bf16.mxu0 %vm1215_vm0, %v14112_v54 }
 0x161   : > { %11800 = vmatprep.mubr.msk.bf16.mxu1 %vm1215_vm0, %v14112_v54 }
 0x167   : > { %2517 = vmatmul.mubr.bf16.gmra.mrb[100].mxu0 %v14113_v55 }
 0x168   : > { %3096 = vmatmul.mubr.bf16.gmra.mrb[100].mxu1 %v14113_v55  ;;  %11735 = vmatprep.mubr.msk.bf16.mxu0 %vm1215_vm0, %v14114_v56 }
 0x169   : > { %11801 = vmatprep.mubr.msk.bf16.mxu1 %vm1215_vm0, %v14114_v56 }
 0x16f   : > { %2525 = vmatmul.mubr.bf16.gmra.mrb[104].mxu0 %v14115_v57 }
 0x170   : > { %3104 = vmatmul.mubr.bf16.gmra.mrb[104].mxu1 %v14115_v57  ;;  %11736 = vmatprep.mubr.msk.bf16.mxu0 %vm1215_vm0, %v14116_v59 }
 0x171   : > { %11802 = vmatprep.mubr.msk.bf16.mxu1 %vm1215_vm0, %v14116_v59 }
 0x172   : > { %v14943_v60 = vpop.f32.mrb[0].mxu0 }
 0x173   : > { %v14945_v62 = vpop.f32.mrb[0].mxu1  ;;  %v1306_v0 = vpop.f32.mrb[1].mxu0 }
 0x174   : > { %v1885_v3 = vpop.f32.mrb[1].mxu1  ;;  %v14947_v15 = vpop.f32.mrb[2].mxu0 }
 0x175   : > { %v14949_v16 = vpop.f32.mrb[2].mxu1  ;;  %v1309_v17 = vpop.f32.mrb[3].mxu0  ;;  %v13733_v3 = vld [vmem:[%s14490_s23 + $0x100] sm:$0xff]  }
 0x176   : > { %v1888_v18 = vpop.f32.mrb[3].mxu1 }
 0x177   : > { %2533 = vmatmul.mubr.bf16.gmra.mrb[108].mxu0 %v14117_v19 }
 0x178   : > { %3112 = vmatmul.mubr.bf16.gmra.mrb[108].mxu1 %v14117_v19  ;;  %11737 = vmatprep.mubr.msk.bf16.mxu0 %vm1215_vm0, %v14678_v58  ;;  %v13731_v19 = vld [vmem:[%s14490_s23 + $0xe0] sm:$0xff]  }
 0x179   : > { %11803 = vmatprep.mubr.msk.bf16.mxu1 %vm1215_vm0, %v14118_v20 }
 0x17a   : > { %v14960_v21 = vpop.f32.mrb[4].mxu0 }
 0x17b   : > { %v14962_v22 = vpop.f32.mrb[4].mxu1  ;;  %v1314_v23 = vpop.f32.mrb[5].mxu0 }
 0x17c   : > { %v1893_v24 = vpop.f32.mrb[5].mxu1  ;;  %v14964_v25 = vpop.f32.mrb[6].mxu0 }
 0x17d   : > { %v14966_v26 = vpop.f32.mrb[6].mxu1  ;;  %v1317_v27 = vpop.f32.mrb[7].mxu0 }
 0x17e   : > { %v1896_v28 = vpop.f32.mrb[7].mxu1 }
 0x17f   : > { %2541 = vmatmul.mubr.bf16.gmra.mrb[112].mxu0 %v14693_v61 }
 0x180   : > { %3120 = vmatmul.mubr.bf16.gmra.mrb[112].mxu1 %v14693_v61  ;;  %11738 = vmatprep.mubr.msk.bf16.mxu0 %vm1215_vm0, %v14701_v63 }
 0x181   : > { %11804 = vmatprep.mubr.msk.bf16.mxu1 %vm1215_vm0, %v14701_v63 }
 0x182   : > { %v14974_v58 = vpop.f32.mrb[8].mxu0 }
 0x183   : > { %v14976_v29 = vpop.f32.mrb[8].mxu1  ;;  %v1322_v30 = vpop.f32.mrb[9].mxu0 }
 0x184   : > { %v1901_v31 = vpop.f32.mrb[9].mxu1  ;;  %v14978_v32 = vpop.f32.mrb[10].mxu0 }
 0x185   : > { %v14980_v33 = vpop.f32.mrb[10].mxu1  ;;  %v1325_v34 = vpop.f32.mrb[11].mxu0  ;;  %v13720_v31 = vld [vmem:[%s14490_s23 + $0xf0] sm:$0xff]  }
 0x186   : > { %v1904_v35 = vpop.f32.mrb[11].mxu1 }
 0x187   : > { %2549 = vmatmul.mubr.bf16.gmra.mrb[116].mxu0 %v14715_v1 }
 0x188   : > { %3128 = vmatmul.mubr.bf16.gmra.mrb[116].mxu1 %v14715_v1  ;;  %11739 = vmatprep.mubr.msk.bf16.mxu0 %vm1215_vm0, %v14720_v2 }
 0x189   : > { %11805 = vmatprep.mubr.msk.bf16.mxu1 %vm1215_vm0, %v14720_v2 }
 0x18a   : > { %v14988_v61 = vpop.f32.mrb[12].mxu0 }
 0x18b   : > { %v14990_v63 = vpop.f32.mrb[12].mxu1  ;;  %v1330_v36 = vpop.f32.mrb[13].mxu0 }
 0x18c   : > { %v1909_v37 = vpop.f32.mrb[13].mxu1  ;;  %v14992_v38 = vpop.f32.mrb[14].mxu0 }
 0x18d   : > { %v14994_v39 = vpop.f32.mrb[14].mxu1  ;;  %v1333_v40 = vpop.f32.mrb[15].mxu0 }
 0x18e   : > { %v1912_v41 = vpop.f32.mrb[15].mxu1 }
 0x18f   : > { %2557 = vmatmul.mubr.bf16.gmra.mrb[120].mxu0 %v14734_v4 }
 0x190   : > { %3136 = vmatmul.mubr.bf16.gmra.mrb[120].mxu1 %v14734_v4  ;;  %11740 = vmatprep.mubr.msk.bf16.mxu0 %vm1215_vm0, %v14739_v5 }
 0x191   : > { %11806 = vmatprep.mubr.msk.bf16.mxu1 %vm1215_vm0, %v14739_v5 }
 0x192   : > { %v15002_v1 = vpop.f32.mrb[16].mxu0 }
 0x193   : > { %19232 = vst [vmem:[#allocation6_spill] sm:$0xff] %v15002_v1  ;;  %v15004_v2 = vpop.f32.mrb[16].mxu1  ;;  %v1338_v42 = vpop.f32.mrb[17].mxu0  ;;  %v13757_v1 = vld [vmem:[%s14490_s23 + $0x100] sm:$0xff]  }
 0x194   : > { %19233 = vst [vmem:[#allocation7_spill] sm:$0xff] %v15004_v2  ;;  %v1917_v43 = vpop.f32.mrb[17].mxu1  ;;  %v15006_v44 = vpop.f32.mrb[18].mxu0 }
 0x195   : > { %v15010_v46 = vpop.f32.mrb[18].mxu1  ;;  %v1341_v4 = vpop.f32.mrb[19].mxu0 }
 0x196   : > { %v1920_v49 = vpop.f32.mrb[19].mxu1 }
 0x197   : > { %2565 = vmatmul.mubr.bf16.gmra.mrb[124].mxu0 %v14750_v6  ;;  %v13712_v49 = vld [vmem:[%s14490_s23 + $0xe8] sm:$0xff]  }
 0x198   : > { %3144 = vmatmul.mubr.bf16.gmra.mrb[124].mxu1 %v14750_v6  ;;  %11741 = vmatprep.mubr.msk.bf16.mxu0 %vm1215_vm0, %v14755_v7 }
 0x199   : > { %11807 = vmatprep.mubr.msk.bf16.mxu1 %vm1215_vm0, %v14755_v7 }
 0x19a   : > { %v15020_v5 = vpop.f32.mrb[20].mxu0 }
 0x19b   : > { %v15024_v51 = vpop.f32.mrb[20].mxu1  ;;  %v1346_v52 = vpop.f32.mrb[21].mxu0 }
 0x19c   : > { %v1925_v54 = vpop.f32.mrb[21].mxu1  ;;  %v15028_v55 = vpop.f32.mrb[22].mxu0 }
 0x19d   : > { %v15032_v56 = vpop.f32.mrb[22].mxu1  ;;  %v1349_v7 = vpop.f32.mrb[23].mxu0 }
 0x19e   : > { %v1928_v59 = vpop.f32.mrb[23].mxu1  ;;  %v13707_v7 = vld [vmem:[%s14490_s23 + $0xe0] sm:$0xff]  }
 0x19f   : > { %2573 = vmatmul.mubr.bf16.gmra.mrb[128].mxu0 %v14766_v8 }
 0x1a0   : > { %3152 = vmatmul.mubr.bf16.gmra.mrb[128].mxu1 %v14766_v8  ;;  %11742 = vmatprep.mubr.msk.bf16.mxu0 %vm1215_vm0, %v14771_v9 }
 0x1a1   : > { %11808 = vmatprep.mubr.msk.bf16.mxu1 %vm1215_vm0, %v14771_v9 }
 0x1a2   : > { %v15042_v0 = vpop.f32.mrb[24].mxu0 }
 0x1a3   : > { %v15046_v17 = vpop.f32.mrb[24].mxu1  ;;  %v1354_v18 = vpop.f32.mrb[25].mxu0 }
 0x1a4   : > { %v1933_v20 = vpop.f32.mrb[25].mxu1  ;;  %v15050_v23 = vpop.f32.mrb[26].mxu0 }
 0x1a5   : > { %v15054_v24 = vpop.f32.mrb[26].mxu1  ;;  %v1357_v9 = vpop.f32.mrb[27].mxu0 }
 0x1a6   : > { %v1936_v28 = vpop.f32.mrb[27].mxu1 }
 0x1a7   : > { %2581 = vmatmul.mubr.bf16.gmra.mrb[132].mxu0 %v14782_v10  ;;  %v13705_v28 = vld [vmem:[%s14490_s23 + $0xc0] sm:$0xff]  }
 0x1a8   : > { %3160 = vmatmul.mubr.bf16.gmra.mrb[132].mxu1 %v14782_v10  ;;  %11743 = vmatprep.mubr.msk.bf16.mxu0 %vm1215_vm0, %v14787_v11 }
 0x1a9   : > { %11809 = vmatprep.mubr.msk.bf16.mxu1 %vm1215_vm0, %v14787_v11 }
 0x1aa   : > { %v15064_v30 = vpop.f32.mrb[28].mxu0 }
 0x1ab   : > { %v15068_v34 = vpop.f32.mrb[28].mxu1  ;;  %v1362_v35 = vpop.f32.mrb[29].mxu0 }
 0x1ac   : > { %v1941_v37 = vpop.f32.mrb[29].mxu1  ;;  %v15072_v40 = vpop.f32.mrb[30].mxu0 }
 0x1ad   : > { %v15076_v41 = vpop.f32.mrb[30].mxu1  ;;  %v1365_v11 = vpop.f32.mrb[31].mxu0 }
 0x1ae   : > { %v1944_v43 = vpop.f32.mrb[31].mxu1 }
 0x1af   : > { %2589 = vmatmul.mubr.bf16.gmra.mrb[136].mxu0 %v14798_v12 }
 0x1b0   : > { %3168 = vmatmul.mubr.bf16.gmra.mrb[136].mxu1 %v14798_v12  ;;  %11744 = vmatprep.mubr.msk.bf16.mxu0 %vm1215_vm0, %v14803_v13  ;;  %v13702_v12 = vld [vmem:[%s19000_s1 + $0x4] ss:$8 sps:$4 sm:$0xff]  }
 0x1b1   : > { %11810 = vmatprep.mubr.msk.bf16.mxu1 %vm1215_vm0, %v14803_v13 }
 0x1b2   : > { %v15086_v4 = vpop.f32.mrb[32].mxu0 }
 0x1b3   : > { %v15090_v52 = vpop.f32.mrb[32].mxu1  ;;  %v1370_v54 = vpop.f32.mrb[33].mxu0 }
 0x1b4   : > { %19234 = vst [vmem:[#allocation8_spill] sm:$0xff] %v15090_v52  ;;  %v1949_v59 = vpop.f32.mrb[33].mxu1  ;;  %v15094_v18 = vpop.f32.mrb[34].mxu0  ;;  %v13700_v54 = vld [vmem:[%s19000_s1] ss:$8 sps:$4 sm:$0xff]  }
 0x1b5   : > { %19235 = vst [vmem:[#allocation9_spill] sm:$0xff] %v15094_v18  ;;  %v15101_v20 = vpop.f32.mrb[34].mxu1  ;;  %v1373_v9 = vpop.f32.mrb[35].mxu0 }
 0x1b6   : > { %19236 = vst [vmem:[#allocation10_spill] sm:$0xff] %v15101_v20  ;;  %v1952_v35 = vpop.f32.mrb[35].mxu1 }
 0x1b7   : > { %2597 = vmatmul.mubr.bf16.gmra.mrb[140].mxu0 %v14814_v14 }
 0x1b8   : > { %3176 = vmatmul.mubr.bf16.gmra.mrb[140].mxu1 %v14814_v14  ;;  %11859 = vmatprep.mubr.msk.bf16.mxu0 %vm1215_vm0, %v13702_v12  ;;  %v13703_v14 = vld [vmem:[%s19000_s1 + $0x14] ss:$8 sps:$4 sm:$0xff]  }
 0x1b9   : > { %11925 = vmatprep.mubr.msk.bf16.mxu1 %vm1215_vm0, %v13702_v12 }
 0x1ba   : > { %v15109_v37 = vpop.f32.mrb[36].mxu0 }
 0x1bb   : > { %v15111_v11 = vpop.f32.mrb[36].mxu1  ;;  %v1378_v43 = vpop.f32.mrb[37].mxu0 }
 0x1bc   : > { %v1957_v59 = vpop.f32.mrb[37].mxu1  ;;  %v15116_v9 = vpop.f32.mrb[38].mxu0  ;;  %v13711_v43 = vld [vmem:[%s14490_s23 + $0xc8] sm:$0xff]  }
 0x1bd   : > { %v15121_v35 = vpop.f32.mrb[38].mxu1  ;;  %v1381_v12 = vpop.f32.mrb[39].mxu0 }
 0x1be   : > { %v1960_v13 = vpop.f32.mrb[39].mxu1 }
 0x1bf   : > { %3619 = vmatmul.mubr.bf16.vlgmr.msra.gmra.mrb[144].mxu0 %v13700_v54 }
 0x1c0   : > { %4198 = vmatmul.mubr.bf16.vlgmr.msra.gmra.mrb[144].mxu1 %v13700_v54  ;;  %11860 = vmatprep.mubr.msk.bf16.mxu0 %vm1215_vm0, %v13703_v14  ;;  %v13706_v54 = vld [vmem:[%s19000_s1 + $0x10] ss:$8 sps:$4 sm:$0xff]  }
 0x1c1   : > { %11926 = vmatprep.mubr.msk.bf16.mxu1 %vm1215_vm0, %v13703_v14  ;;  %4745 = vmatpush1.bf16.msra.mxu0 %v13705_v28 }
 0x1c2   : > { %v15128_v59 = vpop.f32.mrb[40].mxu0  ;;  %5324 = vmatpush1.bf16.msra.mxu1 %v13707_v7  ;;  %4746 = vmatprep.subr.bf16.mxu0 %v19019_v48  ;;  %v13708_v7 = vld [vmem:[%s19000_s1 + $0x24] ss:$8 sps:$4 sm:$0xff]  }
 0x1c3   : > { %v15132_v12 = vpop.f32.mrb[40].mxu1  ;;  %v1386_v13 = vpop.f32.mrb[41].mxu0  ;;  %5325 = vmatprep.subr.bf16.mxu1 %v19019_v48 }
 0x1c4   : > { %v1965_v14 = vpop.f32.mrb[41].mxu1  ;;  %v15138_v28 = vpop.f32.mrb[42].mxu0  ;;  %v13718_v13 = vld [vmem:[%s14490_s23 + $0xd0] sm:$0xff]  }
 0x1c5   : > { %v15143_v42 = vpop.f32.mrb[42].mxu1  ;;  %v1389_v10 = vpop.f32.mrb[43].mxu0  ;;  %4747 = vmatpush1.bf16.msra.mxu0 %v13711_v43  ;;  %v13724_v14 = vld [vmem:[%s14490_s23 + $0xd8] sm:$0xff]  }
 0x1c6   : > { %v1968_v36 = vpop.f32.mrb[43].mxu1  ;;  %5326 = vmatpush1.bf16.msra.mxu1 %v13712_v49  ;;  %4748 = vmatprep.subr.bf16.mxu0 %v19019_v48 }
 0x1c7   : > { %3627 = vmatmul.mubr.bf16.gmra.mrb[148].mxu0 %v13706_v54  ;;  %5327 = vmatprep.subr.bf16.mxu1 %v19019_v48  ;;  %v13725_v36 = vld [vmem:[%s14490_s23 + $0xf8] sm:$0xff]  }
 0x1c8   : > { %4206 = vmatmul.mubr.bf16.gmra.mrb[148].mxu1 %v13706_v54  ;;  %11861 = vmatprep.mubr.msk.bf16.mxu0 %vm1215_vm0, %v13708_v7  ;;  %v13710_v54 = vld [vmem:[%s19000_s1 + $0x20] ss:$8 sps:$4 sm:$0xff]  }
 0x1c9   : > { %11927 = vmatprep.mubr.msk.bf16.mxu1 %vm1215_vm0, %v13708_v7  ;;  %4749 = vmatpush1.bf16.msra.mxu0 %v13718_v13 }
 0x1ca   : > { %v15152_v10 = vpop.f32.mrb[44].mxu0  ;;  %5328 = vmatpush1.bf16.msra.mxu1 %v13720_v31  ;;  %4750 = vmatprep.subr.bf16.mxu0 %v19019_v48  ;;  %v13713_v31 = vld [vmem:[%s19000_s1 + $0x34] ss:$8 sps:$4 sm:$0xff]  }
 0x1cb   : > { %v15156_v49 = vpop.f32.mrb[44].mxu1  ;;  %v1394_v43 = vpop.f32.mrb[45].mxu0  ;;  %5329 = vmatprep.subr.bf16.mxu1 %v19019_v48 }
 0x1cc   : > { %v1973_v7 = vpop.f32.mrb[45].mxu1  ;;  %v15162_v13 = vpop.f32.mrb[46].mxu0 }
 0x1cd   : > { %v15167_v27 = vpop.f32.mrb[46].mxu1  ;;  %v1397_v8 = vpop.f32.mrb[47].mxu0  ;;  %4751 = vmatpush1.bf16.msra.mxu0 %v13724_v14  ;;  %v13737_v7 = vld [vmem:[%s14490_s23 + $0xe8] sm:$0xff]  }
 0x1ce   : > { %v1976_v43 = vpop.f32.mrb[47].mxu1  ;;  %5330 = vmatpush1.bf16.msra.mxu1 %v13725_v36  ;;  %4752 = vmatprep.subr.bf16.mxu0 %v19019_v48  ;;  %v15178_v14 = vpop.permute.xlu0 %913  ;;  %v13738_v36 = vld [vmem:[%s14490_s23 + $0x108] sm:$0xff]  }
 0x1cf   : > { %3635 = vmatmul.mubr.bf16.gmra.mrb[152].mxu0 %v13710_v54  ;;  %5331 = vmatprep.subr.bf16.mxu1 %v19019_v48  ;;  %19237 = vst [vmem:[#allocation11_spill] sm:$0xff] %v15178_v14 }
 0x1d0   : > { %4214 = vmatmul.mubr.bf16.gmra.mrb[152].mxu1 %v13710_v54  ;;  %11862 = vmatprep.mubr.msk.bf16.mxu0 %vm1215_vm0, %v13713_v31  ;;  %v13715_v54 = vld [vmem:[%s19000_s1 + $0x30] ss:$8 sps:$4 sm:$0xff]  }
 0x1d1   : > { %11928 = vmatprep.mubr.msk.bf16.mxu1 %vm1215_vm0, %v13713_v31  ;;  %4753 = vmatpush1.bf16.msra.mxu0 %v13731_v19 }
 0x1d2   : > { %v15176_v8 = vpop.f32.mrb[48].mxu0  ;;  %5332 = vmatpush1.bf16.msra.mxu1 %v13733_v3  ;;  %4754 = vmatprep.subr.bf16.mxu0 %v19019_v48  ;;  %v13716_v3 = vld [vmem:[%s19000_s1 + $0x44] ss:$8 sps:$4 sm:$0xff]  }
 0x1d3   : > { %v15182_v43 = vpop.f32.mrb[48].mxu1  ;;  %v1402_v57 = vpop.f32.mrb[49].mxu0  ;;  %5333 = vmatprep.subr.bf16.mxu1 %v19019_v48 }
 0x1d4   : > { %v1981_v19 = vpop.f32.mrb[49].mxu1  ;;  %v15188_v31 = vpop.f32.mrb[50].mxu0 }
 0x1d5   : > { %v15193_v6 = vpop.f32.mrb[50].mxu1  ;;  %v1405_v53 = vpop.f32.mrb[51].mxu0  ;;  %4755 = vmatpush1.bf16.msra.mxu0 %v13737_v7 }
 0x1d6   : > { %v1984_v57 = vpop.f32.mrb[51].mxu1  ;;  %5334 = vmatpush1.bf16.msra.mxu1 %v13738_v36  ;;  %4756 = vmatprep.subr.bf16.mxu0 %v19019_v48  ;;  %v15201_v19 = vpop.permute.xlu1 %878  ;;  %v13750_v53 = vld [vmem:[%s14490_s23 + $0xf8] sm:$0xff]  }
 0x1d7   : > { %3643 = vmatmul.mubr.bf16.gmra.mrb[156].mxu0 %v13715_v54  ;;  %5335 = vmatprep.subr.bf16.mxu1 %v19019_v48  ;;  %19238 = vst [vmem:[#allocation12_spill] sm:$0xff] %v15201_v19  ;;  %v15206_v57 = vpop.permute.xlu0 %918  ;;  %v13751_v36 = vld [vmem:[%s14490_s23 + $0x118] sm:$0xff]  }
 0x1d8   : > { %4222 = vmatmul.mubr.bf16.gmra.mrb[156].mxu1 %v13715_v54  ;;  %11863 = vmatprep.mubr.msk.bf16.mxu0 %vm1215_vm0, %v13716_v3  ;;  %19239 = vst [vmem:[#allocation13_spill] sm:$0xff] %v15206_v57  ;;  %v13721_v57 = vld [vmem:[%s19000_s1 + $0x54] ss:$8 sps:$4 sm:$0xff]  }
 0x1d9   : > { %11929 = vmatprep.mubr.msk.bf16.mxu1 %vm1215_vm0, %v13716_v3  ;;  %4757 = vmatpush1.bf16.msra.mxu0 %v13744_v50  ;;  %v13719_v3 = vld [vmem:[%s19000_s1 + $0x40] ss:$8 sps:$4 sm:$0xff]  }
 0x1da   : > { %v15204_v7 = vpop.f32.mrb[52].mxu0  ;;  %5336 = vmatpush1.bf16.msra.mxu1 %v13746_v47  ;;  %4758 = vmatprep.subr.bf16.mxu0 %v19019_v48 }
 0x1db   : > { %v15210_v45 = vpop.f32.mrb[52].mxu1  ;;  %v1410_v54 = vpop.f32.mrb[53].mxu0  ;;  %5337 = vmatprep.subr.bf16.mxu1 %v19019_v48 }
 0x1dc   : > { %19240 = vst [vmem:[#allocation14_spill] sm:$0xff] %v15210_v45  ;;  %v1989_v50 = vpop.f32.mrb[53].mxu1  ;;  %v1411_v20 = vpop.f32.mrb[54].mxu0  ;;  %v19241_v45 = vmax.f32 %v14943_v60, %v15006_v44  ;;  %v13764_v60 = vld [vmem:[%s14490_s23 + $0x128] sm:$0xff]  }
 0x1dd   : > { %v1456_v47 = vmax.f32 %v15109_v37, %v1411_v20  ;;  %v1990_v2 = vpop.f32.mrb[54].mxu1  ;;  %v1413_v18 = vpop.f32.mrb[55].mxu0  ;;  %4759 = vmatpush1.bf16.msra.mxu0 %v13750_v53  ;;  %v13759_v50 = vld [vmem:[%s14490_s23 + $0x120] sm:$0xff]   ;;  %v13763_v37 = vld [vmem:[%s14490_s23 + $0x108] sm:$0xff]  }
 0x1de   : > { %v2035_v54 = vmax.f32 %v15111_v11, %v1990_v2  ;;  %v1992_v14 = vpop.f32.mrb[55].mxu1  ;;  %5338 = vmatpush1.bf16.msra.mxu1 %v13751_v36  ;;  %4760 = vmatprep.subr.bf16.mxu0 %v19019_v48  ;;  %v19242_v18 = vmax.f32 %v14945_v62, %v15010_v46  ;;  %v15232_v2 = vpop.permute.xlu1 %883  ;;  %v13723_v46 = vld [vmem:[%s19000_s1 + $0x50] ss:$8 sps:$4 sm:$0xff]   ;;  %v13726_v36 = vld [vmem:[%s19000_s1 + $0x64] ss:$8 sps:$4 sm:$0xff]  }
 0x1df   : > { %v1465_v52 = vmax.f32 %v19241_v45, %v1456_v47  ;;  %3651 = vmatmul.mubr.bf16.gmra.mrb[160].mxu0 %v13719_v3  ;;  %5339 = vmatprep.subr.bf16.mxu1 %v19019_v48  ;;  %19243 = vst [vmem:[#allocation15_spill] sm:$0xff] %v15232_v2  ;;  %v15236_v14 = vpop.permute.xlu0 %888 }
 0x1e0   : > { %v2044_v20 = vmax.f32 %v19242_v18, %v2035_v54  ;;  %4230 = vmatmul.mubr.bf16.gmra.mrb[160].mxu1 %v13719_v3  ;;  %11864 = vmatprep.mubr.msk.bf16.mxu0 %vm1215_vm0, %v13721_v57  ;;  %19244 = vst [vmem:[#allocation16_spill] sm:$0xff] %v15236_v14  ;;  %v13770_v18 = vld [vmem:[%s14490_s23 + $0x110] sm:$0xff]  }
 0x1e1   : > { %11930 = vmatprep.mubr.msk.bf16.mxu1 %vm1215_vm0, %v13721_v57  ;;  %4761 = vmatpush1.bf16.msra.mxu0 %v13757_v1 }
 0x1e2   : > { %v1416_v11 = vpop.f32.mrb[56].mxu0  ;;  %5340 = vmatpush1.bf16.msra.mxu1 %v13759_v50  ;;  %4762 = vmatprep.subr.bf16.mxu0 %v19019_v48 }
 0x1e3   : > { %v1457_v62 = vmax.f32 %v15116_v9, %v1416_v11  ;;  %v1995_v44 = vpop.f32.mrb[56].mxu1  ;;  %v1418_v45 = vpop.f32.mrb[57].mxu0  ;;  %5341 = vmatprep.subr.bf16.mxu1 %v19019_v48  ;;  %v19245_v9 = vmax.f32 %v14947_v15, %v15020_v5  ;;  %v1474_v11 = vadd.f32 %v1465_v52, %v15201_v19  ;;  %v13772_v15 = vld [vmem:[%s14490_s23 + $0x130] sm:$0xff]   ;;  %v15262_v5 = vadd.f32 %v2044_v20, %v15201_v19 }
 0x1e4   : > { %v2036_v1 = vmax.f32 %v15121_v35, %v1995_v44  ;;  %v1997_v53 = vpop.f32.mrb[57].mxu1  ;;  %v1419_v57 = vpop.f32.mrb[58].mxu0  ;;  %v19246_v35 = vmax.f32 %v14949_v16, %v15024_v51  ;;  %v19248_v51 = vmax.f32 %v14962_v22, %v15032_v56  ;;  %v13777_v22 = vld [vmem:[%s14490_s23 + $0x138] sm:$0xff]  }
 0x1e5   : > { %v1466_v3 = vmax.f32 %v19245_v9, %v1457_v62  ;;  %v1458_v47 = vmax.f32 %v15128_v59, %v1419_v57  ;;  %v1998_v54 = vpop.f32.mrb[58].mxu1  ;;  %v1421_v50 = vpop.f32.mrb[59].mxu0  ;;  %4763 = vmatpush1.bf16.msra.mxu0 %v13763_v37  ;;  %v19247_v59 = vmax.f32 %v14960_v21, %v15028_v55  ;;  %v13776_v21 = vld [vmem:[%s14490_s23 + $0x118] sm:$0xff]   ;;  %v1483_v55 = vmax.f32 %v1474_v11, 0.0 }
 0x1e6   : > { %v2045_v44 = vmax.f32 %v19246_v35, %v2036_v1  ;;  %v2037_v45 = vmax.f32 %v15132_v12, %v1998_v54  ;;  %v2000_v53 = vpop.f32.mrb[59].mxu1  ;;  %5342 = vmatpush1.bf16.msra.mxu1 %v13764_v60  ;;  %4764 = vmatprep.subr.bf16.mxu0 %v19019_v48  ;;  %v15274_v20 = vpop.permute.xlu0 %903  ;;  %v2062_v56 = vmax.f32 %v15262_v5, 0.0  ;;  %v13729_v35 = vld [vmem:[%s19000_s1 + $0x74] ss:$8 sps:$4 sm:$0xff]  }
 0x1e7   : > { %v1467_v37 = vmax.f32 %v19247_v59, %v1458_v47  ;;  %3659 = vmatmul.mubr.bf16.gmra.mrb[164].mxu0 %v13723_v46  ;;  %5343 = vmatprep.subr.bf16.mxu1 %v19019_v48  ;;  %v1475_v16 = vadd.f32 %v1466_v3, %v15232_v2  ;;  %19249 = vst [vmem:[#allocation17_spill] sm:$0xff] %v15274_v20  ;;  %v15278_v1 = vpop.permute.xlu1 %893  ;;  %v13728_v47 = vld [vmem:[%s19000_s1 + $0x60] ss:$8 sps:$4 sm:$0xff]  }
 0x1e8   : > { %v2046_v52 = vmax.f32 %v19248_v51, %v2037_v45  ;;  %4238 = vmatmul.mubr.bf16.gmra.mrb[164].mxu1 %v13723_v46  ;;  %11865 = vmatprep.mubr.msk.bf16.mxu0 %vm1215_vm0, %v13726_v36  ;;  %v2054_v12 = vadd.f32 %v2045_v44, %v15232_v2  ;;  %19250 = vst [vmem:[#allocation18_spill] sm:$0xff] %v15278_v1 }
 0x1e9   : > { %11931 = vmatprep.mubr.msk.bf16.mxu1 %vm1215_vm0, %v13726_v36  ;;  %4765 = vmatpush1.bf16.msra.mxu0 %v13770_v18  ;;  %v1484_v60 = vmax.f32 %v1475_v16, 0.0  ;;  %v19253_v45 = vmax.f32 %v14964_v25, %v15042_v0  ;;  %v19254_v51 = vmax.f32 %v14966_v26, %v15046_v17  ;;  %v19256_v25 = vmax.f32 %v14974_v58, %v15050_v23 }
 0x1ea   : > { %v1424_v62 = vpop.f32.mrb[60].mxu0  ;;  %5344 = vmatpush1.bf16.msra.mxu1 %v13772_v15  ;;  %4766 = vmatprep.subr.bf16.mxu0 %v19019_v48  ;;  %v2055_v46 = vadd.f32 %v2046_v52, %v15236_v14  ;;  %v2063_v57 = vmax.f32 %v2054_v12, 0.0  ;;  %v19258_v17 = vmax.f32 %v14976_v29, %v15054_v24  ;;  %v13732_v29 = vld [vmem:[%s19000_s1 + $0x70] ss:$8 sps:$4 sm:$0xff]  }
 0x1eb   : > { %v1459_v9 = vmax.f32 %v15138_v28, %v1424_v62  ;;  %v2003_v3 = vpop.f32.mrb[60].mxu1  ;;  %v1426_v36 = vpop.f32.mrb[61].mxu0  ;;  %5345 = vmatprep.subr.bf16.mxu1 %v19019_v48  ;;  %v15289_v54 = vpack.c.bf16 %v1484_v60, %v1483_v55 }
 0x1ec   : > { %v2038_v50 = vmax.f32 %v15143_v42, %v2003_v3  ;;  %v2005_v18 = vpop.f32.mrb[61].mxu1  ;;  %v1427_v11 = vpop.f32.mrb[62].mxu0  ;;  %v2064_v44 = vmax.f32 %v2055_v46, 0.0  ;;  %v15297_v28 = vpack.c.bf16 %v2063_v57, %v2062_v56  ;;  %v1476_v42 = vadd.f32 %v1467_v37, %v15236_v14 }
 0x1ed   : > { %19251 = vst [vmem:[#allocation19_spill] sm:$0xff] %v15289_v54  ;;  %v1468_v53 = vmax.f32 %v19253_v45, %v1459_v9  ;;  %v1460_v15 = vmax.f32 %v15152_v10, %v1427_v11  ;;  %v2006_v59 = vpop.f32.mrb[62].mxu1  ;;  %v1429_v16 = vpop.f32.mrb[63].mxu0  ;;  %4767 = vmatpush1.bf16.msra.mxu0 %v13776_v21 }
 0x1ee   : > { %19252 = vst [vmem:[#allocation20_spill] sm:$0xff] %v15297_v28  ;;  %v2047_v52 = vmax.f32 %v19254_v51, %v2038_v50  ;;  %v2039_v12 = vmax.f32 %v15156_v49, %v2006_v59  ;;  %v2008_v55 = vpop.f32.mrb[63].mxu1  ;;  %5346 = vmatpush1.bf16.msra.mxu1 %v13777_v22  ;;  %5902 = vmatprep.subr.bf16.mxu0 %v19019_v48  ;;  %v15314_v10 = vpop.permute.xlu0 %898  ;;  %v1485_v58 = vmax.f32 %v1476_v42, 0.0  ;;  %v13734_v50 = vld [vmem:[%s19000_s1 + $0x84] ss:$8 sps:$4 sm:$0xff]  }
 0x1ef   : > { %v15309_v60 = vpack.c.bf16 %v2064_v44, %v2063_v57  ;;  %v1469_v0 = vmax.f32 %v19256_v25, %v1460_v15  ;;  %3667 = vmatmul.mubr.bf16.gmra.mrb[168].mxu0 %v13728_v47  ;;  %19257 = vst [vmem:[#allocation22_spill] sm:$0xff] %v15314_v10  ;;  %6481 = vmatprep.subr.bf16.mxu1 %v19019_v48 }
 0x1f0   : > { %v1477_v26 = vadd.f32 %v1468_v53, %v15278_v1  ;;  %v2048_v49 = vmax.f32 %v19258_v17, %v2039_v12  ;;  %4246 = vmatmul.mubr.bf16.gmra.mrb[168].mxu1 %v13728_v47  ;;  %11866 = vmatprep.mubr.msk.bf16.mxu0 %vm1215_vm0, %v13729_v35  ;;  %v2056_v37 = vadd.f32 %v2047_v52, %v15278_v1 }
 0x1f1   : > { %19255 = vst [vmem:[#allocation21_spill] sm:$0xff] %v15309_v60  ;;  %11932 = vmatprep.mubr.msk.bf16.mxu1 %vm1215_vm0, %v13729_v35  ;;  %v1478_v59 = vadd.f32 %v1469_v0, %v15314_v10  ;;  %v13783_v60 = vld [vmem:[%s14490_s23 + $0x100] sm:$0xff]  }
 0x1f2   : > { %v1486_v23 = vmax.f32 %v1477_v26, 0.0  ;;  %v1432_v21 = vpop.f32.mrb[64].mxu0  ;;  %v2057_v62 = vadd.f32 %v2048_v49, %v15314_v10  ;;  %v2065_v22 = vmax.f32 %v2056_v37, 0.0 }
 0x1f3   : > { %v1461_v46 = vmax.f32 %v15162_v13, %v1432_v21  ;;  %v2011_v57 = vpop.f32.mrb[64].mxu1  ;;  %v1434_v9 = vpop.f32.mrb[65].mxu0  ;;  %v19261_v13 = vmax.f32 %v14978_v32, %v15064_v30  ;;  %v19264_v32 = vmax.f32 %v14988_v61, %v15072_v40  ;;  %v1487_v55 = vmax.f32 %v1478_v59, 0.0  ;;  %v19279_v59 = vld [vmem:[#allocation10_spill] sm:$0xff] }
 0x1f4   : > { %v15329_v24 = vpack.c.bf16 %v1486_v23, %v1485_v58  ;;  %v2040_v3 = vmax.f32 %v15167_v27, %v2011_v57  ;;  %v2013_v36 = vpop.f32.mrb[65].mxu1  ;;  %v1435_v47 = vpop.f32.mrb[66].mxu0  ;;  %v2066_v18 = vmax.f32 %v2057_v62, 0.0  ;;  %v15335_v11 = vpack.c.bf16 %v2065_v22, %v2064_v44  ;;  %v13739_v23 = vld [vmem:[%s19000_s1 + $0x94] ss:$8 sps:$4 sm:$0xff]  }
 0x1f5   : > { %v1470_v35 = vmax.f32 %v19261_v13, %v1461_v46  ;;  %v1462_v45 = vmax.f32 %v15176_v8, %v1435_v47  ;;  %v2014_v53 = vpop.f32.mrb[66].mxu1  ;;  %v1437_v15 = vpop.f32.mrb[67].mxu0  ;;  %v19262_v27 = vmax.f32 %v14980_v33, %v15068_v34  ;;  %v19266_v33 = vmax.f32 %v14990_v63, %v15076_v41  ;;  %v13736_v63 = vld [vmem:[%s19000_s1 + $0x80] ss:$8 sps:$4 sm:$0xff]  }
 0x1f6   : > { %19259 = vst [vmem:[#allocation23_spill] sm:$0xff] %v15329_v24  ;;  %19260 = vst [vmem:[#allocation24_spill] sm:$0xff] %v15335_v11  ;;  %v2041_v42 = vmax.f32 %v15182_v43, %v2014_v53  ;;  %v2016_v51 = vpop.f32.mrb[67].mxu1  ;;  %v15346_v52 = vpack.c.bf16 %v2066_v18, %v2065_v22  ;;  %v15352_v8 = vpop.permute.xlu1 %908  ;;  %v19272_v47 = vld [vmem:[#allocation14_spill] sm:$0xff] }
 0x1f7   : > { %v2049_v16 = vmax.f32 %v19262_v27, %v2040_v3  ;;  %v1479_v44 = vadd.f32 %v1470_v35, %v15274_v20  ;;  %v1471_v30 = vmax.f32 %v19264_v32, %v1462_v45  ;;  %3675 = vmatmul.mubr.bf16.gmra.mrb[172].mxu0 %v13732_v29  ;;  %19265 = vst [vmem:[#allocation26_spill] sm:$0xff] %v15352_v8  ;;  %v19275_v53 = vld [vmem:[#allocation6_spill] sm:$0xff]  ;;  %v19283_v51 = vld [vmem:[#allocation13_spill] sm:$0xff] }
 0x1f8   : > { %19263 = vst [vmem:[#allocation25_spill] sm:$0xff] %v15346_v52  ;;  %v2050_v34 = vmax.f32 %v19266_v33, %v2041_v42  ;;  %4254 = vmatmul.mubr.bf16.gmra.mrb[172].mxu1 %v13732_v29  ;;  %11867 = vmatprep.mubr.msk.bf16.mxu0 %vm1215_vm0, %v13734_v50 }
 0x1f9   : > { %v2058_v12 = vadd.f32 %v2049_v16, %v15274_v20  ;;  %v1488_v43 = vmax.f32 %v1479_v44, 0.0  ;;  %11933 = vmatprep.mubr.msk.bf16.mxu1 %vm1215_vm0, %v13734_v50  ;;  %v1480_v29 = vadd.f32 %v1471_v30, %v15352_v8 }
 0x1fa   : > { %v1440_v0 = vpop.f32.mrb[68].mxu0  ;;  %v2059_v61 = vadd.f32 %v2050_v34, %v15352_v8 }
 0x1fb   : > { %v2067_v25 = vmax.f32 %v2058_v12, 0.0  ;;  %v1463_v40 = vmax.f32 %v15188_v31, %v1440_v0  ;;  %v2019_v26 = vpop.f32.mrb[68].mxu1  ;;  %v1442_v17 = vpop.f32.mrb[69].mxu0  ;;  %v15365_v41 = vpack.c.bf16 %v1488_v43, %v1487_v55  ;;  %v19269_v31 = vmax.f32 %v14992_v38, %v15086_v4  ;;  %v19276_v38 = vld [vmem:[#allocation9_spill] sm:$0xff] }
 0x1fc   : > { %v2042_v49 = vmax.f32 %v15193_v6, %v2019_v26  ;;  %v2021_v37 = vpop.f32.mrb[69].mxu1  ;;  %v1443_v58 = vpop.f32.mrb[70].mxu0  ;;  %v2068_v21 = vmax.f32 %v2059_v61, 0.0  ;;  %v19270_v6 = vld [vmem:[#allocation8_spill] sm:$0xff]  ;;  %v19277_v4 = vmax.f32 %v19275_v53, %v19276_v38  ;;  %v1489_v32 = vmax.f32 %v1480_v29, 0.0 }
 0x1fd   : > { %19267 = vst [vmem:[#allocation27_spill] sm:$0xff] %v15365_v41  ;;  %v15371_v62 = vpack.c.bf16 %v2067_v25, %v2066_v18  ;;  %v1472_v22 = vmax.f32 %v19269_v31, %v1463_v40  ;;  %v1464_v46 = vmax.f32 %v15204_v7, %v1443_v58  ;;  %v2022_v57 = vpop.f32.mrb[70].mxu1  ;;  %v1445_v9 = vpop.f32.mrb[71].mxu0  ;;  %v19271_v3 = vmax.f32 %v14994_v39, %v19270_v6  ;;  %v19274_v18 = vld [vmem:[#allocation11_spill] sm:$0xff]  ;;  %v13741_v55 = vld [vmem:[%s19000_s1 + $0x90] ss:$8 sps:$4 sm:$0xff]  }
 0x1fe   : > { %v2043_v50 = vmax.f32 %v19272_v47, %v2022_v57  ;;  %v2024_v13 = vpop.f32.mrb[71].mxu1  ;;  %v15382_v35 = vpack.c.bf16 %v2068_v21, %v2067_v25  ;;  %v19278_v7 = vld [vmem:[#allocation7_spill] sm:$0xff] }
 0x1ff   : > { %19268 = vst [vmem:[#allocation28_spill] sm:$0xff] %v15371_v62  ;;  %v2051_v36 = vmax.f32 %v19271_v3, %v2042_v49  ;;  %v1481_v45 = vadd.f32 %v1472_v22, %v19274_v18  ;;  %v1473_v15 = vmax.f32 %v19277_v4, %v1464_v46  ;;  %3683 = vmatmul.mubr.bf16.gmra.mrb[176].mxu0 %v13736_v63  ;;  %v13742_v40 = vld [vmem:[%s19000_s1 + $0xa4] ss:$8 sps:$4 sm:$0xff]   ;;  %v13745_v31 = vld [vmem:[%s19000_s1 + $0xa0] ss:$8 sps:$4 sm:$0xff]  }
 0x200   : > { %19273 = vst [vmem:[#allocation8_spill] sm:$0xff] %v15382_v35  ;;  %v19280_v27 = vmax.f32 %v19278_v7, %v19279_v59  ;;  %4262 = vmatmul.mubr.bf16.gmra.mrb[176].mxu1 %v13736_v63  ;;  %11868 = vmatprep.mubr.msk.bf16.mxu0 %vm1215_vm0, %v13739_v23  ;;  %v13752_v13 = vld [vmem:[%s19000_s1 + $0xc4] ss:$8 sps:$4 sm:$0xff]   ;;  %v13754_v59 = vld [vmem:[%s19000_s1 + $0xc0] ss:$8 sps:$4 sm:$0xff]  }
 0x201   : > { %v15395_v39 = vadd.f32 %v2051_v36, %v19274_v18  ;;  %v1490_v42 = vmax.f32 %v1481_v45, 0.0  ;;  %v1482_v44 = vadd.f32 %v1473_v15, %v19283_v51  ;;  %11934 = vmatprep.mubr.msk.bf16.mxu1 %vm1215_vm0, %v13739_v23  ;;  %v13749_v36 = vld [vmem:[%s19000_s1 + $0xb0] ss:$8 sps:$4 sm:$0xff]   ;;  %v13780_v62 = vld [vmem:[%s19000_s1 + $0x4] ss:$8 sps:$4 sm:$0xff]  }
 0x202   : > { %v15391_v16 = vmax.f32 %v19280_v27, %v2043_v50  ;;  %v15399_v30 = vpop.f32.mrb[72].mxu0 }
 0x203   : > { %19282 = vst [vmem:[#allocation6_spill] sm:$0xff] %v15395_v39  ;;  %v19018_v12 = vmax.f32 %v15395_v39, 0.0  ;;  %v1491_v33 = vmax.f32 %v1482_v44, 0.0  ;;  %v15402_v34 = vpop.f32.mrb[72].mxu1  ;;  %v2464_v43 = vpop.f32.mrb[73].mxu0  ;;  %v15407_v25 = vpack.c.bf16 %v1490_v42, %v1489_v32 }
 0x204   : > { %19281 = vst [vmem:[#allocation14_spill] sm:$0xff] %v15391_v16  ;;  %v3043_v0 = vpop.f32.mrb[73].mxu1  ;;  %v15409_v61 = vpop.f32.mrb[74].mxu0  ;;  %v13755_v44 = vld [vmem:[%s19000_s1 + $0xd4] ss:$8 sps:$4 sm:$0xff]  }
 0x205   : > { %19284 = vst [vmem:[#allocation9_spill] sm:$0xff] %v15407_v25  ;;  %v15416_v26 = vpack.c.bf16 %v19018_v12, %v2068_v21  ;;  %v15418_v17 = vpop.f32.mrb[74].mxu1  ;;  %v2467_v63 = vpop.f32.mrb[75].mxu0  ;;  %v15422_v49 = vpack.c.bf16 %v2062_v56, %v1491_v33  ;;  %v13747_v56 = vld [vmem:[%s19000_s1 + $0xb4] ss:$8 sps:$4 sm:$0xff]   ;;  %v7870_v0 = vld [vmem:[%s19003_s4] sm:$0xff] }
 0x206   : > { %v3046_v37 = vpop.f32.mrb[75].mxu1  ;;  %7880 = vperm.xlu1 %13573, %v7870_v0  }
 0x207   : > { %19285 = vst [vmem:[#allocation7_spill] sm:$0xff] %v15416_v26  ;;  %19286 = vst [vmem:[#allocation10_spill] sm:$0xff] %v15422_v49  ;;  %3691 = vmatmul.mubr.bf16.gmra.mrb[180].mxu0 %v13741_v55  ;;  %v13785_v49 = vld [vmem:[%s14490_s23 + $0x120] sm:$0xff]  }
 0x208   : > { %4270 = vmatmul.mubr.bf16.gmra.mrb[180].mxu1 %v13741_v55  ;;  %11869 = vmatprep.mubr.msk.bf16.mxu0 %vm1215_vm0, %v13742_v40  ;;  %v7871_v55 = vld [vmem:[%s19003_s4 + $0x8] sm:$0xff] }
 0x209   : > { %11935 = vmatprep.mubr.msk.bf16.mxu1 %vm1215_vm0, %v13742_v40  ;;  %7885 = vperm.xlu0 %13572, %v7871_v55   ;;  %v13771_v55 = vld [vmem:[%s19000_s1 + $0x100] ss:$8 sps:$4 sm:$0xff]  }
 0x20a   : > { %v15426_v58 = vpop.f32.mrb[76].mxu0 }
 0x20b   : > { %v15428_v23 = vpop.f32.mrb[76].mxu1  ;;  %v2472_v21 = vpop.f32.mrb[77].mxu0 }
 0x20c   : > { %v3051_v22 = vpop.f32.mrb[77].mxu1  ;;  %v15433_v5 = vpop.f32.mrb[78].mxu0  ;;  %v13758_v21 = vld [vmem:[%s19000_s1 + $0xd0] ss:$8 sps:$4 sm:$0xff]  }
 0x20d   : > { %v15438_v46 = vpop.f32.mrb[78].mxu1  ;;  %v2475_v57 = vpop.f32.mrb[79].mxu0 }
 0x20e   : > { %v3054_v9 = vpop.f32.mrb[79].mxu1 }
 0x20f   : > { %3699 = vmatmul.mubr.bf16.gmra.mrb[184].mxu0 %v13745_v31 }
 0x210   : > { %4278 = vmatmul.mubr.bf16.gmra.mrb[184].mxu1 %v13745_v31  ;;  %11870 = vmatprep.mubr.msk.bf16.mxu0 %vm1215_vm0, %v13747_v56 }
 0x211   : > { %11936 = vmatprep.mubr.msk.bf16.mxu1 %vm1215_vm0, %v13747_v56  ;;  %v13760_v56 = vld [vmem:[%s19000_s1 + $0xe4] ss:$8 sps:$4 sm:$0xff]  }
 0x212   : > { %v15442_v29 = vpop.f32.mrb[80].mxu0 }
 0x213   : > { %v15444_v6 = vpop.f32.mrb[80].mxu1  ;;  %v2480_v3 = vpop.f32.mrb[81].mxu0 }
 0x214   : > { %v3059_v47 = vpop.f32.mrb[81].mxu1  ;;  %v15449_v50 = vpop.f32.mrb[82].mxu0 }
 0x215   : > { %v15454_v45 = vpop.f32.mrb[82].mxu1  ;;  %v2483_v53 = vpop.f32.mrb[83].mxu0  ;;  %v7872_v47 = vld [vmem:[%s19003_s4 + $0x10] sm:$0xff] }
 0x216   : > { %v3062_v38 = vpop.f32.mrb[83].mxu1  ;;  %7890 = vperm.xlu1 %13573, %v7872_v47   ;;  %v7876_v47 = vld [vmem:[%s19003_s4 + $0x30] sm:$0xff] }
 0x217   : > { %3707 = vmatmul.mubr.bf16.gmra.mrb[188].mxu0 %v13749_v36  ;;  %v7875_v38 = vld [vmem:[%s19003_s4 + $0x28] sm:$0xff] }
 0x218   : > { %4286 = vmatmul.mubr.bf16.gmra.mrb[188].mxu1 %v13749_v36  ;;  %11871 = vmatprep.mubr.msk.bf16.mxu0 %vm1215_vm0, %v13752_v13  ;;  %v7873_v36 = vld [vmem:[%s19003_s4 + $0x18] sm:$0xff] }
 0x219   : > { %11937 = vmatprep.mubr.msk.bf16.mxu1 %vm1215_vm0, %v13752_v13  ;;  %7895 = vperm.xlu0 %13572, %v7873_v36   ;;  %v7877_v36 = vld [vmem:[%s19003_s4 + $0x38] sm:$0xff] }
 0x21a   : > { %v15458_v4 = vpop.f32.mrb[84].mxu0  ;;  %v13773_v13 = vld [vmem:[%s19000_s1 + $0x114] ss:$8 sps:$4 sm:$0xff]  }
 0x21b   : > { %v15460_v15 = vpop.f32.mrb[84].mxu1  ;;  %v2488_v7 = vpop.f32.mrb[85].mxu0 }
 0x21c   : > { %v3067_v27 = vpop.f32.mrb[85].mxu1  ;;  %v15465_v42 = vpop.f32.mrb[86].mxu0  ;;  %v7874_v7 = vld [vmem:[%s19003_s4 + $0x20] sm:$0xff] }
 0x21d   : > { %19287 = vst [vmem:[#allocation29_spill] sm:$0xff] %v15465_v42  ;;  %v15470_v32 = vpop.f32.mrb[86].mxu1  ;;  %v2491_v33 = vpop.f32.mrb[87].mxu0  ;;  %7905 = vperm.xlu0 %13572, %v7875_v38   ;;  %7900 = vperm.xlu1 %13573, %v7874_v7   ;;  %v10860_v7 = vld [vmem:[%s19005_s6 + $0x8] sm:$0xff] }
 0x21e   : > { %19288 = vst [vmem:[#allocation30_spill] sm:$0xff] %v15470_v32  ;;  %v3070_v43 = vpop.f32.mrb[87].mxu1 }
 0x21f   : > { %3715 = vmatmul.mubr.bf16.gmra.mrb[192].mxu0 %v13754_v59  ;;  %v13762_v43 = vld [vmem:[%s19000_s1 + $0xe0] ss:$8 sps:$4 sm:$0xff]  }
 0x220   : > { %4294 = vmatmul.mubr.bf16.gmra.mrb[192].mxu1 %v13754_v59  ;;  %11872 = vmatprep.mubr.msk.bf16.mxu0 %vm1215_vm0, %v13755_v44 }
 0x221   : > { %11938 = vmatprep.mubr.msk.bf16.mxu1 %vm1215_vm0, %v13755_v44  ;;  %7915 = vperm.xlu0 %13572, %v7877_v36  }
 0x222   : > { %v15480_v40 = vpop.f32.mrb[88].mxu0  ;;  %7910 = vperm.xlu1 %13573, %v7876_v47   ;;  %v13767_v47 = vld [vmem:[%s19000_s1 + $0xf0] ss:$8 sps:$4 sm:$0xff]  }
 0x223   : > { %19289 = vst [vmem:[#allocation31_spill] sm:$0xff] %v15480_v40  ;;  %v15482_v63 = vpop.f32.mrb[88].mxu1  ;;  %v2496_v37 = vpop.f32.mrb[89].mxu0 }
 0x224   : > { %19290 = vst [vmem:[#allocation32_spill] sm:$0xff] %v15482_v63  ;;  %v3075_v31 = vpop.f32.mrb[89].mxu1  ;;  %v15487_v22 = vpop.f32.mrb[90].mxu0 }
 0x225   : > { %v15494_v9 = vpop.f32.mrb[90].mxu1  ;;  %v2499_v3 = vpop.f32.mrb[91].mxu0  ;;  %10881 = vperm.xlu0 %13572, %v10860_v7   ;;  %v13775_v7 = vld [vmem:[%s19000_s1 + $0x110] ss:$8 sps:$4 sm:$0xff]  }
 0x226   : > { %v3078_v53 = vpop.f32.mrb[91].mxu1 }
 0x227   : > { %3723 = vmatmul.mubr.bf16.gmra.mrb[196].mxu0 %v13758_v21 }
 0x228   : > { %4302 = vmatmul.mubr.bf16.gmra.mrb[196].mxu1 %v13758_v21  ;;  %11873 = vmatprep.mubr.msk.bf16.mxu0 %vm1215_vm0, %v13760_v56  ;;  %v13765_v21 = vld [vmem:[%s19000_s1 + $0xf4] ss:$8 sps:$4 sm:$0xff]  }
 0x229   : > { %11939 = vmatprep.mubr.msk.bf16.mxu1 %vm1215_vm0, %v13760_v56 }
 0x22a   : > { %v15512_v59 = vpop.f32.mrb[92].mxu0 }
 0x22b   : > { %v15516_v44 = vpop.f32.mrb[92].mxu1  ;;  %v2504_v33 = vpop.f32.mrb[93].mxu0 }
 0x22c   : > { %v3083_v0 = vpop.f32.mrb[93].mxu1  ;;  %v15523_v37 = vpop.f32.mrb[94].mxu0  ;;  %v10859_v33 = vld [vmem:[%s19005_s6] sm:$0xff] }
 0x22d   : > { %v15530_v56 = vpop.f32.mrb[94].mxu1  ;;  %v2507_v3 = vpop.f32.mrb[95].mxu0  ;;  %10876 = vperm.xlu1 %13573, %v10859_v33  }
 0x22e   : > { %v3086_v38 = vpop.f32.mrb[95].mxu1  ;;  %v10863_v3 = vld [vmem:[%s19005_s6 + $0x20] sm:$0xff] }
 0x22f   : > { %3731 = vmatmul.mubr.bf16.gmra.mrb[200].mxu0 %v13762_v43  ;;  %v10861_v38 = vld [vmem:[%s19005_s6 + $0x10] sm:$0xff] }
 0x230   : > { %4310 = vmatmul.mubr.bf16.gmra.mrb[200].mxu1 %v13762_v43  ;;  %11874 = vmatprep.mubr.msk.bf16.mxu0 %vm1215_vm0, %v13765_v21 }
 0x231   : > { %11940 = vmatprep.mubr.msk.bf16.mxu1 %vm1215_vm0, %v13765_v21  ;;  %v13768_v21 = vld [vmem:[%s19000_s1 + $0x104] ss:$8 sps:$4 sm:$0xff]   ;;  %10886 = vperm.xlu1 %13573, %v10861_v38   ;;  %v10865_v38 = vld [vmem:[%s19005_s6 + $0x30] sm:$0xff] }
 0x232   : > { %v15548_v0 = vpop.f32.mrb[96].mxu0 }
 0x233   : > { %v15552_v43 = vpop.f32.mrb[96].mxu1  ;;  %v2512_v36 = vpop.f32.mrb[97].mxu0 }
 0x234   : > { %v3091_v12 = vpop.f32.mrb[97].mxu1  ;;  %v15559_v53 = vpop.f32.mrb[98].mxu0 }
 0x235   : > { %v15566_v33 = vpop.f32.mrb[98].mxu1  ;;  %v2515_v36 = vpop.f32.mrb[99].mxu0  ;;  %v10862_v12 = vld [vmem:[%s19005_s6 + $0x18] sm:$0xff]  ;;  %10896 = vperm.xlu1 %13573, %v10863_v3   ;;  %v10868_v3 = vld [vmem:[%s19005_s6 + $0x48] sm:$0xff] }
 0x236   : > { %v3094_v31 = vpop.f32.mrb[99].mxu1  ;;  %10891 = vperm.xlu0 %13572, %v10862_v12   ;;  %v10864_v36 = vld [vmem:[%s19005_s6 + $0x28] sm:$0xff] }
 0x237   : > { %3739 = vmatmul.mubr.bf16.gmra.mrb[204].mxu0 %v13767_v47 }
 0x238   : > { %4318 = vmatmul.mubr.bf16.gmra.mrb[204].mxu1 %v13767_v47  ;;  %11875 = vmatprep.mubr.msk.bf16.mxu0 %vm1215_vm0, %v13768_v21 }
 0x239   : > { %11941 = vmatprep.mubr.msk.bf16.mxu1 %vm1215_vm0, %v13768_v21  ;;  %10906 = vperm.xlu1 %13573, %v10865_v38  }
 0x23a   : > { %v15581_v31 = vpop.f32.mrb[100].mxu0  ;;  %10901 = vperm.xlu0 %13572, %v10864_v36  }
 0x23b   : > { %v15588_v12 = vpop.f32.mrb[100].mxu1  ;;  %v2520_v47 = vpop.f32.mrb[101].mxu0 }
 0x23c   : > { %v3099_v21 = vpop.f32.mrb[101].mxu1  ;;  %v15595_v27 = vpop.f32.mrb[102].mxu0 }
 0x23d   : > { %v15602_v57 = vpop.f32.mrb[102].mxu1  ;;  %v2523_v47 = vpop.f32.mrb[103].mxu0  ;;  %v10866_v21 = vld [vmem:[%s19005_s6 + $0x38] sm:$0xff] }
 0x23e   : > { %v3102_v48 = vpop.f32.mrb[103].mxu1  ;;  %10911 = vperm.xlu0 %13572, %v10866_v21   ;;  %v10867_v47 = vld [vmem:[%s19005_s6 + $0x40] sm:$0xff] }
 0x23f   : > { %3747 = vmatmul.mubr.bf16.gmra.mrb[208].mxu0 %v13771_v55  ;;  %10916 = vperm.xlu1 %13573, %v10867_v47   ;;  %v10872_v47 = vld [vmem:[%s19005_s6 + $0x68] sm:$0xff] }
 0x240   : > { %4326 = vmatmul.mubr.bf16.gmra.mrb[208].mxu1 %v13771_v55  ;;  %11876 = vmatprep.mubr.msk.bf16.mxu0 %vm1215_vm0, %v13773_v13 }
 0x241   : > { %11942 = vmatprep.mubr.msk.bf16.mxu1 %vm1215_vm0, %v13773_v13  ;;  %v10869_v13 = vld [vmem:[%s19005_s6 + $0x50] sm:$0xff] }
 0x242   : > { %v15617_v48 = vpop.f32.mrb[104].mxu0  ;;  %10921 = vperm.xlu0 %13572, %v10868_v3  }
 0x243   : > { %19291 = vst [vmem:[#allocation33_spill] sm:$0xff] %v15617_v48  ;;  %v15624_v21 = vpop.f32.mrb[104].mxu1  ;;  %v2528_v55 = vpop.f32.mrb[105].mxu0  ;;  %10926 = vperm.xlu1 %13573, %v10869_v13  }
 0x244   : > { %19292 = vst [vmem:[#allocation34_spill] sm:$0xff] %v15624_v21  ;;  %v3107_v38 = vpop.f32.mrb[105].mxu1  ;;  %v15631_v26 = vpop.f32.mrb[106].mxu0 }
 0x245   : > { %19293 = vst [vmem:[#allocation35_spill] sm:$0xff] %v15631_v26  ;;  %v15638_v11 = vpop.f32.mrb[106].mxu1  ;;  %v2531_v55 = vpop.f32.mrb[107].mxu0  ;;  %v10870_v38 = vld [vmem:[%s19005_s6 + $0x58] sm:$0xff] }
 0x246   : > { %19294 = vst [vmem:[#allocation36_spill] sm:$0xff] %v15638_v11  ;;  %v3110_v28 = vpop.f32.mrb[107].mxu1  ;;  %10931 = vperm.xlu0 %13572, %v10870_v38   ;;  %v10871_v55 = vld [vmem:[%s19005_s6 + $0x60] sm:$0xff] }
 0x247   : > { %3755 = vmatmul.mubr.bf16.gmra.mrb[212].mxu0 %v13775_v7  ;;  %v13778_v38 = vld [vmem:[%s19000_s1] ss:$8 sps:$4 sm:$0xff]   ;;  %10936 = vperm.xlu1 %13573, %v10871_v55   ;;  %v11158_v55 = vld [vmem:[%s19007_s8 + $0x10] sm:$0xff] }
 0x248   : > { %4334 = vmatmul.mubr.bf16.gmra.mrb[212].mxu1 %v13775_v7  ;;  %11991 = vmatprep.mubr.msk.bf16.mxu0 %vm1215_vm0, %v13780_v62 }
 0x249   : > { %12057 = vmatprep.mubr.msk.bf16.mxu1 %vm1215_vm0, %v13780_v62  ;;  %v13781_v62 = vld [vmem:[%s19000_s1 + $0x14] ss:$8 sps:$4 sm:$0xff]  }
 0x24a   : > { %v15653_v28 = vpop.f32.mrb[108].mxu0  ;;  %10941 = vperm.xlu0 %13572, %v10872_v47   ;;  %v11156_v47 = vld [vmem:[%s19007_s8] sm:$0xff] }
 0x24b   : > { %v15658_v3 = vpop.f32.mrb[108].mxu1  ;;  %v2536_v7 = vpop.f32.mrb[109].mxu0 }
 0x24c   : > { %v3115_v36 = vpop.f32.mrb[109].mxu1  ;;  %v15663_v35 = vpop.f32.mrb[110].mxu0 }
 0x24d   : > { %v15668_v13 = vpop.f32.mrb[110].mxu1  ;;  %v2539_v52 = vpop.f32.mrb[111].mxu0  ;;  %v10873_v36 = vld [vmem:[%s19005_s6 + $0x70] sm:$0xff] }
 0x24e   : > { %v3118_v7 = vpop.f32.mrb[111].mxu1  ;;  %11169 = vperm.xlu0 %13572, %v11156_v47   ;;  %v13789_v52 = vld [vmem:[%s14490_s23 + $0x108] sm:$0xff]   ;;  %v19295_v47 = vmov 0   ;;  %10946 = vperm.xlu1 %13573, %v10873_v36   ;;  %v13798_v36 = vld [vmem:[%s14490_s23 + $0x130] sm:$0xff]  }
 0x24f   : > { %4777 = vmatmul.mubr.bf16.vlgmr.msra.gmra.mrb[216].mxu0 %v13778_v38 }
 0x250   : > { %5356 = vmatmul.mubr.bf16.vlgmr.msra.gmra.mrb[216].mxu1 %v13778_v38  ;;  %11992 = vmatprep.mubr.msk.bf16.mxu0 %vm1215_vm0, %v13781_v62  ;;  %v13790_v38 = vld [vmem:[%s14490_s23 + $0x128] sm:$0xff]  }
 0x251   : > { %12058 = vmatprep.mubr.msk.bf16.mxu1 %vm1215_vm0, %v13781_v62  ;;  %5903 = vmatpush1.bf16.msra.mxu0 %v13783_v60  ;;  %v13784_v60 = vld [vmem:[%s19000_s1 + $0x10] ss:$8 sps:$4 sm:$0xff]  }
 0x252   : > { %v15684_v7 = vpop.f32.mrb[112].mxu0  ;;  %6482 = vmatpush1.bf16.msra.mxu1 %v13785_v49  ;;  %5904 = vmatprep.subr.bf16.mxu0 %v19295_v47  ;;  %v13786_v49 = vld [vmem:[%s19000_s1 + $0x24] ss:$8 sps:$4 sm:$0xff]  }
 0x253   : > { %v15688_v25 = vpop.f32.mrb[112].mxu1  ;;  %v2544_v41 = vpop.f32.mrb[113].mxu0  ;;  %6483 = vmatprep.subr.bf16.mxu1 %v19295_v47  ;;  %11179 = vperm.xlu0 %13572, %v11158_v55   ;;  %v11157_v55 = vld [vmem:[%s19007_s8 + $0x8] sm:$0xff] }
 0x254   : > { %v3123_v62 = vpop.f32.mrb[113].mxu1  ;;  %v15694_v24 = vpop.f32.mrb[114].mxu0  ;;  %v13796_v41 = vld [vmem:[%s14490_s23 + $0x110] sm:$0xff]   ;;  %11174 = vperm.xlu1 %13573, %v11157_v55   ;;  %v13811_v55 = vld [vmem:[%s14490_s23 + $0x140] sm:$0xff]  }
 0x255   : > { %v15699_v54 = vpop.f32.mrb[114].mxu1  ;;  %v2547_v39 = vpop.f32.mrb[115].mxu0  ;;  %5905 = vmatpush1.bf16.msra.mxu0 %v13789_v52 }
 0x256   : > { %v3126_v16 = vpop.f32.mrb[115].mxu1  ;;  %6484 = vmatpush1.bf16.msra.mxu1 %v13790_v38  ;;  %5906 = vmatprep.subr.bf16.mxu0 %v19295_v47  ;;  %v13802_v39 = vld [vmem:[%s14490_s23 + $0x118] sm:$0xff]  }
 0x257   : > { %4785 = vmatmul.mubr.bf16.gmra.mrb[220].mxu0 %v13784_v60  ;;  %6485 = vmatprep.subr.bf16.mxu1 %v19295_v47  ;;  %v11160_v16 = vld [vmem:[%s19007_s8 + $0x20] sm:$0xff]  ;;  %v13803_v38 = vld [vmem:[%s14490_s23 + $0x138] sm:$0xff]  }
 0x258   : > { %5364 = vmatmul.mubr.bf16.gmra.mrb[220].mxu1 %v13784_v60  ;;  %11993 = vmatprep.mubr.msk.bf16.mxu0 %vm1215_vm0, %v13786_v49 }
 0x259   : > { %12059 = vmatprep.mubr.msk.bf16.mxu1 %vm1215_vm0, %v13786_v49  ;;  %5907 = vmatpush1.bf16.msra.mxu0 %v13796_v41  ;;  %v13788_v49 = vld [vmem:[%s19000_s1 + $0x20] ss:$8 sps:$4 sm:$0xff]  }
 0x25a   : > { %v15714_v52 = vpop.f32.mrb[116].mxu0  ;;  %6486 = vmatpush1.bf16.msra.mxu1 %v13798_v36  ;;  %5908 = vmatprep.subr.bf16.mxu0 %v19295_v47  ;;  %v13791_v36 = vld [vmem:[%s19000_s1 + $0x34] ss:$8 sps:$4 sm:$0xff]  }
 0x25b   : > { %v15718_v60 = vpop.f32.mrb[116].mxu1  ;;  %v2552_v62 = vpop.f32.mrb[117].mxu0  ;;  %6487 = vmatprep.subr.bf16.mxu1 %v19295_v47  ;;  %11189 = vperm.xlu0 %13572, %v11160_v16   ;;  %v11159_v16 = vld [vmem:[%s19007_s8 + $0x18] sm:$0xff] }
 0x25c   : > { %v3131_v41 = vpop.f32.mrb[117].mxu1  ;;  %v15724_v51 = vpop.f32.mrb[118].mxu0  ;;  %v13809_v62 = vld [vmem:[%s14490_s23 + $0x120] sm:$0xff]   ;;  %11184 = vperm.xlu1 %13573, %v11159_v16   ;;  %v13824_v16 = vld [vmem:[%s14490_s23 + $0x150] sm:$0xff]  }
 0x25d   : > { %v15729_v11 = vpop.f32.mrb[118].mxu1  ;;  %v2555_v63 = vpop.f32.mrb[119].mxu0  ;;  %5909 = vmatpush1.bf16.msra.mxu0 %v13802_v39 }
 0x25e   : > { %v3134_v18 = vpop.f32.mrb[119].mxu1  ;;  %6488 = vmatpush1.bf16.msra.mxu1 %v13803_v38  ;;  %5910 = vmatprep.subr.bf16.mxu0 %v19295_v47  ;;  %v13815_v63 = vld [vmem:[%s14490_s23 + $0x128] sm:$0xff]  }
 0x25f   : > { %4793 = vmatmul.mubr.bf16.gmra.mrb[224].mxu0 %v13788_v49  ;;  %6489 = vmatprep.subr.bf16.mxu1 %v19295_v47  ;;  %v11162_v18 = vld [vmem:[%s19007_s8 + $0x30] sm:$0xff]  ;;  %v13816_v38 = vld [vmem:[%s14490_s23 + $0x148] sm:$0xff]  }
 0x260   : > { %5372 = vmatmul.mubr.bf16.gmra.mrb[224].mxu1 %v13788_v49  ;;  %11994 = vmatprep.mubr.msk.bf16.mxu0 %vm1215_vm0, %v13791_v36 }
 0x261   : > { %12060 = vmatprep.mubr.msk.bf16.mxu1 %vm1215_vm0, %v13791_v36  ;;  %5911 = vmatpush1.bf16.msra.mxu0 %v13809_v62  ;;  %v13793_v36 = vld [vmem:[%s19000_s1 + $0x30] ss:$8 sps:$4 sm:$0xff]  }
 0x262   : > { %v15744_v39 = vpop.f32.mrb[120].mxu0  ;;  %6490 = vmatpush1.bf16.msra.mxu1 %v13811_v55  ;;  %5912 = vmatprep.subr.bf16.mxu0 %v19295_v47  ;;  %v13794_v55 = vld [vmem:[%s19000_s1 + $0x44] ss:$8 sps:$4 sm:$0xff]  }
 0x263   : > { %v15748_v49 = vpop.f32.mrb[120].mxu1  ;;  %v2560_v41 = vpop.f32.mrb[121].mxu0  ;;  %6491 = vmatprep.subr.bf16.mxu1 %v19295_v47  ;;  %11199 = vperm.xlu0 %13572, %v11162_v18   ;;  %v11161_v18 = vld [vmem:[%s19007_s8 + $0x28] sm:$0xff] }
 0x264   : > { %v3139_v62 = vpop.f32.mrb[121].mxu1  ;;  %v15754_v26 = vpop.f32.mrb[122].mxu0  ;;  %v13823_v41 = vld [vmem:[%s14490_s23 + $0x130] sm:$0xff]   ;;  %11194 = vperm.xlu1 %13573, %v11161_v18   ;;  %v13837_v18 = vld [vmem:[%s14490_s23 + $0x160] sm:$0xff]  }
 0x265   : > { %19296 = vst [vmem:[#allocation37_spill] sm:$0xff] %v15754_v26  ;;  %v15759_v40 = vpop.f32.mrb[122].mxu1  ;;  %v2563_v21 = vpop.f32.mrb[123].mxu0  ;;  %5913 = vmatpush1.bf16.msra.mxu0 %v13815_v63 }
 0x266   : > { %19297 = vst [vmem:[#allocation38_spill] sm:$0xff] %v15759_v40  ;;  %v3142_v32 = vpop.f32.mrb[123].mxu1  ;;  %6492 = vmatpush1.bf16.msra.mxu1 %v13816_v38  ;;  %5914 = vmatprep.subr.bf16.mxu0 %v19295_v47  ;;  %v13828_v21 = vld [vmem:[%s14490_s23 + $0x138] sm:$0xff]  }
 0x267   : > { %4801 = vmatmul.mubr.bf16.gmra.mrb[228].mxu0 %v13793_v36  ;;  %6493 = vmatprep.subr.bf16.mxu1 %v19295_v47  ;;  %v11164_v32 = vld [vmem:[%s19007_s8 + $0x40] sm:$0xff]  ;;  %v13829_v38 = vld [vmem:[%s14490_s23 + $0x158] sm:$0xff]  }
 0x268   : > { %5380 = vmatmul.mubr.bf16.gmra.mrb[228].mxu1 %v13793_v36  ;;  %11995 = vmatprep.mubr.msk.bf16.mxu0 %vm1215_vm0, %v13794_v55 }
 0x269   : > { %12061 = vmatprep.mubr.msk.bf16.mxu1 %vm1215_vm0, %v13794_v55  ;;  %5915 = vmatpush1.bf16.msra.mxu0 %v13823_v41  ;;  %v13797_v55 = vld [vmem:[%s19000_s1 + $0x40] ss:$8 sps:$4 sm:$0xff]  }
 0x26a   : > { %v15774_v63 = vpop.f32.mrb[124].mxu0  ;;  %6494 = vmatpush1.bf16.msra.mxu1 %v13824_v16  ;;  %5916 = vmatprep.subr.bf16.mxu0 %v19295_v47  ;;  %v13799_v16 = vld [vmem:[%s19000_s1 + $0x54] ss:$8 sps:$4 sm:$0xff]  }
 0x26b   : > { %19298 = vst [vmem:[#allocation39_spill] sm:$0xff] %v15774_v63  ;;  %v15778_v36 = vpop.f32.mrb[124].mxu1  ;;  %v2568_v62 = vpop.f32.mrb[125].mxu0  ;;  %6495 = vmatprep.subr.bf16.mxu1 %v19295_v47  ;;  %11209 = vperm.xlu0 %13572, %v11164_v32  }
 0x26c   : > { %19299 = vst [vmem:[#allocation40_spill] sm:$0xff] %v15778_v36  ;;  %v3147_v41 = vpop.f32.mrb[125].mxu1  ;;  %v2569_v48 = vpop.f32.mrb[126].mxu0  ;;  %v13836_v62 = vld [vmem:[%s14490_s23 + $0x140] sm:$0xff]  }
 0x26d   : > { %v2614_v63 = vmax.f32 %v15653_v28, %v2569_v48  ;;  %v3148_v42 = vpop.f32.mrb[126].mxu1  ;;  %v2571_v36 = vpop.f32.mrb[127].mxu0  ;;  %5917 = vmatpush1.bf16.msra.mxu0 %v13828_v21  ;;  %v19300_v41 = vmax.f32 %v15399_v30, %v15487_v22  ;;  %v19301_v48 = vmax.f32 %v15402_v34, %v15494_v9  ;;  %v11166_v30 = vld [vmem:[%s19007_s8 + $0x50] sm:$0xf]  ;;  %v13842_v34 = vld [vmem:[%s14490_s23 + $0x168] sm:$0xff]  }
 0x26e   : > { %v3193_v40 = vmax.f32 %v15658_v3, %v3148_v42  ;;  %v3150_v26 = vpop.f32.mrb[127].mxu1  ;;  %6496 = vmatpush1.bf16.msra.mxu1 %v13829_v38  ;;  %5918 = vmatprep.subr.bf16.mxu0 %v19295_v47  ;;  %v13841_v42 = vld [vmem:[%s14490_s23 + $0x148] sm:$0xff]   ;;  %v13801_v21 = vld [vmem:[%s19000_s1 + $0x50] ss:$8 sps:$4 sm:$0xff]  }
 0x26f   : > { %v2623_v8 = vmax.f32 %v19300_v41, %v2614_v63  ;;  %4809 = vmatmul.mubr.bf16.gmra.mrb[232].mxu0 %v13797_v55  ;;  %6497 = vmatprep.subr.bf16.mxu1 %v19295_v47  ;;  %v11163_v26 = vld [vmem:[%s19007_s8 + $0x38] sm:$0xff]  ;;  %v13804_v36 = vld [vmem:[%s19000_s1 + $0x64] ss:$8 sps:$4 sm:$0xff]   ;;  %v13849_v41 = vld [vmem:[%s14490_s23 + $0x150] sm:$0xff]  }
 0x270   : > { %v3202_v28 = vmax.f32 %v19301_v48, %v3193_v40  ;;  %5388 = vmatmul.mubr.bf16.gmra.mrb[232].mxu1 %v13797_v55  ;;  %11996 = vmatprep.mubr.msk.bf16.mxu0 %vm1215_vm0, %v13799_v16  ;;  %v19304_v48 = vmax.f32 %v15418_v17, %v15516_v44 }
 0x271   : > { %12062 = vmatprep.mubr.msk.bf16.mxu1 %vm1215_vm0, %v13799_v16  ;;  %5919 = vmatpush1.bf16.msra.mxu0 %v13836_v62 }
 0x272   : > { %v2574_v22 = vpop.f32.mrb[128].mxu0  ;;  %6498 = vmatpush1.bf16.msra.mxu1 %v13837_v18  ;;  %5920 = vmatprep.subr.bf16.mxu0 %v19295_v47 }
 0x273   : > { %v2615_v40 = vmax.f32 %v15663_v35, %v2574_v22  ;;  %v3153_v9 = vpop.f32.mrb[128].mxu1  ;;  %v2576_v3 = vpop.f32.mrb[129].mxu0  ;;  %6499 = vmatprep.subr.bf16.mxu1 %v19295_v47  ;;  %11204 = vperm.xlu1 %13573, %v11163_v26   ;;  %v19302_v35 = vmax.f32 %v15409_v61, %v15512_v59  ;;  %v13850_v61 = vld [vmem:[%s14490_s23 + $0x170] sm:$0xff]   ;;  %v15834_v59 = vadd.f32 %v3202_v28, %v15201_v19  ;;  %v11165_v28 = vld [vmem:[%s19007_s8 + $0x48] sm:$0xff] }
 0x274   : > { %v3194_v32 = vmax.f32 %v15668_v13, %v3153_v9  ;;  %v3155_v63 = vpop.f32.mrb[129].mxu1  ;;  %v2577_v38 = vpop.f32.mrb[130].mxu0  ;;  %11219 = vperm.xlu0 %13572, %v11166_v30   ;;  %v15825_v13 = vadd.f32 %v2623_v8, %v15201_v19  ;;  %v13855_v9 = vld [vmem:[%s14490_s23 + $0x178] sm:$0xff]  }
 0x275   : > { %v2624_v55 = vmax.f32 %v19302_v35, %v2615_v40  ;;  %v2616_v16 = vmax.f32 %v15684_v7, %v2577_v38  ;;  %v3156_v62 = vpop.f32.mrb[130].mxu1  ;;  %v2579_v18 = vpop.f32.mrb[131].mxu0  ;;  %5921 = vmatpush1.bf16.msra.mxu0 %v13841_v42  ;;  %v19305_v7 = vmax.f32 %v15426_v58, %v15523_v37  ;;  %v13854_v37 = vld [vmem:[%s14490_s23 + $0x158] sm:$0xff]   ;;  %v11372_v42 = vld [vmem:[%s19009_s10 + $0x8] sm:$0x3]  ;;  %v3220_v3 = vmax.f32 %v15834_v59, 0.0 }
 0x276   : > { %19303 = vst [vmem:[#allocation41_spill] sm:$0xff] %v15825_v13  ;;  %v3203_v26 = vmax.f32 %v19304_v48, %v3194_v32  ;;  %v3195_v22 = vmax.f32 %v15688_v25, %v3156_v62  ;;  %v3158_v30 = vpop.f32.mrb[131].mxu1  ;;  %6500 = vmatpush1.bf16.msra.mxu1 %v13842_v34  ;;  %5922 = vmatprep.subr.bf16.mxu0 %v19295_v47  ;;  %v13806_v35 = vld [vmem:[%s19000_s1 + $0x60] ss:$8 sps:$4 sm:$0xff]  }
 0x277   : > { %v2625_v8 = vmax.f32 %v19305_v7, %v2616_v16  ;;  %4817 = vmatmul.mubr.bf16.gmra.mrb[236].mxu0 %v13801_v21  ;;  %6501 = vmatprep.subr.bf16.mxu1 %v19295_v47  ;;  %v2633_v17 = vadd.f32 %v2624_v55, %v15232_v2  ;;  %v19306_v25 = vmax.f32 %v15428_v23, %v15530_v56  ;;  %v19033_v23 = vmax.f32 %v15825_v13, 0.0  ;;  %v13820_v59 = vld [vmem:[%s19000_s1 + $0xa0] ss:$8 sps:$4 sm:$0xff]  }
 0x278   : > { %5396 = vmatmul.mubr.bf16.gmra.mrb[236].mxu1 %v13801_v21  ;;  %11997 = vmatprep.mubr.msk.bf16.mxu0 %vm1215_vm0, %v13804_v36  ;;  %v3212_v58 = vadd.f32 %v3203_v26, %v15232_v2 }
 0x279   : > { %v3204_v44 = vmax.f32 %v19306_v25, %v3195_v22  ;;  %12063 = vmatprep.mubr.msk.bf16.mxu1 %vm1215_vm0, %v13804_v36  ;;  %5923 = vmatpush1.bf16.msra.mxu0 %v13849_v41  ;;  %v2642_v56 = vmax.f32 %v2633_v17, 0.0  ;;  %v2634_v34 = vadd.f32 %v2625_v8, %v15236_v14  ;;  %v19309_v22 = vmax.f32 %v15433_v5, %v15548_v0  ;;  %v11371_v5 = vld [vmem:[%s19009_s10] sm:$0xff] }
 0x27a   : > { %v2582_v40 = vpop.f32.mrb[132].mxu0  ;;  %6502 = vmatpush1.bf16.msra.mxu1 %v13850_v61  ;;  %5924 = vmatprep.subr.bf16.mxu0 %v19295_v47  ;;  %v3221_v32 = vmax.f32 %v3212_v58, 0.0  ;;  %v19311_v17 = vmax.f32 %v15438_v46, %v15552_v43  ;;  %v19314_v43 = vmax.f32 %v15444_v6, %v15566_v33  ;;  %v13810_v33 = vld [vmem:[%s19000_s1 + $0x70] ss:$8 sps:$4 sm:$0xff]  }
 0x27b   : > { %v3213_v21 = vadd.f32 %v3204_v44, %v15236_v14  ;;  %v2617_v63 = vmax.f32 %v15694_v24, %v2582_v40  ;;  %v3161_v38 = vpop.f32.mrb[132].mxu1  ;;  %v2584_v36 = vpop.f32.mrb[133].mxu0  ;;  %6503 = vmatprep.subr.bf16.mxu1 %v19295_v47  ;;  %11214 = vperm.xlu1 %13573, %v11165_v28   ;;  %v15867_v55 = vpack.c.bf16 %v2642_v56, %v19033_v23  ;;  %v2643_v16 = vmax.f32 %v2634_v34, 0.0  ;;  %v13807_v24 = vld [vmem:[%s19000_s1 + $0x74] ss:$8 sps:$4 sm:$0xff]  }
 0x27c   : > { %v3196_v62 = vmax.f32 %v15699_v54, %v3161_v38  ;;  %v3163_v18 = vpop.f32.mrb[133].mxu1  ;;  %v2585_v41 = vpop.f32.mrb[134].mxu0  ;;  %11380 = vperm.xlu0 %13572, %v11372_v42   ;;  %v15875_v26 = vpack.c.bf16 %v3221_v32, %v3220_v3 }
 0x27d   : > { %19307 = vst [vmem:[#allocation42_spill] sm:$0xff] %v15867_v55  ;;  %v3222_v48 = vmax.f32 %v3213_v21, 0.0  ;;  %v2626_v30 = vmax.f32 %v19309_v22, %v2617_v63  ;;  %v2618_v61 = vmax.f32 %v15714_v52, %v2585_v41  ;;  %v3164_v7 = vpop.f32.mrb[134].mxu1  ;;  %v2587_v54 = vpop.f32.mrb[135].mxu0  ;;  %5925 = vmatpush1.bf16.msra.mxu0 %v13854_v37  ;;  %v15881_v8 = vpack.c.bf16 %v2643_v16, %v2642_v56 }
 0x27e   : > { %19308 = vst [vmem:[#allocation43_spill] sm:$0xff] %v15875_v26  ;;  %v3205_v25 = vmax.f32 %v19311_v17, %v3196_v62  ;;  %v3197_v44 = vmax.f32 %v15718_v60, %v3164_v7  ;;  %v3166_v28 = vpop.f32.mrb[135].mxu1  ;;  %6504 = vmatpush1.bf16.msra.mxu1 %v13855_v9  ;;  %7060 = vmatprep.subr.bf16.mxu0 %v19295_v47 }
 0x27f   : > { %19310 = vst [vmem:[#allocation44_spill] sm:$0xff] %v15881_v8  ;;  %v15891_v0 = vpack.c.bf16 %v3222_v48, %v3221_v32  ;;  %v19313_v52 = vmax.f32 %v15442_v29, %v15559_v53  ;;  %4825 = vmatmul.mubr.bf16.gmra.mrb[240].mxu0 %v13806_v35  ;;  %7639 = vmatprep.subr.bf16.mxu1 %v19295_v47 }
 0x280   : > { %v2635_v46 = vadd.f32 %v2626_v30, %v15278_v1  ;;  %v3206_v60 = vmax.f32 %v19314_v43, %v3197_v44  ;;  %5404 = vmatmul.mubr.bf16.gmra.mrb[240].mxu1 %v13806_v35  ;;  %11998 = vmatprep.mubr.msk.bf16.mxu0 %vm1215_vm0, %v13807_v24  ;;  %v3214_v37 = vadd.f32 %v3205_v25, %v15278_v1  ;;  %v13812_v35 = vld [vmem:[%s19000_s1 + $0x84] ss:$8 sps:$4 sm:$0xff]  }
 0x281   : > { %19312 = vst [vmem:[#allocation45_spill] sm:$0xff] %v15891_v0  ;;  %v2627_v58 = vmax.f32 %v19313_v52, %v2618_v61  ;;  %12064 = vmatprep.mubr.msk.bf16.mxu1 %vm1215_vm0, %v13807_v24  ;;  %11375 = vperm.xlu1 %13573, %v11371_v5   ;;  %v19324_v5 = vld [vmem:[#allocation37_spill] sm:$0xff] }
 0x282   : > { %v2644_v42 = vmax.f32 %v2635_v46, 0.0  ;;  %v2590_v53 = vpop.f32.mrb[136].mxu0  ;;  %v3215_v56 = vadd.f32 %v3206_v60, %v15314_v10  ;;  %v3223_v34 = vmax.f32 %v3214_v37, 0.0  ;;  %v19326_v60 = vld [vmem:[#allocation38_spill] sm:$0xff] }
 0x283   : > { %v2636_v29 = vadd.f32 %v2627_v58, %v15314_v10  ;;  %v2619_v40 = vmax.f32 %v15724_v51, %v2590_v53  ;;  %v3169_v9 = vpop.f32.mrb[136].mxu1  ;;  %v2592_v6 = vpop.f32.mrb[137].mxu0  ;;  %v19317_v51 = vmax.f32 %v15449_v50, %v15581_v31  ;;  %v13817_v53 = vld [vmem:[%s19000_s1 + $0x94] ss:$8 sps:$4 sm:$0xff]  }
 0x284   : > { %v15910_v21 = vpack.c.bf16 %v2644_v42, %v2643_v16  ;;  %v3198_v63 = vmax.f32 %v15729_v11, %v3169_v9  ;;  %v3171_v38 = vpop.f32.mrb[137].mxu1  ;;  %v2593_v36 = vpop.f32.mrb[138].mxu0  ;;  %v3224_v62 = vmax.f32 %v3215_v56, 0.0  ;;  %v15916_v18 = vpack.c.bf16 %v3223_v34, %v3222_v48  ;;  %v19329_v9 = vld [vmem:[#allocation33_spill] sm:$0xff] }
 0x285   : > { %v2645_v32 = vmax.f32 %v2636_v29, 0.0  ;;  %v2628_v41 = vmax.f32 %v19317_v51, %v2619_v40  ;;  %v2620_v24 = vmax.f32 %v15744_v39, %v2593_v36  ;;  %v3172_v16 = vpop.f32.mrb[138].mxu1  ;;  %v2595_v22 = vpop.f32.mrb[139].mxu0  ;;  %v19319_v11 = vmax.f32 %v15454_v45, %v15588_v12  ;;  %v19328_v40 = vld [vmem:[#allocation29_spill] sm:$0xff]  ;;  %v19333_v51 = vld [vmem:[#allocation30_spill] sm:$0xff] }
 0x286   : > { %19315 = vst [vmem:[#allocation46_spill] sm:$0xff] %v15910_v21  ;;  %19316 = vst [vmem:[#allocation47_spill] sm:$0xff] %v15916_v18  ;;  %v3199_v7 = vmax.f32 %v15748_v49, %v3172_v16  ;;  %v3174_v54 = vpop.f32.mrb[139].mxu1  ;;  %v15928_v17 = vpack.c.bf16 %v3224_v62, %v3223_v34  ;;  %v19321_v48 = vmax.f32 %v15458_v4, %v15595_v27  ;;  %v19323_v49 = vld [vmem:[#allocation26_spill] sm:$0xff]  ;;  %v19336_v22 = vld [vmem:[#allocation40_spill] sm:$0xff] }
 0x287   : > { %v15922_v30 = vpack.c.bf16 %v2645_v32, %v2644_v42  ;;  %v3207_v61 = vmax.f32 %v19319_v11, %v3198_v63  ;;  %4833 = vmatmul.mubr.bf16.gmra.mrb[244].mxu0 %v13810_v33  ;;  %v2637_v31 = vadd.f32 %v2628_v41, %v15274_v20  ;;  %v19322_v39 = vmax.f32 %v15460_v15, %v15602_v57  ;;  %v13814_v15 = vld [vmem:[%s19000_s1 + $0x80] ss:$8 sps:$4 sm:$0xff]   ;;  %v13866_v21 = vld [vmem:[%s14490_s23 + $0x150] sm:$0xff]  }
 0x288   : > { %19320 = vst [vmem:[#allocation49_spill] sm:$0xff] %v15928_v17  ;;  %v2629_v50 = vmax.f32 %v19321_v48, %v2620_v24  ;;  %5412 = vmatmul.mubr.bf16.gmra.mrb[244].mxu1 %v13810_v33  ;;  %11999 = vmatprep.mubr.msk.bf16.mxu0 %vm1215_vm0, %v13812_v35  ;;  %v19330_v6 = vmax.f32 %v19328_v40, %v19329_v9  ;;  %v19331_v63 = vld [vmem:[#allocation39_spill] sm:$0xff]  ;;  %v19334_v41 = vld [vmem:[#allocation34_spill] sm:$0xff] }
 0x289   : > { %19318 = vst [vmem:[#allocation48_spill] sm:$0xff] %v15922_v30  ;;  %v3208_v25 = vmax.f32 %v19322_v39, %v3199_v7  ;;  %v3216_v45 = vadd.f32 %v3207_v61, %v15274_v20  ;;  %12065 = vmatprep.mubr.msk.bf16.mxu1 %vm1215_vm0, %v13812_v35  ;;  %v2646_v12 = vmax.f32 %v2637_v31, 0.0  ;;  %v19335_v24 = vmax.f32 %v19333_v51, %v19334_v41  ;;  %v19339_v54 = vld [vmem:[#allocation35_spill] sm:$0xff]  ;;  %v13827_v41 = vld [vmem:[%s19000_s1 + $0xb4] ss:$8 sps:$4 sm:$0xff]  }
 0x28a   : > { %v2638_v44 = vadd.f32 %v2629_v50, %v19323_v49  ;;  %v2598_v28 = vpop.f32.mrb[140].mxu0  ;;  %v19341_v31 = vld [vmem:[#allocation11_spill] sm:$0xff] }
 0x28b   : > { %v3217_v4 = vadd.f32 %v3208_v25, %v19323_v49  ;;  %v3225_v27 = vmax.f32 %v3216_v45, 0.0  ;;  %v2621_v52 = vmax.f32 %v19324_v5, %v2598_v28  ;;  %v3177_v58 = vpop.f32.mrb[140].mxu1  ;;  %v2600_v46 = vpop.f32.mrb[141].mxu0  ;;  %v15946_v57 = vpack.c.bf16 %v2646_v12, %v2645_v32  ;;  %v19342_v25 = vld [vmem:[#allocation32_spill] sm:$0xff] }
 0x28c   : > { %v2647_v43 = vmax.f32 %v2638_v44, 0.0  ;;  %v3200_v37 = vmax.f32 %v19326_v60, %v3177_v58  ;;  %v3179_v42 = vpop.f32.mrb[141].mxu1  ;;  %v2601_v29 = vpop.f32.mrb[142].mxu0  ;;  %v19343_v45 = vld [vmem:[#allocation36_spill] sm:$0xff] }
 0x28d   : > { %19325 = vst [vmem:[#allocation37_spill] sm:$0xff] %v15946_v57  ;;  %v3226_v56 = vmax.f32 %v3217_v4, 0.0  ;;  %v15952_v34 = vpack.c.bf16 %v3225_v27, %v3224_v62  ;;  %v2630_v33 = vmax.f32 %v19330_v6, %v2621_v52  ;;  %v2622_v38 = vmax.f32 %v19331_v63, %v2601_v29  ;;  %v3180_v32 = vpop.f32.mrb[142].mxu1  ;;  %v2603_v36 = vpop.f32.mrb[143].mxu0  ;;  %v19338_v62 = vld [vmem:[#allocation31_spill] sm:$0xff] }
 0x28e   : > { %v15958_v35 = vpack.c.bf16 %v2647_v43, %v2646_v12  ;;  %v3209_v16 = vmax.f32 %v19335_v24, %v3200_v37  ;;  %v3201_v11 = vmax.f32 %v19336_v22, %v3180_v32  ;;  %v3182_v61 = vpop.f32.mrb[143].mxu1  ;;  %v19340_v48 = vmax.f32 %v19338_v62, %v19339_v54  ;;  %v13825_v54 = vld [vmem:[%s19000_s1 + $0xb0] ss:$8 sps:$4 sm:$0xff]  }
 0x28f   : > { %19327 = vst [vmem:[#allocation38_spill] sm:$0xff] %v15952_v34  ;;  %v15964_v7 = vpack.c.bf16 %v3226_v56, %v3225_v27  ;;  %4841 = vmatmul.mubr.bf16.gmra.mrb[248].mxu0 %v13814_v15  ;;  %v2639_v39 = vadd.f32 %v2630_v33, %v19341_v31  ;;  %v19344_v12 = vmax.f32 %v19342_v25, %v19343_v45  ;;  %v19347_v27 = vld [vmem:[#allocation13_spill] sm:$0xff] }
 0x290   : > { %19332 = vst [vmem:[#allocation29_spill] sm:$0xff] %v15958_v35  ;;  %v2631_v50 = vmax.f32 %v19340_v48, %v2622_v38  ;;  %5420 = vmatmul.mubr.bf16.gmra.mrb[248].mxu1 %v13814_v15  ;;  %12000 = vmatprep.mubr.msk.bf16.mxu0 %vm1215_vm0, %v13817_v53  ;;  %v15977_v28 = vadd.f32 %v3209_v16, %v19341_v31  ;;  %v13819_v15 = vld [vmem:[%s19000_s1 + $0x90] ss:$8 sps:$4 sm:$0xff]  }
 0x291   : > { %19337 = vst [vmem:[#allocation33_spill] sm:$0xff] %v15964_v7  ;;  %v15973_v44 = vmax.f32 %v19344_v12, %v3201_v11  ;;  %12066 = vmatprep.mubr.msk.bf16.mxu1 %vm1215_vm0, %v13817_v53  ;;  %v2648_v4 = vmax.f32 %v2639_v39, 0.0  ;;  %v13822_v53 = vld [vmem:[%s19000_s1 + $0xa4] ss:$8 sps:$4 sm:$0xff]   ;;  %v13880_v31 = vld [vmem:[%s14490_s23 + $0x170] sm:$0xff]  }
 0x292   : > { %19346 = vst [vmem:[#allocation30_spill] sm:$0xff] %v15977_v28  ;;  %v2640_v5 = vadd.f32 %v2631_v50, %v19347_v27  ;;  %v15981_v52 = vpop.f32.mrb[144].mxu0  ;;  %v19034_v58 = vmax.f32 %v15977_v28, 0.0  ;;  %v13832_v39 = vld [vmem:[%s19000_s1 + $0xc4] ss:$8 sps:$4 sm:$0xff]  }
 0x293   : > { %19345 = vst [vmem:[#allocation39_spill] sm:$0xff] %v15973_v44  ;;  %v15984_v46 = vpop.f32.mrb[144].mxu1  ;;  %v3622_v60 = vpop.f32.mrb[145].mxu0  ;;  %v15989_v37 = vpack.c.bf16 %v2648_v4, %v2647_v43 }
 0x294   : > { %v2649_v42 = vmax.f32 %v2640_v5, 0.0  ;;  %v4201_v29 = vpop.f32.mrb[145].mxu1  ;;  %v15991_v40 = vpop.f32.mrb[146].mxu0  ;;  %v15998_v9 = vpack.c.bf16 %v19034_v58, %v3226_v56 }
 0x295   : > { %19348 = vst [vmem:[#allocation34_spill] sm:$0xff] %v15989_v37  ;;  %v16000_v6 = vpop.f32.mrb[146].mxu1  ;;  %v3625_v33 = vpop.f32.mrb[147].mxu0  ;;  %v13865_v37 = vld [vmem:[%s19000_s1 + $0x14] ss:$8 sps:$4 sm:$0xff]  }
 0x296   : > { %19349 = vst [vmem:[#allocation40_spill] sm:$0xff] %v15998_v9  ;;  %v16004_v63 = vpack.c.bf16 %v3220_v3, %v2649_v42  ;;  %v16006_v43 = vpack.c.bf16 %v2649_v42, %v2648_v4  ;;  %v4204_v38 = vpop.f32.mrb[147].mxu1 }
 0x297   : > { %4849 = vmatmul.mubr.bf16.gmra.mrb[252].mxu0 %v13819_v15 }
 0x298   : > { %19350 = vst [vmem:[#allocation31_spill] sm:$0xff] %v16004_v63  ;;  %19351 = vst [vmem:[#allocation35_spill] sm:$0xff] %v16006_v43  ;;  %5428 = vmatmul.mubr.bf16.gmra.mrb[252].mxu1 %v13819_v15  ;;  %12001 = vmatprep.mubr.msk.bf16.mxu0 %vm1215_vm0, %v13822_v53  ;;  %v13830_v15 = vld [vmem:[%s19000_s1 + $0xc0] ss:$8 sps:$4 sm:$0xff]  }
 0x299   : > { %12067 = vmatprep.mubr.msk.bf16.mxu1 %vm1215_vm0, %v13822_v53  ;;  %v13835_v53 = vld [vmem:[%s19000_s1 + $0xd4] ss:$8 sps:$4 sm:$0xff]   ;;  %v13860_v63 = vld [vmem:[%s14490_s23 + $0x160] sm:$0xff]  }
 0x29a   : > { %v16010_v32 = vpop.f32.mrb[148].mxu0 }
 0x29b   : > { %v16012_v56 = vpop.f32.mrb[148].mxu1  ;;  %v3630_v36 = vpop.f32.mrb[149].mxu0 }
 0x29c   : > { %v4209_v3 = vpop.f32.mrb[149].mxu1  ;;  %v16017_v51 = vpop.f32.mrb[150].mxu0 }
 0x29d   : > { %v16022_v24 = vpop.f32.mrb[150].mxu1  ;;  %v3633_v16 = vpop.f32.mrb[151].mxu0 }
 0x29e   : > { %v4212_v22 = vpop.f32.mrb[151].mxu1  ;;  %v13833_v16 = vld [vmem:[%s19000_s1 + $0xd0] ss:$8 sps:$4 sm:$0xff]  }
 0x29f   : > { %4857 = vmatmul.mubr.bf16.gmra.mrb[0].mxu0 %v13820_v59 }
 0x2a0   : > { %5436 = vmatmul.mubr.bf16.gmra.mrb[0].mxu1 %v13820_v59  ;;  %12002 = vmatprep.mubr.msk.bf16.mxu0 %vm1215_vm0, %v13827_v41 }
 0x2a1   : > { %12068 = vmatprep.mubr.msk.bf16.mxu1 %vm1215_vm0, %v13827_v41 }
 0x2a2   : > { %v16026_v11 = vpop.f32.mrb[152].mxu0 }
 0x2a3   : > { %v16028_v61 = vpop.f32.mrb[152].mxu1  ;;  %v3638_v62 = vpop.f32.mrb[153].mxu0 }
 0x2a4   : > { %v4217_v48 = vpop.f32.mrb[153].mxu1  ;;  %v16033_v50 = vpop.f32.mrb[154].mxu0 }
 0x2a5   : > { %v16038_v25 = vpop.f32.mrb[154].mxu1  ;;  %v3641_v45 = vpop.f32.mrb[155].mxu0 }
 0x2a6   : > { %v4220_v12 = vpop.f32.mrb[155].mxu1 }
 0x2a7   : > { %4865 = vmatmul.mubr.bf16.gmra.mrb[4].mxu0 %v13825_v54 }
 0x2a8   : > { %5444 = vmatmul.mubr.bf16.gmra.mrb[4].mxu1 %v13825_v54  ;;  %12003 = vmatprep.mubr.msk.bf16.mxu0 %vm1215_vm0, %v13832_v39  ;;  %v13840_v54 = vld [vmem:[%s19000_s1 + $0xe4] ss:$8 sps:$4 sm:$0xff]  }
 0x2a9   : > { %12069 = vmatprep.mubr.msk.bf16.mxu1 %vm1215_vm0, %v13832_v39 }
 0x2aa   : > { %v16042_v4 = vpop.f32.mrb[156].mxu0 }
 0x2ab   : > { %v16044_v5 = vpop.f32.mrb[156].mxu1  ;;  %v3646_v60 = vpop.f32.mrb[157].mxu0 }
 0x2ac   : > { %v4225_v42 = vpop.f32.mrb[157].mxu1  ;;  %v16049_v29 = vpop.f32.mrb[158].mxu0 }
 0x2ad   : > { %19352 = vst [vmem:[#allocation32_spill] sm:$0xff] %v16049_v29  ;;  %v16054_v33 = vpop.f32.mrb[158].mxu1  ;;  %v3649_v38 = vpop.f32.mrb[159].mxu0  ;;  %v13887_v29 = vld [vmem:[%s14490_s23 + $0x180] sm:$0xff]  }
 0x2ae   : > { %19353 = vst [vmem:[#allocation36_spill] sm:$0xff] %v16054_v33  ;;  %v4228_v36 = vpop.f32.mrb[159].mxu1 }
 0x2af   : > { %4873 = vmatmul.mubr.bf16.gmra.mrb[8].mxu0 %v13830_v15  ;;  %v13838_v36 = vld [vmem:[%s19000_s1 + $0xe0] ss:$8 sps:$4 sm:$0xff]  }
 0x2b0   : > { %5452 = vmatmul.mubr.bf16.gmra.mrb[8].mxu1 %v13830_v15  ;;  %12004 = vmatprep.mubr.msk.bf16.mxu0 %vm1215_vm0, %v13835_v53 }
 0x2b1   : > { %12070 = vmatprep.mubr.msk.bf16.mxu1 %vm1215_vm0, %v13835_v53 }
 0x2b2   : > { %v16058_v59 = vpop.f32.mrb[160].mxu0 }
 0x2b3   : > { %19354 = vst [vmem:[#allocation50_spill] sm:$0xff] %v16058_v59  ;;  %v16060_v3 = vpop.f32.mrb[160].mxu1  ;;  %v3654_v41 = vpop.f32.mrb[161].mxu0 }
 0x2b4   : > { %19355 = vst [vmem:[#allocation51_spill] sm:$0xff] %v16060_v3  ;;  %v4233_v22 = vpop.f32.mrb[161].mxu1  ;;  %v16065_v62 = vpop.f32.mrb[162].mxu0 }
 0x2b5   : > { %v16072_v39 = vpop.f32.mrb[162].mxu1  ;;  %v3657_v45 = vpop.f32.mrb[163].mxu0 }
 0x2b6   : > { %v4236_v60 = vpop.f32.mrb[163].mxu1 }
 0x2b7   : > { %4881 = vmatmul.mubr.bf16.gmra.mrb[12].mxu0 %v13833_v16 }
 0x2b8   : > { %5460 = vmatmul.mubr.bf16.gmra.mrb[12].mxu1 %v13833_v16  ;;  %12005 = vmatprep.mubr.msk.bf16.mxu0 %vm1215_vm0, %v13840_v54 }
 0x2b9   : > { %12071 = vmatprep.mubr.msk.bf16.mxu1 %vm1215_vm0, %v13840_v54  ;;  %v13845_v54 = vld [vmem:[%s19000_s1 + $0xf4] ss:$8 sps:$4 sm:$0xff]  }
 0x2ba   : > { %v16078_v15 = vpop.f32.mrb[164].mxu0 }
 0x2bb   : > { %v16082_v53 = vpop.f32.mrb[164].mxu1  ;;  %v3662_v38 = vpop.f32.mrb[165].mxu0 }
 0x2bc   : > { %v4241_v16 = vpop.f32.mrb[165].mxu1  ;;  %v16089_v22 = vpop.f32.mrb[166].mxu0 }
 0x2bd   : > { %v16096_v60 = vpop.f32.mrb[166].mxu1  ;;  %v3665_v38 = vpop.f32.mrb[167].mxu0 }
 0x2be   : > { %v4244_v58 = vpop.f32.mrb[167].mxu1  ;;  %v13843_v38 = vld [vmem:[%s19000_s1 + $0xf0] ss:$8 sps:$4 sm:$0xff]  }
 0x2bf   : > { %4889 = vmatmul.mubr.bf16.gmra.mrb[16].mxu0 %v13838_v36 }
 0x2c0   : > { %5468 = vmatmul.mubr.bf16.gmra.mrb[16].mxu1 %v13838_v36  ;;  %12006 = vmatprep.mubr.msk.bf16.mxu0 %vm1215_vm0, %v13845_v54 }
 0x2c1   : > { %12072 = vmatprep.mubr.msk.bf16.mxu1 %vm1215_vm0, %v13845_v54  ;;  %v13848_v54 = vld [vmem:[%s19000_s1 + $0x104] ss:$8 sps:$4 sm:$0xff]  }
 0x2c2   : > { %v16102_v16 = vpop.f32.mrb[168].mxu0 }
 0x2c3   : > { %v16106_v42 = vpop.f32.mrb[168].mxu1  ;;  %v3670_v45 = vpop.f32.mrb[169].mxu0 }
 0x2c4   : > { %v4249_v36 = vpop.f32.mrb[169].mxu1  ;;  %v16113_v23 = vpop.f32.mrb[170].mxu0 }
 0x2c5   : > { %v16120_v12 = vpop.f32.mrb[170].mxu1  ;;  %v3673_v45 = vpop.f32.mrb[171].mxu0 }
 0x2c6   : > { %v4252_v35 = vpop.f32.mrb[171].mxu1  ;;  %v13846_v45 = vld [vmem:[%s19000_s1 + $0x100] ss:$8 sps:$4 sm:$0xff]  }
 0x2c7   : > { %4897 = vmatmul.mubr.bf16.gmra.mrb[20].mxu0 %v13843_v38 }
 0x2c8   : > { %5476 = vmatmul.mubr.bf16.gmra.mrb[20].mxu1 %v13843_v38  ;;  %12007 = vmatprep.mubr.msk.bf16.mxu0 %vm1215_vm0, %v13848_v54 }
 0x2c9   : > { %12073 = vmatprep.mubr.msk.bf16.mxu1 %vm1215_vm0, %v13848_v54  ;;  %v13853_v54 = vld [vmem:[%s19000_s1 + $0x114] ss:$8 sps:$4 sm:$0xff]  }
 0x2ca   : > { %v16126_v36 = vpop.f32.mrb[172].mxu0 }
 0x2cb   : > { %v16130_v30 = vpop.f32.mrb[172].mxu1  ;;  %v3678_v41 = vpop.f32.mrb[173].mxu0 }
 0x2cc   : > { %v4257_v38 = vpop.f32.mrb[173].mxu1  ;;  %v16137_v48 = vpop.f32.mrb[174].mxu0 }
 0x2cd   : > { %v16144_v8 = vpop.f32.mrb[174].mxu1  ;;  %v3681_v41 = vpop.f32.mrb[175].mxu0 }
 0x2ce   : > { %v4260_v9 = vpop.f32.mrb[175].mxu1  ;;  %v13851_v41 = vld [vmem:[%s19000_s1 + $0x110] ss:$8 sps:$4 sm:$0xff]  }
 0x2cf   : > { %4905 = vmatmul.mubr.bf16.gmra.mrb[24].mxu0 %v13846_v45 }
 0x2d0   : > { %5484 = vmatmul.mubr.bf16.gmra.mrb[24].mxu1 %v13846_v45  ;;  %12008 = vmatprep.mubr.msk.bf16.mxu0 %vm1215_vm0, %v13853_v54 }
 0x2d1   : > { %12074 = vmatprep.mubr.msk.bf16.mxu1 %vm1215_vm0, %v13853_v54  ;;  %v13858_v54 = vld [vmem:[%s19000_s1 + $0x4] ss:$8 sps:$4 sm:$0xff]  }
 0x2d2   : > { %v16150_v38 = vpop.f32.mrb[176].mxu0 }
 0x2d3   : > { %19356 = vst [vmem:[#allocation52_spill] sm:$0xff] %v16150_v38  ;;  %v16154_v34 = vpop.f32.mrb[176].mxu1  ;;  %v3686_v58 = vpop.f32.mrb[177].mxu0 }
 0x2d4   : > { %19357 = vst [vmem:[#allocation53_spill] sm:$0xff] %v16154_v34  ;;  %v4265_v45 = vpop.f32.mrb[177].mxu1  ;;  %v16161_v13 = vpop.f32.mrb[178].mxu0 }
 0x2d5   : > { %19358 = vst [vmem:[#allocation54_spill] sm:$0xff] %v16161_v13  ;;  %v16168_v18 = vpop.f32.mrb[178].mxu1  ;;  %v3689_v58 = vpop.f32.mrb[179].mxu0 }
 0x2d6   : > { %19359 = vst [vmem:[#allocation55_spill] sm:$0xff] %v16168_v18  ;;  %v4268_v43 = vpop.f32.mrb[179].mxu1  ;;  %v13856_v58 = vld [vmem:[%s19000_s1] ss:$8 sps:$4 sm:$0xff]  }
 0x2d7   : > { %4913 = vmatmul.mubr.bf16.gmra.mrb[28].mxu0 %v13851_v41  ;;  %v13859_v43 = vld [vmem:[%s14490_s23 + $0x140] sm:$0xff]  }
 0x2d8   : > { %5492 = vmatmul.mubr.bf16.gmra.mrb[28].mxu1 %v13851_v41  ;;  %12123 = vmatprep.mubr.msk.bf16.mxu0 %vm1215_vm0, %v13858_v54  ;;  %v13873_v18 = vld [vmem:[%s14490_s23 + $0x160] sm:$0xff]  }
 0x2d9   : > { %12189 = vmatprep.mubr.msk.bf16.mxu1 %vm1215_vm0, %v13858_v54 }
 0x2da   : > { %v16174_v45 = vpop.f32.mrb[180].mxu0 }
 0x2db   : > { %v16176_v9 = vpop.f32.mrb[180].mxu1  ;;  %v3694_v35 = vpop.f32.mrb[181].mxu0 }
 0x2dc   : > { %v4273_v17 = vpop.f32.mrb[181].mxu1  ;;  %v16181_v26 = vpop.f32.mrb[182].mxu0  ;;  %v13861_v35 = vld [vmem:[%s14490_s23 + $0x148] sm:$0xff]  }
 0x2dd   : > { %v16184_v41 = vpop.f32.mrb[182].mxu1  ;;  %v3697_v0 = vpop.f32.mrb[183].mxu0  ;;  %v13862_v17 = vld [vmem:[%s14490_s23 + $0x168] sm:$0xff]  }
 0x2de   : > { %v4276_v54 = vpop.f32.mrb[183].mxu1 }
 0x2df   : > { %5935 = vmatmul.mubr.bf16.vlgmr.msra.gmra.mrb[32].mxu0 %v13856_v58 }
 0x2e0   : > { %6514 = vmatmul.mubr.bf16.vlgmr.msra.gmra.mrb[32].mxu1 %v13856_v58  ;;  %7061 = vmatpush1.bf16.msra.mxu0 %v13859_v43  ;;  %v13863_v58 = vld [vmem:[%s19000_s1 + $0x10] ss:$8 sps:$4 sm:$0xff]  }
 0x2e1   : > { %7640 = vmatpush1.bf16.msra.mxu1 %v13860_v63  ;;  %7062 = vmatprep.subr.bf16.mxu0 %v19295_v47 }
 0x2e2   : > { %v16193_v57 = vpop.f32.mrb[184].mxu0  ;;  %7641 = vmatprep.subr.bf16.mxu1 %v19295_v47  ;;  %12124 = vmatprep.mubr.msk.bf16.mxu0 %vm1215_vm0, %v13865_v37 }
 0x2e3   : > { %v16197_v0 = vpop.f32.mrb[184].mxu1  ;;  %v3702_v54 = vpop.f32.mrb[185].mxu0  ;;  %12190 = vmatprep.mubr.msk.bf16.mxu1 %vm1215_vm0, %v13865_v37  ;;  %v13872_v37 = vld [vmem:[%s19000_s1 + $0x24] ss:$8 sps:$4 sm:$0xff]  }
 0x2e4   : > { %v4281_v63 = vpop.f32.mrb[185].mxu1  ;;  %7063 = vmatpush1.bf16.msra.mxu0 %v13861_v35  ;;  %v16203_v43 = vpop.f32.mrb[186].mxu0  ;;  %v13867_v54 = vld [vmem:[%s14490_s23 + $0x170] sm:$0xff]   ;;  %v13868_v35 = vld [vmem:[%s14490_s23 + $0x158] sm:$0xff]  }
 0x2e5   : > { %7642 = vmatpush1.bf16.msra.mxu1 %v13862_v17  ;;  %v16206_v55 = vpop.f32.mrb[186].mxu1  ;;  %v3705_v28 = vpop.f32.mrb[187].mxu0  ;;  %7064 = vmatprep.subr.bf16.mxu0 %v19295_v47  ;;  %v13869_v17 = vld [vmem:[%s14490_s23 + $0x178] sm:$0xff]  }
 0x2e6   : > { %v4284_v44 = vpop.f32.mrb[187].mxu1  ;;  %7643 = vmatprep.subr.bf16.mxu1 %v19295_v47 }
 0x2e7   : > { %5943 = vmatmul.mubr.bf16.gmra.mrb[36].mxu0 %v13863_v58 }
 0x2e8   : > { %6522 = vmatmul.mubr.bf16.gmra.mrb[36].mxu1 %v13863_v58  ;;  %7065 = vmatpush1.bf16.msra.mxu0 %v13866_v21  ;;  %v13870_v58 = vld [vmem:[%s19000_s1 + $0x20] ss:$8 sps:$4 sm:$0xff]  }
 0x2e9   : > { %7644 = vmatpush1.bf16.msra.mxu1 %v13867_v54  ;;  %7066 = vmatprep.subr.bf16.mxu0 %v19295_v47 }
 0x2ea   : > { %v16217_v28 = vpop.f32.mrb[188].mxu0  ;;  %7645 = vmatprep.subr.bf16.mxu1 %v19295_v47  ;;  %12125 = vmatprep.mubr.msk.bf16.mxu0 %vm1215_vm0, %v13872_v37 }
 0x2eb   : > { %v16221_v44 = vpop.f32.mrb[188].mxu1  ;;  %v3710_v63 = vpop.f32.mrb[189].mxu0  ;;  %12191 = vmatprep.mubr.msk.bf16.mxu1 %vm1215_vm0, %v13872_v37  ;;  %v13879_v37 = vld [vmem:[%s19000_s1 + $0x34] ss:$8 sps:$4 sm:$0xff]  }
 0x2ec   : > { %v4289_v21 = vpop.f32.mrb[189].mxu1  ;;  %7067 = vmatpush1.bf16.msra.mxu0 %v13868_v35  ;;  %v16227_v54 = vpop.f32.mrb[190].mxu0  ;;  %v13874_v63 = vld [vmem:[%s14490_s23 + $0x180] sm:$0xff]   ;;  %v13875_v35 = vld [vmem:[%s14490_s23 + $0x168] sm:$0xff]  }
 0x2ed   : > { %7646 = vmatpush1.bf16.msra.mxu1 %v13869_v17  ;;  %v16230_v3 = vpop.f32.mrb[190].mxu1  ;;  %v3713_v13 = vpop.f32.mrb[191].mxu0  ;;  %7068 = vmatprep.subr.bf16.mxu0 %v19295_v47  ;;  %v13876_v17 = vld [vmem:[%s14490_s23 + $0x188] sm:$0xff]  }
 0x2ee   : > { %v4292_v59 = vpop.f32.mrb[191].mxu1  ;;  %7647 = vmatprep.subr.bf16.mxu1 %v19295_v47 }
 0x2ef   : > { %5951 = vmatmul.mubr.bf16.gmra.mrb[40].mxu0 %v13870_v58 }
 0x2f0   : > { %6530 = vmatmul.mubr.bf16.gmra.mrb[40].mxu1 %v13870_v58  ;;  %7069 = vmatpush1.bf16.msra.mxu0 %v13873_v18  ;;  %v13877_v58 = vld [vmem:[%s19000_s1 + $0x30] ss:$8 sps:$4 sm:$0xff]  }
 0x2f1   : > { %7648 = vmatpush1.bf16.msra.mxu1 %v13874_v63  ;;  %7070 = vmatprep.subr.bf16.mxu0 %v19295_v47 }
 0x2f2   : > { %v16241_v13 = vpop.f32.mrb[192].mxu0  ;;  %7649 = vmatprep.subr.bf16.mxu1 %v19295_v47  ;;  %12126 = vmatprep.mubr.msk.bf16.mxu0 %vm1215_vm0, %v13879_v37 }
 0x2f3   : > { %v16245_v59 = vpop.f32.mrb[192].mxu1  ;;  %v3718_v21 = vpop.f32.mrb[193].mxu0  ;;  %12192 = vmatprep.mubr.msk.bf16.mxu1 %vm1215_vm0, %v13879_v37  ;;  %v13886_v37 = vld [vmem:[%s19000_s1 + $0x44] ss:$8 sps:$4 sm:$0xff]  }
 0x2f4   : > { %v4297_v18 = vpop.f32.mrb[193].mxu1  ;;  %7071 = vmatpush1.bf16.msra.mxu0 %v13875_v35  ;;  %v16251_v63 = vpop.f32.mrb[194].mxu0  ;;  %v13881_v21 = vld [vmem:[%s14490_s23 + $0x190] sm:$0xff]   ;;  %v13882_v35 = vld [vmem:[%s14490_s23 + $0x178] sm:$0xff]  }
 0x2f5   : > { %19360 = vst [vmem:[#allocation56_spill] sm:$0xff] %v16251_v63  ;;  %7650 = vmatpush1.bf16.msra.mxu1 %v13876_v17  ;;  %v16254_v34 = vpop.f32.mrb[194].mxu1  ;;  %v3721_v33 = vpop.f32.mrb[195].mxu0  ;;  %7072 = vmatprep.subr.bf16.mxu0 %v19295_v47  ;;  %v13883_v17 = vld [vmem:[%s14490_s23 + $0x198] sm:$0xff]  }
 0x2f6   : > { %19361 = vst [vmem:[#allocation57_spill] sm:$0xff] %v16254_v34  ;;  %v4300_v38 = vpop.f32.mrb[195].mxu1  ;;  %7651 = vmatprep.subr.bf16.mxu1 %v19295_v47 }
 0x2f7   : > { %5959 = vmatmul.mubr.bf16.gmra.mrb[44].mxu0 %v13877_v58 }
 0x2f8   : > { %6538 = vmatmul.mubr.bf16.gmra.mrb[44].mxu1 %v13877_v58  ;;  %7073 = vmatpush1.bf16.msra.mxu0 %v13880_v31  ;;  %v13884_v58 = vld [vmem:[%s19000_s1 + $0x40] ss:$8 sps:$4 sm:$0xff]  }
 0x2f9   : > { %7652 = vmatpush1.bf16.msra.mxu1 %v13881_v21  ;;  %7074 = vmatprep.subr.bf16.mxu0 %v19295_v47 }
 0x2fa   : > { %v16265_v33 = vpop.f32.mrb[196].mxu0  ;;  %7653 = vmatprep.subr.bf16.mxu1 %v19295_v47  ;;  %12127 = vmatprep.mubr.msk.bf16.mxu0 %vm1215_vm0, %v13886_v37 }
 0x2fb   : > { %19362 = vst [vmem:[#allocation58_spill] sm:$0xff] %v16265_v33  ;;  %v16269_v38 = vpop.f32.mrb[196].mxu1  ;;  %v3726_v18 = vpop.f32.mrb[197].mxu0  ;;  %12193 = vmatprep.mubr.msk.bf16.mxu1 %vm1215_vm0, %v13886_v37  ;;  %v13893_v37 = vld [vmem:[%s19000_s1 + $0x54] ss:$8 sps:$4 sm:$0xff]  }
 0x2fc   : > { %19363 = vst [vmem:[#allocation59_spill] sm:$0xff] %v16269_v38  ;;  %v4305_v31 = vpop.f32.mrb[197].mxu1  ;;  %7075 = vmatpush1.bf16.msra.mxu0 %v13882_v35  ;;  %v3727_v21 = vpop.f32.mrb[198].mxu0  ;;  %v13888_v18 = vld [vmem:[%s14490_s23 + $0x1a0] sm:$0xff]   ;;  %v19364_v35 = vmax.f32 %v15981_v52, %v16065_v62 }
 0x2fd   : > { %7654 = vmatpush1.bf16.msra.mxu1 %v13883_v17  ;;  %v3772_v33 = vmax.f32 %v16174_v45, %v3727_v21  ;;  %v4306_v34 = vpop.f32.mrb[198].mxu1  ;;  %v3729_v63 = vpop.f32.mrb[199].mxu0  ;;  %7076 = vmatprep.subr.bf16.mxu0 %v19295_v47  ;;  %v19365_v45 = vmax.f32 %v15984_v46, %v16072_v39  ;;  %v13889_v31 = vld [vmem:[%s14490_s23 + $0x188] sm:$0xff]   ;;  %v13891_v46 = vld [vmem:[%s19000_s1 + $0x50] ss:$8 sps:$4 sm:$0xff]  }
 0x2fe   : > { %v4351_v38 = vmax.f32 %v16176_v9, %v4306_v34  ;;  %v4308_v49 = vpop.f32.mrb[199].mxu1  ;;  %7655 = vmatprep.subr.bf16.mxu1 %v19295_v47  ;;  %v13894_v21 = vld [vmem:[%s14490_s23 + $0x190] sm:$0xff]  }
 0x2ff   : > { %v3781_v17 = vmax.f32 %v19364_v35, %v3772_v33  ;;  %5967 = vmatmul.mubr.bf16.gmra.mrb[48].mxu0 %v13884_v58  ;;  %v13890_v49 = vld [vmem:[%s14490_s23 + $0x1a8] sm:$0xff]  }
 0x300   : > { %v4360_v63 = vmax.f32 %v19365_v45, %v4351_v38  ;;  %6546 = vmatmul.mubr.bf16.gmra.mrb[48].mxu1 %v13884_v58  ;;  %7077 = vmatpush1.bf16.msra.mxu0 %v13887_v29  ;;  %v19366_v29 = vld [vmem:[#allocation14_spill] sm:$0xff] }
 0x301   : > { %7656 = vmatpush1.bf16.msra.mxu1 %v13888_v18  ;;  %7078 = vmatprep.subr.bf16.mxu0 %v19295_v47  ;;  %v16302_v39 = vadd.f32 %v19366_v29, %v19347_v27  ;;  %v19369_v18 = vmax.f32 %v15991_v40, %v16078_v15  ;;  %v13896_v29 = vld [vmem:[%s14490_s23 + $0x198] sm:$0xff]  }
 0x302   : > { %v3732_v34 = vpop.f32.mrb[200].mxu0  ;;  %7657 = vmatprep.subr.bf16.mxu1 %v19295_v47  ;;  %12128 = vmatprep.mubr.msk.bf16.mxu0 %vm1215_vm0, %v13893_v37 }
 0x303   : > { %v3773_v52 = vmax.f32 %v16181_v26, %v3732_v34  ;;  %v4311_v62 = vpop.f32.mrb[200].mxu1  ;;  %v3734_v9 = vpop.f32.mrb[201].mxu0  ;;  %12194 = vmatprep.mubr.msk.bf16.mxu1 %vm1215_vm0, %v13893_v37  ;;  %19367 = vst [vmem:[#allocation14_spill] sm:$0xff] %v16302_v39  ;;  %v16307_v26 = vadd.f32 %v3781_v17, %v15201_v19  ;;  %v19370_v17 = vmax.f32 %v16000_v6, %v16082_v53  ;;  %v19060_v6 = vmax.f32 %v16302_v39, 0.0 }
 0x304   : > { %v4352_v33 = vmax.f32 %v16184_v41, %v4311_v62  ;;  %v4313_v38 = vpop.f32.mrb[201].mxu1  ;;  %7079 = vmatpush1.bf16.msra.mxu0 %v13889_v31  ;;  %v3735_v58 = vpop.f32.mrb[202].mxu0  ;;  %v13895_v41 = vld [vmem:[%s14490_s23 + $0x1b0] sm:$0xff]   ;;  %v16316_v31 = vadd.f32 %v4360_v63, %v15201_v19  ;;  %v19371_v63 = vmax.f32 %v16010_v32, %v16089_v22  ;;  %v13897_v32 = vld [vmem:[%s14490_s23 + $0x1b8] sm:$0xff]   ;;  %s11447_s23 = scalar_lea.vmem (%p14238_p5), %s19010_s11, %s12530_s27 }
 0x305   : > { %19368 = vst [vmem:[#allocation60_spill] sm:$0xff] %v16307_v26  ;;  %v3782_v35 = vmax.f32 %v19369_v18, %v3773_v52  ;;  %7658 = vmatpush1.bf16.msra.mxu1 %v13890_v49  ;;  %v3774_v37 = vmax.f32 %v16193_v57, %v3735_v58  ;;  %v4314_v45 = vpop.f32.mrb[202].mxu1  ;;  %v3737_v34 = vpop.f32.mrb[203].mxu0  ;;  %7080 = vmatprep.subr.bf16.mxu0 %v19295_v47  ;;  %v13900_v57 = vld [vmem:[%s19000_s1 + $0x64] ss:$8 sps:$4 sm:$0xff]  }
 0x306   : > { %v4361_v62 = vmax.f32 %v19370_v17, %v4352_v33  ;;  %v4353_v9 = vmax.f32 %v16197_v0, %v4314_v45  ;;  %v4316_v40 = vpop.f32.mrb[203].mxu1  ;;  %7659 = vmatprep.subr.bf16.mxu1 %v19295_v47  ;;  %v19372_v0 = vmax.f32 %v16012_v56, %v16096_v60  ;;  %v19059_v33 = vmax.f32 %v16307_v26, 0.0  ;;  %v19373_v45 = vld [vmem:[#allocation6_spill] sm:$0xff] }
 0x307   : > { %v3791_v15 = vadd.f32 %v3782_v35, %v15232_v2  ;;  %v3783_v49 = vmax.f32 %v19371_v63, %v3774_v37  ;;  %5975 = vmatmul.mubr.bf16.gmra.mrb[52].mxu0 %v13891_v46  ;;  %v4378_v22 = vmax.f32 %v16316_v31, 0.0  ;;  %v19374_v34 = vmax.f32 %v19373_v45, 0.0  ;;  %v13898_v17 = vld [vmem:[%s19000_s1 + $0x60] ss:$8 sps:$4 sm:$0xff]  }
 0x308   : > { %v4370_v53 = vadd.f32 %v4361_v62, %v15232_v2  ;;  %v4362_v52 = vmax.f32 %v19372_v0, %v4353_v9  ;;  %6554 = vmatmul.mubr.bf16.gmra.mrb[52].mxu1 %v13891_v46  ;;  %7081 = vmatpush1.bf16.msra.mxu0 %v13894_v21 }
 0x309   : > { %v3800_v38 = vmax.f32 %v3791_v15, 0.0  ;;  %v3792_v58 = vadd.f32 %v3783_v49, %v15236_v14  ;;  %7660 = vmatpush1.bf16.msra.mxu1 %v13895_v41  ;;  %7082 = vmatprep.subr.bf16.mxu0 %v19295_v47  ;;  %v7971_v41 = vpack.c.bf16 %v19060_v6, %v19374_v34  ;;  %v13903_v15 = vld [vmem:[%s19000_s1 + $0x74] ss:$8 sps:$4 sm:$0xff]  }
 0x30a   : > { %v4379_v18 = vmax.f32 %v4370_v53, 0.0  ;;  %v4371_v35 = vadd.f32 %v4362_v52, %v15236_v14  ;;  %v3740_v37 = vpop.f32.mrb[204].mxu0  ;;  %7661 = vmatprep.subr.bf16.mxu1 %v19295_v47  ;;  %12129 = vmatprep.mubr.msk.bf16.mxu0 %vm1215_vm0, %v13900_v57 }
 0x30b   : > { %v3801_v56 = vmax.f32 %v3792_v58, 0.0  ;;  %v3775_v60 = vmax.f32 %v16203_v43, %v3740_v37  ;;  %v4319_v46 = vpop.f32.mrb[204].mxu1  ;;  %v3742_v21 = vpop.f32.mrb[205].mxu0  ;;  %12195 = vmatprep.mubr.msk.bf16.mxu1 %vm1215_vm0, %v13900_v57  ;;  %v16355_v47 = vpack.c.bf16 %v3800_v38, %v19059_v33  ;;  %v19377_v57 = vmax.f32 %v16017_v51, %v16102_v16 }
 0x30c   : > { %v4380_v62 = vmax.f32 %v4371_v35, 0.0  ;;  %v4354_v43 = vmax.f32 %v16206_v55, %v4319_v46  ;;  %v4321_v9 = vpop.f32.mrb[205].mxu1  ;;  %7083 = vmatpush1.bf16.msra.mxu0 %v13896_v29  ;;  %v3743_v40 = vpop.f32.mrb[206].mxu0  ;;  %v16363_v63 = vpack.c.bf16 %v4379_v18, %v4378_v22  ;;  %v19379_v29 = vmax.f32 %v16022_v24, %v16106_v42 }
 0x30d   : > { %19375 = vst [vmem:[#allocation6_spill] sm:$0xff] %v16355_v47  ;;  %v3784_v49 = vmax.f32 %v19377_v57, %v3775_v60  ;;  %7662 = vmatpush1.bf16.msra.mxu1 %v13897_v32  ;;  %v3776_v53 = vmax.f32 %v16217_v28, %v3743_v40  ;;  %v4322_v0 = vpop.f32.mrb[206].mxu1  ;;  %12533 = vmatprep.subr.bf16.mxu0 %v7971_v41  ;;  %v3745_v55 = vpop.f32.mrb[207].mxu0  ;;  %v13906_v40 = vld [vmem:[%s19000_s1 + $0x84] ss:$8 sps:$4 sm:$0xff]  }
 0x30e   : > { %19376 = vst [vmem:[#allocation61_spill] sm:$0xff] %v16363_v63  ;;  %v16369_v52 = vpack.c.bf16 %v3801_v56, %v3800_v38  ;;  %v4363_v58 = vmax.f32 %v19379_v29, %v4354_v43  ;;  %v4355_v35 = vmax.f32 %v16221_v44, %v4322_v0  ;;  %13250 = vmatprep.subr.bf16.mxu1 %v15964_v7  ;;  %v4324_v37 = vpop.f32.mrb[207].mxu1 }
 0x30f   : > { %v16376_v46 = vpack.c.bf16 %v4380_v62, %v4379_v18  ;;  %v3793_v51 = vadd.f32 %v3784_v49, %v15278_v1  ;;  %v19381_v16 = vmax.f32 %v16026_v11, %v16113_v23  ;;  %5983 = vmatmul.mubr.bf16.gmra.mrb[56].mxu0 %v13898_v17  ;;  %v19382_v24 = vmax.f32 %v16028_v61, %v16120_v12  ;;  %v13901_v61 = vld [vmem:[%s19000_s1 + $0x70] ss:$8 sps:$4 sm:$0xff]  }
 0x310   : > { %19378 = vst [vmem:[#allocation62_spill] sm:$0xff] %v16369_v52  ;;  %v4372_v38 = vadd.f32 %v4363_v58, %v15278_v1  ;;  %6562 = vmatmul.mubr.bf16.gmra.mrb[56].mxu1 %v13898_v17  ;;  %12130 = vmatprep.mubr.msk.bf16.mxu0 %vm1215_vm0, %v13903_v15  ;;  %v19390_v37 = vmax.f32 %v16044_v5, %v16144_v8  ;;  %v13904_v8 = vld [vmem:[%s19000_s1 + $0x80] ss:$8 sps:$4 sm:$0xff]  }
 0x311   : > { %19380 = vst [vmem:[#allocation63_spill] sm:$0xff] %v16376_v46  ;;  %v3785_v28 = vmax.f32 %v19381_v16, %v3776_v53  ;;  %v4364_v42 = vmax.f32 %v19382_v24, %v4355_v35  ;;  %v3802_v44 = vmax.f32 %v3793_v51, 0.0  ;;  %12196 = vmatprep.mubr.msk.bf16.mxu1 %vm1215_vm0, %v13903_v15 }
 0x312   : > { %v4381_v18 = vmax.f32 %v4372_v38, 0.0  ;;  %v3748_v23 = vpop.f32.mrb[208].mxu0  ;;  %v19392_v38 = vld [vmem:[#allocation56_spill] sm:$0xff] }
 0x313   : > { %v3794_v32 = vadd.f32 %v3785_v28, %v15314_v10  ;;  %v4373_v60 = vadd.f32 %v4364_v42, %v15314_v10  ;;  %v3777_v21 = vmax.f32 %v16227_v54, %v3748_v23  ;;  %v4327_v45 = vpop.f32.mrb[208].mxu1  ;;  %v3750_v34 = vpop.f32.mrb[209].mxu0  ;;  %v16394_v12 = vpack.c.bf16 %v3802_v44, %v3801_v56 }
 0x314   : > { %v4356_v17 = vmax.f32 %v16230_v3, %v4327_v45  ;;  %v4329_v43 = vpop.f32.mrb[209].mxu1  ;;  %v3751_v9 = vpop.f32.mrb[210].mxu0  ;;  %v16400_v15 = vpack.c.bf16 %v4381_v18, %v4380_v62  ;;  %v19385_v54 = vmax.f32 %v16033_v50, %v16126_v36  ;;  %v19387_v3 = vmax.f32 %v16038_v25, %v16130_v30  ;;  %v19391_v25 = vld [vmem:[#allocation26_spill] sm:$0xff]  ;;  %v13909_v45 = vld [vmem:[%s19000_s1 + $0x94] ss:$8 sps:$4 sm:$0xff]  }
 0x315   : > { %v3803_v11 = vmax.f32 %v3794_v32, 0.0  ;;  %19383 = vst [vmem:[#allocation64_spill] sm:$0xff] %v16394_v12  ;;  %v4382_v41 = vmax.f32 %v4373_v60, 0.0  ;;  %v3778_v49 = vmax.f32 %v16241_v13, %v3751_v9  ;;  %v4330_v53 = vpop.f32.mrb[210].mxu1  ;;  %v3753_v56 = vpop.f32.mrb[211].mxu0  ;;  %v19389_v50 = vmax.f32 %v16042_v4, %v16137_v48 }
 0x316   : > { %19384 = vst [vmem:[#allocation65_spill] sm:$0xff] %v16400_v15  ;;  %v3786_v57 = vmax.f32 %v19385_v54, %v3777_v21  ;;  %v4365_v55 = vmax.f32 %v19387_v3, %v4356_v17  ;;  %v4357_v29 = vmax.f32 %v16245_v59, %v4330_v53  ;;  %v4332_v58 = vpop.f32.mrb[211].mxu1  ;;  %v19397_v17 = vld [vmem:[#allocation52_spill] sm:$0xff]  ;;  %v19402_v56 = vld [vmem:[#allocation53_spill] sm:$0xff] }
 0x317   : > { %v16406_v0 = vpack.c.bf16 %v3803_v11, %v3802_v44  ;;  %v16412_v35 = vpack.c.bf16 %v4382_v41, %v4381_v18  ;;  %v3787_v36 = vmax.f32 %v19389_v50, %v3778_v49  ;;  %5991 = vmatmul.mubr.bf16.gmra.mrb[60].mxu0 %v13901_v61  ;;  %v19394_v18 = vld [vmem:[#allocation57_spill] sm:$0xff]  ;;  %v19401_v53 = vld [vmem:[#allocation36_spill] sm:$0xff] }
 0x318   : > { %v3795_v62 = vadd.f32 %v3786_v57, %v15274_v20  ;;  %v4374_v13 = vadd.f32 %v4365_v55, %v15274_v20  ;;  %v4366_v51 = vmax.f32 %v19390_v37, %v4357_v29  ;;  %6570 = vmatmul.mubr.bf16.gmra.mrb[60].mxu1 %v13901_v61  ;;  %12131 = vmatprep.mubr.msk.bf16.mxu0 %vm1215_vm0, %v13906_v40  ;;  %v19396_v61 = vld [vmem:[#allocation32_spill] sm:$0xff]  ;;  %v19404_v29 = vld [vmem:[#allocation59_spill] sm:$0xff]  ;;  %v19408_v37 = vld [vmem:[#allocation54_spill] sm:$0xff] }
 0x319   : > { %19386 = vst [vmem:[#allocation66_spill] sm:$0xff] %v16406_v0  ;;  %19388 = vst [vmem:[#allocation67_spill] sm:$0xff] %v16412_v35  ;;  %v3796_v59 = vadd.f32 %v3787_v36, %v19391_v25  ;;  %12197 = vmatprep.mubr.msk.bf16.mxu1 %vm1215_vm0, %v13906_v40  ;;  %v19398_v43 = vmax.f32 %v19396_v61, %v19397_v17  ;;  %v19399_v40 = vld [vmem:[#allocation58_spill] sm:$0xff]  ;;  %v19403_v3 = vmax.f32 %v19401_v53, %v19402_v56 }
 0x31a   : > { %v3804_v30 = vmax.f32 %v3795_v62, 0.0  ;;  %v4383_v16 = vmax.f32 %v4374_v13, 0.0  ;;  %v4375_v28 = vadd.f32 %v4366_v51, %v19391_v25  ;;  %v3756_v4 = vpop.f32.mrb[212].mxu0  ;;  %v19407_v13 = vld [vmem:[#allocation50_spill] sm:$0xff] }
 0x31b   : > { %v3805_v48 = vmax.f32 %v3796_v59, 0.0  ;;  %v3779_v24 = vmax.f32 %v19392_v38, %v3756_v4  ;;  %v4335_v42 = vpop.f32.mrb[212].mxu1  ;;  %v3758_v44 = vpop.f32.mrb[213].mxu0  ;;  %v19409_v51 = vmax.f32 %v19407_v13, %v19408_v37  ;;  %v19412_v4 = vld [vmem:[#allocation55_spill] sm:$0xff] }
 0x31c   : > { %v16430_v5 = vpack.c.bf16 %v3804_v30, %v3803_v11  ;;  %v4384_v32 = vmax.f32 %v4375_v28, 0.0  ;;  %v4358_v60 = vmax.f32 %v19394_v18, %v4335_v42  ;;  %v4337_v23 = vpop.f32.mrb[213].mxu1  ;;  %v3759_v21 = vpop.f32.mrb[214].mxu0  ;;  %v16436_v34 = vpack.c.bf16 %v4383_v16, %v4382_v41  ;;  %v19406_v41 = vld [vmem:[#allocation11_spill] sm:$0xff] }
 0x31d   : > { %v3788_v9 = vmax.f32 %v19398_v43, %v3779_v24  ;;  %v3780_v54 = vmax.f32 %v19399_v40, %v3759_v21  ;;  %v4338_v57 = vpop.f32.mrb[214].mxu1  ;;  %v3761_v11 = vpop.f32.mrb[215].mxu0  ;;  %v16442_v49 = vpack.c.bf16 %v3805_v48, %v3804_v30  ;;  %v19411_v30 = vld [vmem:[#allocation51_spill] sm:$0xff] }
 0x31e   : > { %19393 = vst [vmem:[#allocation56_spill] sm:$0xff] %v16430_v5  ;;  %19395 = vst [vmem:[#allocation57_spill] sm:$0xff] %v16436_v34  ;;  %v4367_v55 = vmax.f32 %v19403_v3, %v4358_v60  ;;  %v4359_v58 = vmax.f32 %v19404_v29, %v4338_v57  ;;  %v4340_v62 = vpop.f32.mrb[215].mxu1  ;;  %v16448_v50 = vpack.c.bf16 %v4384_v32, %v4383_v16  ;;  %v13910_v3 = vld [vmem:[%s19000_s1 + $0xa0] ss:$8 sps:$4 sm:$0xff]  }
 0x31f   : > { %19400 = vst [vmem:[#allocation32_spill] sm:$0xff] %v16442_v49  ;;  %v3797_v36 = vadd.f32 %v3788_v9, %v19406_v41  ;;  %v3789_v59 = vmax.f32 %v19409_v51, %v3780_v54  ;;  %5999 = vmatmul.mubr.bf16.gmra.mrb[64].mxu0 %v13904_v8  ;;  %v19413_v38 = vmax.f32 %v19411_v30, %v19412_v4  ;;  %v13913_v51 = vld [vmem:[%s19000_s1 + $0xb0] ss:$8 sps:$4 sm:$0xff]   ;;  %v13918_v4 = vld [vmem:[%s19000_s1 + $0xc4] ss:$8 sps:$4 sm:$0xff]  }
 0x320   : > { %19405 = vst [vmem:[#allocation52_spill] sm:$0xff] %v16448_v50  ;;  %v16455_v28 = vadd.f32 %v4367_v55, %v19406_v41  ;;  %6578 = vmatmul.mubr.bf16.gmra.mrb[64].mxu1 %v13904_v8  ;;  %12132 = vmatprep.mubr.msk.bf16.mxu0 %vm1215_vm0, %v13909_v45  ;;  %v13907_v8 = vld [vmem:[%s19000_s1 + $0x90] ss:$8 sps:$4 sm:$0xff]   ;;  %v13945_v41 = vld [vmem:[%s19000_s1 + $0x34] ss:$8 sps:$4 sm:$0xff]  }
 0x321   : > { %v16460_v24 = vmax.f32 %v19413_v38, %v4359_v58  ;;  %v3806_v16 = vmax.f32 %v3797_v36, 0.0  ;;  %v3798_v42 = vadd.f32 %v3789_v59, %v19347_v27  ;;  %12198 = vmatprep.mubr.msk.bf16.mxu1 %vm1215_vm0, %v13909_v45  ;;  %v13912_v45 = vld [vmem:[%s19000_s1 + $0xa4] ss:$8 sps:$4 sm:$0xff]  }
 0x322   : > { %19410 = vst [vmem:[#allocation58_spill] sm:$0xff] %v16455_v28  ;;  %v19058_v44 = vmax.f32 %v16455_v28, 0.0  ;;  %v16466_v18 = vpop.f32.mrb[216].mxu0 }
 0x323   : > { %19414 = vst [vmem:[#allocation36_spill] sm:$0xff] %v16460_v24  ;;  %v16468_v60 = vmax.f32 %v3798_v42, 0.0  ;;  %v16470_v23 = vpop.f32.mrb[216].mxu1  ;;  %v4780_v21 = vpop.f32.mrb[217].mxu0  ;;  %v16475_v61 = vpack.c.bf16 %v3806_v16, %v3805_v48 }
 0x324   : > { %v5359_v17 = vpop.f32.mrb[217].mxu1  ;;  %v16477_v43 = vpop.f32.mrb[218].mxu0  ;;  %v16484_v9 = vpack.c.bf16 %v19058_v44, %v4384_v32 }
 0x325   : > { %19415 = vst [vmem:[#allocation53_spill] sm:$0xff] %v16475_v61  ;;  %v16486_v40 = vpop.f32.mrb[218].mxu1  ;;  %v4783_v54 = vpop.f32.mrb[219].mxu0  ;;  %v16489_v57 = vpack.c.bf16 %v16468_v60, %v3806_v16  ;;  %v16494_v48 = vpack.c.bf16 %v4378_v22, %v16468_v60  ;;  %v13915_v22 = vld [vmem:[%s19000_s1 + $0xb4] ss:$8 sps:$4 sm:$0xff]  }
 0x326   : > { %19416 = vst [vmem:[#allocation59_spill] sm:$0xff] %v16484_v9  ;;  %v5362_v11 = vpop.f32.mrb[219].mxu1 }
 0x327   : > { %19417 = vst [vmem:[#allocation50_spill] sm:$0xff] %v16489_v57  ;;  %19418 = vst [vmem:[#allocation54_spill] sm:$0xff] %v16494_v48  ;;  %6007 = vmatmul.mubr.bf16.gmra.mrb[68].mxu0 %v13907_v8 }
 0x328   : > { %6586 = vmatmul.mubr.bf16.gmra.mrb[68].mxu1 %v13907_v8  ;;  %12133 = vmatprep.mubr.msk.bf16.mxu0 %vm1215_vm0, %v13912_v45 }
 0x329   : > { %12199 = vmatprep.mubr.msk.bf16.mxu1 %vm1215_vm0, %v13912_v45  ;;  %v13916_v45 = vld [vmem:[%s19000_s1 + $0xc0] ss:$8 sps:$4 sm:$0xff]  }
 0x32a   : > { %v16498_v32 = vpop.f32.mrb[220].mxu0 }
 0x32b   : > { %v16500_v53 = vpop.f32.mrb[220].mxu1  ;;  %v4788_v56 = vpop.f32.mrb[221].mxu0 }
 0x32c   : > { %v5367_v55 = vpop.f32.mrb[221].mxu1  ;;  %v16505_v31 = vpop.f32.mrb[222].mxu0  ;;  %v13921_v56 = vld [vmem:[%s19000_s1 + $0xd4] ss:$8 sps:$4 sm:$0xff]  }
 0x32d   : > { %v16510_v29 = vpop.f32.mrb[222].mxu1  ;;  %v4791_v58 = vpop.f32.mrb[223].mxu0 }
 0x32e   : > { %v5370_v62 = vpop.f32.mrb[223].mxu1 }
 0x32f   : > { %6015 = vmatmul.mubr.bf16.gmra.mrb[72].mxu0 %v13910_v3 }
 0x330   : > { %6594 = vmatmul.mubr.bf16.gmra.mrb[72].mxu1 %v13910_v3  ;;  %12134 = vmatprep.mubr.msk.bf16.mxu0 %vm1215_vm0, %v13915_v22 }
 0x331   : > { %12200 = vmatprep.mubr.msk.bf16.mxu1 %vm1215_vm0, %v13915_v22 }
 0x332   : > { %v16514_v36 = vpop.f32.mrb[224].mxu0 }
 0x333   : > { %v16516_v13 = vpop.f32.mrb[224].mxu1  ;;  %v4796_v37 = vpop.f32.mrb[225].mxu0 }
 0x334   : > { %v5375_v59 = vpop.f32.mrb[225].mxu1  ;;  %v16521_v30 = vpop.f32.mrb[226].mxu0 }
 0x335   : > { %v16526_v38 = vpop.f32.mrb[226].mxu1  ;;  %v4799_v16 = vpop.f32.mrb[227].mxu0 }
 0x336   : > { %v5378_v42 = vpop.f32.mrb[227].mxu1  ;;  %v13924_v16 = vld [vmem:[%s19000_s1 + $0xe4] ss:$8 sps:$4 sm:$0xff]  }
 0x337   : > { %6023 = vmatmul.mubr.bf16.gmra.mrb[76].mxu0 %v13913_v51 }
 0x338   : > { %6602 = vmatmul.mubr.bf16.gmra.mrb[76].mxu1 %v13913_v51  ;;  %12135 = vmatprep.mubr.msk.bf16.mxu0 %vm1215_vm0, %v13918_v4  ;;  %v13919_v51 = vld [vmem:[%s19000_s1 + $0xd0] ss:$8 sps:$4 sm:$0xff]  }
 0x339   : > { %12201 = vmatprep.mubr.msk.bf16.mxu1 %vm1215_vm0, %v13918_v4 }
 0x33a   : > { %v16530_v21 = vpop.f32.mrb[228].mxu0 }
 0x33b   : > { %v16532_v8 = vpop.f32.mrb[228].mxu1  ;;  %v4804_v17 = vpop.f32.mrb[229].mxu0 }
 0x33c   : > { %v5383_v54 = vpop.f32.mrb[229].mxu1  ;;  %v16537_v11 = vpop.f32.mrb[230].mxu0 }
 0x33d   : > { %19419 = vst [vmem:[#allocation51_spill] sm:$0xff] %v16537_v11  ;;  %v16542_v3 = vpop.f32.mrb[230].mxu1  ;;  %v4807_v55 = vpop.f32.mrb[231].mxu0 }
 0x33e   : > { %19420 = vst [vmem:[#allocation55_spill] sm:$0xff] %v16542_v3  ;;  %v5386_v22 = vpop.f32.mrb[231].mxu1 }
 0x33f   : > { %6031 = vmatmul.mubr.bf16.gmra.mrb[80].mxu0 %v13916_v45 }
 0x340   : > { %6610 = vmatmul.mubr.bf16.gmra.mrb[80].mxu1 %v13916_v45  ;;  %12136 = vmatprep.mubr.msk.bf16.mxu0 %vm1215_vm0, %v13921_v56 }
 0x341   : > { %12202 = vmatprep.mubr.msk.bf16.mxu1 %vm1215_vm0, %v13921_v56 }
 0x342   : > { %v16546_v58 = vpop.f32.mrb[232].mxu0 }
 0x343   : > { %19421 = vst [vmem:[#allocation68_spill] sm:$0xff] %v16546_v58  ;;  %v16548_v62 = vpop.f32.mrb[232].mxu1  ;;  %v4812_v37 = vpop.f32.mrb[233].mxu0 }
 0x344   : > { %19422 = vst [vmem:[#allocation69_spill] sm:$0xff] %v16548_v62  ;;  %v5391_v59 = vpop.f32.mrb[233].mxu1  ;;  %v16553_v4 = vpop.f32.mrb[234].mxu0  ;;  %v19433_v62 = vld [vmem:[#allocation42_spill] sm:$0xff] }
 0x345   : > { %v16560_v17 = vpop.f32.mrb[234].mxu1  ;;  %v4815_v45 = vpop.f32.mrb[235].mxu0 }
 0x346   : > { %v5394_v56 = vpop.f32.mrb[235].mxu1  ;;  %v13922_v45 = vld [vmem:[%s19000_s1 + $0xe0] ss:$8 sps:$4 sm:$0xff]  }
 0x347   : > { %6039 = vmatmul.mubr.bf16.gmra.mrb[84].mxu0 %v13919_v51 }
 0x348   : > { %6618 = vmatmul.mubr.bf16.gmra.mrb[84].mxu1 %v13919_v51  ;;  %12137 = vmatprep.mubr.msk.bf16.mxu0 %vm1215_vm0, %v13924_v16 }
 0x349   : > { %12203 = vmatprep.mubr.msk.bf16.mxu1 %vm1215_vm0, %v13924_v16  ;;  %v13927_v16 = vld [vmem:[%s19000_s1 + $0xf4] ss:$8 sps:$4 sm:$0xff]  }
 0x34a   : > { %v16566_v55 = vpop.f32.mrb[236].mxu0 }
 0x34b   : > { %v16570_v37 = vpop.f32.mrb[236].mxu1  ;;  %v4820_v59 = vpop.f32.mrb[237].mxu0 }
 0x34c   : > { %v5399_v51 = vpop.f32.mrb[237].mxu1  ;;  %v16577_v44 = vpop.f32.mrb[238].mxu0 }
 0x34d   : > { %v16584_v6 = vpop.f32.mrb[238].mxu1  ;;  %v4823_v59 = vpop.f32.mrb[239].mxu0 }
 0x34e   : > { %v5402_v54 = vpop.f32.mrb[239].mxu1  ;;  %v13925_v59 = vld [vmem:[%s19000_s1 + $0xf0] ss:$8 sps:$4 sm:$0xff]  }
 0x34f   : > { %6047 = vmatmul.mubr.bf16.gmra.mrb[88].mxu0 %v13922_v45 }
 0x350   : > { %6626 = vmatmul.mubr.bf16.gmra.mrb[88].mxu1 %v13922_v45  ;;  %12138 = vmatprep.mubr.msk.bf16.mxu0 %vm1215_vm0, %v13927_v16 }
 0x351   : > { %12204 = vmatprep.mubr.msk.bf16.mxu1 %vm1215_vm0, %v13927_v16  ;;  %v13930_v16 = vld [vmem:[%s19000_s1 + $0x104] ss:$8 sps:$4 sm:$0xff]  }
 0x352   : > { %v16590_v51 = vpop.f32.mrb[240].mxu0 }
 0x353   : > { %v16594_v42 = vpop.f32.mrb[240].mxu1  ;;  %v4828_v33 = vpop.f32.mrb[241].mxu0 }
 0x354   : > { %v5407_v45 = vpop.f32.mrb[241].mxu1  ;;  %v16601_v22 = vpop.f32.mrb[242].mxu0 }
 0x355   : > { %v16608_v35 = vpop.f32.mrb[242].mxu1  ;;  %v4831_v33 = vpop.f32.mrb[243].mxu0 }
 0x356   : > { %v5410_v48 = vpop.f32.mrb[243].mxu1  ;;  %v13928_v33 = vld [vmem:[%s19000_s1 + $0x100] ss:$8 sps:$4 sm:$0xff]  }
 0x357   : > { %6055 = vmatmul.mubr.bf16.gmra.mrb[92].mxu0 %v13925_v59 }
 0x358   : > { %6634 = vmatmul.mubr.bf16.gmra.mrb[92].mxu1 %v13925_v59  ;;  %12139 = vmatprep.mubr.msk.bf16.mxu0 %vm1215_vm0, %v13930_v16 }
 0x359   : > { %12205 = vmatprep.mubr.msk.bf16.mxu1 %vm1215_vm0, %v13930_v16  ;;  %v13933_v16 = vld [vmem:[%s19000_s1 + $0x114] ss:$8 sps:$4 sm:$0xff]  }
 0x35a   : > { %v16614_v45 = vpop.f32.mrb[244].mxu0 }
 0x35b   : > { %v16618_v28 = vpop.f32.mrb[244].mxu1  ;;  %v4836_v56 = vpop.f32.mrb[245].mxu0 }
 0x35c   : > { %v5415_v59 = vpop.f32.mrb[245].mxu1  ;;  %v16625_v46 = vpop.f32.mrb[246].mxu0 }
 0x35d   : > { %v16632_v50 = vpop.f32.mrb[246].mxu1  ;;  %v4839_v56 = vpop.f32.mrb[247].mxu0 }
 0x35e   : > { %v5418_v52 = vpop.f32.mrb[247].mxu1  ;;  %v13931_v56 = vld [vmem:[%s19000_s1 + $0x110] ss:$8 sps:$4 sm:$0xff]  }
 0x35f   : > { %6063 = vmatmul.mubr.bf16.gmra.mrb[96].mxu0 %v13928_v33 }
 0x360   : > { %6642 = vmatmul.mubr.bf16.gmra.mrb[96].mxu1 %v13928_v33  ;;  %12140 = vmatprep.mubr.msk.bf16.mxu0 %vm1215_vm0, %v13933_v16 }
 0x361   : > { %12206 = vmatprep.mubr.msk.bf16.mxu1 %vm1215_vm0, %v13933_v16  ;;  %v13936_v16 = vld [vmem:[%s19000_s1 + $0x4] ss:$8 sps:$4 sm:$0xff]  }
 0x362   : > { %v16638_v59 = vpop.f32.mrb[248].mxu0 }
 0x363   : > { %19423 = vst [vmem:[#allocation70_spill] sm:$0xff] %v16638_v59  ;;  %v16642_v9 = vpop.f32.mrb[248].mxu1  ;;  %v4844_v54 = vpop.f32.mrb[249].mxu0 }
 0x364   : > { %19424 = vst [vmem:[#allocation71_spill] sm:$0xff] %v16642_v9  ;;  %v5423_v33 = vpop.f32.mrb[249].mxu1  ;;  %v16649_v0 = vpop.f32.mrb[250].mxu0  ;;  %v19443_v9 = vld [vmem:[#allocation45_spill] sm:$0xff] }
 0x365   : > { %19425 = vst [vmem:[#allocation72_spill] sm:$0xff] %v16649_v0  ;;  %v16656_v26 = vpop.f32.mrb[250].mxu1  ;;  %v4847_v54 = vpop.f32.mrb[251].mxu0  ;;  %v19427_v33 = vld [vmem:[#allocation39_spill] sm:$0xff] }
 0x366   : > { %19426 = vst [vmem:[#allocation73_spill] sm:$0xff] %v16656_v26  ;;  %v5426_v34 = vpop.f32.mrb[251].mxu1  ;;  %v16663_v52 = vadd.f32 %v19427_v33, %v19347_v27  ;;  %v13934_v54 = vld [vmem:[%s19000_s1] ss:$8 sps:$4 sm:$0xff]   ;;  %v13942_v0 = vld [vmem:[%s19000_s1 + $0x24] ss:$8 sps:$4 sm:$0xff]  }
 0x367   : > { %6071 = vmatmul.mubr.bf16.gmra.mrb[100].mxu0 %v13931_v56  ;;  %v19430_v27 = vld [vmem:[#allocation30_spill] sm:$0xff] }
 0x368   : > { %6650 = vmatmul.mubr.bf16.gmra.mrb[100].mxu1 %v13931_v56  ;;  %12255 = vmatprep.mubr.msk.bf16.mxu0 %vm1215_vm0, %v13936_v16  ;;  %19428 = vst [vmem:[#allocation39_spill] sm:$0xff] %v16663_v52  ;;  %v19078_v56 = vmax.f32 %v16663_v52, 0.0  ;;  %v19431_v26 = vmax.f32 %v19430_v27, 0.0  ;;  %v13937_v27 = vld [vmem:[%s19000_s1 + $0x10] ss:$8 sps:$4 sm:$0xff]  }
 0x369   : > { %12321 = vmatprep.mubr.msk.bf16.mxu1 %vm1215_vm0, %v13936_v16  ;;  %v13939_v16 = vld [vmem:[%s19000_s1 + $0x14] ss:$8 sps:$4 sm:$0xff]  }
 0x36a   : > { %v16666_v24 = vpop.f32.mrb[252].mxu0 }
 0x36b   : > { %v16668_v48 = vpop.f32.mrb[252].mxu1  ;;  %v4852_v15 = vpop.f32.mrb[253].mxu0 }
 0x36c   : > { %v5431_v34 = vpop.f32.mrb[253].mxu1  ;;  %v16673_v39 = vpop.f32.mrb[254].mxu0  ;;  %v19429_v15 = vld [vmem:[#allocation19_spill] sm:$0xff] }
 0x36d   : > { %v16676_v63 = vpop.f32.mrb[254].mxu1  ;;  %v4855_v33 = vpop.f32.mrb[255].mxu0  ;;  %v16686_v34 = vpack.c.bf16 %v19078_v56, %v19431_v26 }
 0x36e   : > { %v5434_v57 = vpop.f32.mrb[255].mxu1 }
 0x36f   : > { %7093 = vmatmul.mubr.bf16.vlgmr.msra.gmra.mrb[104].mxu0 %v13934_v54  ;;  %19432 = vst [vmem:[#allocation19_spill] sm:$0xff] %v16686_v34 }
 0x370   : > { %7672 = vmatmul.mubr.bf16.vlgmr.msra.gmra.mrb[104].mxu1 %v13934_v54  ;;  %12534 = vmatpush3.bf16.msra.mxu0 %v19429_v15  ;;  %v19434_v15 = vld [vmem:[#allocation23_spill] sm:$0xff] }
 0x371   : > { %13251 = vmatpush3.bf16.msra.mxu1 %v15964_v7  ;;  %12535 = vmatprep.subr.bf16.mxu0 %v19433_v62  ;;  %v19435_v62 = vld [vmem:[#allocation46_spill] sm:$0xff] }
 0x372   : > { %13252 = vmatprep.subr.bf16.mxu1 %v16686_v34  ;;  %v16691_v57 = vpop.f32.mrb[0].mxu0  ;;  %12256 = vmatprep.mubr.msk.bf16.mxu0 %vm1215_vm0, %v13939_v16 }
 0x373   : > { %v16694_v33 = vpop.f32.mrb[0].mxu1  ;;  %v4860_v54 = vpop.f32.mrb[1].mxu0  ;;  %12322 = vmatprep.mubr.msk.bf16.mxu1 %vm1215_vm0, %v13939_v16  ;;  %v19436_v16 = vld [vmem:[#allocation27_spill] sm:$0xff] }
 0x374   : > { %v5439_v26 = vpop.f32.mrb[1].mxu1  ;;  %12536 = vmatpush3.bf16.msra.mxu0 %v19434_v15  ;;  %v16701_v56 = vpop.f32.mrb[2].mxu0 }
 0x375   : > { %13253 = vmatpush3.bf16.msra.mxu1 %v16686_v34  ;;  %v16704_v7 = vpop.f32.mrb[2].mxu1  ;;  %12537 = vmatprep.subr.bf16.mxu0 %v19435_v62  ;;  %v4863_v52 = vpop.f32.mrb[3].mxu0  ;;  %v19437_v26 = vld [vmem:[#allocation37_spill] sm:$0xff]  ;;  %v13940_v62 = vld [vmem:[%s19000_s1 + $0x20] ss:$8 sps:$4 sm:$0xff]  }
 0x376   : > { %13254 = vmatprep.subr.bf16.mxu1 %v16355_v47  ;;  %v5442_v54 = vpop.f32.mrb[3].mxu1  ;;  %v19439_v34 = vld [vmem:[#allocation34_spill] sm:$0xff] }
 0x377   : > { %7101 = vmatmul.mubr.bf16.gmra.mrb[108].mxu0 %v13937_v27 }
 0x378   : > { %7680 = vmatmul.mubr.bf16.gmra.mrb[108].mxu1 %v13937_v27  ;;  %12538 = vmatpush3.bf16.msra.mxu0 %v19436_v16  ;;  %v19438_v16 = vld [vmem:[#allocation9_spill] sm:$0xff] }
 0x379   : > { %13255 = vmatpush3.bf16.msra.mxu1 %v16355_v47  ;;  %12539 = vmatprep.subr.bf16.mxu0 %v19437_v26 }
 0x37a   : > { %13256 = vmatprep.subr.bf16.mxu1 %v16394_v12  ;;  %v16715_v15 = vpop.f32.mrb[4].mxu0  ;;  %12257 = vmatprep.mubr.msk.bf16.mxu0 %vm1215_vm0, %v13942_v0 }
 0x37b   : > { %v16718_v52 = vpop.f32.mrb[4].mxu1  ;;  %v4868_v54 = vpop.f32.mrb[5].mxu0  ;;  %12323 = vmatprep.mubr.msk.bf16.mxu1 %vm1215_vm0, %v13942_v0  ;;  %v19440_v0 = vld [vmem:[#allocation10_spill] sm:$0xff] }
 0x37c   : > { %v5447_v27 = vpop.f32.mrb[5].mxu1  ;;  %12540 = vmatpush3.bf16.msra.mxu0 %v19438_v16  ;;  %v16725_v47 = vpop.f32.mrb[6].mxu0 }
 0x37d   : > { %13257 = vmatpush3.bf16.msra.mxu1 %v16394_v12  ;;  %v16728_v26 = vpop.f32.mrb[6].mxu1  ;;  %12541 = vmatprep.subr.bf16.mxu0 %v19439_v34  ;;  %v4871_v58 = vpop.f32.mrb[7].mxu0  ;;  %v19441_v27 = vld [vmem:[#allocation31_spill] sm:$0xff]  ;;  %v13943_v34 = vld [vmem:[%s19000_s1 + $0x30] ss:$8 sps:$4 sm:$0xff]  }
 0x37e   : > { %13258 = vmatprep.subr.bf16.mxu1 %v16430_v5  ;;  %v5450_v54 = vpop.f32.mrb[7].mxu1 }
 0x37f   : > { %7109 = vmatmul.mubr.bf16.gmra.mrb[112].mxu0 %v13940_v62 }
 0x380   : > { %7688 = vmatmul.mubr.bf16.gmra.mrb[112].mxu1 %v13940_v62  ;;  %12542 = vmatpush3.bf16.msra.mxu0 %v19440_v0  ;;  %v19442_v0 = vld [vmem:[#allocation21_spill] sm:$0xff] }
 0x381   : > { %13259 = vmatpush3.bf16.msra.mxu1 %v16430_v5  ;;  %12543 = vmatprep.subr.bf16.mxu0 %v19441_v27  ;;  %v7985_v27 = vpack.c.bf16 %v16468_v60, %v16468_v60 }
 0x382   : > { %13260 = vmatprep.subr.bf16.mxu1 %v16475_v61  ;;  %v16739_v16 = vpop.f32.mrb[8].mxu0  ;;  %12258 = vmatprep.mubr.msk.bf16.mxu0 %vm1215_vm0, %v13945_v41 }
 0x383   : > { %v16742_v58 = vpop.f32.mrb[8].mxu1  ;;  %v4876_v54 = vpop.f32.mrb[9].mxu0  ;;  %12324 = vmatprep.mubr.msk.bf16.mxu1 %vm1215_vm0, %v13945_v41  ;;  %v13948_v41 = vld [vmem:[%s19000_s1 + $0x44] ss:$8 sps:$4 sm:$0xff]   ;;  %v8197_v60 = vsel %vm8195_vm1, %v7985_v27, 0 }
 0x384   : > { %v5455_v62 = vpop.f32.mrb[9].mxu1  ;;  %12544 = vmatpush3.bf16.msra.mxu0 %v19442_v0  ;;  %v16749_v5 = vpop.f32.mrb[10].mxu0  ;;  %v19445_v0 = vld [vmem:[#allocation49_spill] sm:$0xff] }
 0x385   : > { %13261 = vmatpush3.bf16.msra.mxu1 %v16475_v61  ;;  %v16754_v12 = vpop.f32.mrb[10].mxu1  ;;  %12545 = vmatprep.subr.bf16.mxu0 %v19443_v9  ;;  %v4879_v54 = vpop.f32.mrb[11].mxu0  ;;  %v19444_v62 = vld [vmem:[#allocation25_spill] sm:$0xff]  ;;  %v19446_v61 = vld [vmem:[#allocation35_spill] sm:$0xff] }
 0x386   : > { %13534 = vmatprep.subr.msk.bf16.mxu1 %vm8195_vm1, %v7985_v27  ;;  %v5458_v3 = vpop.f32.mrb[11].mxu1  ;;  %v19449_v27 = vld [vmem:[#allocation8_spill] sm:$0xff] }
 0x387   : > { %7117 = vmatmul.mubr.bf16.gmra.mrb[116].mxu0 %v13943_v34 }
 0x388   : > { %7696 = vmatmul.mubr.bf16.gmra.mrb[116].mxu1 %v13943_v34  ;;  %12546 = vmatpush3.bf16.msra.mxu0 %v19444_v62  ;;  %v13946_v34 = vld [vmem:[%s19000_s1 + $0x40] ss:$8 sps:$4 sm:$0xff]  }
 0x389   : > { %13263 = vmatpush3.bf16.msra.mxu1 %v8197_v60  ;;  %12547 = vmatprep.subr.bf16.mxu0 %v19445_v0 }
 0x38a   : > { %12612 = vmatprep.subr.bf16.mxu1 %v19446_v61  ;;  %v16765_v9 = vpop.f32.mrb[12].mxu0  ;;  %12259 = vmatprep.mubr.msk.bf16.mxu0 %vm1215_vm0, %v13948_v41  ;;  %v13951_v61 = vld [vmem:[%s19000_s1 + $0x54] ss:$8 sps:$4 sm:$0xff]  }
 0x38b   : > { %19447 = vst [vmem:[#allocation30_spill] sm:$0xff] %v16765_v9  ;;  %v16768_v3 = vpop.f32.mrb[12].mxu1  ;;  %v4884_v54 = vpop.f32.mrb[13].mxu0  ;;  %12325 = vmatprep.mubr.msk.bf16.mxu1 %vm1215_vm0, %v13948_v41  ;;  %v19450_v41 = vmax.f32 %v16466_v18, %v16553_v4  ;;  %v13949_v18 = vld [vmem:[%s19000_s1 + $0x50] ss:$8 sps:$4 sm:$0xff]  }
 0x38c   : > { %19448 = vst [vmem:[#allocation23_spill] sm:$0xff] %v16768_v3  ;;  %v5463_v62 = vpop.f32.mrb[13].mxu1  ;;  %12548 = vmatpush3.bf16.msra.mxu0 %v19449_v27  ;;  %v4885_v60 = vpop.f32.mrb[14].mxu0  ;;  %v19451_v27 = vmax.f32 %v16470_v23, %v16560_v17  ;;  %v13954_v23 = vld [vmem:[%s19000_s1 + $0x64] ss:$8 sps:$4 sm:$0xff]  }
 0x38d   : > { %v4930_v0 = vmax.f32 %v16666_v24, %v4885_v60  ;;  %v5464_v9 = vpop.f32.mrb[14].mxu1  ;;  %13280 = vmatprep.subr.bf16.mxu0 %v16442_v49  ;;  %v4887_v54 = vpop.f32.mrb[15].mxu0 }
 0x38e   : > { %v5509_v3 = vmax.f32 %v16668_v48, %v5464_v9  ;;  %v5466_v59 = vpop.f32.mrb[15].mxu1 }
 0x38f   : > { %v4939_v62 = vmax.f32 %v19450_v41, %v4930_v0  ;;  %7125 = vmatmul.mubr.bf16.gmra.mrb[120].mxu0 %v13946_v34 }
 0x390   : > { %v5518_v11 = vmax.f32 %v19451_v27, %v5509_v3  ;;  %7704 = vmatmul.mubr.bf16.gmra.mrb[120].mxu1 %v13946_v34  ;;  %12260 = vmatprep.mubr.msk.bf16.mxu0 %vm1215_vm0, %v13951_v61 }
 0x391   : > { %12326 = vmatprep.mubr.msk.bf16.mxu1 %vm1215_vm0, %v13951_v61  ;;  %v16798_v17 = vadd.f32 %v4939_v62, %v15201_v19 }
 0x392   : > { %v4890_v24 = vpop.f32.mrb[16].mxu0  ;;  %v16805_v41 = vadd.f32 %v5518_v11, %v15201_v19  ;;  %v19456_v11 = vmax.f32 %v16500_v53, %v16584_v6 }
 0x393   : > { %v4931_v60 = vmax.f32 %v16673_v39, %v4890_v24  ;;  %v5469_v54 = vpop.f32.mrb[16].mxu1  ;;  %v4892_v9 = vpop.f32.mrb[17].mxu0  ;;  %19452 = vst [vmem:[#allocation27_spill] sm:$0xff] %v16798_v17  ;;  %v19453_v39 = vmax.f32 %v16477_v43, %v16566_v55  ;;  %v19455_v43 = vmax.f32 %v16498_v32, %v16577_v44 }
 0x394   : > { %v5510_v4 = vmax.f32 %v16676_v63, %v5469_v54  ;;  %v5471_v48 = vpop.f32.mrb[17].mxu1  ;;  %v4893_v59 = vpop.f32.mrb[18].mxu0  ;;  %v19454_v63 = vmax.f32 %v16486_v40, %v16570_v37  ;;  %v19098_v40 = vmax.f32 %v16798_v17, 0.0  ;;  %v5536_v44 = vmax.f32 %v16805_v41, 0.0  ;;  %v17138_v17 = vld [vmem:[%s19002_s3 + $0x8] ss:$12 sps:$4 sm:$0xff]  }
 0x395   : > { %v4940_v0 = vmax.f32 %v19453_v39, %v4931_v60  ;;  %v4932_v3 = vmax.f32 %v16691_v57, %v4893_v59  ;;  %v5472_v34 = vpop.f32.mrb[18].mxu1  ;;  %v4895_v61 = vpop.f32.mrb[19].mxu0  ;;  %v13952_v59 = vld [vmem:[%s19000_s1 + $0x60] ss:$8 sps:$4 sm:$0xff]   ;;  %19511 = vst [vmem:[#allocation88_spill] sm:$0xff] %v17138_v17 }
 0x396   : > { %v5519_v27 = vmax.f32 %v19454_v63, %v5510_v4  ;;  %v5511_v24 = vmax.f32 %v16694_v33, %v5472_v34  ;;  %v5474_v54 = vpop.f32.mrb[19].mxu1  ;;  %v13957_v61 = vld [vmem:[%s19000_s1 + $0x74] ss:$8 sps:$4 sm:$0xff]   ;;  %v19458_v63 = vmax.f32 %v16505_v31, %v16590_v51  ;;  %v19462_v31 = vmax.f32 %v16514_v36, %v16601_v22 }
 0x397   : > { %v4949_v62 = vadd.f32 %v4940_v0, %v15232_v2  ;;  %v4941_v55 = vmax.f32 %v19455_v43, %v4932_v3  ;;  %7133 = vmatmul.mubr.bf16.gmra.mrb[124].mxu0 %v13949_v18 }
 0x398   : > { %v5528_v57 = vadd.f32 %v5519_v27, %v15232_v2  ;;  %v5520_v60 = vmax.f32 %v19456_v11, %v5511_v24  ;;  %7712 = vmatmul.mubr.bf16.gmra.mrb[124].mxu1 %v13949_v18  ;;  %12261 = vmatprep.mubr.msk.bf16.mxu0 %vm1215_vm0, %v13954_v23 }
 0x399   : > { %v4958_v37 = vmax.f32 %v4949_v62, 0.0  ;;  %v4950_v33 = vadd.f32 %v4941_v55, %v15236_v14  ;;  %12327 = vmatprep.mubr.msk.bf16.mxu1 %vm1215_vm0, %v13954_v23 }
 0x39a   : > { %v5537_v32 = vmax.f32 %v5528_v57, 0.0  ;;  %v5529_v9 = vadd.f32 %v5520_v60, %v15236_v14  ;;  %v4898_v4 = vpop.f32.mrb[20].mxu0 }
 0x39b   : > { %v4959_v48 = vmax.f32 %v4950_v33, 0.0  ;;  %v4933_v6 = vmax.f32 %v16701_v56, %v4898_v4  ;;  %v5477_v53 = vpop.f32.mrb[20].mxu1  ;;  %v4900_v18 = vpop.f32.mrb[21].mxu0  ;;  %v16831_v39 = vpack.c.bf16 %v4958_v37, %v19098_v40 }
 0x39c   : > { %v5538_v23 = vmax.f32 %v5529_v9, 0.0  ;;  %v5512_v0 = vmax.f32 %v16704_v7, %v5477_v53  ;;  %v5479_v3 = vpop.f32.mrb[21].mxu1  ;;  %v4901_v34 = vpop.f32.mrb[22].mxu0  ;;  %v16839_v56 = vpack.c.bf16 %v5537_v32, %v5536_v44  ;;  %v19460_v7 = vmax.f32 %v16510_v29, %v16594_v42 }
 0x39d   : > { %v4942_v27 = vmax.f32 %v19458_v63, %v4933_v6  ;;  %v4934_v24 = vmax.f32 %v16715_v15, %v4901_v34  ;;  %v5480_v54 = vpop.f32.mrb[22].mxu1  ;;  %v4903_v62 = vpop.f32.mrb[23].mxu0  ;;  %v16845_v43 = vpack.c.bf16 %v4959_v48, %v4958_v37  ;;  %v19463_v37 = vmax.f32 %v16516_v13, %v16608_v35  ;;  %v13955_v35 = vld [vmem:[%s19000_s1 + $0x70] ss:$8 sps:$4 sm:$0xff]   ;;  %v13960_v34 = vld [vmem:[%s19000_s1 + $0x84] ss:$8 sps:$4 sm:$0xff]  }
 0x39e   : > { %19457 = vst [vmem:[#allocation9_spill] sm:$0xff] %v16839_v56  ;;  %v5521_v55 = vmax.f32 %v19460_v7, %v5512_v0  ;;  %v5513_v57 = vmax.f32 %v16718_v52, %v5480_v54  ;;  %v5482_v11 = vpop.f32.mrb[23].mxu1  ;;  %v16851_v60 = vpack.c.bf16 %v5538_v23, %v5537_v32 }
 0x39f   : > { %19459 = vst [vmem:[#allocation10_spill] sm:$0xff] %v16845_v43  ;;  %v4951_v33 = vadd.f32 %v4942_v27, %v15278_v1  ;;  %v4943_v51 = vmax.f32 %v19462_v31, %v4934_v24  ;;  %7141 = vmatmul.mubr.bf16.gmra.mrb[128].mxu0 %v13952_v59  ;;  %v19470_v11 = vmax.f32 %v16532_v8, %v16632_v50  ;;  %v13958_v50 = vld [vmem:[%s19000_s1 + $0x80] ss:$8 sps:$4 sm:$0xff]  }
 0x3a0   : > { %19461 = vst [vmem:[#allocation21_spill] sm:$0xff] %v16851_v60  ;;  %v5530_v15 = vadd.f32 %v5521_v55, %v15278_v1  ;;  %v5522_v9 = vmax.f32 %v19463_v37, %v5513_v57  ;;  %7720 = vmatmul.mubr.bf16.gmra.mrb[128].mxu1 %v13952_v59  ;;  %12262 = vmatprep.mubr.msk.bf16.mxu0 %vm1215_vm0, %v13957_v61 }
 0x3a1   : > { %v4960_v29 = vmax.f32 %v4951_v33, 0.0  ;;  %v4952_v42 = vadd.f32 %v4943_v51, %v15314_v10  ;;  %12328 = vmatprep.mubr.msk.bf16.mxu1 %vm1215_vm0, %v13957_v61 }
 0x3a2   : > { %v5539_v52 = vmax.f32 %v5530_v15, 0.0  ;;  %v5531_v32 = vadd.f32 %v5522_v9, %v15314_v10  ;;  %v4906_v36 = vpop.f32.mrb[24].mxu0 }
 0x3a3   : > { %v4961_v22 = vmax.f32 %v4952_v42, 0.0  ;;  %v4935_v4 = vmax.f32 %v16725_v47, %v4906_v36  ;;  %v5485_v6 = vpop.f32.mrb[24].mxu1  ;;  %v4908_v53 = vpop.f32.mrb[25].mxu0  ;;  %v16869_v13 = vpack.c.bf16 %v4960_v29, %v4959_v48  ;;  %v19465_v47 = vmax.f32 %v16521_v30, %v16614_v45 }
 0x3a4   : > { %v5540_v18 = vmax.f32 %v5531_v32, 0.0  ;;  %v5514_v59 = vmax.f32 %v16728_v26, %v5485_v6  ;;  %v5487_v0 = vpop.f32.mrb[25].mxu1  ;;  %v4909_v3 = vpop.f32.mrb[26].mxu0  ;;  %v16875_v61 = vpack.c.bf16 %v5539_v52, %v5538_v23  ;;  %v19467_v26 = vmax.f32 %v16526_v38, %v16618_v28  ;;  %v13963_v32 = vld [vmem:[%s19000_s1 + $0x94] ss:$8 sps:$4 sm:$0xff]  }
 0x3a5   : > { %v4944_v63 = vmax.f32 %v19465_v47, %v4935_v4  ;;  %v4936_v27 = vmax.f32 %v16739_v16, %v4909_v3  ;;  %v5488_v24 = vpop.f32.mrb[26].mxu1  ;;  %v4911_v48 = vpop.f32.mrb[27].mxu0  ;;  %v16881_v54 = vpack.c.bf16 %v4961_v22, %v4960_v29  ;;  %v19469_v30 = vmax.f32 %v16530_v21, %v16625_v46  ;;  %v19473_v4 = vld [vmem:[#allocation70_spill] sm:$0xff] }
 0x3a6   : > { %19464 = vst [vmem:[#allocation25_spill] sm:$0xff] %v16875_v61  ;;  %v5523_v62 = vmax.f32 %v19467_v26, %v5514_v59  ;;  %v5515_v7 = vmax.f32 %v16742_v58, %v5488_v24  ;;  %v5490_v55 = vpop.f32.mrb[27].mxu1  ;;  %v16887_v57 = vpack.c.bf16 %v5540_v18, %v5539_v52 }
 0x3a7   : > { %19466 = vst [vmem:[#allocation35_spill] sm:$0xff] %v16881_v54  ;;  %v4953_v23 = vadd.f32 %v4944_v63, %v15274_v20  ;;  %v4945_v45 = vmax.f32 %v19469_v30, %v4936_v27  ;;  %7149 = vmatmul.mubr.bf16.gmra.mrb[132].mxu0 %v13955_v35  ;;  %v19480_v27 = vld [vmem:[#allocation23_spill] sm:$0xff]  ;;  %v19484_v55 = vld [vmem:[#allocation72_spill] sm:$0xff] }
 0x3a8   : > { %19468 = vst [vmem:[#allocation8_spill] sm:$0xff] %v16887_v57  ;;  %v5532_v16 = vadd.f32 %v5523_v62, %v15274_v20  ;;  %v5524_v33 = vmax.f32 %v19470_v11, %v5515_v7  ;;  %7728 = vmatmul.mubr.bf16.gmra.mrb[132].mxu1 %v13955_v35  ;;  %12263 = vmatprep.mubr.msk.bf16.mxu0 %vm1215_vm0, %v13960_v34  ;;  %v19475_v35 = vld [vmem:[#allocation30_spill] sm:$0xff]  ;;  %v19483_v7 = vld [vmem:[#allocation68_spill] sm:$0xff]  ;;  %v19488_v11 = vld [vmem:[#allocation73_spill] sm:$0xff] }
 0x3a9   : > { %v4962_v28 = vmax.f32 %v4953_v23, 0.0  ;;  %v4954_v38 = vadd.f32 %v4945_v45, %v19391_v25  ;;  %12329 = vmatprep.mubr.msk.bf16.mxu1 %vm1215_vm0, %v13960_v34  ;;  %v19477_v34 = vld [vmem:[#allocation55_spill] sm:$0xff]  ;;  %v19485_v23 = vmax.f32 %v19483_v7, %v19484_v55  ;;  %v13967_v7 = vld [vmem:[%s19000_s1 + $0xb0] ss:$8 sps:$4 sm:$0xff]   ;;  %v19530_v20 = vld [vmem:[#allocation14_spill] sm:$0xff] }
 0x3aa   : > { %v5541_v58 = vmax.f32 %v5532_v16, 0.0  ;;  %v5533_v31 = vadd.f32 %v5524_v33, %v19391_v25  ;;  %v4914_v46 = vpop.f32.mrb[28].mxu0  ;;  %v19487_v16 = vld [vmem:[#allocation69_spill] sm:$0xff] }
 0x3ab   : > { %v4963_v21 = vmax.f32 %v4954_v38, 0.0  ;;  %v4937_v51 = vmax.f32 %v16749_v5, %v4914_v46  ;;  %v5493_v15 = vpop.f32.mrb[28].mxu1  ;;  %v4916_v37 = vpop.f32.mrb[29].mxu0  ;;  %v16905_v8 = vpack.c.bf16 %v4962_v28, %v4961_v22  ;;  %v19472_v5 = vld [vmem:[#allocation51_spill] sm:$0xff]  ;;  %v19489_v33 = vmax.f32 %v19487_v16, %v19488_v11 }
 0x3ac   : > { %v5542_v9 = vmax.f32 %v5533_v31, 0.0  ;;  %v5516_v29 = vmax.f32 %v16754_v12, %v5493_v15  ;;  %v5495_v42 = vpop.f32.mrb[29].mxu1  ;;  %v4917_v52 = vpop.f32.mrb[30].mxu0  ;;  %v16911_v36 = vpack.c.bf16 %v5541_v58, %v5540_v18  ;;  %v19474_v6 = vmax.f32 %v19472_v5, %v19473_v4  ;;  %v19478_v12 = vld [vmem:[#allocation71_spill] sm:$0xff] }
 0x3ad   : > { %v4938_v59 = vmax.f32 %v19475_v35, %v4917_v52  ;;  %v5496_v0 = vpop.f32.mrb[30].mxu1  ;;  %v4919_v22 = vpop.f32.mrb[31].mxu0  ;;  %v16917_v3 = vpack.c.bf16 %v4963_v21, %v4962_v28  ;;  %v19479_v47 = vmax.f32 %v19477_v34, %v19478_v12  ;;  %v19482_v18 = vld [vmem:[#allocation11_spill] sm:$0xff] }
 0x3ae   : > { %19471 = vst [vmem:[#allocation74_spill] sm:$0xff] %v16911_v36  ;;  %v4946_v53 = vmax.f32 %v19474_v6, %v4937_v51  ;;  %v5517_v24 = vmax.f32 %v19480_v27, %v5496_v0  ;;  %v5498_v48 = vpop.f32.mrb[31].mxu1  ;;  %v16923_v26 = vpack.c.bf16 %v5542_v9, %v5541_v58  ;;  %v19491_v58 = vld [vmem:[#allocation13_spill] sm:$0xff]  ;;  %v13964_v34 = vld [vmem:[%s19000_s1 + $0xa0] ss:$8 sps:$4 sm:$0xff]  }
 0x3af   : > { %19476 = vst [vmem:[#allocation51_spill] sm:$0xff] %v16917_v3  ;;  %v5525_v63 = vmax.f32 %v19479_v47, %v5516_v29  ;;  %v4947_v30 = vmax.f32 %v19485_v23, %v4938_v59  ;;  %7157 = vmatmul.mubr.bf16.gmra.mrb[136].mxu0 %v13958_v50  ;;  %v19514_v3 = vld [vmem:[#allocation20_spill] sm:$0xff] }
 0x3b0   : > { %19481 = vst [vmem:[#allocation70_spill] sm:$0xff] %v16923_v26  ;;  %v4955_v62 = vadd.f32 %v4946_v53, %v19482_v18  ;;  %v16935_v28 = vmax.f32 %v19489_v33, %v5517_v24  ;;  %7736 = vmatmul.mubr.bf16.gmra.mrb[136].mxu1 %v13958_v50  ;;  %12264 = vmatprep.mubr.msk.bf16.mxu0 %vm1215_vm0, %v13963_v32  ;;  %v13961_v50 = vld [vmem:[%s19000_s1 + $0x90] ss:$8 sps:$4 sm:$0xff]  }
 0x3b1   : > { %v16930_v45 = vadd.f32 %v5525_v63, %v19482_v18  ;;  %v4956_v31 = vadd.f32 %v4947_v30, %v19491_v58  ;;  %12330 = vmatprep.mubr.msk.bf16.mxu1 %vm1215_vm0, %v13963_v32  ;;  %v13966_v32 = vld [vmem:[%s19000_s1 + $0xa4] ss:$8 sps:$4 sm:$0xff]  }
 0x3b2   : > { %19490 = vst [vmem:[#allocation55_spill] sm:$0xff] %v16935_v28  ;;  %v4964_v38 = vmax.f32 %v4955_v62, 0.0  ;;  %v16941_v51 = vpop.f32.mrb[32].mxu0  ;;  %v13972_v30 = vld [vmem:[%s19000_s1 + $0xc4] ss:$8 sps:$4 sm:$0xff]  }
 0x3b3   : > { %19486 = vst [vmem:[#allocation30_spill] sm:$0xff] %v16930_v45  ;;  %v19097_v46 = vmax.f32 %v16930_v45, 0.0  ;;  %v16943_v15 = vmax.f32 %v4956_v31, 0.0  ;;  %v16945_v37 = vpop.f32.mrb[32].mxu1  ;;  %v5938_v29 = vpop.f32.mrb[33].mxu0 }
 0x3b4   : > { %v16950_v42 = vpack.c.bf16 %v4964_v38, %v4963_v21  ;;  %v6517_v52 = vpop.f32.mrb[33].mxu1  ;;  %v16952_v5 = vpop.f32.mrb[34].mxu0  ;;  %v17152_v28 = vld [vmem:[%s19002_s3] ss:$12 sps:$4 sm:$0xff]  }
 0x3b5   : > { %v16959_v4 = vpack.c.bf16 %v19097_v46, %v5542_v9  ;;  %v16961_v6 = vpop.f32.mrb[34].mxu1  ;;  %v5941_v53 = vpop.f32.mrb[35].mxu0  ;;  %v16964_v35 = vpack.c.bf16 %v16943_v15, %v4964_v38  ;;  %v16969_v21 = vpack.c.bf16 %v5536_v44, %v16943_v15  ;;  %v13969_v44 = vld [vmem:[%s19000_s1 + $0xb4] ss:$8 sps:$4 sm:$0xff]  }
 0x3b6   : > { %v6520_v59 = vpop.f32.mrb[35].mxu1  ;;  %v13975_v53 = vld [vmem:[%s19000_s1 + $0xd4] ss:$8 sps:$4 sm:$0xff]  }
 0x3b7   : > { %19492 = vst [vmem:[#allocation71_spill] sm:$0xff] %v16959_v4  ;;  %19493 = vst [vmem:[#allocation23_spill] sm:$0xff] %v16964_v35  ;;  %7165 = vmatmul.mubr.bf16.gmra.mrb[140].mxu0 %v13961_v50 }
 0x3b8   : > { %19494 = vst [vmem:[#allocation68_spill] sm:$0xff] %v16969_v21  ;;  %7744 = vmatmul.mubr.bf16.gmra.mrb[140].mxu1 %v13961_v50  ;;  %12265 = vmatprep.mubr.msk.bf16.mxu0 %vm1215_vm0, %v13966_v32  ;;  %v13970_v50 = vld [vmem:[%s19000_s1 + $0xc0] ss:$8 sps:$4 sm:$0xff]  }
 0x3b9   : > { %12331 = vmatprep.mubr.msk.bf16.mxu1 %vm1215_vm0, %v13966_v32 }
 0x3ba   : > { %v16973_v9 = vpop.f32.mrb[36].mxu0 }
 0x3bb   : > { %v16975_v0 = vpop.f32.mrb[36].mxu1  ;;  %v5946_v22 = vpop.f32.mrb[37].mxu0 }
 0x3bc   : > { %v6525_v12 = vpop.f32.mrb[37].mxu1  ;;  %v16980_v41 = vpop.f32.mrb[38].mxu0 }
 0x3bd   : > { %v16985_v47 = vpop.f32.mrb[38].mxu1  ;;  %v5949_v63 = vpop.f32.mrb[39].mxu0 }
 0x3be   : > { %v6528_v27 = vpop.f32.mrb[39].mxu1 }
 0x3bf   : > { %7173 = vmatmul.mubr.bf16.gmra.mrb[144].mxu0 %v13964_v34  ;;  %v13973_v27 = vld [vmem:[%s19000_s1 + $0xd0] ss:$8 sps:$4 sm:$0xff]  }
 0x3c0   : > { %7752 = vmatmul.mubr.bf16.gmra.mrb[144].mxu1 %v13964_v34  ;;  %12266 = vmatprep.mubr.msk.bf16.mxu0 %vm1215_vm0, %v13969_v44 }
 0x3c1   : > { %12332 = vmatprep.mubr.msk.bf16.mxu1 %vm1215_vm0, %v13969_v44 }
 0x3c2   : > { %v16989_v24 = vpop.f32.mrb[40].mxu0 }
 0x3c3   : > { %v16991_v48 = vpop.f32.mrb[40].mxu1  ;;  %v5954_v62 = vpop.f32.mrb[41].mxu0 }
 0x3c4   : > { %v6533_v55 = vpop.f32.mrb[41].mxu1  ;;  %v16996_v23 = vpop.f32.mrb[42].mxu0 }
 0x3c5   : > { %v17001_v16 = vpop.f32.mrb[42].mxu1  ;;  %v5957_v11 = vpop.f32.mrb[43].mxu0  ;;  %v13978_v55 = vld [vmem:[%s19000_s1 + $0xe4] ss:$8 sps:$4 sm:$0xff]  }
 0x3c6   : > { %19495 = vst [vmem:[#allocation72_spill] sm:$0xff] %v17001_v16  ;;  %v6536_v33 = vpop.f32.mrb[43].mxu1 }
 0x3c7   : > { %7181 = vmatmul.mubr.bf16.gmra.mrb[148].mxu0 %v13967_v7 }
 0x3c8   : > { %7760 = vmatmul.mubr.bf16.gmra.mrb[148].mxu1 %v13967_v7  ;;  %12267 = vmatprep.mubr.msk.bf16.mxu0 %vm1215_vm0, %v13972_v30 }
 0x3c9   : > { %12333 = vmatprep.mubr.msk.bf16.mxu1 %vm1215_vm0, %v13972_v30 }
 0x3ca   : > { %v17005_v38 = vpop.f32.mrb[44].mxu0 }
 0x3cb   : > { %19496 = vst [vmem:[#allocation69_spill] sm:$0xff] %v17005_v38  ;;  %v17007_v31 = vpop.f32.mrb[44].mxu1  ;;  %v5962_v29 = vpop.f32.mrb[45].mxu0 }
 0x3cc   : > { %19497 = vst [vmem:[#allocation73_spill] sm:$0xff] %v17007_v31  ;;  %v6541_v52 = vpop.f32.mrb[45].mxu1  ;;  %v17012_v32 = vpop.f32.mrb[46].mxu0  ;;  %v19529_v31 = vld [vmem:[#allocation40_spill] sm:$0xff] }
 0x3cd   : > { %19498 = vst [vmem:[#allocation75_spill] sm:$0xff] %v17012_v32  ;;  %v17017_v59 = vpop.f32.mrb[46].mxu1  ;;  %v5965_v22 = vpop.f32.mrb[47].mxu0  ;;  %v19525_v32 = vld [vmem:[#allocation36_spill] sm:$0xff] }
 0x3ce   : > { %19499 = vst [vmem:[#allocation76_spill] sm:$0xff] %v17017_v59  ;;  %v6544_v34 = vpop.f32.mrb[47].mxu1  ;;  %v19520_v59 = vld [vmem:[#allocation47_spill] sm:$0xff] }
 0x3cf   : > { %7189 = vmatmul.mubr.bf16.gmra.mrb[152].mxu0 %v13970_v50 }
 0x3d0   : > { %7768 = vmatmul.mubr.bf16.gmra.mrb[152].mxu1 %v13970_v50  ;;  %12268 = vmatprep.mubr.msk.bf16.mxu0 %vm1215_vm0, %v13975_v53 }
 0x3d1   : > { %12334 = vmatprep.mubr.msk.bf16.mxu1 %vm1215_vm0, %v13975_v53 }
 0x3d2   : > { %v17021_v12 = vpop.f32.mrb[48].mxu0 }
 0x3d3   : > { %19500 = vst [vmem:[#allocation77_spill] sm:$0xff] %v17021_v12  ;;  %v17023_v44 = vpop.f32.mrb[48].mxu1  ;;  %v5970_v63 = vpop.f32.mrb[49].mxu0  ;;  %v19519_v12 = vld [vmem:[#allocation61_spill] sm:$0xff] }
 0x3d4   : > { %19501 = vst [vmem:[#allocation78_spill] sm:$0xff] %v17023_v44  ;;  %v6549_v62 = vpop.f32.mrb[49].mxu1  ;;  %v17028_v7 = vpop.f32.mrb[50].mxu0  ;;  %v13976_v63 = vld [vmem:[%s19000_s1 + $0xe0] ss:$8 sps:$4 sm:$0xff]  }
 0x3d5   : > { %v17035_v11 = vpop.f32.mrb[50].mxu1  ;;  %v5973_v33 = vpop.f32.mrb[51].mxu0 }
 0x3d6   : > { %v6552_v50 = vpop.f32.mrb[51].mxu1 }
 0x3d7   : > { %7197 = vmatmul.mubr.bf16.gmra.mrb[156].mxu0 %v13973_v27 }
 0x3d8   : > { %7776 = vmatmul.mubr.bf16.gmra.mrb[156].mxu1 %v13973_v27  ;;  %12269 = vmatprep.mubr.msk.bf16.mxu0 %vm1215_vm0, %v13978_v55 }
 0x3d9   : > { %12335 = vmatprep.mubr.msk.bf16.mxu1 %vm1215_vm0, %v13978_v55  ;;  %v13981_v55 = vld [vmem:[%s19000_s1 + $0xf4] ss:$8 sps:$4 sm:$0xff]  }
 0x3da   : > { %v17041_v52 = vpop.f32.mrb[52].mxu0 }
 0x3db   : > { %v17045_v22 = vpop.f32.mrb[52].mxu1  ;;  %v5978_v34 = vpop.f32.mrb[53].mxu0 }
 0x3dc   : > { %v6557_v27 = vpop.f32.mrb[53].mxu1  ;;  %v17052_v33 = vpop.f32.mrb[54].mxu0 }
 0x3dd   : > { %v17059_v46 = vpop.f32.mrb[54].mxu1  ;;  %v5981_v34 = vpop.f32.mrb[55].mxu0 }
 0x3de   : > { %v6560_v53 = vpop.f32.mrb[55].mxu1  ;;  %v13979_v34 = vld [vmem:[%s19000_s1 + $0xf0] ss:$8 sps:$4 sm:$0xff]  }
 0x3df   : > { %7205 = vmatmul.mubr.bf16.gmra.mrb[160].mxu0 %v13976_v63 }
 0x3e0   : > { %7784 = vmatmul.mubr.bf16.gmra.mrb[160].mxu1 %v13976_v63  ;;  %12270 = vmatprep.mubr.msk.bf16.mxu0 %vm1215_vm0, %v13981_v55 }
 0x3e1   : > { %12336 = vmatprep.mubr.msk.bf16.mxu1 %vm1215_vm0, %v13981_v55  ;;  %v13984_v55 = vld [vmem:[%s19000_s1 + $0x104] ss:$8 sps:$4 sm:$0xff]  }
 0x3e2   : > { %v17065_v27 = vpop.f32.mrb[56].mxu0 }
 0x3e3   : > { %v17069_v29 = vpop.f32.mrb[56].mxu1  ;;  %v5986_v50 = vpop.f32.mrb[57].mxu0 }
 0x3e4   : > { %v6565_v63 = vpop.f32.mrb[57].mxu1  ;;  %v17076_v40 = vpop.f32.mrb[58].mxu0 }
 0x3e5   : > { %v17083_v30 = vpop.f32.mrb[58].mxu1  ;;  %v5989_v50 = vpop.f32.mrb[59].mxu0 }
 0x3e6   : > { %v6568_v60 = vpop.f32.mrb[59].mxu1  ;;  %v13982_v50 = vld [vmem:[%s19000_s1 + $0x100] ss:$8 sps:$4 sm:$0xff]  }
 0x3e7   : > { %7213 = vmatmul.mubr.bf16.gmra.mrb[164].mxu0 %v13979_v34 }
 0x3e8   : > { %7792 = vmatmul.mubr.bf16.gmra.mrb[164].mxu1 %v13979_v34  ;;  %12271 = vmatprep.mubr.msk.bf16.mxu0 %vm1215_vm0, %v13984_v55 }
 0x3e9   : > { %12337 = vmatprep.mubr.msk.bf16.mxu1 %vm1215_vm0, %v13984_v55  ;;  %v13987_v55 = vld [vmem:[%s19000_s1 + $0x114] ss:$8 sps:$4 sm:$0xff]  }
 0x3ea   : > { %v17089_v63 = vpop.f32.mrb[60].mxu0 }
 0x3eb   : > { %19502 = vst [vmem:[#allocation79_spill] sm:$0xff] %v17089_v63  ;;  %v17093_v21 = vpop.f32.mrb[60].mxu1  ;;  %v5994_v62 = vpop.f32.mrb[61].mxu0 }
 0x3ec   : > { %19503 = vst [vmem:[#allocation80_spill] sm:$0xff] %v17093_v21  ;;  %v6573_v34 = vpop.f32.mrb[61].mxu1  ;;  %v17100_v57 = vpop.f32.mrb[62].mxu0 }
 0x3ed   : > { %19504 = vst [vmem:[#allocation81_spill] sm:$0xff] %v17100_v57  ;;  %v17107_v45 = vpop.f32.mrb[62].mxu1  ;;  %v5997_v62 = vpop.f32.mrb[63].mxu0  ;;  %v19531_v57 = vmax.f32 %v19530_v20, 0.0  ;;  %v19540_v20 = vld [vmem:[#allocation59_spill] sm:$0xff] }
 0x3ee   : > { %19505 = vst [vmem:[#allocation82_spill] sm:$0xff] %v17107_v45  ;;  %v6576_v54 = vpop.f32.mrb[63].mxu1  ;;  %v13985_v62 = vld [vmem:[%s19000_s1 + $0x110] ss:$8 sps:$4 sm:$0xff]  }
 0x3ef   : > { %7221 = vmatmul.mubr.bf16.gmra.mrb[168].mxu0 %v13982_v50 }
 0x3f0   : > { %7800 = vmatmul.mubr.bf16.gmra.mrb[168].mxu1 %v13982_v50  ;;  %12272 = vmatprep.mubr.msk.bf16.mxu0 %vm1215_vm0, %v13987_v55 }
 0x3f1   : > { %12338 = vmatprep.mubr.msk.bf16.mxu1 %vm1215_vm0, %v13987_v55  ;;  %v17129_v55 = vld [vmem:[%s19002_s3 + $0x4] ss:$12 sps:$4 sm:$0xff]  }
 0x3f2   : > { %v17113_v34 = vpop.f32.mrb[64].mxu0  ;;  %19509 = vst [vmem:[#allocation86_spill] sm:$0xff] %v17129_v55 }
 0x3f3   : > { %19506 = vst [vmem:[#allocation83_spill] sm:$0xff] %v17113_v34  ;;  %v17117_v43 = vpop.f32.mrb[64].mxu1  ;;  %v6002_v53 = vpop.f32.mrb[65].mxu0  ;;  %v17214_v34 = vld [vmem:[%s19002_s3 + $0x68] ss:$12 sps:$4 sm:$0xff]  }
 0x3f4   : > { %19507 = vst [vmem:[#allocation84_spill] sm:$0xff] %v17117_v43  ;;  %v6581_v50 = vpop.f32.mrb[65].mxu1  ;;  %v17124_v26 = vpop.f32.mrb[66].mxu0 }
 0x3f5   : > { %19508 = vst [vmem:[#allocation85_spill] sm:$0xff] %v17124_v26  ;;  %v17133_v4 = vpop.f32.mrb[66].mxu1  ;;  %v6005_v53 = vpop.f32.mrb[67].mxu0  ;;  %v17188_v26 = vld [vmem:[%s19002_s3 + $0x18] ss:$12 sps:$4 sm:$0xff]  }
 0x3f6   : > { %19510 = vst [vmem:[#allocation87_spill] sm:$0xff] %v17133_v4  ;;  %v6584_v54 = vpop.f32.mrb[67].mxu1 }
 0x3f7   : > { %7229 = vmatmul.mubr.bf16.gmra.mrb[172].mxu0 %v13985_v62 }
 0x3f8   : > { %7808 = vmatmul.mubr.bf16.gmra.mrb[172].mxu1 %v13985_v62  ;;  %8231 = vmatprep.mubr.bf16.mxu0 %v17129_v55  ;;  %v17159_v62 = vld [vmem:[%s19002_s3 + $0x20] ss:$12 sps:$4 sm:$0xff]  }
 0x3f9   : > { %13264 = vmatprep.mubr.msk.bf16.mxu1 %vm8170_vm2, %v17138_v17  ;;  %19512 = vst [vmem:[#allocation89_spill] sm:$0xff] %v17159_v62 }
 0x3fa   : > { %v17145_v60 = vpop.f32.mrb[68].mxu0 }
 0x3fb   : > { %v17147_v53 = vpop.f32.mrb[68].mxu1  ;;  %v6010_v36 = vpop.f32.mrb[69].mxu0 }
 0x3fc   : > { %v6589_v50 = vpop.f32.mrb[69].mxu1  ;;  %v17154_v54 = vpop.f32.mrb[70].mxu0  ;;  %v17166_v36 = vld [vmem:[%s19002_s3 + $0x1c] ss:$12 sps:$4 sm:$0xff]  }
 0x3fd   : > { %v17161_v61 = vpop.f32.mrb[70].mxu1  ;;  %v6013_v56 = vpop.f32.mrb[71].mxu0  ;;  %v17172_v50 = vld [vmem:[%s19002_s3 + $0x38] ss:$12 sps:$4 sm:$0xff]  }
 0x3fe   : > { %v6592_v35 = vpop.f32.mrb[71].mxu1  ;;  %19513 = vst [vmem:[#allocation90_spill] sm:$0xff] %v17172_v50  ;;  %v19515_v56 = vld [vmem:[#allocation50_spill] sm:$0xff] }
 0x3ff   : > { %8232 = vmatmul.mubr.bf16.vlgmr.msra.gmra.mrb[176].mxu0 %v17152_v28  ;;  %v19516_v35 = vld [vmem:[#allocation43_spill] sm:$0xff] }
 0x400   : > { %13265 = vmatmul.mubr.msk.bf16.vlgmr.msra.gmra.mrb[176].mxu1 %vm8170_vm2, %v17159_v62  ;;  %13281 = vmatpush3.bf16.msra.mxu0 %v16442_v49  ;;  %v19518_v62 = vld [vmem:[#allocation24_spill] sm:$0xff] }
 0x401   : > { %12613 = vmatpush3.bf16.msra.mxu1 %v19514_v3  ;;  %13282 = vmatprep.subr.bf16.mxu0 %v19515_v56  ;;  %19521 = vst [vmem:[#allocation24_spill] sm:$0xff] %v17214_v34 }
 0x402   : > { %12614 = vmatprep.subr.bf16.mxu1 %v19516_v35  ;;  %v17180_v4 = vpop.f32.mrb[72].mxu0  ;;  %8239 = vmatprep.mubr.bf16.mxu0 %v17166_v36  ;;  %v17198_v35 = vld [vmem:[%s19002_s3 + $0x50] ss:$12 sps:$4 sm:$0xff]  }
 0x403   : > { %v17183_v44 = vpop.f32.mrb[72].mxu1  ;;  %v6018_v18 = vpop.f32.mrb[73].mxu0  ;;  %13268 = vmatprep.mubr.msk.bf16.mxu1 %vm8170_vm2, %v17172_v50  ;;  %19517 = vst [vmem:[#allocation20_spill] sm:$0xff] %v17198_v35 }
 0x404   : > { %v6597_v3 = vpop.f32.mrb[73].mxu1  ;;  %13283 = vmatpush3.bf16.msra.mxu0 %v19515_v56  ;;  %v17193_v49 = vpop.f32.mrb[74].mxu0  ;;  %v4377_v56 = vadd.f32 %v19525_v32, %v19491_v58  ;;  %v17242_v32 = vld [vmem:[%s19002_s3 + $0x80] ss:$12 sps:$4 sm:$0xff]   ;;  %v19528_v58 = vld [vmem:[#allocation57_spill] sm:$0xff] }
 0x405   : > { %12615 = vmatpush3.bf16.msra.mxu1 %v19518_v62  ;;  %v17201_v18 = vpop.f32.mrb[74].mxu1  ;;  %13284 = vmatprep.subr.bf16.mxu0 %v19519_v12  ;;  %v6021_v43 = vpop.f32.mrb[75].mxu0  ;;  %v17208_v3 = vld [vmem:[%s19002_s3 + $0x34] ss:$12 sps:$4 sm:$0xff]   ;;  %v19523_v62 = vld [vmem:[#allocation65_spill] sm:$0xff] }
 0x406   : > { %12616 = vmatprep.subr.bf16.mxu1 %v19520_v59  ;;  %v6600_v50 = vpop.f32.mrb[75].mxu1  ;;  %v19522_v43 = vld [vmem:[#allocation28_spill] sm:$0xff] }
 0x407   : > { %8240 = vmatmul.mubr.bf16.gmra.mrb[180].mxu0 %v17188_v26  ;;  %v19524_v50 = vld [vmem:[#allocation38_spill] sm:$0xff]  ;;  %19526 = vst [vmem:[#allocation28_spill] sm:$0xff] %v17242_v32 }
 0x408   : > { %13269 = vmatmul.mubr.msk.bf16.gmra.mrb[180].mxu1 %vm8170_vm2, %v17198_v35  ;;  %13285 = vmatpush3.bf16.msra.mxu0 %v19519_v12  ;;  %v17232_v12 = vld [vmem:[%s19002_s3 + $0x30] ss:$12 sps:$4 sm:$0xff]   ;;  %v19527_v35 = vld [vmem:[#allocation7_spill] sm:$0xff] }
 0x409   : > { %12617 = vmatpush3.bf16.msra.mxu1 %v19522_v43  ;;  %13286 = vmatprep.subr.bf16.mxu0 %v19523_v62 }
 0x40a   : > { %12618 = vmatprep.subr.bf16.mxu1 %v19524_v50  ;;  %v17222_v59 = vpop.f32.mrb[76].mxu0  ;;  %8247 = vmatprep.mubr.bf16.mxu0 %v17208_v3 }
 0x40b   : > { %v17227_v25 = vpop.f32.mrb[76].mxu1  ;;  %v6026_v17 = vpop.f32.mrb[77].mxu0  ;;  %13272 = vmatprep.mubr.msk.bf16.mxu1 %vm8170_vm2, %v17214_v34 }
 0x40c   : > { %v6605_v43 = vpop.f32.mrb[77].mxu1  ;;  %13287 = vmatpush3.bf16.msra.mxu0 %v19523_v62  ;;  %v17237_v50 = vpop.f32.mrb[78].mxu0  ;;  %v17254_v62 = vmax.f32 %v4377_v56, 0.0 }
 0x40d   : > { %12619 = vmatpush3.bf16.msra.mxu1 %v19527_v35  ;;  %v17245_v17 = vpop.f32.mrb[78].mxu1  ;;  %13288 = vmatprep.subr.bf16.mxu0 %v19528_v58  ;;  %v6029_v45 = vpop.f32.mrb[79].mxu0  ;;  %v17252_v43 = vld [vmem:[%s19002_s3 + $0x4c] ss:$12 sps:$4 sm:$0xff]  }
 0x40e   : > { %12620 = vmatprep.subr.bf16.mxu1 %v19529_v31  ;;  %v6608_v34 = vpop.f32.mrb[79].mxu1  ;;  %v19532_v35 = vld [vmem:[#allocation41_spill] sm:$0xff]  ;;  %v19537_v31 = vld [vmem:[#allocation60_spill] sm:$0xff] }
 0x40f   : > { %8248 = vmatmul.mubr.bf16.gmra.mrb[184].mxu0 %v17232_v12  ;;  %v19533_v38 = vmax.f32 %v19532_v35, 0.0  ;;  %v17264_v45 = vld [vmem:[%s19002_s3 + $0x98] ss:$12 sps:$4 sm:$0xff]   ;;  %v19535_v34 = vld [vmem:[#allocation39_spill] sm:$0xff]  ;;  %v19538_v16 = vmax.f32 %v19537_v31, 0.0 }
 0x410   : > { %19534 = vst [vmem:[#allocation36_spill] sm:$0xff] %v17264_v45  ;;  %13273 = vmatmul.mubr.msk.bf16.gmra.mrb[184].mxu1 %vm8170_vm2, %v17242_v32  ;;  %13289 = vmatpush3.bf16.msra.mxu0 %v19528_v58  ;;  %v19536_v56 = vmax.f32 %v19535_v34, 0.0  ;;  %v8017_v58 = vpack.c.bf16 %v17254_v62, %v17254_v62  ;;  %v17297_v34 = vld [vmem:[%s19002_s3 + $0xb0] ss:$12 sps:$4 sm:$0xff]   ;;  %v19548_v32 = vld [vmem:[#allocation62_spill] sm:$0xff] }
 0x411   : > { %v7999_v21 = vpack.c.bf16 %v19533_v38, %v19531_v57  ;;  %13290 = vmatprep.subr.bf16.mxu0 %v19540_v20  ;;  %8255 = vmatprep.mubr.bf16.mxu0 %v17252_v43  ;;  %19545 = vst [vmem:[#allocation91_spill] sm:$0xff] %v17297_v34 }
 0x412   : > { %v17273_v63 = vpack.c.bf16 %v19538_v16, %v19536_v56  ;;  %v17277_v57 = vpop.f32.mrb[80].mxu0  ;;  %v17287_v16 = vld [vmem:[%s19002_s3 + $0x48] ss:$12 sps:$4 sm:$0xff]   ;;  %13276 = vmatprep.mubr.msk.bf16.mxu1 %vm8170_vm2, %v17264_v45 }
 0x413   : > { %12621 = vmatpush3.bf16.msra.mxu1 %v7999_v21  ;;  %19541 = vst [vmem:[#allocation14_spill] sm:$0xff] %v17277_v57  ;;  %v17280_v38 = vpop.f32.mrb[80].mxu1  ;;  %v6034_v35 = vpop.f32.mrb[81].mxu0  ;;  %19543 = vst [vmem:[#allocation39_spill] sm:$0xff] %v17287_v16  ;;  %v19546_v56 = vld [vmem:[#allocation44_spill] sm:$0xff] }
 0x414   : > { %19539 = vst [vmem:[#allocation7_spill] sm:$0xff] %v17273_v63  ;;  %12622 = vmatprep.subr.bf16.mxu1 %v17273_v63  ;;  %19542 = vst [vmem:[#allocation41_spill] sm:$0xff] %v17280_v38  ;;  %v6613_v21 = vpop.f32.mrb[81].mxu1  ;;  %13291 = vmatpush3.bf16.msra.mxu0 %v19540_v20  ;;  %v17292_v31 = vpop.f32.mrb[82].mxu0  ;;  %v8394_v20 = vsel %vm8195_vm1, %v8017_v58, 0  ;;  %v19558_v38 = vmax.f32 %v16945_v37, %v17035_v11 }
 0x415   : > { %19544 = vst [vmem:[#allocation60_spill] sm:$0xff] %v17292_v31  ;;  %v17300_v35 = vpop.f32.mrb[82].mxu1  ;;  %13535 = vmatprep.subr.msk.bf16.mxu0 %vm8195_vm1, %v8017_v58  ;;  %v6037_v63 = vpop.f32.mrb[83].mxu0  ;;  %v17307_v21 = vld [vmem:[%s19002_s3 + $0x64] ss:$12 sps:$4 sm:$0xff]  }
 0x416   : > { %19547 = vst [vmem:[#allocation44_spill] sm:$0xff] %v17300_v35  ;;  %v6616_v45 = vpop.f32.mrb[83].mxu1  ;;  %19549 = vst [vmem:[#allocation92_spill] sm:$0xff] %v17307_v21  ;;  %v19551_v35 = vld [vmem:[#allocation19_spill] sm:$0xff]  ;;  %v19552_v63 = vld [vmem:[#allocation66_spill] sm:$0xff] }
 0x417   : > { %12623 = vmatpush3.bf16.msra.mxu1 %v19546_v56  ;;  %8256 = vmatmul.mubr.bf16.gmra.mrb[188].mxu0 %v17287_v16  ;;  %v19550_v56 = vld [vmem:[#allocation48_spill] sm:$0xff]  ;;  %v17324_v58 = vld [vmem:[%s19002_s3 + $0x60] ss:$12 sps:$4 sm:$0xff]  }
 0x418   : > { %12624 = vmatprep.subr.bf16.mxu1 %v19548_v32  ;;  %13277 = vmatmul.mubr.msk.bf16.gmra.mrb[188].mxu1 %vm8170_vm2, %v17297_v34 }
 0x419   : > { %13293 = vmatpush3.bf16.msra.mxu0 %v8394_v20  ;;  %8263 = vmatprep.mubr.bf16.mxu0 %v17307_v21  ;;  %v19556_v21 = vld [vmem:[#allocation52_spill] sm:$0xff] }
 0x41a   : > { %12691 = vmatprep.subr.bf16.mxu0 %v19551_v35  ;;  %v17316_v45 = vpop.f32.mrb[84].mxu0  ;;  %8428 = vmatprep.mubr.bf16.mxu1 %v17129_v55  ;;  %v17330_v35 = vld [vmem:[%s19002_s3 + $0x7c] ss:$12 sps:$4 sm:$0xff]  }
 0x41b   : > { %12625 = vmatpush3.bf16.msra.mxu1 %v19550_v56  ;;  %19553 = vst [vmem:[#allocation48_spill] sm:$0xff] %v17316_v45  ;;  %v17319_v32 = vpop.f32.mrb[84].mxu1  ;;  %v6042_v31 = vpop.f32.mrb[85].mxu0 }
 0x41c   : > { %12626 = vmatprep.subr.bf16.mxu1 %v19552_v63  ;;  %19554 = vst [vmem:[#allocation19_spill] sm:$0xff] %v17319_v32  ;;  %v6621_v20 = vpop.f32.mrb[85].mxu1  ;;  %v6043_v56 = vpop.f32.mrb[86].mxu0  ;;  %v19555_v63 = vld [vmem:[#allocation29_spill] sm:$0xff] }
 0x41d   : > { %v6088_v34 = vmax.f32 %v17145_v60, %v6043_v56  ;;  %v6622_v32 = vpop.f32.mrb[86].mxu1  ;;  %v6045_v31 = vpop.f32.mrb[87].mxu0  ;;  %v19557_v20 = vmax.f32 %v16941_v51, %v17028_v7  ;;  %v19559_v60 = vld [vmem:[#allocation58_spill] sm:$0xff] }
 0x41e   : > { %v6667_v45 = vmax.f32 %v17147_v53, %v6622_v32  ;;  %v6624_v16 = vpop.f32.mrb[87].mxu1  ;;  %v17357_v53 = vld [vmem:[%s19002_s3 + $0x78] ss:$12 sps:$4 sm:$0xff]  }
 0x41f   : > { %12627 = vmatpush3.bf16.msra.mxu1 %v19555_v63  ;;  %v6097_v55 = vmax.f32 %v19557_v20, %v6088_v34  ;;  %8264 = vmatmul.mubr.bf16.gmra.mrb[192].mxu0 %v17324_v58  ;;  %v19560_v63 = vmax.f32 %v19559_v60, 0.0  ;;  %v17363_v34 = vld [vmem:[%s19002_s3 + $0x94] ss:$12 sps:$4 sm:$0xff]  }
 0x420   : > { %13310 = vmatprep.subr.bf16.mxu1 %v19556_v21  ;;  %v6676_v57 = vmax.f32 %v19558_v38, %v6667_v45  ;;  %8271 = vmatprep.mubr.bf16.mxu0 %v17330_v35  ;;  %v19561_v45 = vmax.f32 %v16952_v5, %v17041_v52 }
 0x421   : > { %v17347_v56 = vpack.c.bf16 %v17254_v62, %v19560_v63  ;;  %v17371_v63 = vadd.f32 %v6097_v55, %v15201_v19 }
 0x422   : > { %8429 = vmatmul.mubr.bf16.vlgmr.msra.gmra.mrb[192].mxu1 %v17152_v28  ;;  %v6048_v51 = vpop.f32.mrb[88].mxu0  ;;  %v17379_v5 = vadd.f32 %v6676_v57, %v15201_v19 }
 0x423   : > { %13311 = vmatpush3.bf16.msra.mxu1 %v19556_v21  ;;  %8436 = vmatprep.mubr.bf16.mxu1 %v17166_v36  ;;  %v6089_v7 = vmax.f32 %v17154_v54, %v6048_v51  ;;  %v6627_v37 = vpop.f32.mrb[88].mxu1  ;;  %v6050_v11 = vpop.f32.mrb[89].mxu0  ;;  %19562 = vst [vmem:[#allocation29_spill] sm:$0xff] %v17371_v63 }
 0x424   : > { %13312 = vmatprep.subr.bf16.mxu1 %v17347_v56  ;;  %v6668_v32 = vmax.f32 %v17161_v61, %v6627_v37  ;;  %v6629_v38 = vpop.f32.mrb[89].mxu1  ;;  %v6051_v16 = vpop.f32.mrb[90].mxu0  ;;  %v19563_v61 = vmax.f32 %v16961_v6, %v17045_v22  ;;  %v19565_v6 = vmax.f32 %v16975_v0, %v17059_v46  ;;  %v19155_v46 = vmax.f32 %v17379_v5, 0.0 }
 0x425   : > { %v6098_v54 = vmax.f32 %v19561_v45, %v6089_v7  ;;  %v6090_v31 = vmax.f32 %v17180_v4, %v6051_v16  ;;  %v6630_v20 = vpop.f32.mrb[90].mxu1  ;;  %v6053_v60 = vpop.f32.mrb[91].mxu0  ;;  %v19564_v4 = vmax.f32 %v16973_v9, %v17052_v33  ;;  %v19154_v9 = vmax.f32 %v17371_v63, 0.0 }
 0x426   : > { %v6677_v51 = vmax.f32 %v19563_v61, %v6668_v32  ;;  %v6669_v37 = vmax.f32 %v17183_v44, %v6630_v20  ;;  %v6632_v11 = vpop.f32.mrb[91].mxu1 }
 0x427   : > { %13313 = vmatpush3.bf16.msra.mxu1 %v17347_v56  ;;  %v6099_v52 = vmax.f32 %v19564_v4, %v6090_v31  ;;  %8272 = vmatmul.mubr.bf16.gmra.mrb[196].mxu0 %v17357_v53  ;;  %v6107_v55 = vadd.f32 %v6098_v54, %v15232_v2  ;;  %v17403_v54 = vld [vmem:[%s19002_s3 + $0x90] ss:$12 sps:$4 sm:$0xff]   ;;  %v19568_v4 = vmax.f32 %v16980_v41, %v17065_v27 }
 0x428   : > { %13314 = vmatprep.subr.bf16.mxu1 %v16831_v39  ;;  %v6678_v22 = vmax.f32 %v19565_v6, %v6669_v37  ;;  %8279 = vmatprep.mubr.bf16.mxu0 %v17363_v34  ;;  %v6686_v44 = vadd.f32 %v6677_v51, %v15232_v2  ;;  %v19572_v41 = vmax.f32 %v16989_v24, %v17076_v40 }
 0x429   : > { %v6116_v33 = vmax.f32 %v6107_v55, 0.0  ;;  %v6108_v57 = vadd.f32 %v6099_v52, %v15236_v14 }
 0x42a   : > { %8437 = vmatmul.mubr.bf16.gmra.mrb[196].mxu1 %v17188_v26  ;;  %v6056_v7 = vpop.f32.mrb[92].mxu0  ;;  %v6695_v0 = vmax.f32 %v6686_v44, 0.0  ;;  %v6687_v32 = vadd.f32 %v6678_v22, %v15236_v14  ;;  %v19570_v44 = vmax.f32 %v16985_v47, %v17069_v29 }
 0x42b   : > { %13315 = vmatpush3.bf16.msra.mxu1 %v16831_v39  ;;  %8444 = vmatprep.mubr.bf16.mxu1 %v17208_v3  ;;  %v6091_v38 = vmax.f32 %v17193_v49, %v6056_v7  ;;  %v6635_v16 = vpop.f32.mrb[92].mxu1  ;;  %v6058_v45 = vpop.f32.mrb[93].mxu0  ;;  %v17407_v31 = vpack.c.bf16 %v6116_v33, %v19154_v9  ;;  %v6117_v20 = vmax.f32 %v6108_v57, 0.0  ;;  %v17413_v49 = vld [vmem:[%s19002_s3 + $0xac] ss:$12 sps:$4 sm:$0xff]  }
 0x42c   : > { %13316 = vmatprep.subr.bf16.mxu1 %v16869_v13  ;;  %v6670_v60 = vmax.f32 %v17201_v18, %v6635_v16  ;;  %v6637_v61 = vpop.f32.mrb[93].mxu1  ;;  %v6059_v51 = vpop.f32.mrb[94].mxu0  ;;  %v17417_v37 = vpack.c.bf16 %v6695_v0, %v19155_v46  ;;  %v6696_v11 = vmax.f32 %v6687_v32, 0.0  ;;  %v19604_v46 = vld [vmem:[#allocation48_spill] sm:$0xff] }
 0x42d   : > { %19566 = vst [vmem:[#allocation58_spill] sm:$0xff] %v17407_v31  ;;  %v6100_v52 = vmax.f32 %v19568_v4, %v6091_v38  ;;  %v6092_v18 = vmax.f32 %v17222_v59, %v6059_v51  ;;  %v6638_v55 = vpop.f32.mrb[94].mxu1  ;;  %v6061_v6 = vpop.f32.mrb[95].mxu0  ;;  %v17424_v22 = vpack.c.bf16 %v6117_v20, %v6116_v33  ;;  %v19573_v33 = vmax.f32 %v16991_v48, %v17083_v30 }
 0x42e   : > { %19567 = vst [vmem:[#allocation93_spill] sm:$0xff] %v17417_v37  ;;  %v6679_v57 = vmax.f32 %v19570_v44, %v6670_v60  ;;  %v6671_v7 = vmax.f32 %v17227_v25, %v6638_v55  ;;  %v6640_v32 = vpop.f32.mrb[95].mxu1  ;;  %v17431_v16 = vpack.c.bf16 %v6696_v11, %v6695_v0  ;;  %v17453_v60 = vld [vmem:[%s19002_s3 + $0xa8] ss:$12 sps:$4 sm:$0xff]   ;;  %v8705_v55 = vpack.c.bf16 %v16943_v15, %v16943_v15  ;;  %v19583_v15 = vld [vmem:[#allocation41_spill] sm:$0xff] }
 0x42f   : > { %13317 = vmatpush3.bf16.msra.mxu1 %v16869_v13  ;;  %19569 = vst [vmem:[#allocation94_spill] sm:$0xff] %v17424_v22  ;;  %v6101_v27 = vmax.f32 %v19572_v41, %v6092_v18  ;;  %8280 = vmatmul.mubr.bf16.gmra.mrb[200].mxu0 %v17403_v54  ;;  %v6109_v59 = vadd.f32 %v6100_v52, %v15278_v1  ;;  %v19576_v44 = vld [vmem:[#allocation79_spill] sm:$0xff]  ;;  %v19578_v32 = vld [vmem:[#allocation14_spill] sm:$0xff] }
 0x430   : > { %13318 = vmatprep.subr.bf16.mxu1 %v16905_v8  ;;  %19571 = vst [vmem:[#allocation95_spill] sm:$0xff] %v17431_v16  ;;  %v6680_v47 = vmax.f32 %v19573_v33, %v6671_v7  ;;  %8287 = vmatprep.mubr.bf16.mxu0 %v17413_v49  ;;  %v6688_v25 = vadd.f32 %v6679_v57, %v15278_v1  ;;  %v19581_v33 = vld [vmem:[#allocation80_spill] sm:$0xff] }
 0x431   : > { %v6118_v40 = vmax.f32 %v6109_v59, 0.0  ;;  %v6110_v24 = vadd.f32 %v6101_v27, %v15314_v10  ;;  %v19577_v57 = vmax.f32 %v16996_v23, %v19576_v44  ;;  %v19585_v23 = vld [vmem:[#allocation69_spill] sm:$0xff] }
 0x432   : > { %8445 = vmatmul.mubr.bf16.gmra.mrb[200].mxu1 %v17232_v12  ;;  %v6064_v29 = vpop.f32.mrb[96].mxu0  ;;  %v6697_v0 = vmax.f32 %v6688_v25, 0.0  ;;  %v6689_v48 = vadd.f32 %v6680_v47, %v15314_v10 }
 0x433   : > { %13319 = vmatpush3.bf16.msra.mxu1 %v16905_v8  ;;  %8452 = vmatprep.mubr.bf16.mxu1 %v17252_v43  ;;  %v6093_v30 = vmax.f32 %v17237_v50, %v6064_v29  ;;  %v6643_v38 = vpop.f32.mrb[96].mxu1  ;;  %v6066_v45 = vpop.f32.mrb[97].mxu0  ;;  %v17455_v61 = vpack.c.bf16 %v6118_v40, %v6117_v20  ;;  %v6119_v51 = vmax.f32 %v6110_v24, 0.0 }
 0x434   : > { %13320 = vmatprep.subr.bf16.mxu1 %v16950_v42  ;;  %v6672_v4 = vmax.f32 %v17245_v17, %v6643_v38  ;;  %v6645_v52 = vpop.f32.mrb[97].mxu1  ;;  %v6067_v18 = vpop.f32.mrb[98].mxu0  ;;  %v17460_v6 = vpack.c.bf16 %v6697_v0, %v6696_v11  ;;  %v6698_v50 = vmax.f32 %v6689_v48, 0.0  ;;  %v19580_v17 = vld [vmem:[#allocation72_spill] sm:$0xff]  ;;  %v19586_v48 = vld [vmem:[#allocation81_spill] sm:$0xff] }
 0x435   : > { %19574 = vst [vmem:[#allocation96_spill] sm:$0xff] %v17455_v61  ;;  %v6102_v7 = vmax.f32 %v19577_v57, %v6093_v30  ;;  %v6094_v20 = vmax.f32 %v19578_v32, %v6067_v18  ;;  %v6646_v41 = vpop.f32.mrb[98].mxu1  ;;  %v6069_v27 = vpop.f32.mrb[99].mxu0  ;;  %v17467_v59 = vpack.c.bf16 %v6119_v51, %v6118_v40  ;;  %v19582_v47 = vmax.f32 %v19580_v17, %v19581_v33  ;;  %v19588_v45 = vld [vmem:[#allocation17_spill] sm:$0xff]  ;;  %v19590_v18 = vld [vmem:[#allocation82_spill] sm:$0xff] }
 0x436   : > { %19575 = vst [vmem:[#allocation97_spill] sm:$0xff] %v17460_v6  ;;  %v6673_v11 = vmax.f32 %v19583_v15, %v6646_v41  ;;  %v6648_v24 = vpop.f32.mrb[99].mxu1  ;;  %v17474_v29 = vpack.c.bf16 %v6698_v50, %v6697_v0  ;;  %v19587_v30 = vmax.f32 %v19585_v23, %v19586_v48  ;;  %v19589_v52 = vld [vmem:[#allocation73_spill] sm:$0xff]  ;;  %v8915_v32 = vsel %vm8195_vm1, %v8705_v55, 0  ;;  %v19593_v41 = vld [vmem:[#allocation88_spill] sm:$0xff]  ;;  %v19595_v17 = vld [vmem:[#allocation26_spill] sm:$0xff] }
 0x437   : > { %13321 = vmatpush3.bf16.msra.mxu1 %v16950_v42  ;;  %19579 = vst [vmem:[#allocation79_spill] sm:$0xff] %v17467_v59  ;;  %v6681_v25 = vmax.f32 %v19582_v47, %v6672_v4  ;;  %8288 = vmatmul.mubr.bf16.gmra.mrb[204].mxu0 %v17453_v60  ;;  %v6111_v40 = vadd.f32 %v6102_v7, %v19588_v45  ;;  %v19592_v4 = vld [vmem:[#allocation39_spill] sm:$0xff]  ;;  %v19594_v27 = vld [vmem:[#allocation92_spill] sm:$0xff]  ;;  %v19596_v7 = vld [vmem:[#allocation50_spill] sm:$0xff] }
 0x438   : > { %13536 = vmatprep.subr.msk.bf16.mxu1 %vm8195_vm1, %v8705_v55  ;;  %19584 = vst [vmem:[#allocation14_spill] sm:$0xff] %v17474_v29  ;;  %v6103_v38 = vmax.f32 %v19587_v30, %v6094_v20  ;;  %v19591_v44 = vmax.f32 %v19589_v52, %v19590_v18  ;;  %13294 = vmatprep.mubr.msk.bf16.mxu0 %vm8170_vm2, %v19593_v41  ;;  %v19597_v24 = vld [vmem:[#allocation60_spill] sm:$0xff]  ;;  %v19601_v41 = vld [vmem:[#allocation75_spill] sm:$0xff]  ;;  %v19612_v59 = vld [vmem:[#allocation85_spill] sm:$0xff] }
 0x439   : > { %v6690_v0 = vadd.f32 %v6681_v25, %v19588_v45  ;;  %v6120_v20 = vmax.f32 %v6111_v40, 0.0  ;;  %v19599_v25 = vld [vmem:[#allocation44_spill] sm:$0xff]  ;;  %v19654_v45 = vld [vmem:[#allocation33_spill] sm:$0xff] }
 0x43a   : > { %v6682_v57 = vmax.f32 %v19591_v44, %v6673_v11  ;;  %8453 = vmatmul.mubr.bf16.gmra.mrb[204].mxu1 %v19592_v4  ;;  %v6112_v33 = vadd.f32 %v6103_v38, %v19595_v17  ;;  %v6072_v47 = vpop.f32.mrb[100].mxu0 }
 0x43b   : > { %13323 = vmatpush3.bf16.msra.mxu1 %v8915_v32  ;;  %8460 = vmatprep.mubr.bf16.mxu1 %v19594_v27  ;;  %v6699_v15 = vmax.f32 %v6690_v0, 0.0  ;;  %v6095_v23 = vmax.f32 %v19597_v24, %v6072_v47  ;;  %v6651_v55 = vpop.f32.mrb[100].mxu1  ;;  %v6074_v48 = vpop.f32.mrb[101].mxu0  ;;  %v17494_v30 = vpack.c.bf16 %v6120_v20, %v6119_v51  ;;  %v19606_v51 = vld [vmem:[#allocation76_spill] sm:$0xff] }
 0x43c   : > { %12770 = vmatprep.subr.bf16.mxu1 %v19596_v7  ;;  %v6691_v11 = vadd.f32 %v6682_v57, %v19595_v17  ;;  %v6121_v52 = vmax.f32 %v6112_v33, 0.0  ;;  %v6674_v18 = vmax.f32 %v19599_v25, %v6651_v55  ;;  %v6653_v44 = vpop.f32.mrb[101].mxu1  ;;  %v6075_v32 = vpop.f32.mrb[102].mxu0  ;;  %v19602_v7 = vld [vmem:[#allocation83_spill] sm:$0xff]  ;;  %v19607_v48 = vld [vmem:[#allocation84_spill] sm:$0xff] }
 0x43d   : > { %19598 = vst [vmem:[#allocation72_spill] sm:$0xff] %v17494_v30  ;;  %v17497_v40 = vpack.c.bf16 %v6699_v15, %v6698_v50  ;;  %v19603_v9 = vmax.f32 %v19601_v41, %v19602_v7  ;;  %v6096_v57 = vmax.f32 %v19604_v46, %v6075_v32  ;;  %v6654_v29 = vpop.f32.mrb[102].mxu1  ;;  %v6077_v47 = vpop.f32.mrb[103].mxu0  ;;  %v19608_v33 = vmax.f32 %v19606_v51, %v19607_v48  ;;  %v19609_v55 = vld [vmem:[#allocation19_spill] sm:$0xff]  ;;  %v19625_v51 = vld [vmem:[#allocation90_spill] sm:$0xff] }
 0x43e   : > { %v6700_v38 = vmax.f32 %v6691_v11, 0.0  ;;  %v17503_v24 = vpack.c.bf16 %v6121_v52, %v6120_v20  ;;  %v6675_v25 = vmax.f32 %v19609_v55, %v6654_v29  ;;  %v6656_v44 = vpop.f32.mrb[103].mxu1  ;;  %v19611_v11 = vld [vmem:[#allocation77_spill] sm:$0xff]  ;;  %v19615_v46 = vld [vmem:[#allocation11_spill] sm:$0xff]  ;;  %v19616_v20 = vld [vmem:[#allocation78_spill] sm:$0xff] }
 0x43f   : > { %19600 = vst [vmem:[#allocation80_spill] sm:$0xff] %v17497_v40  ;;  %v6104_v0 = vmax.f32 %v19603_v9, %v6095_v23  ;;  %v6683_v16 = vmax.f32 %v19608_v33, %v6674_v18  ;;  %v19613_v22 = vmax.f32 %v19611_v11, %v19612_v59  ;;  %v19614_v9 = vld [vmem:[#allocation89_spill] sm:$0xff]  ;;  %v19617_v32 = vld [vmem:[#allocation87_spill] sm:$0xff]  ;;  %v19620_v29 = vld [vmem:[#allocation42_spill] sm:$0xff] }
 0x440   : > { %19605 = vst [vmem:[#allocation41_spill] sm:$0xff] %v17503_v24  ;;  %v17509_v50 = vpack.c.bf16 %v6700_v38, %v6699_v15  ;;  %13295 = vmatmul.mubr.msk.bf16.vlgmr.msra.gmra.mrb[208].mxu0 %vm8170_vm2, %v19614_v9  ;;  %v19618_v7 = vmax.f32 %v19616_v20, %v19617_v32  ;;  %v19622_v18 = vld [vmem:[#allocation13_spill] sm:$0xff]  ;;  %v19628_v11 = vld [vmem:[#allocation46_spill] sm:$0xff]  ;;  %v19631_v20 = vld [vmem:[#allocation64_spill] sm:$0xff] }
 0x441   : > { %v6105_v41 = vmax.f32 %v19613_v22, %v6096_v57  ;;  %v6113_v23 = vadd.f32 %v6104_v0, %v19615_v46  ;;  %12692 = vmatpush3.bf16.msra.mxu0 %v19620_v29  ;;  %v17525_v15 = vadd.f32 %v6683_v16, %v19615_v46  ;;  %v19623_v22 = vld [vmem:[#allocation6_spill] sm:$0xff]  ;;  %13298 = vmatprep.mubr.msk.bf16.mxu0 %vm8170_vm2, %v19625_v51  ;;  %v19635_v51 = vld [vmem:[#allocation20_spill] sm:$0xff]  ;;  %v19658_v24 = vld [vmem:[#allocation61_spill] sm:$0xff] }
 0x442   : > { %19610 = vst [vmem:[#allocation69_spill] sm:$0xff] %v17509_v50  ;;  %v17520_v47 = vmax.f32 %v19618_v7, %v6675_v25  ;;  %8461 = vmatmul.mubr.bf16.gmra.mrb[208].mxu1 %v17324_v58  ;;  %12693 = vmatprep.subr.bf16.mxu0 %v19623_v22  ;;  %v17530_v0 = vpop.f32.mrb[104].mxu0  ;;  %v19645_v50 = vld [vmem:[#allocation54_spill] sm:$0xff] }
 0x443   : > { %19621 = vst [vmem:[#allocation73_spill] sm:$0xff] %v17525_v15  ;;  %v6114_v59 = vadd.f32 %v6105_v41, %v19622_v18  ;;  %8468 = vmatprep.mubr.bf16.mxu1 %v17330_v35  ;;  %v6122_v57 = vmax.f32 %v6113_v23, 0.0  ;;  %19624 = vst [vmem:[#allocation82_spill] sm:$0xff] %v17530_v0  ;;  %v19158_v48 = vmax.f32 %v17525_v15, 0.0  ;;  %v17537_v55 = vpop.f32.mrb[104].mxu1  ;;  %v7096_v16 = vpop.f32.mrb[105].mxu0 }
 0x444   : > { %19619 = vst [vmem:[#allocation81_spill] sm:$0xff] %v17520_v47  ;;  %19626 = vst [vmem:[#allocation39_spill] sm:$0xff] %v17537_v55  ;;  %v7675_v44 = vpop.f32.mrb[105].mxu1  ;;  %v17542_v41 = vpop.f32.mrb[106].mxu0  ;;  %v19637_v16 = vld [vmem:[#allocation56_spill] sm:$0xff] }
 0x445   : > { %v17535_v33 = vmax.f32 %v6114_v59, 0.0  ;;  %v17539_v25 = vpack.c.bf16 %v6122_v57, %v6121_v52  ;;  %12694 = vmatpush3.bf16.msra.mxu0 %v19628_v11  ;;  %v17546_v9 = vpack.c.bf16 %v19158_v48, %v6700_v38  ;;  %v17548_v23 = vpop.f32.mrb[106].mxu1  ;;  %v7099_v32 = vpop.f32.mrb[107].mxu0  ;;  %v19633_v52 = vmax.f32 %v17379_v5, 0.0  ;;  %v19636_v38 = vld [vmem:[#allocation37_spill] sm:$0xff]  ;;  %v19643_v15 = vld [vmem:[#allocation28_spill] sm:$0xff] }
 0x446   : > { %19630 = vst [vmem:[#allocation50_spill] sm:$0xff] %v17548_v23  ;;  %12695 = vmatprep.subr.bf16.mxu0 %v19631_v20  ;;  %v7678_v59 = vpop.f32.mrb[107].mxu1  ;;  %v17598_v47 = vld [vmem:[%s19002_s3 + $0x8] ss:$12 sps:$4 sm:$0xff]  }
 0x447   : > { %19627 = vst [vmem:[#allocation88_spill] sm:$0xff] %v17539_v25  ;;  %19629 = vst [vmem:[#allocation92_spill] sm:$0xff] %v17546_v9  ;;  %v17552_v7 = vpack.c.bf16 %v17535_v33, %v6122_v57  ;;  %v17557_v29 = vpack.c.bf16 %v19633_v52, %v17535_v33  ;;  %v19638_v57 = vld [vmem:[#allocation24_spill] sm:$0xff]  ;;  %v19640_v52 = vld [vmem:[#allocation34_spill] sm:$0xff] }
 0x448   : > { %13299 = vmatmul.mubr.msk.bf16.gmra.mrb[212].mxu0 %vm8170_vm2, %v19635_v51  ;;  %v19648_v9 = vld [vmem:[#allocation45_spill] sm:$0xff]  ;;  %v19670_v55 = vld [vmem:[#allocation40_spill] sm:$0xff] }
 0x449   : > { %19632 = vst [vmem:[#allocation60_spill] sm:$0xff] %v17552_v7  ;;  %19634 = vst [vmem:[#allocation44_spill] sm:$0xff] %v17557_v29  ;;  %12696 = vmatpush3.bf16.msra.mxu0 %v19636_v38  ;;  %13302 = vmatprep.mubr.msk.bf16.mxu0 %vm8170_vm2, %v19638_v57  ;;  %v19642_v38 = vld [vmem:[#allocation53_spill] sm:$0xff]  ;;  %v19644_v57 = vld [vmem:[#allocation31_spill] sm:$0xff] }
 0x44a   : > { %8469 = vmatmul.mubr.bf16.gmra.mrb[212].mxu1 %v17357_v53  ;;  %12697 = vmatprep.subr.bf16.mxu0 %v19637_v16  ;;  %v17565_v44 = vpop.f32.mrb[108].mxu0  ;;  %v19655_v7 = vld [vmem:[#allocation51_spill] sm:$0xff] }
 0x44b   : > { %8476 = vmatprep.mubr.bf16.mxu1 %v17363_v34  ;;  %v17569_v5 = vpop.f32.mrb[108].mxu1  ;;  %v7104_v11 = vpop.f32.mrb[109].mxu0 }
 0x44c   : > { %19639 = vst [vmem:[#allocation75_spill] sm:$0xff] %v17569_v5  ;;  %v7683_v32 = vpop.f32.mrb[109].mxu1  ;;  %v17572_v59 = vpop.f32.mrb[110].mxu0 }
 0x44d   : > { %12698 = vmatpush3.bf16.msra.mxu0 %v19640_v52  ;;  %v17574_v51 = vpop.f32.mrb[110].mxu1  ;;  %v7107_v48 = vpop.f32.mrb[111].mxu0  ;;  %v19646_v32 = vld [vmem:[#allocation36_spill] sm:$0xff] }
 0x44e   : > { %19641 = vst [vmem:[#allocation83_spill] sm:$0xff] %v17574_v51  ;;  %12699 = vmatprep.subr.bf16.mxu0 %v19642_v38  ;;  %v7686_v29 = vpop.f32.mrb[111].mxu1 }
 0x450   : > { %13303 = vmatmul.mubr.msk.bf16.gmra.mrb[216].mxu0 %vm8170_vm2, %v19643_v15 }
 0x451   : > { %12700 = vmatpush3.bf16.msra.mxu0 %v19644_v57  ;;  %13306 = vmatprep.mubr.msk.bf16.mxu0 %vm8170_vm2, %v19646_v32  ;;  %v19649_v57 = vld [vmem:[#allocation63_spill] sm:$0xff] }
 0x452   : > { %8477 = vmatmul.mubr.bf16.gmra.mrb[216].mxu1 %v17403_v54  ;;  %12701 = vmatprep.subr.bf16.mxu0 %v19645_v50  ;;  %v17583_v11 = vpop.f32.mrb[112].mxu0  ;;  %v19650_v32 = vld [vmem:[#allocation91_spill] sm:$0xff] }
 0x453   : > { %8484 = vmatprep.mubr.bf16.mxu1 %v17413_v49  ;;  %v17587_v52 = vpop.f32.mrb[112].mxu1  ;;  %v7112_v48 = vpop.f32.mrb[113].mxu0 }
 0x454   : > { %19647 = vst [vmem:[#allocation48_spill] sm:$0xff] %v17587_v52  ;;  %v7691_v29 = vpop.f32.mrb[113].mxu1  ;;  %v17590_v15 = vpop.f32.mrb[114].mxu0  ;;  %v19651_v48 = vld [vmem:[#allocation49_spill] sm:$0xff] }
 0x455   : > { %12702 = vmatpush3.bf16.msra.mxu0 %v19648_v9  ;;  %v17592_v63 = vpop.f32.mrb[114].mxu1  ;;  %v7115_v46 = vpop.f32.mrb[115].mxu0  ;;  %v19652_v9 = vld [vmem:[#allocation67_spill] sm:$0xff]  ;;  %v19653_v29 = vld [vmem:[#allocation86_spill] sm:$0xff] }
 0x456   : > { %12703 = vmatprep.subr.bf16.mxu0 %v19649_v57  ;;  %v7694_v40 = vpop.f32.mrb[115].mxu1  ;;  %v19663_v57 = vld [vmem:[#allocation65_spill] sm:$0xff] }
 0x458   : > { %13307 = vmatmul.mubr.msk.bf16.gmra.mrb[220].mxu0 %vm8170_vm2, %v19650_v32 }
 0x459   : > { %12704 = vmatpush3.bf16.msra.mxu0 %v19651_v48  ;;  %8949 = vmatprep.mubr.bf16.mxu0 %v19653_v29  ;;  %v17618_v48 = vld [vmem:[%s19002_s3 + $0x20] ss:$12 sps:$4 sm:$0xff]  }
 0x45a   : > { %8485 = vmatmul.mubr.bf16.gmra.mrb[220].mxu1 %v17453_v60  ;;  %12705 = vmatprep.subr.bf16.mxu0 %v19652_v9  ;;  %v17606_v6 = vpop.f32.mrb[116].mxu0  ;;  %v19664_v9 = vld [vmem:[#allocation38_spill] sm:$0xff] }
 0x45b   : > { %13324 = vmatprep.mubr.msk.bf16.mxu1 %vm8170_vm2, %v17598_v47  ;;  %v17610_v40 = vpop.f32.mrb[116].mxu1  ;;  %v7120_v46 = vpop.f32.mrb[117].mxu0 }
 0x45c   : > { %v7699_v17 = vpop.f32.mrb[117].mxu1  ;;  %v17613_v32 = vpop.f32.mrb[118].mxu0  ;;  %v19657_v46 = vld [vmem:[#allocation23_spill] sm:$0xff] }
 0x45d   : > { %12706 = vmatpush3.bf16.msra.mxu0 %v19654_v45  ;;  %v17620_v37 = vpop.f32.mrb[118].mxu1  ;;  %v7123_v10 = vpop.f32.mrb[119].mxu0  ;;  %v17627_v17 = vld [vmem:[%s19002_s3 + $0x38] ss:$12 sps:$4 sm:$0xff]   ;;  %v19656_v45 = vld [vmem:[#allocation43_spill] sm:$0xff] }
 0x45e   : > { %13340 = vmatprep.subr.bf16.mxu0 %v19655_v7  ;;  %v7702_v1 = vpop.f32.mrb[119].mxu1 }
 0x460   : > { %8950 = vmatmul.mubr.bf16.vlgmr.msra.gmra.mrb[224].mxu0 %v17152_v28 }
 0x461   : > { %13341 = vmatpush3.bf16.msra.mxu0 %v19655_v7  ;;  %8957 = vmatprep.mubr.bf16.mxu0 %v17166_v36 }
 0x462   : > { %13325 = vmatmul.mubr.msk.bf16.vlgmr.msra.gmra.mrb[224].mxu1 %vm8170_vm2, %v17618_v48  ;;  %13342 = vmatprep.subr.bf16.mxu0 %v19657_v46  ;;  %v17635_v10 = vpop.f32.mrb[120].mxu0 }
 0x463   : > { %12771 = vmatpush3.bf16.msra.mxu1 %v19656_v45  ;;  %v17638_v1 = vpop.f32.mrb[120].mxu1  ;;  %v7128_v21 = vpop.f32.mrb[121].mxu0  ;;  %13328 = vmatprep.mubr.msk.bf16.mxu1 %vm8170_vm2, %v17627_v17  ;;  %v17648_v45 = vld [vmem:[%s19002_s3 + $0x50] ss:$12 sps:$4 sm:$0xff]  }
 0x464   : > { %12772 = vmatprep.subr.bf16.mxu1 %v19658_v24  ;;  %v7707_v14 = vpop.f32.mrb[121].mxu1  ;;  %v17643_v7 = vpop.f32.mrb[122].mxu0  ;;  %v19660_v24 = vld [vmem:[#allocation47_spill] sm:$0xff]  ;;  %v19662_v21 = vld [vmem:[#allocation9_spill] sm:$0xff] }
 0x465   : > { %13343 = vmatpush3.bf16.msra.mxu0 %v19657_v46  ;;  %19659 = vst [vmem:[#allocation76_spill] sm:$0xff] %v17643_v7  ;;  %v17653_v2 = vpop.f32.mrb[122].mxu1  ;;  %v7131_v19 = vpop.f32.mrb[123].mxu0  ;;  %v19666_v14 = vld [vmem:[#allocation57_spill] sm:$0xff] }
 0x466   : > { %19661 = vst [vmem:[#allocation84_spill] sm:$0xff] %v17653_v2  ;;  %13344 = vmatprep.subr.bf16.mxu0 %v19662_v21  ;;  %v7710_v50 = vpop.f32.mrb[123].mxu1  ;;  %v19665_v19 = vld [vmem:[#allocation25_spill] sm:$0xff] }
 0x467   : > { %12773 = vmatpush3.bf16.msra.mxu1 %v19660_v24  ;;  %v17663_v24 = vld [vmem:[%s19002_s3 + $0x68] ss:$12 sps:$4 sm:$0xff]  }
 0x468   : > { %12774 = vmatprep.subr.bf16.mxu1 %v19663_v57  ;;  %8958 = vmatmul.mubr.bf16.gmra.mrb[228].mxu0 %v17188_v26  ;;  %v19668_v50 = vld [vmem:[#allocation55_spill] sm:$0xff] }
 0x469   : > { %13345 = vmatpush3.bf16.msra.mxu0 %v19662_v21  ;;  %8965 = vmatprep.mubr.bf16.mxu0 %v17208_v3  ;;  %v5535_v2 = vadd.f32 %v19668_v50, %v19622_v18  ;;  %v17690_v50 = vld [vmem:[%s19002_s3 + $0x80] ss:$12 sps:$4 sm:$0xff]  }
 0x46a   : > { %13329 = vmatmul.mubr.msk.bf16.gmra.mrb[228].mxu1 %vm8170_vm2, %v17648_v45  ;;  %13346 = vmatprep.subr.bf16.mxu0 %v19665_v19  ;;  %v17671_v57 = vpop.f32.mrb[124].mxu0 }
 0x46b   : > { %12775 = vmatpush3.bf16.msra.mxu1 %v19664_v9  ;;  %19667 = vst [vmem:[#allocation19_spill] sm:$0xff] %v17671_v57  ;;  %v17678_v7 = vpop.f32.mrb[124].mxu1  ;;  %v7136_v0 = vpop.f32.mrb[125].mxu0  ;;  %13332 = vmatprep.mubr.msk.bf16.mxu1 %vm8170_vm2, %v17663_v24  ;;  %v19672_v57 = vld [vmem:[#allocation74_spill] sm:$0xff]  ;;  %v17701_v23 = vmax.f32 %v5535_v2, 0.0  ;;  %v19679_v2 = vld [vmem:[#allocation71_spill] sm:$0xff] }
 0x46c   : > { %12776 = vmatprep.subr.bf16.mxu1 %v19666_v14  ;;  %19669 = vst [vmem:[#allocation77_spill] sm:$0xff] %v17678_v7  ;;  %v7715_v14 = vpop.f32.mrb[125].mxu1  ;;  %v17685_v21 = vpop.f32.mrb[126].mxu0 }
 0x46d   : > { %13347 = vmatpush3.bf16.msra.mxu0 %v19665_v19  ;;  %v17695_v18 = vpop.f32.mrb[126].mxu1  ;;  %v7139_v9 = vpop.f32.mrb[127].mxu0  ;;  %v19673_v19 = vld [vmem:[#allocation59_spill] sm:$0xff]  ;;  %19674 = vst [vmem:[#allocation89_spill] sm:$0xff] %v17701_v23 }
 0x46e   : > { %19671 = vst [vmem:[#allocation85_spill] sm:$0xff] %v17695_v18  ;;  %13348 = vmatprep.subr.bf16.mxu0 %v19672_v57  ;;  %v7718_v7 = vpop.f32.mrb[127].mxu1  ;;  %v19675_v9 = vld [vmem:[#allocation27_spill] sm:$0xff]  ;;  %v17739_v18 = vld [vmem:[%s19002_s3 + $0xb0] ss:$12 sps:$4 sm:$0xff]  }
 0x46f   : > { %12777 = vmatpush3.bf16.msra.mxu1 %v19670_v55  ;;  %v17707_v55 = vld [vmem:[%s19002_s3 + $0x98] ss:$12 sps:$4 sm:$0xff]   ;;  %v19676_v14 = vmax.f32 %v19675_v9, 0.0  ;;  %v19678_v7 = vld [vmem:[#allocation7_spill] sm:$0xff] }
 0x470   : > { %12778 = vmatprep.subr.bf16.mxu1 %v19673_v19  ;;  %8966 = vmatmul.mubr.bf16.gmra.mrb[232].mxu0 %v17232_v12 }
 0x471   : > { %13349 = vmatpush3.bf16.msra.mxu0 %v19672_v57  ;;  %v17715_v0 = vpack.c.bf16 %v19676_v14, %v17254_v62  ;;  %8973 = vmatprep.mubr.bf16.mxu0 %v17252_v43  ;;  %v8737_v62 = vpack.c.bf16 %v17701_v23, %v17701_v23 }
 0x472   : > { %13333 = vmatmul.mubr.msk.bf16.gmra.mrb[232].mxu1 %vm8170_vm2, %v17690_v50  ;;  %13350 = vmatprep.subr.bf16.mxu0 %v19679_v2  ;;  %v17720_v19 = vpop.f32.mrb[128].mxu0 }
 0x473   : > { %19677 = vst [vmem:[#allocation78_spill] sm:$0xff] %v17715_v0  ;;  %12779 = vmatpush3.bf16.msra.mxu1 %v19678_v7  ;;  %19680 = vst [vmem:[#allocation87_spill] sm:$0xff] %v17720_v19  ;;  %v17725_v5 = vpop.f32.mrb[128].mxu1  ;;  %v7144_v57 = vpop.f32.mrb[129].mxu0  ;;  %13336 = vmatprep.mubr.msk.bf16.mxu1 %vm8170_vm2, %v17707_v55  ;;  %v9112_v51 = vsel %vm8195_vm1, %v8737_v62, 0 }
 0x474   : > { %12780 = vmatprep.subr.bf16.mxu1 %v17715_v0  ;;  %19681 = vst [vmem:[#allocation42_spill] sm:$0xff] %v17725_v5  ;;  %v7723_v9 = vpop.f32.mrb[129].mxu1  ;;  %v17734_v7 = vpop.f32.mrb[130].mxu0  ;;  %v19682_v57 = vld [vmem:[#allocation62_spill] sm:$0xff]  ;;  %v19686_v0 = vld [vmem:[#allocation35_spill] sm:$0xff] }
 0x475   : > { %13351 = vmatpush3.bf16.msra.mxu0 %v19679_v2  ;;  %v17744_v19 = vpop.f32.mrb[130].mxu1  ;;  %v7147_v14 = vpop.f32.mrb[131].mxu0  ;;  %v19684_v2 = vld [vmem:[#allocation10_spill] sm:$0xff] }
 0x476   : > { %19683 = vst [vmem:[#allocation6_spill] sm:$0xff] %v17744_v19  ;;  %13537 = vmatprep.subr.msk.bf16.mxu0 %vm8195_vm1, %v8737_v62  ;;  %v7726_v5 = vpop.f32.mrb[131].mxu1 }
 0x477   : > { %12781 = vmatpush3.bf16.msra.mxu1 %v19682_v57  ;;  %v19685_v57 = vld [vmem:[#allocation66_spill] sm:$0xff] }
 0x478   : > { %12782 = vmatprep.subr.bf16.mxu1 %v19684_v2  ;;  %8974 = vmatmul.mubr.bf16.gmra.mrb[236].mxu0 %v19592_v4 }
 0x479   : > { %13353 = vmatpush3.bf16.msra.mxu0 %v9112_v51  ;;  %8981 = vmatprep.mubr.bf16.mxu0 %v19594_v27 }
 0x47a   : > { %13337 = vmatmul.mubr.msk.bf16.gmra.mrb[236].mxu1 %vm8170_vm2, %v17739_v18  ;;  %12849 = vmatprep.subr.bf16.mxu0 %v17347_v56  ;;  %v17757_v14 = vpop.f32.mrb[132].mxu0  ;;  %v19687_v56 = vld [vmem:[#allocation32_spill] sm:$0xff] }
 0x47b   : > { %12783 = vmatpush3.bf16.msra.mxu1 %v19685_v57  ;;  %v17762_v9 = vpop.f32.mrb[132].mxu1  ;;  %v7152_v62 = vpop.f32.mrb[133].mxu0  ;;  %9146 = vmatprep.mubr.bf16.mxu1 %v19653_v29 }
 0x47c   : > { %12784 = vmatprep.subr.bf16.mxu1 %v19686_v0  ;;  %v7731_v57 = vpop.f32.mrb[133].mxu1  ;;  %v17767_v2 = vpop.f32.mrb[134].mxu0  ;;  %v19688_v62 = vld [vmem:[#allocation70_spill] sm:$0xff] }
 0x47d   : > { %v17772_v19 = vpop.f32.mrb[134].mxu1  ;;  %v7155_v52 = vpop.f32.mrb[135].mxu0  ;;  %v19689_v57 = vld [vmem:[#allocation30_spill] sm:$0xff] }
 0x47e   : > { %v7734_v29 = vpop.f32.mrb[135].mxu1  ;;  %v19690_v51 = vmax.f32 %v19689_v57, 0.0 }
 0x47f   : > { %12785 = vmatpush3.bf16.msra.mxu1 %v19687_v56 }
 0x480   : > { %13370 = vmatprep.subr.bf16.mxu1 %v19688_v62  ;;  %8982 = vmatmul.mubr.bf16.gmra.mrb[240].mxu0 %v17324_v58  ;;  %v17782_v56 = vpack.c.bf16 %v17701_v23, %v19690_v51 }
 0x481   : > { %8989 = vmatprep.mubr.bf16.mxu0 %v17330_v35 }
 0x482   : > { %9147 = vmatmul.mubr.bf16.vlgmr.msra.gmra.mrb[240].mxu1 %v17152_v28  ;;  %19691 = vst [vmem:[#allocation90_spill] sm:$0xff] %v17782_v56  ;;  %v17788_v52 = vpop.f32.mrb[136].mxu0 }
 0x483   : > { %13371 = vmatpush3.bf16.msra.mxu1 %v19688_v62  ;;  %9154 = vmatprep.mubr.bf16.mxu1 %v17166_v36  ;;  %v17792_v5 = vpop.f32.mrb[136].mxu1  ;;  %v7160_v28 = vpop.f32.mrb[137].mxu0 }
 0x484   : > { %13372 = vmatprep.subr.bf16.mxu1 %v17782_v56  ;;  %v7739_v57 = vpop.f32.mrb[137].mxu1  ;;  %v17796_v0 = vpop.f32.mrb[138].mxu0 }
 0x485   : > { %v17801_v62 = vpop.f32.mrb[138].mxu1  ;;  %v7163_v23 = vpop.f32.mrb[139].mxu0 }
 0x486   : > { %v7742_v28 = vpop.f32.mrb[139].mxu1 }
 0x487   : > { %13373 = vmatpush3.bf16.msra.mxu1 %v17782_v56 }
 0x488   : > { %13374 = vmatprep.subr.bf16.mxu1 %v17407_v31  ;;  %8990 = vmatmul.mubr.bf16.gmra.mrb[244].mxu0 %v17357_v53 }
 0x489   : > { %8997 = vmatprep.mubr.bf16.mxu0 %v17363_v34 }
 0x48a   : > { %9155 = vmatmul.mubr.bf16.gmra.mrb[244].mxu1 %v17188_v26  ;;  %v17812_v57 = vpop.f32.mrb[140].mxu0 }
 0x48b   : > { %13375 = vmatpush3.bf16.msra.mxu1 %v17407_v31  ;;  %9162 = vmatprep.mubr.bf16.mxu1 %v17208_v3  ;;  %v17814_v23 = vpop.f32.mrb[140].mxu1  ;;  %v7168_v29 = vpop.f32.mrb[141].mxu0 }
 0x48c   : > { %13376 = vmatprep.subr.bf16.mxu1 %v17455_v61  ;;  %v7747_v36 = vpop.f32.mrb[141].mxu1  ;;  %v17816_v51 = vpop.f32.mrb[142].mxu0 }
 0x48d   : > { %v17819_v28 = vpop.f32.mrb[142].mxu1  ;;  %v7171_v26 = vpop.f32.mrb[143].mxu0 }
 0x48e   : > { %v7750_v31 = vpop.f32.mrb[143].mxu1 }
 0x48f   : > { %13377 = vmatpush3.bf16.msra.mxu1 %v17455_v61  ;;  %v9423_v31 = vpack.c.bf16 %v17535_v33, %v17535_v33 }
 0x490   : > { %13378 = vmatprep.subr.bf16.mxu1 %v17494_v30  ;;  %8998 = vmatmul.mubr.bf16.gmra.mrb[248].mxu0 %v17403_v54 }
 0x491   : > { %9005 = vmatprep.mubr.bf16.mxu0 %v17413_v49 }
 0x492   : > { %9163 = vmatmul.mubr.bf16.gmra.mrb[248].mxu1 %v17232_v12  ;;  %v17828_v3 = vpop.f32.mrb[144].mxu0 }
 0x493   : > { %13379 = vmatpush3.bf16.msra.mxu1 %v17494_v30  ;;  %9170 = vmatprep.mubr.bf16.mxu1 %v17252_v43  ;;  %v17830_v29 = vpop.f32.mrb[144].mxu1  ;;  %v7176_v36 = vpop.f32.mrb[145].mxu0 }
 0x494   : > { %13380 = vmatprep.subr.bf16.mxu1 %v17539_v25  ;;  %v7755_v26 = vpop.f32.mrb[145].mxu1  ;;  %v17832_v61 = vpop.f32.mrb[146].mxu0  ;;  %v9633_v36 = vsel %vm8195_vm1, %v9423_v31, 0 }
 0x495   : > { %v17837_v12 = vpop.f32.mrb[146].mxu1  ;;  %v7179_v30 = vpop.f32.mrb[147].mxu0 }
 0x496   : > { %v7758_v43 = vpop.f32.mrb[147].mxu1 }
 0x497   : > { %13381 = vmatpush3.bf16.msra.mxu1 %v17539_v25 }
 0x498   : > { %13538 = vmatprep.subr.msk.bf16.mxu1 %vm8195_vm1, %v9423_v31  ;;  %9006 = vmatmul.mubr.bf16.gmra.mrb[252].mxu0 %v17453_v60 }
 0x499   : > { %13354 = vmatprep.mubr.msk.bf16.mxu0 %vm8170_vm2, %v17598_v47 }
 0x49a   : > { %9171 = vmatmul.mubr.bf16.gmra.mrb[252].mxu1 %v19592_v4  ;;  %v17847_v33 = vpop.f32.mrb[148].mxu0 }
 0x49b   : > { %13383 = vmatpush3.bf16.msra.mxu1 %v9633_v36  ;;  %9178 = vmatprep.mubr.bf16.mxu1 %v19594_v27  ;;  %v17849_v30 = vpop.f32.mrb[148].mxu1  ;;  %v7184_v26 = vpop.f32.mrb[149].mxu0 }
 0x49c   : > { %12928 = vmatprep.subr.bf16.mxu1 %v19657_v46  ;;  %v7763_v43 = vpop.f32.mrb[149].mxu1  ;;  %v17851_v25 = vpop.f32.mrb[150].mxu0 }
 0x49d   : > { %v17853_v56 = vpop.f32.mrb[150].mxu1  ;;  %v7187_v4 = vpop.f32.mrb[151].mxu0 }
 0x49e   : > { %v7766_v31 = vpop.f32.mrb[151].mxu1 }
 0x4a0   : > { %13355 = vmatmul.mubr.msk.bf16.vlgmr.msra.gmra.mrb[0].mxu0 %vm8170_vm2, %v17618_v48 }
 0x4a1   : > { %12850 = vmatpush3.bf16.msra.mxu0 %v19623_v22  ;;  %13358 = vmatprep.mubr.msk.bf16.mxu0 %vm8170_vm2, %v17627_v17 }
 0x4a2   : > { %9179 = vmatmul.mubr.bf16.gmra.mrb[0].mxu1 %v17324_v58  ;;  %12851 = vmatprep.subr.bf16.mxu0 %v16831_v39  ;;  %v17861_v27 = vpop.f32.mrb[152].mxu0 }
 0x4a3   : > { %9186 = vmatprep.mubr.bf16.mxu1 %v17330_v35  ;;  %v17865_v47 = vpop.f32.mrb[152].mxu1  ;;  %v7192_v46 = vpop.f32.mrb[153].mxu0 }
 0x4a4   : > { %v7771_v36 = vpop.f32.mrb[153].mxu1  ;;  %v17868_v48 = vpop.f32.mrb[154].mxu0  ;;  %v19692_v46 = vld [vmem:[#allocation82_spill] sm:$0xff] }
 0x4a5   : > { %12852 = vmatpush3.bf16.msra.mxu0 %v19631_v20  ;;  %v17870_v58 = vpop.f32.mrb[154].mxu1  ;;  %v7195_v22 = vpop.f32.mrb[155].mxu0  ;;  %v19693_v36 = vld [vmem:[#allocation76_spill] sm:$0xff] }
 0x4a6   : > { %12853 = vmatprep.subr.bf16.mxu0 %v16869_v13  ;;  %v7774_v26 = vpop.f32.mrb[155].mxu1  ;;  %v19694_v22 = vmax.f32 %v19692_v46, %v19693_v36  ;;  %v19701_v46 = vld [vmem:[#allocation12_spill] sm:$0xff] }
 0x4a7   : > { %v19695_v26 = vld [vmem:[#allocation39_spill] sm:$0xff] }
 0x4a8   : > { %13359 = vmatmul.mubr.msk.bf16.gmra.mrb[4].mxu0 %vm8170_vm2, %v17648_v45 }
 0x4a9   : > { %12854 = vmatpush3.bf16.msra.mxu0 %v19637_v16  ;;  %13362 = vmatprep.mubr.msk.bf16.mxu0 %vm8170_vm2, %v17663_v24 }
 0x4aa   : > { %9187 = vmatmul.mubr.bf16.gmra.mrb[4].mxu1 %v17357_v53  ;;  %12855 = vmatprep.subr.bf16.mxu0 %v16905_v8  ;;  %v17879_v35 = vpop.f32.mrb[156].mxu0 }
 0x4ab   : > { %9194 = vmatprep.mubr.bf16.mxu1 %v17363_v34  ;;  %v17883_v20 = vpop.f32.mrb[156].mxu1  ;;  %v7200_v17 = vpop.f32.mrb[157].mxu0 }
 0x4ac   : > { %v7779_v43 = vpop.f32.mrb[157].mxu1  ;;  %v7201_v45 = vpop.f32.mrb[158].mxu0  ;;  %v19696_v17 = vld [vmem:[#allocation84_spill] sm:$0xff] }
 0x4ad   : > { %12856 = vmatpush3.bf16.msra.mxu0 %v19642_v38  ;;  %v7246_v53 = vmax.f32 %v17812_v57, %v7201_v45  ;;  %v7780_v4 = vpop.f32.mrb[158].mxu1  ;;  %v7203_v16 = vpop.f32.mrb[159].mxu0  ;;  %v19697_v38 = vmax.f32 %v19695_v26, %v19696_v17  ;;  %v19698_v57 = vld [vmem:[#allocation54_spill] sm:$0xff]  ;;  %v19699_v45 = vld [vmem:[#allocation68_spill] sm:$0xff] }
 0x4ae   : > { %12857 = vmatprep.subr.bf16.mxu0 %v16950_v42  ;;  %v7825_v34 = vmax.f32 %v17814_v23, %v7780_v4  ;;  %v7782_v31 = vpop.f32.mrb[159].mxu1 }
 0x4af   : > { %v7255_v24 = vmax.f32 %v19694_v22, %v7246_v53  ;;  %v19703_v22 = vld [vmem:[#allocation19_spill] sm:$0xff] }
 0x4b0   : > { %13363 = vmatmul.mubr.msk.bf16.gmra.mrb[8].mxu0 %vm8170_vm2, %v17690_v50  ;;  %v7834_v43 = vmax.f32 %v19697_v38, %v7825_v34  ;;  %v19700_v34 = vld [vmem:[#allocation63_spill] sm:$0xff]  ;;  %v19705_v38 = vld [vmem:[#allocation21_spill] sm:$0xff] }
 0x4b1   : > { %12858 = vmatpush3.bf16.msra.mxu0 %v19698_v57  ;;  %13366 = vmatprep.mubr.msk.bf16.mxu0 %vm8170_vm2, %v17707_v55  ;;  %v17907_v36 = vadd.f32 %v7255_v24, %v19701_v46  ;;  %v19707_v24 = vld [vmem:[#allocation77_spill] sm:$0xff] }
 0x4b2   : > { %9195 = vmatmul.mubr.bf16.gmra.mrb[8].mxu1 %v17403_v54  ;;  %12859 = vmatprep.subr.bf16.mxu0 %v19699_v45  ;;  %v7206_v23 = vpop.f32.mrb[160].mxu0  ;;  %v7843_v57 = vadd.f32 %v7834_v43, %v19701_v46  ;;  %v19712_v46 = vld [vmem:[#allocation85_spill] sm:$0xff] }
 0x4b3   : > { %9202 = vmatprep.mubr.bf16.mxu1 %v17413_v49  ;;  %v7247_v53 = vmax.f32 %v17816_v51, %v7206_v23  ;;  %v7785_v4 = vpop.f32.mrb[160].mxu1  ;;  %v7208_v50 = vpop.f32.mrb[161].mxu0  ;;  %19702 = vst [vmem:[#allocation46_spill] sm:$0xff] %v17907_v36  ;;  %v19704_v49 = vmax.f32 %v17542_v41, %v19703_v22  ;;  %v19706_v23 = vld [vmem:[#allocation50_spill] sm:$0xff] }
 0x4b4   : > { %v7826_v16 = vmax.f32 %v17819_v28, %v7785_v4  ;;  %v7787_v31 = vpop.f32.mrb[161].mxu1  ;;  %v7209_v54 = vpop.f32.mrb[162].mxu0  ;;  %v17917_v28 = vld [vmem:[%s19002_s3 + $0x4] ss:$12 sps:$4 sm:$0xff]   ;;  %v19708_v4 = vmax.f32 %v19706_v23, %v19707_v24 }
 0x4b5   : > { %12860 = vmatpush3.bf16.msra.mxu0 %v19700_v34  ;;  %v7256_v26 = vmax.f32 %v19704_v49, %v7247_v53  ;;  %v7248_v17 = vmax.f32 %v17828_v3, %v7209_v54  ;;  %v7788_v55 = vpop.f32.mrb[162].mxu1  ;;  %v7211_v51 = vpop.f32.mrb[163].mxu0  ;;  %v17927_v3 = vld [vmem:[%s19002_s3 + $0x8] ss:$12 sps:$4 sm:$0xff]   ;;  %v19710_v54 = vmax.f32 %v17565_v44, %v17685_v21 }
 0x4b6   : > { %12861 = vmatprep.subr.bf16.mxu0 %v19705_v38  ;;  %v7835_v50 = vmax.f32 %v19708_v4, %v7826_v16  ;;  %v7827_v41 = vmax.f32 %v17830_v29, %v7788_v55  ;;  %v7790_v53 = vpop.f32.mrb[163].mxu1  ;;  %v19709_v31 = vld [vmem:[#allocation15_spill] sm:$0xff]  ;;  %v19210_v51 = vmax.f32 %v17907_v36, 0.0  ;;  %v19715_v23 = vld [vmem:[#allocation16_spill] sm:$0xff] }
 0x4b7   : > { %v7265_v34 = vadd.f32 %v7256_v26, %v19709_v31  ;;  %v7257_v22 = vmax.f32 %v19710_v54, %v7248_v17  ;;  %v19711_v16 = vld [vmem:[#allocation75_spill] sm:$0xff]  ;;  %v19716_v44 = vld [vmem:[#allocation8_spill] sm:$0xff] }
 0x4b8   : > { %13367 = vmatmul.mubr.msk.bf16.gmra.mrb[12].mxu0 %vm8170_vm2, %v17739_v18  ;;  %v7844_v43 = vadd.f32 %v7835_v50, %v19709_v31  ;;  %v19713_v29 = vmax.f32 %v19711_v16, %v19712_v46  ;;  %v19714_v55 = vld [vmem:[#allocation67_spill] sm:$0xff]  ;;  %v7852_v18 = vmax.f32 %v7843_v57, 0.0  ;;  %v19717_v54 = vld [vmem:[#allocation52_spill] sm:$0xff] }
 0x4b9   : > { %12862 = vmatpush3.bf16.msra.mxu0 %v19714_v55  ;;  %v7274_v26 = vmax.f32 %v7265_v34, 0.0  ;;  %v7266_v24 = vadd.f32 %v7257_v22, %v19715_v23  ;;  %9667 = vmatprep.mubr.bf16.mxu0 %v17917_v28  ;;  %v17951_v53 = vld [vmem:[%s19002_s3] ss:$12 sps:$4 sm:$0xff]  }
 0x4ba   : > { %v7836_v49 = vmax.f32 %v19713_v29, %v7827_v41  ;;  %9203 = vmatmul.mubr.bf16.gmra.mrb[12].mxu1 %v17453_v60  ;;  %12863 = vmatprep.subr.bf16.mxu0 %v19716_v44  ;;  %v7853_v21 = vmax.f32 %v7844_v43, 0.0  ;;  %v7214_v17 = vpop.f32.mrb[164].mxu0  ;;  %v19719_v16 = vld [vmem:[#allocation87_spill] sm:$0xff] }
 0x4bb   : > { %13384 = vmatprep.mubr.msk.bf16.mxu1 %vm8170_vm2, %v17927_v3  ;;  %v7275_v4 = vmax.f32 %v7266_v24, 0.0  ;;  %v7249_v60 = vmax.f32 %v17832_v61, %v7214_v17  ;;  %v7793_v50 = vpop.f32.mrb[164].mxu1  ;;  %v7216_v41 = vpop.f32.mrb[165].mxu0  ;;  %v17955_v31 = vpack.c.bf16 %v7274_v26, %v19210_v51  ;;  %v17962_v61 = vld [vmem:[%s19002_s3 + $0x20] ss:$12 sps:$4 sm:$0xff]   ;;  %v19720_v46 = vmax.f32 %v17572_v59, %v19719_v16  ;;  %v19721_v17 = vld [vmem:[#allocation41_spill] sm:$0xff] }
 0x4bc   : > { %v7828_v57 = vmax.f32 %v17837_v12, %v7793_v50  ;;  %v7795_v34 = vpop.f32.mrb[165].mxu1  ;;  %v7217_v22 = vpop.f32.mrb[166].mxu0  ;;  %v17964_v43 = vpack.c.bf16 %v7853_v21, %v7852_v18  ;;  %v7845_v41 = vadd.f32 %v7836_v49, %v19715_v23  ;;  %v17981_v59 = vld [vmem:[%s19002_s3 + $0x1c] ss:$12 sps:$4 sm:$0xff]   ;;  %v17991_v49 = vld [vmem:[%s19002_s3 + $0x38] ss:$12 sps:$4 sm:$0xff]  }
 0x4bd   : > { %12864 = vmatpush3.bf16.msra.mxu0 %v19717_v54  ;;  %v7258_v29 = vmax.f32 %v19720_v46, %v7249_v60  ;;  %v7250_v55 = vmax.f32 %v17847_v33, %v7217_v22  ;;  %v7796_v24 = vpop.f32.mrb[166].mxu1  ;;  %v7219_v12 = vpop.f32.mrb[167].mxu0  ;;  %v17971_v50 = vpack.c.bf16 %v7275_v4, %v7274_v26  ;;  %v19723_v34 = vld [vmem:[#allocation83_spill] sm:$0xff]  ;;  %v19724_v54 = vld [vmem:[#allocation42_spill] sm:$0xff]  ;;  %v19727_v26 = vmax.f32 %v17583_v11, %v17734_v7 }
 0x4be   : > { %19718 = vst [vmem:[#allocation64_spill] sm:$0xff] %v17964_v43  ;;  %13400 = vmatprep.subr.bf16.mxu0 %v19721_v17  ;;  %v19725_v51 = vmax.f32 %v19723_v34, %v19724_v54  ;;  %v7829_v18 = vmax.f32 %v17849_v30, %v7796_v24  ;;  %v7798_v21 = vpop.f32.mrb[167].mxu1  ;;  %v19726_v33 = vld [vmem:[#allocation18_spill] sm:$0xff]  ;;  %v7854_v24 = vmax.f32 %v7845_v41, 0.0  ;;  %v19734_v34 = vld [vmem:[#allocation9_spill] sm:$0xff] }
 0x4bf   : > { %19722 = vst [vmem:[#allocation20_spill] sm:$0xff] %v17971_v50  ;;  %v7267_v60 = vadd.f32 %v7258_v29, %v19726_v33  ;;  %v7259_v22 = vmax.f32 %v19727_v26, %v7250_v55  ;;  %v19729_v23 = vld [vmem:[#allocation6_spill] sm:$0xff]  ;;  %v19732_v29 = vld [vmem:[#allocation61_spill] sm:$0xff]  ;;  %v19733_v55 = vld [vmem:[#allocation60_spill] sm:$0xff] }
 0x4c0   : > { %v7837_v36 = vmax.f32 %v19725_v51, %v7828_v57  ;;  %9668 = vmatmul.mubr.bf16.vlgmr.msra.gmra.mrb[16].mxu0 %v17951_v53  ;;  %v19728_v51 = vld [vmem:[#allocation48_spill] sm:$0xff]  ;;  %v19731_v7 = vld [vmem:[#allocation22_spill] sm:$0xff] }
 0x4c1   : > { %v19730_v57 = vmax.f32 %v19728_v51, %v19729_v23  ;;  %13401 = vmatpush3.bf16.msra.mxu0 %v19721_v17  ;;  %v7276_v11 = vmax.f32 %v7267_v60, 0.0  ;;  %v7268_v46 = vadd.f32 %v7259_v22, %v19731_v7  ;;  %9675 = vmatprep.mubr.bf16.mxu0 %v17981_v59  ;;  %v18009_v60 = vld [vmem:[%s19002_s3 + $0x18] ss:$12 sps:$4 sm:$0xff]   ;;  %v19737_v23 = vmax.f32 %v17590_v15, %v17757_v14 }
 0x4c2   : > { %v7846_v30 = vadd.f32 %v7837_v36, %v19726_v33  ;;  %13385 = vmatmul.mubr.msk.bf16.vlgmr.msra.gmra.mrb[16].mxu1 %vm8170_vm2, %v17962_v61  ;;  %13402 = vmatprep.subr.bf16.mxu0 %v19733_v55  ;;  %v7222_v36 = vpop.f32.mrb[168].mxu0  ;;  %19735 = vst [vmem:[#allocation37_spill] sm:$0xff] %v18009_v60  ;;  %v19742_v15 = vld [vmem:[#allocation25_spill] sm:$0xff] }
 0x4c3   : > { %v7838_v16 = vmax.f32 %v19730_v57, %v7829_v18  ;;  %12929 = vmatpush3.bf16.msra.mxu1 %v19732_v29  ;;  %v7277_v54 = vmax.f32 %v7268_v46, 0.0  ;;  %v7251_v18 = vmax.f32 %v17851_v25, %v7222_v36  ;;  %v7801_v21 = vpop.f32.mrb[168].mxu1  ;;  %v7224_v33 = vpop.f32.mrb[169].mxu0  ;;  %13388 = vmatprep.mubr.msk.bf16.mxu1 %vm8170_vm2, %v17991_v49  ;;  %v18013_v41 = vpack.c.bf16 %v7276_v11, %v7275_v4  ;;  %v18020_v25 = vld [vmem:[%s19002_s3 + $0x50] ss:$12 sps:$4 sm:$0xff]  }
 0x4c4   : > { %v7855_v12 = vmax.f32 %v7846_v30, 0.0  ;;  %12930 = vmatprep.subr.bf16.mxu1 %v19734_v34  ;;  %v7830_v26 = vmax.f32 %v17853_v56, %v7801_v21  ;;  %v7803_v22 = vpop.f32.mrb[169].mxu1  ;;  %v7225_v30 = vpop.f32.mrb[170].mxu0  ;;  %v19738_v46 = vld [vmem:[#allocation65_spill] sm:$0xff] }
 0x4c5   : > { %13403 = vmatpush3.bf16.msra.mxu0 %v19733_v55  ;;  %v7260_v57 = vmax.f32 %v19737_v23, %v7251_v18  ;;  %v7252_v4 = vmax.f32 %v17861_v27, %v7225_v30  ;;  %v7804_v56 = vpop.f32.mrb[170].mxu1  ;;  %v19739_v29 = vld [vmem:[#allocation93_spill] sm:$0xff]  ;;  %v7227_v36 = vpop.f32.mrb[171].mxu0  ;;  %v18030_v21 = vpack.c.bf16 %v7277_v54, %v7276_v11  ;;  %v7847_v33 = vadd.f32 %v7838_v16, %v19731_v7  ;;  %v18041_v27 = vld [vmem:[%s19002_s3 + $0x34] ss:$12 sps:$4 sm:$0xff]  }
 0x4c6   : > { %v18022_v51 = vpack.c.bf16 %v7855_v12, %v7854_v24  ;;  %13404 = vmatprep.subr.bf16.mxu0 %v19739_v29  ;;  %v19741_v24 = vmax.f32 %v17592_v63, %v17762_v9  ;;  %v7831_v22 = vmax.f32 %v17865_v47, %v7804_v56  ;;  %v7806_v14 = vpop.f32.mrb[171].mxu1  ;;  %19743 = vst [vmem:[#allocation34_spill] sm:$0xff] %v18041_v27  ;;  %v19744_v18 = vld [vmem:[#allocation17_spill] sm:$0xff]  ;;  %v18051_v63 = vld [vmem:[%s19002_s3 + $0x68] ss:$12 sps:$4 sm:$0xff]   ;;  %v19750_v56 = vld [vmem:[#allocation74_spill] sm:$0xff] }
 0x4c7   : > { %12931 = vmatpush3.bf16.msra.mxu1 %v19738_v46  ;;  %19740 = vst [vmem:[#allocation24_spill] sm:$0xff] %v18030_v21  ;;  %v7269_v30 = vadd.f32 %v7260_v57, %v19744_v18  ;;  %v19745_v11 = vmax.f32 %v17606_v6, %v17767_v2  ;;  %v19746_v47 = vmax.f32 %v17610_v40, %v17772_v19  ;;  %v19747_v2 = vld [vmem:[#allocation26_spill] sm:$0xff]  ;;  %v19748_v23 = vld [vmem:[#allocation57_spill] sm:$0xff]  ;;  %v7856_v46 = vmax.f32 %v7847_v33, 0.0 }
 0x4c8   : > { %19736 = vst [vmem:[#allocation56_spill] sm:$0xff] %v18022_v51  ;;  %v7839_v12 = vmax.f32 %v19741_v24, %v7830_v26  ;;  %12932 = vmatprep.subr.bf16.mxu1 %v19742_v15  ;;  %9676 = vmatmul.mubr.bf16.gmra.mrb[20].mxu0 %v18009_v60  ;;  %v19749_v57 = vld [vmem:[#allocation97_spill] sm:$0xff] }
 0x4c9   : > { %v7261_v16 = vmax.f32 %v19745_v11, %v7252_v4  ;;  %v7840_v7 = vmax.f32 %v19746_v47, %v7831_v22  ;;  %13405 = vmatpush3.bf16.msra.mxu0 %v19739_v29  ;;  %v7278_v6 = vmax.f32 %v7269_v30, 0.0  ;;  %9683 = vmatprep.mubr.bf16.mxu0 %v18041_v27  ;;  %v19751_v40 = vld [vmem:[#allocation13_spill] sm:$0xff] }
 0x4ca   : > { %v7848_v9 = vadd.f32 %v7839_v12, %v19744_v18  ;;  %13389 = vmatmul.mubr.msk.bf16.gmra.mrb[20].mxu1 %vm8170_vm2, %v18020_v25  ;;  %13406 = vmatprep.subr.bf16.mxu0 %v19749_v57  ;;  %v7230_v36 = vpop.f32.mrb[172].mxu0  ;;  %v19752_v19 = vld [vmem:[#allocation81_spill] sm:$0xff] }
 0x4cb   : > { %v7270_v26 = vadd.f32 %v7261_v16, %v19747_v2  ;;  %12933 = vmatpush3.bf16.msra.mxu1 %v19748_v23  ;;  %v6693_v24 = vadd.f32 %v19752_v19, %v19751_v40  ;;  %v7253_v22 = vmax.f32 %v17868_v48, %v7230_v36  ;;  %v7809_v14 = vpop.f32.mrb[172].mxu1  ;;  %v7232_v18 = vpop.f32.mrb[173].mxu0  ;;  %v18071_v30 = vld [vmem:[%s19002_s3 + $0x30] ss:$12 sps:$4 sm:$0xff]   ;;  %13392 = vmatprep.mubr.msk.bf16.mxu1 %vm8170_vm2, %v18051_v63  ;;  %v18082_v48 = vld [vmem:[%s19002_s3 + $0x80] ss:$12 sps:$4 sm:$0xff]  }
 0x4cc   : > { %v7857_v4 = vmax.f32 %v7848_v9, 0.0  ;;  %12934 = vmatprep.subr.bf16.mxu1 %v19750_v56  ;;  %19753 = vst [vmem:[#allocation53_spill] sm:$0xff] %v18071_v30  ;;  %v18075_v33 = vpack.c.bf16 %v7278_v6, %v7277_v54  ;;  %v7832_v11 = vmax.f32 %v17870_v58, %v7809_v14  ;;  %v7811_v16 = vpop.f32.mrb[173].mxu1  ;;  %v7233_v9 = vpop.f32.mrb[174].mxu0  ;;  %v19756_v36 = vld [vmem:[#allocation59_spill] sm:$0xff]  ;;  %v19757_v19 = vld [vmem:[#allocation80_spill] sm:$0xff] }
 0x4cd   : > { %v7279_v12 = vmax.f32 %v7270_v26, 0.0  ;;  %13407 = vmatpush3.bf16.msra.mxu0 %v19749_v57  ;;  %v19755_v26 = vmax.f32 %v17613_v32, %v17788_v52  ;;  %v7254_v54 = vmax.f32 %v17879_v35, %v7233_v9  ;;  %v7812_v58 = vpop.f32.mrb[174].mxu1  ;;  %v7235_v14 = vpop.f32.mrb[175].mxu0  ;;  %v7849_v16 = vadd.f32 %v7840_v7, %v19747_v2  ;;  %v19759_v32 = vld [vmem:[#allocation71_spill] sm:$0xff] }
 0x4ce   : > { %v18084_v47 = vpack.c.bf16 %v7857_v4, %v7856_v46  ;;  %13408 = vmatprep.subr.bf16.mxu0 %v19757_v19  ;;  %v19758_v46 = vmax.f32 %v17620_v37, %v17792_v5  ;;  %v7833_v17 = vmax.f32 %v17883_v20, %v7812_v58  ;;  %v7814_v52 = vpop.f32.mrb[175].mxu1  ;;  %v18103_v35 = vld [vmem:[%s19002_s3 + $0x4c] ss:$12 sps:$4 sm:$0xff]   ;;  %v19763_v7 = vmax.f32 %v17635_v10, %v17796_v0  ;;  %v19771_v58 = vld [vmem:[#allocation92_spill] sm:$0xff] }
 0x4cf   : > { %v7262_v23 = vmax.f32 %v19755_v26, %v7253_v22  ;;  %12935 = vmatpush3.bf16.msra.mxu1 %v19756_v36  ;;  %v18092_v18 = vpack.c.bf16 %v7279_v12, %v7278_v6  ;;  %19760 = vst [vmem:[#allocation31_spill] sm:$0xff] %v18103_v35  ;;  %v18105_v22 = vmax.f32 %v6693_v24, 0.0  ;;  %v19762_v6 = vld [vmem:[#allocation11_spill] sm:$0xff]  ;;  %v18115_v37 = vld [vmem:[%s19002_s3 + $0x98] ss:$12 sps:$4 sm:$0xff]   ;;  %v19764_v20 = vmax.f32 %v17638_v1, %v17801_v62 }
 0x4d0   : > { %19754 = vst [vmem:[#allocation28_spill] sm:$0xff] %v18084_v47  ;;  %v7841_v4 = vmax.f32 %v19758_v46, %v7832_v11  ;;  %12936 = vmatprep.subr.bf16.mxu1 %v19759_v32  ;;  %v7263_v2 = vmax.f32 %v19763_v7, %v7254_v54  ;;  %9684 = vmatmul.mubr.bf16.gmra.mrb[24].mxu0 %v18071_v30  ;;  %v19766_v10 = vld [vmem:[#allocation89_spill] sm:$0xff]  ;;  %v19770_v54 = vld [vmem:[#allocation78_spill] sm:$0xff]  ;;  %v7858_v1 = vmax.f32 %v7849_v16, 0.0 }
 0x4d1   : > { %19761 = vst [vmem:[#allocation36_spill] sm:$0xff] %v18105_v22  ;;  %v7271_v9 = vadd.f32 %v7262_v23, %v19762_v6  ;;  %v18121_v24 = vmax.f32 %v19764_v20, %v7833_v17  ;;  %13409 = vmatpush3.bf16.msra.mxu0 %v19757_v19  ;;  %v19767_v0 = vld [vmem:[#allocation29_spill] sm:$0xff]  ;;  %9691 = vmatprep.mubr.bf16.mxu0 %v18103_v35 }
 0x4d2   : > { %v7850_v5 = vadd.f32 %v7841_v4, %v19762_v6  ;;  %13393 = vmatmul.mubr.msk.bf16.gmra.mrb[24].mxu1 %vm8170_vm2, %v18082_v48  ;;  %v19768_v11 = vmax.f32 %v19767_v0, 0.0  ;;  %v7272_v36 = vadd.f32 %v7263_v2, %v19751_v40  ;;  %13410 = vmatprep.subr.bf16.mxu0 %v19771_v58  ;;  %v12549_v17 = vpop.f32.mrb[176].mxu0  ;;  %v9455_v52 = vpack.c.bf16 %v18105_v22, %v18105_v22  ;;  %v18143_v6 = vld [vmem:[%s19002_s3 + $0x48] ss:$12 sps:$4 sm:$0xff]  }
 0x4d3   : > { %19765 = vst [vmem:[#allocation45_spill] sm:$0xff] %v18121_v24  ;;  %v7280_v23 = vmax.f32 %v7271_v9, 0.0  ;;  %12937 = vmatpush3.bf16.msra.mxu1 %v19770_v54  ;;  %v13266_v46 = vpop.f32.mrb[176].mxu1  ;;  %v12550_v4 = vpop.f32.mrb[177].mxu0  ;;  %13396 = vmatprep.mubr.msk.bf16.mxu1 %vm8170_vm2, %v18115_v37  ;;  %v19774_v54 = vld [vmem:[#allocation94_spill] sm:$0xff] }
 0x4d4   : > { %v18129_v26 = vpack.c.bf16 %v19768_v11, %v19766_v10  ;;  %v7859_v62 = vmax.f32 %v7850_v5, 0.0  ;;  %v18136_v14 = vmax.f32 %v7272_v36, 0.0  ;;  %v12551_v9 = vadd.f32 %v12550_v4, %v12549_v17  ;;  %v8330_v7 = vpop.f32.mrb[177].mxu1  ;;  %v12552_v2 = vpop.f32.mrb[178].mxu0  ;;  %v18153_v5 = vld [vmem:[%s19002_s3 + $0xb0] ss:$12 sps:$4 sm:$0xff]  }
 0x4d5   : > { %v18147_v16 = vpack.c.bf16 %v7280_v23, %v7279_v12  ;;  %13411 = vmatpush3.bf16.msra.mxu0 %v19771_v58  ;;  %v19773_v10 = vld [vmem:[#allocation10_spill] sm:$0xff]  ;;  %v13267_v0 = vpop.f32.mrb[178].mxu1  ;;  %v12553_v11 = vpop.f32.mrb[179].mxu0 }
 0x4d6   : > { %19769 = vst [vmem:[#allocation91_spill] sm:$0xff] %v18129_v26  ;;  %12938 = vmatprep.subr.bf16.mxu1 %v18129_v26  ;;  %v18155_v20 = vpack.c.bf16 %v7859_v62, %v7858_v1  ;;  %13539 = vmatprep.subr.msk.bf16.mxu0 %vm8195_vm1, %v9455_v52  ;;  %v18160_v12 = vpack.c.bf16 %v18136_v14, %v7280_v23  ;;  %v8333_v4 = vpop.f32.mrb[179].mxu1  ;;  %v18168_v1 = vld [vmem:[%s19002_s3 + $0x64] ss:$12 sps:$4 sm:$0xff]   ;;  %v9830_v62 = vsel %vm8195_vm1, %v9455_v52, 0  ;;  %v19775_v23 = vld [vmem:[#allocation35_spill] sm:$0xff] }
 0x4d7   : > { %12939 = vmatpush3.bf16.msra.mxu1 %v19773_v10  ;;  %v18162_v36 = vadd.f32 %v12551_v9, %v8330_v7  ;;  %v12554_v17 = vadd.f32 %v12553_v11, %v12552_v2  ;;  %v19776_v9 = vld [vmem:[#allocation90_spill] sm:$0xff]  ;;  %v19777_v7 = vld [vmem:[#allocation79_spill] sm:$0xff] }
 0x4d8   : > { %19772 = vst [vmem:[#allocation49_spill] sm:$0xff] %v18155_v20  ;;  %12940 = vmatprep.subr.bf16.mxu1 %v19774_v54  ;;  %9692 = vmatmul.mubr.bf16.gmra.mrb[28].mxu0 %v18143_v6  ;;  %v18183_v52 = vld [vmem:[%s19002_s3 + $0x60] ss:$12 sps:$4 sm:$0xff]   ;;  %v19779_v20 = vld [vmem:[#allocation69_spill] sm:$0xff] }
 0x4d9   : > { %v18172_v10 = vadd.f32 %v12554_v17, %v8333_v4  ;;  %13413 = vmatpush3.bf16.msra.mxu0 %v9830_v62  ;;  %9699 = vmatprep.mubr.bf16.mxu0 %v18168_v1 }
 0x4da   : > { %13397 = vmatmul.mubr.msk.bf16.gmra.mrb[28].mxu1 %vm8170_vm2, %v18153_v5  ;;  %13007 = vmatprep.subr.bf16.mxu0 %v19776_v9  ;;  %v12555_v2 = vpop.f32.mrb[180].mxu0  ;;  %v19778_v9 = vld [vmem:[#allocation51_spill] sm:$0xff] }
 0x4db   : > { %12941 = vmatpush3.bf16.msra.mxu1 %v19775_v23  ;;  %v13270_v11 = vpop.f32.mrb[180].mxu1  ;;  %v12556_v21 = vpop.f32.mrb[181].mxu0  ;;  %9864 = vmatprep.mubr.bf16.mxu1 %v17917_v28  ;;  %v18189_v23 = vld [vmem:[%s19002_s3 + $0x7c] ss:$12 sps:$4 sm:$0xff]  }
 0x4dc   : > { %12942 = vmatprep.subr.bf16.mxu1 %v19777_v7  ;;  %v12557_v17 = vadd.f32 %v12556_v21, %v12555_v2  ;;  %v8346_v4 = vpop.f32.mrb[181].mxu1  ;;  %v12558_v62 = vpop.f32.mrb[182].mxu0  ;;  %v19780_v2 = vld [vmem:[#allocation73_spill] sm:$0xff] }
 0x4dd   : > { %v13271_v7 = vpop.f32.mrb[182].mxu1  ;;  %v12559_v50 = vpop.f32.mrb[183].mxu0  ;;  %v19781_v47 = vmax.f32 %v19780_v2, 0.0 }
 0x4de   : > { %v18192_v54 = vadd.f32 %v13266_v46, %v12557_v17  ;;  %v12560_v26 = vadd.f32 %v12559_v50, %v12558_v62  ;;  %v8349_v58 = vpop.f32.mrb[183].mxu1 }
 0x4df   : > { %12943 = vmatpush3.bf16.msra.mxu1 %v19778_v9  ;;  %v10136_v32 = vpack.c.bf16 %v18105_v22, %v19781_v47  ;;  %v18215_v47 = vld [vmem:[%s19002_s3 + $0x94] ss:$12 sps:$4 sm:$0xff]  }
 0x4e0   : > { %13430 = vmatprep.subr.bf16.mxu1 %v19779_v20  ;;  %9700 = vmatmul.mubr.bf16.gmra.mrb[32].mxu0 %v18183_v52  ;;  %v18196_v21 = vadd.f32 %v13267_v0, %v12560_v26  ;;  %v18210_v26 = vld [vmem:[%s19002_s3 + $0x78] ss:$12 sps:$4 sm:$0xff]  }
 0x4e1   : > { %9707 = vmatprep.mubr.bf16.mxu0 %v18189_v23 }
 0x4e2   : > { %9865 = vmatmul.mubr.bf16.vlgmr.msra.gmra.mrb[32].mxu1 %v17951_v53  ;;  %v12561_v46 = vpop.f32.mrb[184].mxu0 }
 0x4e3   : > { %13431 = vmatpush3.bf16.msra.mxu1 %v19779_v20  ;;  %9872 = vmatprep.mubr.bf16.mxu1 %v17981_v59  ;;  %v18205_v50 = vpop.f32.mrb[184].mxu1  ;;  %v12562_v17 = vpop.f32.mrb[185].mxu0 }
 0x4e4   : > { %13432 = vmatprep.subr.bf16.mxu1 %v10136_v32  ;;  %v12563_v0 = vadd.f32 %v12562_v17, %v12561_v46  ;;  %v8362_v62 = vpop.f32.mrb[185].mxu1  ;;  %v12564_v9 = vpop.f32.mrb[186].mxu0 }
 0x4e5   : > { %v18217_v20 = vpop.f32.mrb[186].mxu1  ;;  %v12565_v2 = vpop.f32.mrb[187].mxu0 }
 0x4e6   : > { %v18219_v22 = vadd.f32 %v12563_v0, %v8346_v4  ;;  %v12566_v24 = vadd.f32 %v12565_v2, %v12564_v9  ;;  %v8365_v40 = vpop.f32.mrb[187].mxu1  ;;  %v18235_v0 = vld [vmem:[%s19002_s3 + $0x90] ss:$12 sps:$4 sm:$0xff]  }
 0x4e7   : > { %13433 = vmatpush3.bf16.msra.mxu1 %v10136_v32 }
 0x4e8   : > { %13434 = vmatprep.subr.bf16.mxu1 %v17955_v31  ;;  %9708 = vmatmul.mubr.bf16.gmra.mrb[36].mxu0 %v18210_v26  ;;  %v18223_v46 = vadd.f32 %v12566_v24, %v8349_v58 }
 0x4e9   : > { %9715 = vmatprep.mubr.bf16.mxu0 %v18215_v47 }
 0x4ea   : > { %9873 = vmatmul.mubr.bf16.gmra.mrb[36].mxu1 %v18009_v60  ;;  %v12567_v32 = vpop.f32.mrb[188].mxu0 }
 0x4eb   : > { %13435 = vmatpush3.bf16.msra.mxu1 %v17955_v31  ;;  %9880 = vmatprep.mubr.bf16.mxu1 %v18041_v27  ;;  %v18230_v4 = vpop.f32.mrb[188].mxu1  ;;  %v12568_v17 = vpop.f32.mrb[189].mxu0  ;;  %v18242_v31 = vld [vmem:[%s19002_s3 + $0xac] ss:$12 sps:$4 sm:$0xff]  }
 0x4ec   : > { %13436 = vmatprep.subr.bf16.mxu1 %v18013_v41  ;;  %v12569_v24 = vadd.f32 %v12568_v17, %v12567_v32  ;;  %v18237_v58 = vpop.f32.mrb[189].mxu1  ;;  %v12570_v9 = vpop.f32.mrb[190].mxu0 }
 0x4ed   : > { %v18245_v2 = vpop.f32.mrb[190].mxu1  ;;  %v12571_v27 = vpop.f32.mrb[191].mxu0 }
 0x4ee   : > { %v18247_v19 = vadd.f32 %v13270_v11, %v12569_v24  ;;  %v12572_v51 = vadd.f32 %v12571_v27, %v12570_v9  ;;  %v18250_v56 = vpop.f32.mrb[191].mxu1  ;;  %v18263_v27 = vld [vmem:[%s19002_s3 + $0xa8] ss:$12 sps:$4 sm:$0xff]  }
 0x4ef   : > { %13437 = vmatpush3.bf16.msra.mxu1 %v18013_v41 }
 0x4f0   : > { %13438 = vmatprep.subr.bf16.mxu1 %v18075_v33  ;;  %9716 = vmatmul.mubr.bf16.gmra.mrb[40].mxu0 %v18235_v0  ;;  %v18253_v32 = vadd.f32 %v13271_v7, %v12572_v51  ;;  %v10141_v51 = vpack.c.bf16 %v18136_v14, %v18136_v14 }
 0x4f1   : > { %9723 = vmatprep.mubr.bf16.mxu0 %v18242_v31 }
 0x4f2   : > { %9881 = vmatmul.mubr.bf16.gmra.mrb[40].mxu1 %v18071_v30  ;;  %v12573_v41 = vpop.f32.mrb[192].mxu0 }
 0x4f3   : > { %13439 = vmatpush3.bf16.msra.mxu1 %v18075_v33  ;;  %9888 = vmatprep.mubr.bf16.mxu1 %v18103_v35  ;;  %v12574_v17 = vpop.f32.mrb[193].mxu0 }
 0x4f4   : > { %13440 = vmatprep.subr.bf16.mxu1 %v18147_v16  ;;  %v12575_v7 = vadd.f32 %v12574_v17, %v12573_v41  ;;  %v12576_v9 = vpop.f32.mrb[194].mxu0 }
 0x4f5   : > { %v12628_v11 = vpop.f32.mrb[192].mxu1  ;;  %v12577_v35 = vpop.f32.mrb[195].mxu0 }
 0x4f6   : > { %v12629_v24 = vpop.f32.mrb[193].mxu1  ;;  %v18270_v60 = vadd.f32 %v12575_v7, %v8362_v62  ;;  %v12578_v57 = vadd.f32 %v12577_v35, %v12576_v9 }
 0x4f7   : > { %v18267_v30 = vadd.f32 %v12629_v24, %v12628_v11  ;;  %13441 = vmatpush3.bf16.msra.mxu1 %v18147_v16  ;;  %v12631_v33 = vpop.f32.mrb[194].mxu1  ;;  %v10387_v16 = vsel %vm8195_vm1, %v10141_v51, 0 }
 0x4f8   : > { %13540 = vmatprep.subr.msk.bf16.mxu1 %vm8195_vm1, %v10141_v51  ;;  %v12632_v43 = vpop.f32.mrb[195].mxu1  ;;  %9724 = vmatmul.mubr.bf16.gmra.mrb[44].mxu0 %v18263_v27  ;;  %v8590_v14 = vmax.f32 %v18162_v36, %v18270_v60  ;;  %v18278_v41 = vadd.f32 %v12578_v57, %v8365_v40 }
 0x4f9   : > { %v18273_v15 = vadd.f32 %v12632_v43, %v12631_v33  ;;  %13414 = vmatprep.mubr.msk.bf16.mxu0 %vm8170_vm2, %v17927_v3 }
 0x4fa   : > { %9889 = vmatmul.mubr.bf16.gmra.mrb[44].mxu1 %v18143_v6  ;;  %v12579_v35 = vpop.f32.mrb[196].mxu0 }
 0x4fb   : > { %13443 = vmatpush3.bf16.msra.mxu1 %v10387_v16  ;;  %9896 = vmatprep.mubr.bf16.mxu1 %v18168_v1  ;;  %v12580_v11 = vpop.f32.mrb[197].mxu0 }
 0x4fc   : > { %13086 = vmatprep.subr.bf16.mxu1 %v19733_v55  ;;  %v12581_v57 = vadd.f32 %v12580_v11, %v12579_v35  ;;  %v12582_v17 = vpop.f32.mrb[198].mxu0 }
 0x4fd   : > { %v12634_v62 = vpop.f32.mrb[196].mxu1  ;;  %v12583_v24 = vpop.f32.mrb[199].mxu0 }
 0x4fe   : > { %v12635_v40 = vpop.f32.mrb[197].mxu1  ;;  %v18291_v3 = vadd.f32 %v18205_v50, %v12581_v57  ;;  %v12584_v9 = vadd.f32 %v12583_v24, %v12582_v17  ;;  %v19783_v24 = vld [vmem:[#allocation96_spill] sm:$0xff] }
 0x4ff   : > { %v18288_v7 = vadd.f32 %v12635_v40, %v12634_v62  ;;  %v12637_v51 = vpop.f32.mrb[198].mxu1  ;;  %v19782_v62 = vld [vmem:[#allocation58_spill] sm:$0xff] }
 0x500   : > { %v12638_v33 = vpop.f32.mrb[199].mxu1  ;;  %13415 = vmatmul.mubr.msk.bf16.vlgmr.msra.gmra.mrb[48].mxu0 %vm8170_vm2, %v17962_v61  ;;  %v8592_v55 = vmax.f32 %v18192_v54, %v18291_v3  ;;  %v18300_v35 = vadd.f32 %v18217_v20, %v12584_v9 }
 0x501   : > { %v18293_v16 = vadd.f32 %v12638_v33, %v12637_v51  ;;  %13008 = vmatpush3.bf16.msra.mxu0 %v16831_v39  ;;  %13418 = vmatprep.mubr.msk.bf16.mxu0 %vm8170_vm2, %v17991_v49 }
 0x502   : > { %9897 = vmatmul.mubr.bf16.gmra.mrb[48].mxu1 %v18183_v52  ;;  %13009 = vmatprep.subr.bf16.mxu0 %v19782_v62  ;;  %v12585_v11 = vpop.f32.mrb[200].mxu0 }
 0x503   : > { %9904 = vmatprep.mubr.bf16.mxu1 %v18189_v23  ;;  %v12586_v57 = vpop.f32.mrb[201].mxu0 }
 0x504   : > { %v12587_v40 = vadd.f32 %v12586_v57, %v12585_v11  ;;  %v12588_v17 = vpop.f32.mrb[202].mxu0  ;;  %v19784_v11 = vld [vmem:[#allocation72_spill] sm:$0xff] }
 0x505   : > { %v12640_v61 = vpop.f32.mrb[200].mxu1  ;;  %13010 = vmatpush3.bf16.msra.mxu0 %v16869_v13  ;;  %v12589_v9 = vpop.f32.mrb[203].mxu0 }
 0x506   : > { %v12641_v20 = vpop.f32.mrb[201].mxu1  ;;  %13011 = vmatprep.subr.bf16.mxu0 %v19783_v24  ;;  %v18315_v33 = vadd.f32 %v12587_v40, %v18237_v58  ;;  %v12590_v62 = vadd.f32 %v12589_v9, %v12588_v17  ;;  %v19785_v17 = vld [vmem:[#allocation88_spill] sm:$0xff]  ;;  %v18486_v58 = vld [vmem:[%s19002_s3 + $0x98] ss:$12 sps:$4 sm:$0xff]  }
 0x507   : > { %v18311_v51 = vadd.f32 %v12641_v20, %v12640_v61  ;;  %v12643_v39 = vpop.f32.mrb[202].mxu1 }
 0x508   : > { %v12644_v43 = vpop.f32.mrb[203].mxu1  ;;  %13419 = vmatmul.mubr.msk.bf16.gmra.mrb[52].mxu0 %vm8170_vm2, %v18020_v25  ;;  %v8594_v13 = vmax.f32 %v18219_v22, %v18315_v33  ;;  %v18324_v49 = vadd.f32 %v12590_v62, %v18250_v56 }
 0x509   : > { %v18317_v50 = vadd.f32 %v12644_v43, %v12643_v39  ;;  %13012 = vmatpush3.bf16.msra.mxu0 %v16905_v8  ;;  %13422 = vmatprep.mubr.msk.bf16.mxu0 %vm8170_vm2, %v18051_v63 }
 0x50a   : > { %9905 = vmatmul.mubr.bf16.gmra.mrb[52].mxu1 %v18210_v26  ;;  %13013 = vmatprep.subr.bf16.mxu0 %v19784_v11  ;;  %v12591_v43 = vpop.f32.mrb[204].mxu0  ;;  %v19811_v33 = vmax.f32 %v18223_v46, %v18324_v49 }
 0x50b   : > { %9912 = vmatprep.mubr.bf16.mxu1 %v18215_v47  ;;  %v12592_v61 = vpop.f32.mrb[205].mxu0 }
 0x50c   : > { %v12593_v57 = vadd.f32 %v12592_v61, %v12591_v43  ;;  %v12594_v40 = vpop.f32.mrb[206].mxu0  ;;  %v19786_v43 = vld [vmem:[#allocation44_spill] sm:$0xff] }
 0x50d   : > { %v12646_v25 = vpop.f32.mrb[204].mxu1  ;;  %13014 = vmatpush3.bf16.msra.mxu0 %v16950_v42  ;;  %v12595_v39 = vpop.f32.mrb[207].mxu0 }
 0x50e   : > { %v12647_v56 = vpop.f32.mrb[205].mxu1  ;;  %13015 = vmatprep.subr.bf16.mxu0 %v19785_v17  ;;  %v18337_v24 = vadd.f32 %v18230_v4, %v12593_v57  ;;  %v12596_v9 = vadd.f32 %v12595_v39, %v12594_v40  ;;  %v19787_v39 = vld [vmem:[#allocation95_spill] sm:$0xff] }
 0x50f   : > { %v12648_v20 = vadd.f32 %v12647_v56, %v12646_v25  ;;  %v12649_v8 = vpop.f32.mrb[206].mxu1 }
 0x510   : > { %v12650_v62 = vpop.f32.mrb[207].mxu1  ;;  %13423 = vmatmul.mubr.msk.bf16.gmra.mrb[56].mxu0 %vm8170_vm2, %v18082_v48  ;;  %v18344_v42 = vadd.f32 %v18245_v2, %v12596_v9 }
 0x511   : > { %v12651_v11 = vadd.f32 %v12650_v62, %v12649_v8  ;;  %13016 = vmatpush3.bf16.msra.mxu0 %v19699_v45  ;;  %13426 = vmatprep.mubr.msk.bf16.mxu0 %vm8170_vm2, %v18115_v37 }
 0x512   : > { %9913 = vmatmul.mubr.bf16.gmra.mrb[56].mxu1 %v18235_v0  ;;  %13017 = vmatprep.subr.bf16.mxu0 %v19786_v43 }
 0x513   : > { %9920 = vmatprep.mubr.bf16.mxu1 %v18242_v31  ;;  %v13296_v25 = vpop.f32.mrb[208].mxu0 }
 0x514   : > { %v18355_v61 = vadd.f32 %v13296_v25, %v18288_v7  ;;  %v8527_v2 = vpop.f32.mrb[209].mxu0 }
 0x515   : > { %v12652_v48 = vpop.f32.mrb[208].mxu1  ;;  %v18358_v56 = vadd.f32 %v18267_v30, %v8527_v2  ;;  %13018 = vmatpush3.bf16.msra.mxu0 %v19705_v38  ;;  %v13297_v45 = vpop.f32.mrb[210].mxu0  ;;  %v18371_v30 = vld [vmem:[%s19002_s3 + $0x8] ss:$12 sps:$4 sm:$0xff]   ;;  %v19788_v38 = vld [vmem:[#allocation14_spill] sm:$0xff] }
 0x516   : > { %v12653_v57 = vpop.f32.mrb[209].mxu1  ;;  %v18362_v17 = vadd.f32 %v13297_v45, %v18293_v16  ;;  %13019 = vmatprep.subr.bf16.mxu0 %v19787_v39  ;;  %v8530_v37 = vpop.f32.mrb[211].mxu0 }
 0x517   : > { %v12654_v40 = vadd.f32 %v12653_v57, %v12652_v48  ;;  %v12655_v8 = vpop.f32.mrb[210].mxu1  ;;  %v18366_v7 = vadd.f32 %v18273_v15, %v8530_v37  ;;  %v18379_v16 = vpop.permute.xlu1 %7880  ;;  %v19789_v57 = vld [vmem:[#allocation70_spill] sm:$0xff] }
 0x518   : > { %v12656_v9 = vpop.f32.mrb[211].mxu1  ;;  %13427 = vmatmul.mubr.msk.bf16.gmra.mrb[60].mxu0 %vm8170_vm2, %v18153_v5 }
 0x519   : > { %v12657_v62 = vadd.f32 %v12656_v9, %v12655_v8  ;;  %13020 = vmatpush3.bf16.msra.mxu0 %v19716_v44  ;;  %10421 = vmatprep.mubr.bf16.mxu0 %v17917_v28  ;;  %v18392_v28 = vld [vmem:[%s19002_s3 + $0x20] ss:$12 sps:$4 sm:$0xff]  }
 0x51a   : > { %9921 = vmatmul.mubr.bf16.gmra.mrb[60].mxu1 %v18263_v27  ;;  %13021 = vmatprep.subr.bf16.mxu0 %v19788_v38  ;;  %v18404_v38 = vld [vmem:[%s19002_s3 + $0x38] ss:$12 sps:$4 sm:$0xff]  }
 0x51b   : > { %v13300_v15 = vpop.f32.mrb[212].mxu0  ;;  %13444 = vmatprep.mubr.msk.bf16.mxu1 %vm8170_vm2, %v18371_v30 }
 0x51c   : > { %v18383_v25 = vadd.f32 %v13300_v15, %v12648_v20  ;;  %v8543_v48 = vpop.f32.mrb[213].mxu0 }
 0x51d   : > { %v12658_v43 = vpop.f32.mrb[212].mxu1  ;;  %v18386_v5 = vadd.f32 %v18311_v51, %v8543_v48  ;;  %13022 = vmatpush3.bf16.msra.mxu0 %v19789_v57  ;;  %v13301_v44 = vpop.f32.mrb[214].mxu0  ;;  %v18423_v57 = vld [vmem:[%s19002_s3 + $0x50] ss:$12 sps:$4 sm:$0xff]  }
 0x51e   : > { %v12659_v2 = vpop.f32.mrb[213].mxu1  ;;  %v18394_v39 = vadd.f32 %v13301_v44, %v12651_v11  ;;  %13460 = vmatprep.subr.bf16.mxu0 %v18092_v18  ;;  %v8546_v20 = vpop.f32.mrb[215].mxu0 }
 0x51f   : > { %v12660_v45 = vadd.f32 %v12659_v2, %v12658_v43  ;;  %v12661_v8 = vpop.f32.mrb[214].mxu1  ;;  %v18398_v9 = vadd.f32 %v18317_v50, %v8546_v20  ;;  %v18409_v11 = vpop.permute.xlu0 %7885 }
 0x520   : > { %v12662_v37 = vpop.f32.mrb[215].mxu1  ;;  %10422 = vmatmul.mubr.bf16.vlgmr.msra.gmra.mrb[64].mxu0 %v17951_v53  ;;  %v18413_v50 = vpop.permute.xlu1 %7890 }
 0x521   : > { %v12663_v51 = vadd.f32 %v12662_v37, %v12661_v8  ;;  %13461 = vmatpush3.bf16.msra.mxu0 %v18092_v18  ;;  %10429 = vmatprep.mubr.bf16.mxu0 %v17981_v59  ;;  %v19790_v8 = vld [vmem:[#allocation25_spill] sm:$0xff]  ;;  %v19791_v37 = vld [vmem:[#allocation64_spill] sm:$0xff] }
 0x522   : > { %13445 = vmatmul.mubr.msk.bf16.vlgmr.msra.gmra.mrb[64].mxu1 %vm8170_vm2, %v18392_v28  ;;  %13462 = vmatprep.subr.bf16.mxu0 %v18160_v12 }
 0x523   : > { %13087 = vmatpush3.bf16.msra.mxu1 %v19734_v34  ;;  %v13304_v53 = vpop.f32.mrb[216].mxu0  ;;  %13448 = vmatprep.mubr.msk.bf16.mxu1 %vm8170_vm2, %v18404_v38  ;;  %v18447_v54 = vpop.permute.xlu0 %7895 }
 0x524   : > { %13088 = vmatprep.subr.bf16.mxu1 %v19739_v29  ;;  %v8568_v43 = vadd.f32 %v13304_v53, %v12660_v45  ;;  %v8559_v48 = vpop.f32.mrb[217].mxu0  ;;  %v18455_v60 = vpop.permute.xlu1 %7900 }
 0x525   : > { %v12664_v15 = vpop.f32.mrb[216].mxu1  ;;  %v8560_v2 = vadd.f32 %v12654_v40, %v8559_v48  ;;  %13463 = vmatpush3.bf16.msra.mxu0 %v18160_v12  ;;  %v13305_v34 = vpop.f32.mrb[218].mxu0  ;;  %v19792_v48 = vld [vmem:[#allocation97_spill] sm:$0xff] }
 0x526   : > { %v12665_v18 = vpop.f32.mrb[217].mxu1  ;;  %v8600_v29 = vmax.f32 %v18355_v61, %v8568_v43  ;;  %v8571_v20 = vadd.f32 %v13305_v34, %v12663_v51  ;;  %13464 = vmatprep.subr.bf16.mxu0 %v19791_v37  ;;  %v8562_v53 = vpop.f32.mrb[219].mxu0  ;;  %v19793_v43 = vld [vmem:[#allocation37_spill] sm:$0xff]  ;;  %v18438_v51 = vld [vmem:[%s19002_s3 + $0x68] ss:$12 sps:$4 sm:$0xff]  }
 0x527   : > { %v12666_v44 = vadd.f32 %v12665_v18, %v12664_v15  ;;  %13089 = vmatpush3.bf16.msra.mxu1 %v19790_v8  ;;  %v12667_v45 = vpop.f32.mrb[218].mxu1  ;;  %v8598_v40 = vmax.f32 %v18358_v56, %v8560_v2  ;;  %v8563_v4 = vadd.f32 %v12657_v62, %v8562_v53  ;;  %v19795_v18 = vld [vmem:[#allocation74_spill] sm:$0xff]  ;;  %v19796_v2 = vld [vmem:[#allocation56_spill] sm:$0xff] }
 0x528   : > { %13090 = vmatprep.subr.bf16.mxu1 %v19792_v48  ;;  %v12668_v12 = vpop.f32.mrb[219].mxu1  ;;  %v8608_v63 = vmax.f32 %v8592_v55, %v8600_v29  ;;  %v8601_v61 = vmax.f32 %v18362_v17, %v8571_v20  ;;  %10430 = vmatmul.mubr.bf16.gmra.mrb[68].mxu0 %v19793_v43  ;;  %v19794_v55 = vmax.f32 %v18196_v21, %v18300_v35  ;;  %v19800_v29 = vld [vmem:[#allocation13_spill] sm:$0xff] }
 0x529   : > { %v12669_v15 = vadd.f32 %v12668_v12, %v12667_v45  ;;  %v8606_v56 = vmax.f32 %v8590_v14, %v8598_v40  ;;  %v8599_v62 = vmax.f32 %v18366_v7, %v8563_v4  ;;  %13465 = vmatpush3.bf16.msra.mxu0 %v19791_v37  ;;  %v19797_v14 = vmax.f32 %v18172_v10, %v18278_v41  ;;  %v19798_v7 = vld [vmem:[#allocation80_spill] sm:$0xff]  ;;  %v19801_v21 = vld [vmem:[#allocation45_spill] sm:$0xff]  ;;  %v18473_v40 = vld [vmem:[%s19002_s3 + $0x80] ss:$12 sps:$4 sm:$0xff]  }
 0x52a   : > { %13449 = vmatmul.mubr.msk.bf16.gmra.mrb[68].mxu1 %vm8170_vm2, %v18423_v57  ;;  %v8616_v3 = vadd.f32 %v8608_v63, %v18413_v50  ;;  %v8609_v17 = vmax.f32 %v19794_v55, %v8601_v61  ;;  %13466 = vmatprep.subr.bf16.mxu0 %v19796_v2  ;;  %v19799_v63 = vld [vmem:[#allocation34_spill] sm:$0xff]  ;;  %v7851_v35 = vadd.f32 %v19801_v21, %v19800_v29  ;;  %v19803_v55 = vld [vmem:[#allocation28_spill] sm:$0xff] }
 0x52b   : > { %13091 = vmatpush3.bf16.msra.mxu1 %v19795_v18  ;;  %v8614_v36 = vadd.f32 %v8606_v56, %v18379_v16  ;;  %v8607_v4 = vmax.f32 %v19797_v14, %v8599_v62  ;;  %v13308_v34 = vpop.f32.mrb[220].mxu0  ;;  %10437 = vmatprep.mubr.bf16.mxu0 %v19799_v63  ;;  %v19802_v56 = vld [vmem:[#allocation71_spill] sm:$0xff]  ;;  %v19804_v18 = vld [vmem:[#allocation36_spill] sm:$0xff]  ;;  %v19805_v14 = vld [vmem:[#allocation46_spill] sm:$0xff] }
 0x52c   : > { %13092 = vmatprep.subr.bf16.mxu1 %v19798_v7  ;;  %v8617_v8 = vadd.f32 %v8609_v17, %v18447_v54  ;;  %v8575_v20 = vpop.f32.mrb[221].mxu0  ;;  %13452 = vmatprep.mubr.msk.bf16.mxu1 %vm8170_vm2, %v18438_v51  ;;  %v8624_v48 = vmax.f32 %v8616_v3, 0.0  ;;  %v19807_v21 = vld [vmem:[#allocation92_spill] sm:$0xff] }
 0x52d   : > { %v12670_v45 = vpop.f32.mrb[220].mxu1  ;;  %v8615_v37 = vadd.f32 %v8607_v4, %v18409_v11  ;;  %v8576_v10 = vadd.f32 %v12666_v44, %v8575_v20  ;;  %13467 = vmatpush3.bf16.msra.mxu0 %v19796_v2  ;;  %v13309_v41 = vpop.f32.mrb[222].mxu0  ;;  %v19806_v44 = vmax.f32 %v19805_v14, 0.0  ;;  %v8622_v2 = vmax.f32 %v8614_v36, 0.0 }
 0x52e   : > { %v12671_v53 = vpop.f32.mrb[221].mxu1  ;;  %v8625_v12 = vmax.f32 %v8617_v8, 0.0  ;;  %13468 = vmatprep.subr.bf16.mxu0 %v19803_v55  ;;  %v8578_v17 = vpop.f32.mrb[223].mxu0  ;;  %v7860_v8 = vmax.f32 %v7851_v35, 0.0 }
 0x52f   : > { %v12672_v61 = vadd.f32 %v12671_v53, %v12670_v45  ;;  %13093 = vmatpush3.bf16.msra.mxu1 %v19802_v56  ;;  %v12673_v62 = vpop.f32.mrb[222].mxu1  ;;  %v10200_v4 = vpack.c.bf16 %v19806_v44, %v19804_v18  ;;  %v8623_v7 = vmax.f32 %v8615_v37, 0.0  ;;  %v8602_v29 = vmax.f32 %v18386_v5, %v8576_v10  ;;  %v19808_v56 = vld [vmem:[#allocation53_spill] sm:$0xff]  ;;  %v18490_v36 = vpop.permute.xlu0 %7905  ;;  %v19809_v10 = vld [vmem:[#allocation91_spill] sm:$0xff] }
 0x530   : > { %13094 = vmatprep.subr.bf16.mxu1 %v19807_v21  ;;  %v12674_v20 = vpop.f32.mrb[223].mxu1  ;;  %v8579_v3 = vadd.f32 %v12669_v15, %v8578_v17  ;;  %10438 = vmatmul.mubr.bf16.gmra.mrb[72].mxu0 %v19808_v56  ;;  %v18488_v14 = vpack.c.bf16 %v8625_v12, %v8624_v48  ;;  %v19810_v48 = vld [vmem:[#allocation49_spill] sm:$0xff]  ;;  %v18504_v12 = vpop.permute.xlu1 %7910 }
 0x531   : > { %v8584_v45 = vadd.f32 %v13308_v34, %v12672_v61  ;;  %v12675_v53 = vadd.f32 %v12674_v20, %v12673_v62  ;;  %v8610_v5 = vmax.f32 %v8594_v13, %v8602_v29  ;;  %13469 = vmatpush3.bf16.msra.mxu0 %v19803_v55  ;;  %v18499_v34 = vpack.c.bf16 %v8623_v7, %v8622_v2  ;;  %v19812_v61 = vld [vmem:[#allocation31_spill] sm:$0xff]  ;;  %v18522_v2 = vld [vmem:[%s19002_s3 + $0xb0] ss:$12 sps:$4 sm:$0xff]   ;;  %v19815_v7 = vld [vmem:[#allocation94_spill] sm:$0xff] }
 0x532   : > { %v8603_v15 = vmax.f32 %v18398_v9, %v8579_v3  ;;  %13453 = vmatmul.mubr.msk.bf16.gmra.mrb[72].mxu1 %vm8170_vm2, %v18473_v40  ;;  %13470 = vmatprep.subr.bf16.mxu0 %v19810_v48  ;;  %v10209_v62 = vpack.c.bf16 %v7860_v8, %v7860_v8 }
 0x533   : > { %v8604_v35 = vmax.f32 %v18383_v25, %v8584_v45  ;;  %v8587_v37 = vadd.f32 %v13309_v41, %v12675_v53  ;;  %13095 = vmatpush3.bf16.msra.mxu1 %v19809_v10  ;;  %v8618_v22 = vadd.f32 %v8610_v5, %v18455_v60  ;;  %v12707_v9 = vpop.f32.mrb[224].mxu0  ;;  %10445 = vmatprep.mubr.bf16.mxu0 %v19812_v61  ;;  %v18530_v20 = vpop.permute.xlu0 %7915  ;;  %v19816_v53 = vld [vmem:[#allocation20_spill] sm:$0xff] }
 0x534   : > { %v8611_v13 = vmax.f32 %v19811_v33, %v8603_v15  ;;  %13096 = vmatprep.subr.bf16.mxu1 %v10200_v4  ;;  %v19813_v25 = vmax.f32 %v18247_v19, %v18337_v24  ;;  %v12708_v18 = vpop.f32.mrb[225].mxu0  ;;  %13456 = vmatprep.mubr.msk.bf16.mxu1 %vm8170_vm2, %v18486_v58  ;;  %v19814_v24 = vmax.f32 %v18253_v32, %v18344_v42  ;;  %v10584_v32 = vsel %vm8195_vm1, %v10209_v62, 0  ;;  %v19818_v33 = vld [vmem:[#allocation24_spill] sm:$0xff] }
 0x535   : > { %v8605_v55 = vmax.f32 %v18394_v39, %v8587_v37  ;;  %v13326_v17 = vpop.f32.mrb[224].mxu1  ;;  %v12709_v46 = vadd.f32 %v12708_v18, %v12707_v9  ;;  %13471 = vmatpush3.bf16.msra.mxu0 %v19810_v48  ;;  %v12710_v4 = vpop.f32.mrb[226].mxu0  ;;  %v8626_v3 = vmax.f32 %v8618_v22, 0.0  ;;  %v19817_v22 = vld [vmem:[#allocation79_spill] sm:$0xff]  ;;  %v14119_v9 = vld [vmem:[%s19002_s3 + $0x4] ss:$12 sps:$4 sm:$0xff]  }
 0x536   : > { %v8612_v41 = vmax.f32 %v19813_v25, %v8604_v35  ;;  %v8619_v44 = vadd.f32 %v8611_v13, %v18490_v36  ;;  %v9048_v49 = vpop.f32.mrb[225].mxu1  ;;  %13541 = vmatprep.subr.msk.bf16.mxu0 %vm8195_vm1, %v10209_v62  ;;  %v12711_v21 = vpop.f32.mrb[227].mxu0 }
 0x537   : > { %v8613_v39 = vmax.f32 %v19814_v24, %v8605_v55  ;;  %13097 = vmatpush3.bf16.msra.mxu1 %v19815_v7  ;;  %v13327_v29 = vpop.f32.mrb[226].mxu1  ;;  %v18532_v45 = vadd.f32 %v12709_v46, %v9048_v49  ;;  %v12712_v5 = vadd.f32 %v12711_v21, %v12710_v4  ;;  %v19819_v46 = vld [vmem:[#allocation41_spill] sm:$0xff]  ;;  %v14120_v21 = vld [vmem:[%s19002_s3] ss:$12 sps:$4 sm:$0xff]  }
 0x538   : > { %v8620_v19 = vadd.f32 %v8612_v41, %v18504_v12  ;;  %v8627_v8 = vmax.f32 %v8619_v44, 0.0  ;;  %13098 = vmatprep.subr.bf16.mxu1 %v19816_v53  ;;  %v9051_v15 = vpop.f32.mrb[227].mxu1  ;;  %10446 = vmatmul.mubr.bf16.gmra.mrb[76].mxu0 %v18143_v6 }
 0x539   : > { %v8621_v35 = vadd.f32 %v8613_v39, %v18530_v20  ;;  %v18538_v42 = vadd.f32 %v12712_v5, %v9051_v15  ;;  %13473 = vmatpush3.bf16.msra.mxu0 %v10584_v32  ;;  %10453 = vmatprep.mubr.bf16.mxu0 %v18168_v1 }
 0x53a   : > { %13457 = vmatmul.mubr.msk.bf16.gmra.mrb[76].mxu1 %vm8170_vm2, %v18522_v2  ;;  %v18542_v37 = vpack.c.bf16 %v8627_v8, %v8626_v3  ;;  %v8628_v10 = vmax.f32 %v8620_v19, 0.0 }
 0x53b   : > { %v8629_v48 = vmax.f32 %v8621_v35, 0.0  ;;  %13099 = vmatpush3.bf16.msra.mxu1 %v19817_v22  ;;  %v12713_v13 = vpop.f32.mrb[228].mxu0  ;;  %10618 = vmatprep.mubr.bf16.mxu1 %v14119_v9 }
 0x53c   : > { %13100 = vmatprep.subr.bf16.mxu1 %v19818_v33  ;;  %v12714_v25 = vpop.f32.mrb[229].mxu0 }
 0x53d   : > { %v13330_v62 = vpop.f32.mrb[228].mxu1  ;;  %v18550_v41 = vpack.c.bf16 %v8629_v48, %v8628_v10  ;;  %v12715_v55 = vadd.f32 %v12714_v25, %v12713_v13  ;;  %v12716_v44 = vpop.f32.mrb[230].mxu0 }
 0x53e   : > { %v9064_v18 = vpop.f32.mrb[229].mxu1  ;;  %v12717_v4 = vpop.f32.mrb[231].mxu0 }
 0x53f   : > { %13101 = vmatpush3.bf16.msra.mxu1 %v19819_v46  ;;  %v13331_v49 = vpop.f32.mrb[230].mxu1  ;;  %v18553_v19 = vadd.f32 %v13326_v17, %v12715_v55  ;;  %v12718_v24 = vadd.f32 %v12717_v4, %v12716_v44 }
 0x540   : > { %v9067_v39 = vpop.f32.mrb[231].mxu1  ;;  %10454 = vmatmul.mubr.bf16.gmra.mrb[80].mxu0 %v18183_v52 }
 0x541   : > { %v18556_v7 = vadd.f32 %v13327_v29, %v12718_v24  ;;  %10461 = vmatprep.mubr.bf16.mxu0 %v18189_v23 }
 0x542   : > { %10619 = vmatmul.mubr.bf16.vlgmr.msra.gmra.mrb[80].mxu1 %v14120_v21 }
 0x543   : > { %10626 = vmatprep.mubr.bf16.mxu1 %v17981_v59  ;;  %v12719_v3 = vpop.f32.mrb[232].mxu0 }
 0x544   : > { %v12720_v53 = vpop.f32.mrb[233].mxu0 }
 0x545   : > { %v13334_v8 = vpop.f32.mrb[232].mxu1  ;;  %v12721_v17 = vadd.f32 %v12720_v53, %v12719_v3  ;;  %v12722_v15 = vpop.f32.mrb[234].mxu0 }
 0x546   : > { %v9080_v5 = vpop.f32.mrb[233].mxu1  ;;  %v12723_v32 = vpop.f32.mrb[235].mxu0 }
 0x547   : > { %v13335_v35 = vpop.f32.mrb[234].mxu1  ;;  %v18563_v10 = vadd.f32 %v12721_v17, %v9064_v18  ;;  %v12724_v29 = vadd.f32 %v12723_v32, %v12722_v15 }
 0x548   : > { %v9083_v48 = vpop.f32.mrb[235].mxu1  ;;  %10462 = vmatmul.mubr.bf16.gmra.mrb[84].mxu0 %v18210_v26 }
 0x549   : > { %v18566_v22 = vadd.f32 %v12724_v29, %v9067_v39  ;;  %10469 = vmatprep.mubr.bf16.mxu0 %v18215_v47 }
 0x54a   : > { %10627 = vmatmul.mubr.bf16.gmra.mrb[84].mxu1 %v19793_v43 }
 0x54b   : > { %10634 = vmatprep.mubr.bf16.mxu1 %v19799_v63  ;;  %v12725_v59 = vpop.f32.mrb[236].mxu0 }
 0x54c   : > { %v12726_v13 = vpop.f32.mrb[237].mxu0 }
 0x54d   : > { %v18571_v33 = vpop.f32.mrb[236].mxu1  ;;  %v12727_v9 = vadd.f32 %v12726_v13, %v12725_v59  ;;  %v12728_v55 = vpop.f32.mrb[238].mxu0 }
 0x54e   : > { %v9096_v25 = vpop.f32.mrb[237].mxu1  ;;  %v12729_v44 = vpop.f32.mrb[239].mxu0 }
 0x54f   : > { %v18573_v18 = vpop.f32.mrb[238].mxu1  ;;  %v18575_v46 = vadd.f32 %v13330_v62, %v12727_v9  ;;  %v12730_v4 = vadd.f32 %v12729_v44, %v12728_v55 }
 0x550   : > { %v9099_v24 = vpop.f32.mrb[239].mxu1  ;;  %10470 = vmatmul.mubr.bf16.gmra.mrb[88].mxu0 %v18235_v0 }
 0x551   : > { %v18578_v43 = vadd.f32 %v13331_v49, %v12730_v4  ;;  %10477 = vmatprep.mubr.bf16.mxu0 %v18242_v31 }
 0x552   : > { %10635 = vmatmul.mubr.bf16.gmra.mrb[88].mxu1 %v19808_v56 }
 0x553   : > { %10642 = vmatprep.mubr.bf16.mxu1 %v19812_v61  ;;  %v12731_v63 = vpop.f32.mrb[240].mxu0 }
 0x554   : > { %v12732_v21 = vpop.f32.mrb[241].mxu0 }
 0x555   : > { %v12786_v39 = vpop.f32.mrb[240].mxu1  ;;  %v12733_v3 = vadd.f32 %v12732_v21, %v12731_v63  ;;  %v12734_v17 = vpop.f32.mrb[242].mxu0 }
 0x556   : > { %v12787_v53 = vpop.f32.mrb[241].mxu1  ;;  %v12735_v32 = vpop.f32.mrb[243].mxu0 }
 0x557   : > { %v18583_v62 = vadd.f32 %v12787_v53, %v12786_v39  ;;  %v12789_v15 = vpop.f32.mrb[242].mxu1  ;;  %v18585_v29 = vadd.f32 %v12733_v3, %v9080_v5  ;;  %v12736_v49 = vadd.f32 %v12735_v32, %v12734_v17 }
 0x558   : > { %v12790_v59 = vpop.f32.mrb[243].mxu1  ;;  %10478 = vmatmul.mubr.bf16.gmra.mrb[92].mxu0 %v18263_v27 }
 0x559   : > { %v18587_v13 = vadd.f32 %v12790_v59, %v12789_v15  ;;  %v9308_v56 = vmax.f32 %v18532_v45, %v18585_v29  ;;  %v18592_v61 = vadd.f32 %v12736_v49, %v9083_v48  ;;  %13474 = vmatprep.mubr.msk.bf16.mxu0 %vm8170_vm2, %v18371_v30 }
 0x55a   : > { %10643 = vmatmul.mubr.bf16.gmra.mrb[92].mxu1 %v18143_v6 }
 0x55b   : > { %10650 = vmatprep.mubr.bf16.mxu1 %v18168_v1  ;;  %v9309_v5 = vmax.f32 %v18538_v42, %v18592_v61  ;;  %v12737_v9 = vpop.f32.mrb[244].mxu0 }
 0x55c   : > { %v12738_v44 = vpop.f32.mrb[245].mxu0 }
 0x55d   : > { %v12792_v55 = vpop.f32.mrb[244].mxu1  ;;  %v12739_v4 = vadd.f32 %v12738_v44, %v12737_v9  ;;  %v12740_v39 = vpop.f32.mrb[246].mxu0 }
 0x55e   : > { %v12793_v63 = vpop.f32.mrb[245].mxu1  ;;  %v12741_v48 = vpop.f32.mrb[247].mxu0 }
 0x55f   : > { %v12794_v21 = vadd.f32 %v12793_v63, %v12792_v55  ;;  %v12795_v3 = vpop.f32.mrb[246].mxu1  ;;  %v18600_v53 = vadd.f32 %v13334_v8, %v12739_v4  ;;  %v12742_v6 = vadd.f32 %v12741_v48, %v12740_v39 }
 0x560   : > { %v12796_v17 = vpop.f32.mrb[247].mxu1  ;;  %13475 = vmatmul.mubr.msk.bf16.vlgmr.msra.gmra.mrb[96].mxu0 %vm8170_vm2, %v18392_v28 }
 0x561   : > { %v12797_v15 = vadd.f32 %v12796_v17, %v12795_v3  ;;  %v9310_v1 = vmax.f32 %v18553_v19, %v18600_v53  ;;  %v18606_v30 = vadd.f32 %v13335_v35, %v12742_v6  ;;  %13478 = vmatprep.mubr.msk.bf16.mxu0 %vm8170_vm2, %v18404_v38 }
 0x562   : > { %10651 = vmatmul.mubr.bf16.gmra.mrb[96].mxu1 %v18183_v52 }
 0x563   : > { %10658 = vmatprep.mubr.bf16.mxu1 %v18189_v23  ;;  %v9311_v8 = vmax.f32 %v18556_v7, %v18606_v30  ;;  %v12743_v32 = vpop.f32.mrb[248].mxu0 }
 0x564   : > { %v12744_v59 = vpop.f32.mrb[249].mxu0 }
 0x565   : > { %v12798_v49 = vpop.f32.mrb[248].mxu1  ;;  %v12745_v9 = vadd.f32 %v12744_v59, %v12743_v32  ;;  %v12746_v55 = vpop.f32.mrb[250].mxu0 }
 0x566   : > { %v12799_v28 = vpop.f32.mrb[249].mxu1  ;;  %v12747_v35 = vpop.f32.mrb[251].mxu0 }
 0x567   : > { %v12800_v44 = vadd.f32 %v12799_v28, %v12798_v49  ;;  %v12801_v4 = vpop.f32.mrb[250].mxu1  ;;  %v18614_v63 = vadd.f32 %v12745_v9, %v9096_v25  ;;  %v12748_v52 = vadd.f32 %v12747_v35, %v12746_v55 }
 0x568   : > { %v12802_v39 = vpop.f32.mrb[251].mxu1  ;;  %13479 = vmatmul.mubr.msk.bf16.gmra.mrb[100].mxu0 %vm8170_vm2, %v18423_v57 }
 0x569   : > { %v12803_v3 = vadd.f32 %v12802_v39, %v12801_v4  ;;  %v18620_v38 = vadd.f32 %v12748_v52, %v9099_v24  ;;  %13482 = vmatprep.mubr.msk.bf16.mxu0 %vm8170_vm2, %v18438_v51 }
 0x56a   : > { %10659 = vmatmul.mubr.bf16.gmra.mrb[100].mxu1 %v18210_v26 }
 0x56b   : > { %10666 = vmatprep.mubr.bf16.mxu1 %v18215_v47  ;;  %v12749_v48 = vpop.f32.mrb[252].mxu0 }
 0x56c   : > { %v12750_v17 = vpop.f32.mrb[253].mxu0 }
 0x56d   : > { %v12804_v6 = vpop.f32.mrb[252].mxu1  ;;  %v12751_v32 = vadd.f32 %v12750_v17, %v12749_v48  ;;  %v12752_v49 = vpop.f32.mrb[254].mxu0 }
 0x56e   : > { %v12805_v57 = vpop.f32.mrb[253].mxu1  ;;  %v12753_v24 = vpop.f32.mrb[255].mxu0 }
 0x56f   : > { %v12806_v59 = vadd.f32 %v12805_v57, %v12804_v6  ;;  %v12807_v9 = vpop.f32.mrb[254].mxu1  ;;  %v18629_v28 = vadd.f32 %v18571_v33, %v12751_v32  ;;  %v12754_v26 = vadd.f32 %v12753_v24, %v12752_v49 }
 0x570   : > { %v12808_v55 = vpop.f32.mrb[255].mxu1  ;;  %13483 = vmatmul.mubr.msk.bf16.gmra.mrb[104].mxu0 %vm8170_vm2, %v18473_v40 }
 0x571   : > { %v12809_v51 = vadd.f32 %v12808_v55, %v12807_v9  ;;  %v18636_v4 = vadd.f32 %v18573_v18, %v12754_v26  ;;  %13486 = vmatprep.mubr.msk.bf16.mxu0 %vm8170_vm2, %v18486_v58 }
 0x572   : > { %10667 = vmatmul.mubr.bf16.gmra.mrb[104].mxu1 %v18235_v0 }
 0x573   : > { %10674 = vmatprep.mubr.bf16.mxu1 %v18242_v31  ;;  %v13356_v35 = vpop.f32.mrb[0].mxu0 }
 0x574   : > { %v9254_v39 = vadd.f32 %v13356_v35, %v12794_v21  ;;  %v9245_v40 = vpop.f32.mrb[1].mxu0 }
 0x575   : > { %v12810_v52 = vpop.f32.mrb[0].mxu1  ;;  %v9246_v6 = vadd.f32 %v18583_v62, %v9245_v40  ;;  %v13357_v17 = vpop.f32.mrb[2].mxu0 }
 0x576   : > { %v12811_v48 = vpop.f32.mrb[1].mxu1  ;;  %v9257_v57 = vadd.f32 %v13357_v17, %v12797_v15  ;;  %v9248_v0 = vpop.f32.mrb[3].mxu0 }
 0x577   : > { %v12812_v18 = vadd.f32 %v12811_v48, %v12810_v52  ;;  %v12813_v32 = vpop.f32.mrb[2].mxu1  ;;  %v9249_v58 = vadd.f32 %v18587_v13, %v9248_v0 }
 0x578   : > { %v12814_v49 = vpop.f32.mrb[3].mxu1  ;;  %13487 = vmatmul.mubr.msk.bf16.gmra.mrb[108].mxu0 %vm8170_vm2, %v18522_v2 }
 0x579   : > { %v12815_v9 = vadd.f32 %v12814_v49, %v12813_v32 }
 0x57a   : > { %10675 = vmatmul.mubr.bf16.gmra.mrb[108].mxu1 %v18263_v27 }
 0x57b   : > { %v13360_v31 = vpop.f32.mrb[4].mxu0 }
 0x57c   : > { %v18649_v24 = vadd.f32 %v13360_v31, %v12806_v59  ;;  %v9261_v26 = vpop.f32.mrb[5].mxu0 }
 0x57d   : > { %v12816_v21 = vpop.f32.mrb[4].mxu1  ;;  %v9262_v55 = vadd.f32 %v12800_v44, %v9261_v26  ;;  %v13361_v35 = vpop.f32.mrb[6].mxu0 }
 0x57e   : > { %v12817_v62 = vpop.f32.mrb[5].mxu1  ;;  %v18651_v40 = vadd.f32 %v13361_v35, %v12809_v51  ;;  %v9264_v48 = vpop.f32.mrb[7].mxu0 }
 0x57f   : > { %v12818_v52 = vadd.f32 %v12817_v62, %v12816_v21  ;;  %v12819_v15 = vpop.f32.mrb[6].mxu1  ;;  %v9265_v17 = vadd.f32 %v12803_v3, %v9264_v48 }
 0x580   : > { %v12820_v13 = vpop.f32.mrb[7].mxu1 }
 0x581   : > { %v12821_v32 = vadd.f32 %v12820_v13, %v12819_v15 }
 0x583   : > { %v13364_v0 = vpop.f32.mrb[8].mxu0 }
 0x584   : > { %v9286_v49 = vadd.f32 %v13364_v0, %v12818_v52  ;;  %v9277_v27 = vpop.f32.mrb[9].mxu0 }
 0x585   : > { %v12822_v2 = vpop.f32.mrb[8].mxu1  ;;  %v9278_v47 = vadd.f32 %v12812_v18, %v9277_v27  ;;  %v13365_v59 = vpop.f32.mrb[10].mxu0 }
 0x586   : > { %v12823_v33 = vpop.f32.mrb[9].mxu1  ;;  %v9318_v31 = vmax.f32 %v9254_v39, %v9286_v49  ;;  %v9289_v44 = vadd.f32 %v13365_v59, %v12821_v32  ;;  %v9280_v26 = vpop.f32.mrb[11].mxu0  ;;  %v19820_v49 = vmax.f32 %v18563_v10, %v18614_v63 }
 0x587   : > { %v12824_v25 = vadd.f32 %v12823_v33, %v12822_v2  ;;  %v12825_v23 = vpop.f32.mrb[10].mxu1  ;;  %v9316_v21 = vmax.f32 %v9246_v6, %v9278_v47  ;;  %v9281_v51 = vadd.f32 %v12815_v9, %v9280_v26 }
 0x588   : > { %v12826_v62 = vpop.f32.mrb[11].mxu1  ;;  %v9326_v3 = vmax.f32 %v9310_v1, %v9318_v31  ;;  %v9319_v35 = vmax.f32 %v9257_v57, %v9289_v44 }
 0x589   : > { %v12827_v15 = vadd.f32 %v12826_v62, %v12825_v23  ;;  %v9324_v52 = vmax.f32 %v9308_v56, %v9316_v21  ;;  %v9317_v18 = vmax.f32 %v9249_v58, %v9281_v51  ;;  %v19822_v51 = vmax.f32 %v18575_v46, %v18629_v28 }
 0x58a   : > { %v9334_v39 = vadd.f32 %v9326_v3, %v18413_v50  ;;  %v9327_v33 = vmax.f32 %v9311_v8, %v9319_v35 }
 0x58b   : > { %v9332_v47 = vadd.f32 %v9324_v52, %v18379_v16  ;;  %v9325_v19 = vmax.f32 %v9309_v5, %v9317_v18  ;;  %v13368_v53 = vpop.f32.mrb[12].mxu0 }
 0x58c   : > { %v9335_v1 = vadd.f32 %v9327_v33, %v18447_v54  ;;  %v9293_v6 = vpop.f32.mrb[13].mxu0  ;;  %v9342_v58 = vmax.f32 %v9334_v39, 0.0 }
 0x58d   : > { %v12828_v23 = vpop.f32.mrb[12].mxu1  ;;  %v9333_v45 = vadd.f32 %v9325_v19, %v18409_v11  ;;  %v9294_v56 = vadd.f32 %v12824_v25, %v9293_v6  ;;  %v13369_v57 = vpop.f32.mrb[14].mxu0  ;;  %v9340_v48 = vmax.f32 %v9332_v47, 0.0 }
 0x58e   : > { %v12829_v29 = vpop.f32.mrb[13].mxu1  ;;  %v9343_v9 = vmax.f32 %v9335_v1, 0.0  ;;  %v9296_v8 = vpop.f32.mrb[15].mxu0 }
 0x58f   : > { %v12830_v7 = vadd.f32 %v12829_v29, %v12828_v23  ;;  %v12831_v30 = vpop.f32.mrb[14].mxu1  ;;  %v9341_v13 = vmax.f32 %v9333_v45, 0.0  ;;  %v9320_v32 = vmax.f32 %v9262_v55, %v9294_v56  ;;  %v9297_v61 = vadd.f32 %v12827_v15, %v9296_v8 }
 0x590   : > { %v12832_v42 = vpop.f32.mrb[15].mxu1  ;;  %v18669_v2 = vpack.c.bf16 %v9343_v9, %v9342_v58  ;;  %v19821_v55 = vmax.f32 %v18566_v22, %v18620_v38  ;;  %v19823_v22 = vmax.f32 %v18578_v43, %v18636_v4 }
 0x591   : > { %v9302_v5 = vadd.f32 %v13368_v53, %v12830_v7  ;;  %v12833_v0 = vadd.f32 %v12832_v42, %v12831_v30  ;;  %v9328_v27 = vmax.f32 %v19820_v49, %v9320_v32  ;;  %v9321_v25 = vmax.f32 %v9265_v17, %v9297_v61 }
 0x592   : > { %v18674_v59 = vpack.c.bf16 %v9341_v13, %v9340_v48 }
 0x593   : > { %v9322_v31 = vmax.f32 %v18649_v24, %v9302_v5  ;;  %v9305_v44 = vadd.f32 %v13369_v57, %v12833_v0  ;;  %v9336_v26 = vadd.f32 %v9328_v27, %v18455_v60  ;;  %v9329_v21 = vmax.f32 %v19821_v55, %v9321_v25  ;;  %v12865_v62 = vpop.f32.mrb[16].mxu0 }
 0x594   : > { %v12866_v17 = vpop.f32.mrb[17].mxu0 }
 0x595   : > { %v9330_v3 = vmax.f32 %v19822_v51, %v9322_v31  ;;  %v9323_v10 = vmax.f32 %v18651_v40, %v9305_v44  ;;  %v13386_v63 = vpop.f32.mrb[16].mxu1  ;;  %v9337_v35 = vadd.f32 %v9329_v21, %v18490_v36  ;;  %v12867_v15 = vadd.f32 %v12866_v17, %v12865_v62  ;;  %v12868_v52 = vpop.f32.mrb[18].mxu0 }
 0x596   : > { %v9766_v24 = vpop.f32.mrb[17].mxu1  ;;  %v12869_v33 = vpop.f32.mrb[19].mxu0  ;;  %v9344_v47 = vmax.f32 %v9336_v26, 0.0 }
 0x597   : > { %v9338_v18 = vadd.f32 %v9330_v3, %v18504_v12  ;;  %v9331_v38 = vmax.f32 %v19823_v22, %v9323_v10  ;;  %v13387_v39 = vpop.f32.mrb[18].mxu1  ;;  %v9345_v46 = vmax.f32 %v9337_v35, 0.0  ;;  %v18690_v28 = vadd.f32 %v12867_v15, %v9766_v24 }
 0x598   : > { %v12870_v40 = vadd.f32 %v12869_v33, %v12868_v52  ;;  %v9769_v19 = vpop.f32.mrb[19].mxu1 }
 0x599   : > { %v9339_v53 = vadd.f32 %v9331_v38, %v18530_v20  ;;  %v18695_v23 = vpack.c.bf16 %v9345_v46, %v9344_v47  ;;  %v9346_v6 = vmax.f32 %v9338_v18, 0.0 }
 0x59a   : > { %v18693_v1 = vadd.f32 %v12870_v40, %v9769_v19 }
 0x59b   : > { %v9347_v45 = vmax.f32 %v9339_v53, 0.0  ;;  %v12871_v29 = vpop.f32.mrb[20].mxu0 }
 0x59c   : > { %v12872_v43 = vpop.f32.mrb[21].mxu0 }
 0x59d   : > { %v13390_v56 = vpop.f32.mrb[20].mxu1  ;;  %v18697_v4 = vpack.c.bf16 %v9347_v45, %v9346_v6  ;;  %v12873_v57 = vadd.f32 %v12872_v43, %v12871_v29  ;;  %v12874_v9 = vpop.f32.mrb[22].mxu0 }
 0x59e   : > { %v9782_v58 = vpop.f32.mrb[21].mxu1  ;;  %v12875_v30 = vpop.f32.mrb[23].mxu0 }
 0x59f   : > { %v13391_v7 = vpop.f32.mrb[22].mxu1  ;;  %v18699_v8 = vadd.f32 %v13386_v63, %v12873_v57  ;;  %v12876_v48 = vadd.f32 %v12875_v30, %v12874_v9 }
 0x5a0   : > { %v9785_v13 = vpop.f32.mrb[23].mxu1 }
 0x5a1   : > { %v18701_v32 = vadd.f32 %v13387_v39, %v12876_v48 }
 0x5a3   : > { %v12877_v42 = vpop.f32.mrb[24].mxu0 }
 0x5a4   : > { %v12878_v5 = vpop.f32.mrb[25].mxu0 }
 0x5a5   : > { %v13394_v61 = vpop.f32.mrb[24].mxu1  ;;  %v12879_v0 = vadd.f32 %v12878_v5, %v12877_v42  ;;  %v12880_v27 = vpop.f32.mrb[26].mxu0 }
 0x5a6   : > { %v9798_v49 = vpop.f32.mrb[25].mxu1  ;;  %v12881_v31 = vpop.f32.mrb[27].mxu0 }
 0x5a7   : > { %v13395_v25 = vpop.f32.mrb[26].mxu1  ;;  %v18703_v44 = vadd.f32 %v12879_v0, %v9782_v58  ;;  %v12882_v26 = vadd.f32 %v12881_v31, %v12880_v27 }
 0x5a8   : > { %v9801_v55 = vpop.f32.mrb[27].mxu1 }
 0x5a9   : > { %v18705_v21 = vadd.f32 %v12882_v26, %v9785_v13 }
 0x5ab   : > { %v12883_v62 = vpop.f32.mrb[28].mxu0 }
 0x5ac   : > { %v12884_v3 = vpop.f32.mrb[29].mxu0 }
 0x5ad   : > { %v18707_v51 = vpop.f32.mrb[28].mxu1  ;;  %v12885_v10 = vadd.f32 %v12884_v3, %v12883_v62  ;;  %v12886_v17 = vpop.f32.mrb[30].mxu0 }
 0x5ae   : > { %v9814_v63 = vpop.f32.mrb[29].mxu1  ;;  %v12887_v15 = vpop.f32.mrb[31].mxu0 }
 0x5af   : > { %v18709_v35 = vpop.f32.mrb[30].mxu1  ;;  %v18711_v24 = vadd.f32 %v13390_v56, %v12885_v10  ;;  %v12888_v52 = vadd.f32 %v12887_v15, %v12886_v17 }
 0x5b0   : > { %v9817_v18 = vpop.f32.mrb[31].mxu1 }
 0x5b1   : > { %v18713_v22 = vadd.f32 %v13391_v7, %v12888_v52 }
 0x5b3   : > { %v12889_v38 = vpop.f32.mrb[32].mxu0 }
 0x5b4   : > { %v12890_v33 = vpop.f32.mrb[33].mxu0 }
 0x5b5   : > { %v12944_v39 = vpop.f32.mrb[32].mxu1  ;;  %v12891_v47 = vadd.f32 %v12890_v33, %v12889_v38  ;;  %v12892_v40 = vpop.f32.mrb[34].mxu0 }
 0x5b6   : > { %v12945_v46 = vpop.f32.mrb[33].mxu1  ;;  %v12893_v6 = vpop.f32.mrb[35].mxu0 }
 0x5b7   : > { %v18715_v19 = vadd.f32 %v12945_v46, %v12944_v39  ;;  %v12947_v53 = vpop.f32.mrb[34].mxu1  ;;  %v18717_v45 = vadd.f32 %v12891_v47, %v9798_v49  ;;  %v12894_v29 = vadd.f32 %v12893_v6, %v12892_v40 }
 0x5b8   : > { %v12948_v43 = vpop.f32.mrb[35].mxu1 }
 0x5b9   : > { %v18719_v56 = vadd.f32 %v12948_v43, %v12947_v53  ;;  %v10026_v57 = vmax.f32 %v18690_v28, %v18717_v45  ;;  %v18723_v58 = vadd.f32 %v12894_v29, %v9801_v55 }
 0x5bb   : > { %v12895_v7 = vpop.f32.mrb[36].mxu0 }
 0x5bc   : > { %v12896_v48 = vpop.f32.mrb[37].mxu0 }
 0x5bd   : > { %v12950_v30 = vpop.f32.mrb[36].mxu1  ;;  %v12897_v13 = vadd.f32 %v12896_v48, %v12895_v7  ;;  %v12898_v5 = vpop.f32.mrb[38].mxu0 }
 0x5be   : > { %v12951_v42 = vpop.f32.mrb[37].mxu1  ;;  %v12899_v27 = vpop.f32.mrb[39].mxu0 }
 0x5bf   : > { %v12952_v0 = vadd.f32 %v12951_v42, %v12950_v30  ;;  %v12953_v49 = vpop.f32.mrb[38].mxu1  ;;  %v18727_v31 = vadd.f32 %v13394_v61, %v12897_v13  ;;  %v12900_v26 = vadd.f32 %v12899_v27, %v12898_v5 }
 0x5c0   : > { %v12954_v62 = vpop.f32.mrb[39].mxu1 }
 0x5c1   : > { %v12955_v3 = vadd.f32 %v12954_v62, %v12953_v49  ;;  %v10028_v55 = vmax.f32 %v18699_v8, %v18727_v31  ;;  %v18731_v10 = vadd.f32 %v13395_v25, %v12900_v26 }
 0x5c3   : > { %v12901_v15 = vpop.f32.mrb[40].mxu0 }
 0x5c4   : > { %v12902_v38 = vpop.f32.mrb[41].mxu0 }
 0x5c5   : > { %v12956_v52 = vpop.f32.mrb[40].mxu1  ;;  %v12903_v39 = vadd.f32 %v12902_v38, %v12901_v15  ;;  %v12904_v47 = vpop.f32.mrb[42].mxu0 }
 0x5c6   : > { %v12957_v33 = vpop.f32.mrb[41].mxu1  ;;  %v12905_v40 = vpop.f32.mrb[43].mxu0 }
 0x5c7   : > { %v12958_v46 = vadd.f32 %v12957_v33, %v12956_v52  ;;  %v12959_v61 = vpop.f32.mrb[42].mxu1  ;;  %v18735_v53 = vadd.f32 %v12903_v39, %v9814_v63  ;;  %v12906_v6 = vadd.f32 %v12905_v40, %v12904_v47 }
 0x5c8   : > { %v12960_v29 = vpop.f32.mrb[43].mxu1 }
 0x5c9   : > { %v12961_v43 = vadd.f32 %v12960_v29, %v12959_v61  ;;  %v18739_v7 = vadd.f32 %v12906_v6, %v9817_v18 }
 0x5cb   : > { %v12907_v48 = vpop.f32.mrb[44].mxu0 }
 0x5cc   : > { %v12908_v42 = vpop.f32.mrb[45].mxu0 }
 0x5cd   : > { %v12962_v13 = vpop.f32.mrb[44].mxu1  ;;  %v12909_v5 = vadd.f32 %v12908_v42, %v12907_v48  ;;  %v12910_v27 = vpop.f32.mrb[46].mxu0 }
 0x5ce   : > { %v12963_v49 = vpop.f32.mrb[45].mxu1  ;;  %v12911_v62 = vpop.f32.mrb[47].mxu0 }
 0x5cf   : > { %v12964_v26 = vadd.f32 %v12963_v49, %v12962_v13  ;;  %v12965_v63 = vpop.f32.mrb[46].mxu1  ;;  %v18744_v15 = vadd.f32 %v18707_v51, %v12909_v5  ;;  %v12912_v52 = vadd.f32 %v12911_v62, %v12910_v27 }
 0x5d0   : > { %v12966_v38 = vpop.f32.mrb[47].mxu1 }
 0x5d1   : > { %v12967_v39 = vadd.f32 %v12966_v38, %v12965_v63  ;;  %v18749_v33 = vadd.f32 %v18709_v35, %v12912_v52 }
 0x5d3   : > { %v13416_v61 = vpop.f32.mrb[48].mxu0 }
 0x5d4   : > { %v9972_v6 = vadd.f32 %v13416_v61, %v12952_v0  ;;  %v9963_v29 = vpop.f32.mrb[49].mxu0 }
 0x5d5   : > { %v12968_v40 = vpop.f32.mrb[48].mxu1  ;;  %v9964_v51 = vadd.f32 %v18715_v19, %v9963_v29  ;;  %v13417_v13 = vpop.f32.mrb[50].mxu0 }
 0x5d6   : > { %v12969_v48 = vpop.f32.mrb[49].mxu1  ;;  %v9975_v49 = vadd.f32 %v13417_v13, %v12955_v3  ;;  %v9966_v27 = vpop.f32.mrb[51].mxu0 }
 0x5d7   : > { %v12970_v42 = vadd.f32 %v12969_v48, %v12968_v40  ;;  %v12971_v5 = vpop.f32.mrb[50].mxu1  ;;  %v9967_v62 = vadd.f32 %v18719_v56, %v9966_v27  ;;  %v14070_v56 = vld [vmem:[%s19004_s5 + $0x4] ss:$8 sps:$4 sm:$0xff]  }
 0x5d8   : > { %v12972_v63 = vpop.f32.mrb[51].mxu1  ;;  %11058 = vmatprep.mubr.bf16.mxu0 %v14070_v56 }
 0x5d9   : > { %v12973_v35 = vadd.f32 %v12972_v63, %v12971_v5 }
 0x5db   : > { %v13420_v52 = vpop.f32.mrb[52].mxu0 }
 0x5dc   : > { %v18755_v18 = vadd.f32 %v13420_v52, %v12964_v26  ;;  %v9979_v47 = vpop.f32.mrb[53].mxu0 }
 0x5dd   : > { %v12974_v38 = vpop.f32.mrb[52].mxu1  ;;  %v9980_v0 = vadd.f32 %v12958_v46, %v9979_v47  ;;  %v13421_v61 = vpop.f32.mrb[54].mxu0 }
 0x5de   : > { %v12975_v30 = vpop.f32.mrb[53].mxu1  ;;  %v18757_v19 = vadd.f32 %v13421_v61, %v12967_v39  ;;  %v9982_v40 = vpop.f32.mrb[55].mxu0 }
 0x5df   : > { %v12976_v25 = vadd.f32 %v12975_v30, %v12974_v38  ;;  %v12977_v9 = vpop.f32.mrb[54].mxu1  ;;  %v9983_v3 = vadd.f32 %v12961_v43, %v9982_v40 }
 0x5e0   : > { %v12978_v29 = vpop.f32.mrb[55].mxu1 }
 0x5e1   : > { %v12979_v48 = vadd.f32 %v12978_v29, %v12977_v9 }
 0x5e3   : > { %v13424_v13 = vpop.f32.mrb[56].mxu0 }
 0x5e4   : > { %v10004_v5 = vadd.f32 %v13424_v13, %v12976_v25  ;;  %v9995_v27 = vpop.f32.mrb[57].mxu0 }
 0x5e5   : > { %v12980_v26 = vpop.f32.mrb[56].mxu1  ;;  %v9996_v46 = vadd.f32 %v12970_v42, %v9995_v27  ;;  %v13425_v47 = vpop.f32.mrb[58].mxu0 }
 0x5e6   : > { %v12981_v63 = vpop.f32.mrb[57].mxu1  ;;  %v10036_v30 = vmax.f32 %v9972_v6, %v10004_v5  ;;  %v10007_v38 = vadd.f32 %v13425_v47, %v12979_v48  ;;  %v9998_v61 = vpop.f32.mrb[59].mxu0  ;;  %v19824_v6 = vmax.f32 %v18701_v32, %v18731_v10 }
 0x5e7   : > { %v12982_v52 = vadd.f32 %v12981_v63, %v12980_v26  ;;  %v12983_v39 = vpop.f32.mrb[58].mxu1  ;;  %v10034_v17 = vmax.f32 %v9964_v51, %v9996_v46  ;;  %v9999_v9 = vadd.f32 %v12973_v35, %v9998_v61  ;;  %v19825_v51 = vmax.f32 %v18693_v1, %v18723_v58 }
 0x5e8   : > { %v12984_v43 = vpop.f32.mrb[59].mxu1  ;;  %v10044_v40 = vmax.f32 %v10028_v55, %v10036_v30  ;;  %v10037_v29 = vmax.f32 %v9975_v49, %v10007_v38  ;;  %v19826_v61 = vmax.f32 %v18703_v44, %v18735_v53 }
 0x5e9   : > { %v12985_v56 = vadd.f32 %v12984_v43, %v12983_v39  ;;  %v10042_v25 = vmax.f32 %v10026_v57, %v10034_v17  ;;  %v10035_v42 = vmax.f32 %v9967_v62, %v9999_v9 }
 0x5ea   : > { %v10045_v13 = vmax.f32 %v19824_v6, %v10037_v29  ;;  %v10052_v48 = vadd.f32 %v10044_v40, %v18413_v50  ;;  %v19828_v6 = vmax.f32 %v18711_v24, %v18744_v15 }
 0x5eb   : > { %v10043_v35 = vmax.f32 %v19825_v51, %v10035_v42  ;;  %v13428_v26 = vpop.f32.mrb[60].mxu0  ;;  %v10050_v8 = vadd.f32 %v10042_v25, %v18379_v16  ;;  %v19827_v25 = vmax.f32 %v18705_v21, %v18739_v7  ;;  %v19829_v7 = vmax.f32 %v18713_v22, %v18749_v33 }
 0x5ec   : > { %v10011_v55 = vpop.f32.mrb[61].mxu0  ;;  %v10053_v49 = vadd.f32 %v10045_v13, %v18447_v54  ;;  %v10060_v5 = vmax.f32 %v10052_v48, 0.0 }
 0x5ed   : > { %v12986_v31 = vpop.f32.mrb[60].mxu1  ;;  %v10012_v45 = vadd.f32 %v12982_v52, %v10011_v55  ;;  %v13429_v57 = vpop.f32.mrb[62].mxu0  ;;  %v10051_v17 = vadd.f32 %v10043_v35, %v18409_v11  ;;  %v10058_v46 = vmax.f32 %v10050_v8, 0.0 }
 0x5ee   : > { %v12987_v28 = vpop.f32.mrb[61].mxu1  ;;  %v10014_v62 = vpop.f32.mrb[63].mxu0  ;;  %v10061_v27 = vmax.f32 %v10053_v49, 0.0 }
 0x5ef   : > { %v12988_v32 = vadd.f32 %v12987_v28, %v12986_v31  ;;  %v12989_v10 = vpop.f32.mrb[62].mxu1  ;;  %v10038_v63 = vmax.f32 %v9980_v0, %v10012_v45  ;;  %v10015_v58 = vadd.f32 %v12985_v56, %v10014_v62  ;;  %v10059_v47 = vmax.f32 %v10051_v17, 0.0 }
 0x5f0   : > { %v12990_v1 = vpop.f32.mrb[63].mxu1  ;;  %v10067_v38 = vpack.c.bf16 %v10061_v27, %v10060_v5 }
 0x5f1   : > { %v10020_v30 = vadd.f32 %v13428_v26, %v12988_v32  ;;  %v12991_v39 = vadd.f32 %v12990_v1, %v12989_v10  ;;  %v10046_v52 = vmax.f32 %v19826_v61, %v10038_v63  ;;  %v10039_v43 = vmax.f32 %v9983_v3, %v10015_v58 }
 0x5f2   : > { %v10066_v9 = vpack.c.bf16 %v10059_v47, %v10058_v46 }
 0x5f3   : > { %v10040_v40 = vmax.f32 %v18755_v18, %v10020_v30  ;;  %v10023_v29 = vadd.f32 %v13429_v57, %v12991_v39  ;;  %v10047_v0 = vmax.f32 %v19827_v25, %v10039_v43  ;;  %v13023_v42 = vpop.f32.mrb[64].mxu0  ;;  %v10054_v56 = vadd.f32 %v10046_v52, %v18455_v60 }
 0x5f4   : > { %13165 = vmatprep.subr.bf16.mxu0 %v10066_v9  ;;  %v13024_v3 = vpop.f32.mrb[65].mxu0 }
 0x5f5   : > { %v10048_v13 = vmax.f32 %v19828_v6, %v10040_v40  ;;  %v10041_v44 = vmax.f32 %v18757_v19, %v10023_v29  ;;  %v13446_v53 = vpop.f32.mrb[64].mxu1  ;;  %13166 = vmatpush3.bf16.msra.mxu0 %v18499_v34  ;;  %v13025_v18 = vadd.f32 %v13024_v3, %v13023_v42  ;;  %v13026_v51 = vpop.f32.mrb[66].mxu0  ;;  %v10055_v21 = vadd.f32 %v10047_v0, %v18490_v36 }
 0x5f6   : > { %v10520_v48 = vpop.f32.mrb[65].mxu1  ;;  %13167 = vmatprep.subr.bf16.mxu0 %v10067_v38  ;;  %v13027_v8 = vpop.f32.mrb[67].mxu0  ;;  %v10062_v55 = vmax.f32 %v10054_v56, 0.0 }
 0x5f7   : > { %v10049_v35 = vmax.f32 %v19829_v7, %v10041_v44  ;;  %v13447_v26 = vpop.f32.mrb[66].mxu1  ;;  %v10056_v24 = vadd.f32 %v10048_v13, %v18504_v12  ;;  %v18796_v15 = vadd.f32 %v13025_v18, %v10520_v48  ;;  %v13028_v19 = vadd.f32 %v13027_v8, %v13026_v51 }
 0x5f8   : > { %v10523_v31 = vpop.f32.mrb[67].mxu1  ;;  %v10063_v34 = vmax.f32 %v10055_v21, 0.0 }
 0x5f9   : > { %13168 = vmatpush3.bf16.msra.mxu0 %v18488_v14  ;;  %v10057_v49 = vadd.f32 %v10049_v35, %v18530_v20  ;;  %v18800_v28 = vadd.f32 %v13028_v19, %v10523_v31  ;;  %v10064_v57 = vmax.f32 %v10056_v24, 0.0 }
 0x5fa   : > { %v10068_v45 = vpack.c.bf16 %v10063_v34, %v10062_v55 }
 0x5fb   : > { %v10065_v22 = vmax.f32 %v10057_v49, 0.0  ;;  %v13029_v33 = vpop.f32.mrb[68].mxu0 }
 0x5fc   : > { %13169 = vmatprep.subr.bf16.mxu0 %v10068_v45  ;;  %v13030_v32 = vpop.f32.mrb[69].mxu0 }
 0x5fd   : > { %v13450_v17 = vpop.f32.mrb[68].mxu1  ;;  %13170 = vmatpush3.bf16.msra.mxu0 %v18542_v37  ;;  %v10069_v10 = vpack.c.bf16 %v10065_v22, %v10064_v57  ;;  %v13031_v62 = vadd.f32 %v13030_v32, %v13029_v33  ;;  %v13032_v27 = vpop.f32.mrb[70].mxu0 }
 0x5fe   : > { %v10536_v5 = vpop.f32.mrb[69].mxu1  ;;  %v13033_v14 = vpop.f32.mrb[71].mxu0 }
 0x5ff   : > { %v13451_v63 = vpop.f32.mrb[70].mxu1  ;;  %13171 = vmatprep.subr.bf16.mxu0 %v10069_v10  ;;  %v18803_v1 = vadd.f32 %v13446_v53, %v13031_v62  ;;  %v13034_v58 = vadd.f32 %v13033_v14, %v13032_v27 }
 0x600   : > { %v10539_v46 = vpop.f32.mrb[71].mxu1 }
 0x601   : > { %13172 = vmatpush3.bf16.msra.mxu0 %v18550_v41  ;;  %v18806_v47 = vadd.f32 %v13447_v26, %v13034_v58 }
 0x603   : > { %v13035_v30 = vpop.f32.mrb[72].mxu0 }
 0x604   : > { %v13036_v38 = vpop.f32.mrb[73].mxu0 }
 0x605   : > { %v13454_v39 = vpop.f32.mrb[72].mxu1  ;;  %v13037_v61 = vadd.f32 %v13036_v38, %v13035_v30  ;;  %v13038_v52 = vpop.f32.mrb[74].mxu0 }
 0x606   : > { %v10552_v37 = vpop.f32.mrb[73].mxu1  ;;  %v13039_v9 = vpop.f32.mrb[75].mxu0 }
 0x607   : > { %v13455_v43 = vpop.f32.mrb[74].mxu1  ;;  %v18808_v40 = vadd.f32 %v13037_v61, %v10536_v5  ;;  %v13040_v29 = vadd.f32 %v13039_v9, %v13038_v52 }
 0x608   : > { %v10555_v25 = vpop.f32.mrb[75].mxu1 }
 0x609   : > { %v18810_v0 = vadd.f32 %v13040_v29, %v10539_v46 }
 0x60b   : > { %v13041_v42 = vpop.f32.mrb[76].mxu0 }
 0x60c   : > { %v13042_v41 = vpop.f32.mrb[77].mxu0 }
 0x60d   : > { %v18812_v56 = vpop.f32.mrb[76].mxu1  ;;  %v13043_v6 = vadd.f32 %v13042_v41, %v13041_v42  ;;  %v13044_v44 = vpop.f32.mrb[78].mxu0 }
 0x60e   : > { %v10568_v13 = vpop.f32.mrb[77].mxu1  ;;  %v13045_v3 = vpop.f32.mrb[79].mxu0 }
 0x60f   : > { %v18814_v53 = vpop.f32.mrb[78].mxu1  ;;  %v18816_v18 = vadd.f32 %v13450_v17, %v13043_v6  ;;  %v13046_v48 = vadd.f32 %v13045_v3, %v13044_v44 }
 0x610   : > { %v10571_v51 = vpop.f32.mrb[79].mxu1 }
 0x611   : > { %v18818_v21 = vadd.f32 %v13451_v63, %v13046_v48 }
 0x613   : > { %v13047_v7 = vpop.f32.mrb[80].mxu0 }
 0x614   : > { %v13048_v26 = vpop.f32.mrb[81].mxu0 }
 0x615   : > { %v13102_v35 = vpop.f32.mrb[80].mxu1  ;;  %v13049_v8 = vadd.f32 %v13048_v26, %v13047_v7  ;;  %v13050_v19 = vpop.f32.mrb[82].mxu0 }
 0x616   : > { %v13103_v24 = vpop.f32.mrb[81].mxu1  ;;  %v13051_v34 = vpop.f32.mrb[83].mxu0 }
 0x617   : > { %v18820_v31 = vadd.f32 %v13103_v24, %v13102_v35  ;;  %v13105_v55 = vpop.f32.mrb[82].mxu1  ;;  %v18822_v49 = vadd.f32 %v13049_v8, %v10552_v37  ;;  %v13052_v45 = vadd.f32 %v13051_v34, %v13050_v19 }
 0x618   : > { %v13106_v57 = vpop.f32.mrb[83].mxu1 }
 0x619   : > { %v18824_v22 = vadd.f32 %v13106_v57, %v13105_v55  ;;  %v10780_v33 = vmax.f32 %v18796_v15, %v18822_v49  ;;  %v18828_v17 = vadd.f32 %v13052_v45, %v10555_v25 }
 0x61b   : > { %v10781_v32 = vmax.f32 %v18800_v28, %v18828_v17  ;;  %v13053_v10 = vpop.f32.mrb[84].mxu0 }
 0x61c   : > { %v13054_v5 = vpop.f32.mrb[85].mxu0 }
 0x61d   : > { %v13108_v62 = vpop.f32.mrb[84].mxu1  ;;  %v13055_v27 = vadd.f32 %v13054_v5, %v13053_v10  ;;  %v13056_v14 = vpop.f32.mrb[86].mxu0 }
 0x61e   : > { %v13109_v63 = vpop.f32.mrb[85].mxu1  ;;  %v13057_v30 = vpop.f32.mrb[87].mxu0 }
 0x61f   : > { %v13110_v58 = vadd.f32 %v13109_v63, %v13108_v62  ;;  %v13111_v46 = vpop.f32.mrb[86].mxu1  ;;  %v18832_v38 = vadd.f32 %v13454_v39, %v13055_v27  ;;  %v13058_v61 = vadd.f32 %v13057_v30, %v13056_v14 }
 0x620   : > { %v13112_v37 = vpop.f32.mrb[87].mxu1 }
 0x621   : > { %v13113_v52 = vadd.f32 %v13112_v37, %v13111_v46  ;;  %v10782_v9 = vmax.f32 %v18803_v1, %v18832_v38  ;;  %v18836_v29 = vadd.f32 %v13455_v43, %v13058_v61 }
 0x623   : > { %v10783_v25 = vmax.f32 %v18806_v47, %v18836_v29  ;;  %v13059_v42 = vpop.f32.mrb[88].mxu0 }
 0x624   : > { %v13060_v6 = vpop.f32.mrb[89].mxu0 }
 0x625   : > { %v13114_v41 = vpop.f32.mrb[88].mxu1  ;;  %v13061_v44 = vadd.f32 %v13060_v6, %v13059_v42  ;;  %v13062_v48 = vpop.f32.mrb[90].mxu0 }
 0x626   : > { %v13115_v3 = vpop.f32.mrb[89].mxu1  ;;  %v13063_v35 = vpop.f32.mrb[91].mxu0 }
 0x627   : > { %v13116_v7 = vadd.f32 %v13115_v3, %v13114_v41  ;;  %v13117_v39 = vpop.f32.mrb[90].mxu1  ;;  %v18840_v26 = vadd.f32 %v13061_v44, %v10568_v13  ;;  %v13064_v8 = vadd.f32 %v13063_v35, %v13062_v48 }
 0x628   : > { %v13118_v24 = vpop.f32.mrb[91].mxu1 }
 0x629   : > { %v13119_v19 = vadd.f32 %v13118_v24, %v13117_v39  ;;  %v18844_v55 = vadd.f32 %v13064_v8, %v10571_v51 }
 0x62b   : > { %v13065_v45 = vpop.f32.mrb[92].mxu0 }
 0x62c   : > { %v13066_v10 = vpop.f32.mrb[93].mxu0 }
 0x62d   : > { %v13120_v57 = vpop.f32.mrb[92].mxu1  ;;  %v13067_v62 = vadd.f32 %v13066_v10, %v13065_v45  ;;  %v13068_v27 = vpop.f32.mrb[94].mxu0 }
 0x62e   : > { %v13121_v5 = vpop.f32.mrb[93].mxu1  ;;  %v13069_v14 = vpop.f32.mrb[95].mxu0 }
 0x62f   : > { %v13122_v63 = vadd.f32 %v13121_v5, %v13120_v57  ;;  %v13123_v13 = vpop.f32.mrb[94].mxu1  ;;  %v18849_v46 = vadd.f32 %v18812_v56, %v13067_v62  ;;  %v13070_v30 = vadd.f32 %v13069_v14, %v13068_v27 }
 0x630   : > { %v13124_v61 = vpop.f32.mrb[95].mxu1 }
 0x631   : > { %v13125_v37 = vadd.f32 %v13124_v61, %v13123_v13  ;;  %v18854_v42 = vadd.f32 %v18814_v53, %v13070_v30 }
 0x633   : > { %v13476_v6 = vpop.f32.mrb[96].mxu0 }
 0x634   : > { %v10726_v3 = vadd.f32 %v13476_v6, %v13110_v58  ;;  %v10717_v48 = vpop.f32.mrb[97].mxu0 }
 0x635   : > { %v13126_v44 = vpop.f32.mrb[96].mxu1  ;;  %v10718_v56 = vadd.f32 %v18820_v31, %v10717_v48  ;;  %v13477_v35 = vpop.f32.mrb[98].mxu0 }
 0x636   : > { %v13127_v39 = vpop.f32.mrb[97].mxu1  ;;  %v10729_v45 = vadd.f32 %v13477_v35, %v13113_v52  ;;  %v10720_v57 = vpop.f32.mrb[99].mxu0 }
 0x637   : > { %v13128_v8 = vadd.f32 %v13127_v39, %v13126_v44  ;;  %v13129_v24 = vpop.f32.mrb[98].mxu1  ;;  %v10721_v62 = vadd.f32 %v18824_v22, %v10720_v57 }
 0x638   : > { %v13130_v10 = vpop.f32.mrb[99].mxu1 }
 0x639   : > { %v13131_v53 = vadd.f32 %v13130_v10, %v13129_v24 }
 0x63b   : > { %v13480_v5 = vpop.f32.mrb[100].mxu0 }
 0x63c   : > { %v18860_v13 = vadd.f32 %v13480_v5, %v13122_v63  ;;  %v10733_v14 = vpop.f32.mrb[101].mxu0 }
 0x63d   : > { %v13132_v27 = vpop.f32.mrb[100].mxu1  ;;  %v10734_v58 = vadd.f32 %v13116_v7, %v10733_v14  ;;  %v13481_v61 = vpop.f32.mrb[102].mxu0 }
 0x63e   : > { %v13133_v30 = vpop.f32.mrb[101].mxu1  ;;  %v18862_v31 = vadd.f32 %v13481_v61, %v13125_v37  ;;  %v10736_v44 = vpop.f32.mrb[103].mxu0 }
 0x63f   : > { %v13134_v6 = vadd.f32 %v13133_v30, %v13132_v27  ;;  %v13135_v41 = vpop.f32.mrb[102].mxu1  ;;  %v10737_v52 = vadd.f32 %v13119_v19, %v10736_v44 }
 0x640   : > { %v13136_v48 = vpop.f32.mrb[103].mxu1 }
 0x641   : > { %v13137_v39 = vadd.f32 %v13136_v48, %v13135_v41 }
 0x643   : > { %v13484_v35 = vpop.f32.mrb[104].mxu0 }
 0x644   : > { %v10758_v22 = vadd.f32 %v13484_v35, %v13134_v6  ;;  %v10749_v24 = vpop.f32.mrb[105].mxu0 }
 0x645   : > { %v13138_v51 = vpop.f32.mrb[104].mxu1  ;;  %v10750_v10 = vadd.f32 %v13128_v8, %v10749_v24  ;;  %v13485_v63 = vpop.f32.mrb[106].mxu0 }
 0x646   : > { %v13139_v57 = vpop.f32.mrb[105].mxu1  ;;  %v10790_v5 = vmax.f32 %v10726_v3, %v10758_v22  ;;  %v10761_v7 = vadd.f32 %v13485_v63, %v13137_v39  ;;  %v10752_v14 = vpop.f32.mrb[107].mxu0 }
 0x647   : > { %v13140_v34 = vadd.f32 %v13139_v57, %v13138_v51  ;;  %v13141_v43 = vpop.f32.mrb[106].mxu1  ;;  %v10788_v27 = vmax.f32 %v10718_v56, %v10750_v10  ;;  %v10753_v37 = vadd.f32 %v13131_v53, %v10752_v14  ;;  %v19831_v10 = vmax.f32 %v18810_v0, %v18844_v55 }
 0x648   : > { %v13142_v30 = vpop.f32.mrb[107].mxu1  ;;  %v10798_v19 = vmax.f32 %v10782_v9, %v10790_v5  ;;  %v10791_v41 = vmax.f32 %v10729_v45, %v10761_v7  ;;  %v19832_v5 = vmax.f32 %v18816_v18, %v18849_v46 }
 0x649   : > { %v13143_v61 = vadd.f32 %v13142_v30, %v13141_v43  ;;  %v10796_v6 = vmax.f32 %v10780_v33, %v10788_v27  ;;  %v10789_v8 = vmax.f32 %v10721_v62, %v10753_v37  ;;  %v14080_v27 = vld [vmem:[%s19004_s5 + $0x40] ss:$8 sps:$4 sm:$0xff]   ;;  %v14085_v30 = vld [vmem:[%s19004_s5 + $0x54] ss:$8 sps:$4 sm:$0xff]   ;;  %v14083_v37 = vld [vmem:[%s19004_s5 + $0x50] ss:$8 sps:$4 sm:$0xff]  }
 0x64a   : > { %v10799_v51 = vmax.f32 %v10783_v25, %v10791_v41  ;;  %v10806_v3 = vadd.f32 %v10798_v19, %v18413_v50  ;;  %v14088_v19 = vld [vmem:[%s19004_s5 + $0x64] ss:$8 sps:$4 sm:$0xff]   ;;  %v10842_v41 = vld [vmem:[%s19004_s5 + $0x70] sm:$0xff] }
 0x64b   : > { %v10797_v56 = vmax.f32 %v10781_v32, %v10789_v8  ;;  %v13488_v53 = vpop.f32.mrb[108].mxu0  ;;  %v10804_v1 = vadd.f32 %v10796_v6, %v18379_v16  ;;  %v12514_v6 = vcombine.high %v10842_v41, %v10842_v41  ;;  %v12513_v8 = vcombine.low %v10842_v41, %v10842_v41 }
 0x64c   : > { %v10765_v9 = vpop.f32.mrb[109].mxu0  ;;  %v10807_v43 = vadd.f32 %v10799_v51, %v18447_v54  ;;  %v10814_v50 = vmax.f32 %v10806_v3, 0.0  ;;  %v19830_v54 = vmax.f32 %v18808_v40, %v18840_v26  ;;  %v19833_v26 = vmax.f32 %v18818_v21, %v18854_v42  ;;  %v14077_v21 = vld [vmem:[%s19004_s5 + $0x30] ss:$8 sps:$4 sm:$0xff]   ;;  %v14082_v42 = vld [vmem:[%s19004_s5 + $0x44] ss:$8 sps:$4 sm:$0xff]  }
 0x64d   : > { %v13144_v38 = vpop.f32.mrb[108].mxu1  ;;  %v10766_v49 = vadd.f32 %v13140_v34, %v10765_v9  ;;  %v13489_v33 = vpop.f32.mrb[110].mxu0  ;;  %v10805_v45 = vadd.f32 %v10797_v56, %v18409_v11  ;;  %v10812_v32 = vmax.f32 %v10804_v1, 0.0  ;;  %v14091_v51 = vld [vmem:[%s19006_s7] sm:$0xff]  }
 0x64e   : > { %v13145_v15 = vpop.f32.mrb[109].mxu1  ;;  %v10768_v25 = vpop.f32.mrb[111].mxu0  ;;  %v10815_v62 = vmax.f32 %v10807_v43, 0.0  ;;  %13506 = vmatprep.mubr.msk.bf16.mxu1 %vm11250_vm3, %v14091_v51 }
 0x64f   : > { %v13146_v47 = vadd.f32 %v13145_v15, %v13144_v38  ;;  %v13147_v29 = vpop.f32.mrb[110].mxu1  ;;  %v10792_v44 = vmax.f32 %v10734_v58, %v10766_v49  ;;  %v10769_v17 = vadd.f32 %v13143_v61, %v10768_v25  ;;  %v10813_v48 = vmax.f32 %v10805_v45, 0.0  ;;  %v14086_v61 = vld [vmem:[%s19004_s5 + $0x60] ss:$8 sps:$4 sm:$0xff]   ;;  %v10877_v38 = vpop.permute.xlu1 %10876 }
 0x650   : > { %v13148_v28 = vpop.f32.mrb[111].mxu1  ;;  %v10821_v35 = vpack.c.bf16 %v10815_v62, %v10814_v50  ;;  %v10882_v49 = vpop.permute.xlu0 %10881 }
 0x651   : > { %v10774_v16 = vadd.f32 %v13488_v53, %v13146_v47  ;;  %v13149_v39 = vadd.f32 %v13148_v28, %v13147_v29  ;;  %v10800_v34 = vmax.f32 %v19830_v54, %v10792_v44  ;;  %v10793_v22 = vmax.f32 %v10737_v52, %v10769_v17 }
 0x652   : > { %v10820_v24 = vpack.c.bf16 %v10813_v48, %v10812_v32 }
 0x653   : > { %v10794_v11 = vmax.f32 %v18860_v13, %v10774_v16  ;;  %v10777_v57 = vadd.f32 %v13489_v33, %v13149_v39  ;;  %v10801_v58 = vmax.f32 %v19831_v10, %v10793_v22  ;;  %v10808_v63 = vadd.f32 %v10800_v34, %v18455_v60  ;;  %v10887_v28 = vpop.permute.xlu1 %10886 }
 0x654   : > { %13173 = vmatprep.subr.bf16.mxu0 %v10820_v24  ;;  %v10892_v16 = vpop.permute.xlu0 %10891 }
 0x655   : > { %v10802_v7 = vmax.f32 %v19832_v5, %v10794_v11  ;;  %v10795_v14 = vmax.f32 %v18862_v31, %v10777_v57  ;;  %13174 = vmatpush3.bf16.msra.mxu0 %v18674_v59  ;;  %v10809_v40 = vadd.f32 %v10801_v58, %v18490_v36  ;;  %v10816_v55 = vmax.f32 %v10808_v63, 0.0  ;;  %v14068_v36 = vld [vmem:[%s19004_s5] ss:$8 sps:$4 sm:$0xff]  }
 0x656   : > { %13175 = vmatprep.subr.bf16.mxu0 %v10821_v35 }
 0x657   : > { %v10803_v13 = vmax.f32 %v19833_v26, %v10795_v14  ;;  %v10810_v0 = vadd.f32 %v10802_v7, %v18504_v12  ;;  %v10817_v52 = vmax.f32 %v10809_v40, 0.0  ;;  %v14073_v12 = vld [vmem:[%s19004_s5 + $0x14] ss:$8 sps:$4 sm:$0xff]   ;;  %v10897_v10 = vpop.permute.xlu1 %10896 }
 0x658   : > { %v10902_v7 = vpop.permute.xlu0 %10901 }
 0x659   : > { %13176 = vmatpush3.bf16.msra.mxu0 %v18669_v2  ;;  %v10811_v60 = vadd.f32 %v10803_v13, %v18530_v20  ;;  %v10822_v18 = vpack.c.bf16 %v10817_v52, %v10816_v55  ;;  %v10818_v46 = vmax.f32 %v10810_v0, 0.0  ;;  %v14071_v20 = vld [vmem:[%s19004_s5 + $0x10] ss:$8 sps:$4 sm:$0xff]   ;;  %v14076_v2 = vld [vmem:[%s19004_s5 + $0x24] ss:$8 sps:$4 sm:$0xff]  }
 0x65b   : > { %v10819_v31 = vmax.f32 %v10811_v60, 0.0  ;;  %13177 = vmatprep.subr.bf16.mxu0 %v10822_v18  ;;  %v10907_v18 = vpop.permute.xlu1 %10906 }
 0x65d   : > { %13178 = vmatpush3.bf16.msra.mxu0 %v18695_v23  ;;  %v10823_v59 = vpack.c.bf16 %v10819_v31, %v10818_v46  ;;  %v14074_v23 = vld [vmem:[%s19004_s5 + $0x20] ss:$8 sps:$4 sm:$0xff]  }
 0x65f   : > { %13179 = vmatprep.subr.bf16.mxu0 %v10823_v59 }
 0x661   : > { %13180 = vmatpush3.bf16.msra.mxu0 %v18697_v4  ;;  %v14079_v4 = vld [vmem:[%s19004_s5 + $0x34] ss:$8 sps:$4 sm:$0xff]  }
 0x664   : > { %11059 = vmatmul.mubr.bf16.vlgmr.msra.gmra.mrb[112].mxu0 %v14068_v36  ;;  %v10912_v36 = vpop.permute.xlu0 %10911 }
 0x665   : > { %11066 = vmatprep.mubr.bf16.mxu0 %v14073_v12 }
 0x66c   : > { %11067 = vmatmul.mubr.bf16.gmra.mrb[116].mxu0 %v14071_v20 }
 0x66d   : > { %11074 = vmatprep.mubr.bf16.mxu0 %v14076_v2 }
 0x674   : > { %11075 = vmatmul.mubr.bf16.gmra.mrb[120].mxu0 %v14074_v23 }
 0x675   : > { %11082 = vmatprep.mubr.bf16.mxu0 %v14079_v4 }
 0x67c   : > { %11083 = vmatmul.mubr.bf16.gmra.mrb[124].mxu0 %v14077_v21 }
 0x67d   : > { %11090 = vmatprep.mubr.bf16.mxu0 %v14082_v42 }
 0x684   : > { %11091 = vmatmul.mubr.bf16.gmra.mrb[128].mxu0 %v14080_v27 }
 0x685   : > { %11098 = vmatprep.mubr.bf16.mxu0 %v14085_v30  ;;  %v10917_v30 = vpop.permute.xlu1 %10916 }
 0x68c   : > { %11099 = vmatmul.mubr.bf16.gmra.mrb[132].mxu0 %v14083_v37 }
 0x68d   : > { %11106 = vmatprep.mubr.bf16.mxu0 %v14088_v19 }
 0x694   : > { %11107 = vmatmul.mubr.bf16.gmra.mrb[136].mxu0 %v14086_v61  ;;  %v10922_v61 = vpop.permute.xlu0 %10921 }
 0x695   : > { %11114 = vmatprep.mubr.bf16.mxu0 %v12514_v6 }
 0x69c   : > { %11115 = vmatmul.mubr.bf16.gmra.mrb[140].mxu0 %v12513_v8 }
 0x737   : > { %v13181_v3 = vpop.f32.mrb[112].mxu0 }
 0x738   : > { %v13182_v56 = vpop.f32.mrb[113].mxu0 }
 0x739   : > { %v13183_v53 = vadd.f32 %v13182_v56, %v13181_v3  ;;  %v13184_v1 = vpop.f32.mrb[114].mxu0 }
 0x73a   : > { %v13185_v9 = vpop.f32.mrb[115].mxu0 }
 0x73b   : > { %v11061_v43 = vadd.f32 %v13183_v53, %v10877_v38  ;;  %v13186_v15 = vadd.f32 %v13185_v9, %v13184_v1  ;;  %v10927_v9 = vpop.permute.xlu1 %10926 }
 0x73d   : > { %v11064_v33 = vadd.f32 %v13186_v15, %v10882_v49  ;;  %v11122_v45 = vmax.f32 %v11061_v43, 0.0 }
 0x73f   : > { %v11123_v47 = vmax.f32 %v11064_v33, 0.0  ;;  %v13187_v29 = vpop.f32.mrb[116].mxu0  ;;  %v10932_v33 = vpop.permute.xlu0 %10931 }
 0x740   : > { %v13188_v25 = vpop.f32.mrb[117].mxu0 }
 0x741   : > { %v13189_v50 = vadd.f32 %v13188_v25, %v13187_v29  ;;  %v13190_v62 = vpop.f32.mrb[118].mxu0  ;;  %v11137_v44 = vpack.c.bf16 %v11123_v47, %v11122_v45 }
 0x742   : > { %v13191_v17 = vpop.f32.mrb[119].mxu0 }
 0x743   : > { %v11069_v32 = vadd.f32 %v13189_v50, %v10887_v28  ;;  %v13192_v48 = vadd.f32 %v13191_v17, %v13190_v62  ;;  %13490 = vmatprep.subr.bf16.mxu1 %v11137_v44  ;;  %v10937_v17 = vpop.permute.xlu1 %10936 }
 0x744   : > { %13491 = vmatpush3.bf16.msra.mxu1 %v11137_v44 }
 0x745   : > { %v11072_v39 = vadd.f32 %v13192_v48, %v10892_v16  ;;  %v11124_v35 = vmax.f32 %v11069_v32, 0.0 }
 0x747   : > { %v11125_v54 = vmax.f32 %v11072_v39, 0.0  ;;  %v13193_v34 = vpop.f32.mrb[120].mxu0  ;;  %v10942_v39 = vpop.permute.xlu0 %10941 }
 0x748   : > { %v13194_v22 = vpop.f32.mrb[121].mxu0 }
 0x749   : > { %v13195_v24 = vadd.f32 %v13194_v22, %v13193_v34  ;;  %v13196_v11 = vpop.f32.mrb[122].mxu0  ;;  %v11138_v57 = vpack.c.bf16 %v11125_v54, %v11124_v35 }
 0x74a   : > { %v13197_v58 = vpop.f32.mrb[123].mxu0 }
 0x74b   : > { %v11077_v63 = vadd.f32 %v13195_v24, %v10897_v10  ;;  %v13198_v5 = vadd.f32 %v13197_v58, %v13196_v11  ;;  %13492 = vmatprep.subr.bf16.mxu1 %v11138_v57  ;;  %v10947_v58 = vpop.permute.xlu1 %10946 }
 0x74c   : > { %13493 = vmatpush3.bf16.msra.mxu1 %v11138_v57 }
 0x74d   : > { %v11080_v14 = vadd.f32 %v13198_v5, %v10902_v7  ;;  %v11126_v40 = vmax.f32 %v11077_v63, 0.0 }
 0x74f   : > { %v11127_v26 = vmax.f32 %v11080_v14, 0.0  ;;  %v13199_v13 = vpop.f32.mrb[124].mxu0 }
 0x750   : > { %v13200_v0 = vpop.f32.mrb[125].mxu0 }
 0x751   : > { %v13201_v55 = vadd.f32 %v13200_v0, %v13199_v13  ;;  %v13202_v52 = vpop.f32.mrb[126].mxu0  ;;  %v11139_v60 = vpack.c.bf16 %v11127_v26, %v11126_v40  ;;  %v14092_v26 = vld [vmem:[%s19006_s7 + $0x8] sm:$0xff]   ;;  %v14093_v13 = vld [vmem:[%s19006_s7 + $0x10] sm:$0xff]   ;;  %v14094_v0 = vld [vmem:[%s19006_s7 + $0x18] sm:$0xff]  }
 0x752   : > { %v13203_v46 = vpop.f32.mrb[127].mxu0 }
 0x753   : > { %v11085_v31 = vadd.f32 %v13201_v55, %v10907_v18  ;;  %v13204_v59 = vadd.f32 %v13203_v46, %v13202_v52  ;;  %13494 = vmatprep.subr.bf16.mxu1 %v11139_v60  ;;  %v14095_v55 = vld [vmem:[%s19006_s7 + $0x20] sm:$0xff]   ;;  %v14096_v52 = vld [vmem:[%s19006_s7 + $0x28] ss:$0 sps:$4 sm:$0x33]   ;;  %v11170_v18 = vpop.permute.xlu0 %11169 }
 0x754   : > { %13495 = vmatpush3.bf16.msra.mxu1 %v11139_v60  ;;  %v14146_v60 = vmov 0.0  }
 0x755   : > { %v11088_v12 = vadd.f32 %v13204_v59, %v10912_v36  ;;  %v11128_v20 = vmax.f32 %v11085_v31, 0.0  ;;  %v11175_v31 = vpop.permute.xlu1 %11174 }
 0x757   : > { %v11129_v2 = vmax.f32 %v11088_v12, 0.0  ;;  %v13205_v23 = vpop.f32.mrb[128].mxu0  ;;  %v11180_v46 = vpop.permute.xlu0 %11179 }
 0x758   : > { %v13206_v4 = vpop.f32.mrb[129].mxu0 }
 0x759   : > { %v13207_v21 = vadd.f32 %v13206_v4, %v13205_v23  ;;  %v13208_v42 = vpop.f32.mrb[130].mxu0  ;;  %v11140_v27 = vpack.c.bf16 %v11129_v2, %v11128_v20  ;;  %v11185_v36 = vpop.permute.xlu1 %11184 }
 0x75a   : > { %v13209_v37 = vpop.f32.mrb[131].mxu0 }
 0x75b   : > { %v11093_v19 = vadd.f32 %v13207_v21, %v10917_v30  ;;  %v13210_v41 = vadd.f32 %v13209_v37, %v13208_v42  ;;  %13496 = vmatprep.subr.bf16.mxu1 %v11140_v27  ;;  %v11190_v59 = vpop.permute.xlu0 %11189 }
 0x75c   : > { %13497 = vmatpush3.bf16.msra.mxu1 %v11140_v27 }
 0x75d   : > { %v11096_v6 = vadd.f32 %v13210_v41, %v10922_v61  ;;  %v11130_v8 = vmax.f32 %v11093_v19, 0.0  ;;  %v11195_v30 = vpop.permute.xlu1 %11194 }
 0x75f   : > { %v11131_v51 = vmax.f32 %v11096_v6, 0.0  ;;  %v13211_v3 = vpop.f32.mrb[132].mxu0  ;;  %v11200_v21 = vpop.permute.xlu0 %11199 }
 0x760   : > { %v13212_v56 = vpop.f32.mrb[133].mxu0 }
 0x761   : > { %v13213_v53 = vadd.f32 %v13212_v56, %v13211_v3  ;;  %v13214_v1 = vpop.f32.mrb[134].mxu0  ;;  %v11141_v38 = vpack.c.bf16 %v11131_v51, %v11130_v8 }
 0x762   : > { %v13215_v43 = vpop.f32.mrb[135].mxu0 }
 0x763   : > { %v11101_v15 = vadd.f32 %v13213_v53, %v10927_v9  ;;  %v13216_v49 = vadd.f32 %v13215_v43, %v13214_v1  ;;  %13498 = vmatprep.subr.bf16.mxu1 %v11141_v38  ;;  %v11210_v56 = vpop.permute.xlu0 %11209 }
 0x764   : > { %13499 = vmatpush3.bf16.msra.mxu1 %v11141_v38  ;;  %v11205_v38 = vpop.permute.xlu1 %11204 }
 0x765   : > { %v11104_v45 = vadd.f32 %v13216_v49, %v10932_v33  ;;  %v11132_v47 = vmax.f32 %v11101_v15, 0.0 }
 0x767   : > { %v11133_v29 = vmax.f32 %v11104_v45, 0.0  ;;  %v13217_v25 = vpop.f32.mrb[136].mxu0 }
 0x768   : > { %v13218_v50 = vpop.f32.mrb[137].mxu0 }
 0x769   : > { %v13219_v62 = vadd.f32 %v13218_v50, %v13217_v25  ;;  %v13220_v44 = vpop.f32.mrb[138].mxu0  ;;  %v11142_v28 = vpack.c.bf16 %v11133_v29, %v11132_v47 }
 0x76a   : > { %v13221_v32 = vpop.f32.mrb[139].mxu0 }
 0x76b   : > { %v11109_v48 = vadd.f32 %v13219_v62, %v10937_v17  ;;  %v13222_v16 = vadd.f32 %v13221_v32, %v13220_v44  ;;  %13500 = vmatprep.subr.bf16.mxu1 %v11142_v28  ;;  %v11220_v62 = vpop.permute.xlu0 %11219 }
 0x76c   : > { %13501 = vmatpush3.bf16.msra.mxu1 %v11142_v28 }
 0x76d   : > { %v11112_v35 = vadd.f32 %v13222_v16, %v10942_v39  ;;  %v11134_v54 = vmax.f32 %v11109_v48, 0.0  ;;  %v11215_v39 = vpop.permute.xlu1 %11214 }
 0x76f   : > { %v11135_v34 = vmax.f32 %v11112_v35, 0.0  ;;  %v13223_v22 = vpop.f32.mrb[140].mxu0 }
 0x770   : > { %v13224_v24 = vpop.f32.mrb[141].mxu0 }
 0x771   : > { %v13225_v11 = vadd.f32 %v13224_v24, %v13223_v22  ;;  %v13226_v57 = vpop.f32.mrb[142].mxu0  ;;  %v11143_v10 = vpack.c.bf16 %v11135_v34, %v11134_v54 }
 0x772   : > { %v13227_v63 = vpop.f32.mrb[143].mxu0 }
 0x773   : > { %v11117_v5 = vadd.f32 %v13225_v11, %v10947_v58  ;;  %13502 = vmatprep.subr.bf16.mxu1 %v11143_v10  ;;  %v14097_v58 = vld [vmem:[%s19008_s9] sm:$0x1f]   ;;  %v11376_v63 = vpop.permute.xlu1 %11375 }
 0x774   : > { %13503 = vmatpush3.bf16.msra.mxu1 %v11143_v10 }
 0x775   : > { %v11136_v7 = vmax.f32 %v11117_v5, 0.0 }
 0x777   : > { %v11144_v14 = vpack.c.bf16 %v11136_v7, %v11136_v7 }
 0x779   : > { %13542 = vmatprep.subr.msk.bf16.mxu1 %vm8195_vm1, %v11144_v14  ;;  %v11270_v40 = vsel %vm8195_vm1, %v11144_v14, 0 }
 0x77a   : > { %13505 = vmatpush3.bf16.msra.mxu1 %v11270_v40  ;;  %v11381_v40 = vpop.permute.xlu0 %11380 }
 0x77b   : > { %13518 = vmatprep.subr.bf16.mxu1 %v14146_v60 }
 0x77d   : > { %13507 = vmatmul.mubr.msk.bf16.vlgmr.msra.gmra.mrb[112].mxu1 %vm11250_vm3, %v14092_v26 }
 0x77e   : > { %13510 = vmatprep.mubr.msk.bf16.mxu1 %vm11250_vm3, %v14093_v13 }
 0x785   : > { %13511 = vmatmul.mubr.msk.bf16.gmra.mrb[116].mxu1 %vm11250_vm3, %v14094_v0 }
 0x786   : > { %13514 = vmatprep.mubr.msk.bf16.mxu1 %vm11250_vm3, %v14095_v55 }
 0x78d   : > { %13515 = vmatmul.mubr.msk.bf16.gmra.mrb[120].mxu1 %vm11250_vm3, %v14096_v52 }
 0x78e   : > { %13530 = vmatprep.mubr.msk.bf16.mxu1 %vm14147_vm4, %v14146_v60 }
 0x850   : > { %v13508_v12 = vpop.f32.mrb[112].mxu1 }
 0x851   : > { %v11315_v20 = vadd.f32 %v13508_v12, %v11180_v46  ;;  %v11306_v2 = vpop.f32.mrb[113].mxu1 }
 0x852   : > { %v11307_v23 = vadd.f32 %v11306_v2, %v11170_v18  ;;  %v13509_v4 = vpop.f32.mrb[114].mxu1 }
 0x853   : > { %v11318_v42 = vadd.f32 %v13509_v4, %v11185_v36  ;;  %v11309_v27 = vpop.f32.mrb[115].mxu1  ;;  %v11354_v19 = vmax.f32 %v11315_v20, 0.0 }
 0x854   : > { %v11310_v37 = vadd.f32 %v11309_v27, %v11175_v31  ;;  %v11352_v61 = vmax.f32 %v11307_v23, 0.0 }
 0x855   : > { %v11355_v41 = vmax.f32 %v11318_v42, 0.0 }
 0x856   : > { %v11353_v6 = vmax.f32 %v11310_v37, 0.0 }
 0x857   : > { %v11364_v8 = vpack.c.bf16 %v11355_v41, %v11354_v19 }
 0x858   : > { %v11363_v51 = vpack.c.bf16 %v11353_v6, %v11352_v61  ;;  %v13512_v3 = vpop.f32.mrb[116].mxu1 }
 0x859   : > { %v11331_v53 = vadd.f32 %v13512_v3, %v11200_v21  ;;  %v11322_v1 = vpop.f32.mrb[117].mxu1 }
 0x85a   : > { %v11323_v9 = vadd.f32 %v11322_v1, %v11190_v59  ;;  %v13513_v43 = vpop.f32.mrb[118].mxu1  ;;  %13519 = vmatpush3.bf16.msra.mxu1 %v11363_v51 }
 0x85b   : > { %v11334_v15 = vadd.f32 %v13513_v43, %v11205_v38  ;;  %v11325_v49 = vpop.f32.mrb[119].mxu1  ;;  %13520 = vmatprep.subr.bf16.mxu1 %v14146_v60  ;;  %v11358_v45 = vmax.f32 %v11331_v53, 0.0 }
 0x85c   : > { %v11326_v33 = vadd.f32 %v11325_v49, %v11195_v30  ;;  %v11356_v29 = vmax.f32 %v11323_v9, 0.0 }
 0x85d   : > { %v11359_v47 = vmax.f32 %v11334_v15, 0.0 }
 0x85e   : > { %v11357_v25 = vmax.f32 %v11326_v33, 0.0  ;;  %13521 = vmatpush3.bf16.msra.mxu1 %v11364_v8 }
 0x85f   : > { %v11366_v50 = vpack.c.bf16 %v11359_v47, %v11358_v45  ;;  %13522 = vmatprep.subr.bf16.mxu1 %v14146_v60 }
 0x860   : > { %v11365_v44 = vpack.c.bf16 %v11357_v25, %v11356_v29  ;;  %v13516_v28 = vpop.f32.mrb[120].mxu1 }
 0x861   : > { %v11347_v17 = vadd.f32 %v13516_v28, %v11220_v62  ;;  %v11338_v32 = vpop.f32.mrb[121].mxu1 }
 0x862   : > { %v11339_v48 = vadd.f32 %v11338_v32, %v11210_v56  ;;  %v13517_v16 = vpop.f32.mrb[122].mxu1  ;;  %13523 = vmatpush3.bf16.msra.mxu1 %v11365_v44 }
 0x863   : > { %v11341_v35 = vpop.f32.mrb[123].mxu1  ;;  %13524 = vmatprep.subr.bf16.mxu1 %v14146_v60  ;;  %v11362_v34 = vmax.f32 %v11347_v17, 0.0 }
 0x864   : > { %v11342_v54 = vadd.f32 %v11341_v35, %v11215_v39  ;;  %v11360_v22 = vmax.f32 %v11339_v48, 0.0 }
 0x865   : > { %v11368_v57 = vpack.c.bf16 %v11362_v34, %v11362_v34 }
 0x866   : > { %v11361_v24 = vmax.f32 %v11342_v54, 0.0  ;;  %13525 = vmatpush3.bf16.msra.mxu1 %v11366_v50 }
 0x867   : > { %13526 = vmatprep.subr.bf16.mxu1 %v14146_v60  ;;  %v11394_v10 = vsel %vm11392_vm5, %v11368_v57, 0 }
 0x868   : > { %v11367_v11 = vpack.c.bf16 %v11361_v24, %v11360_v22 }
 0x86a   : > { %13527 = vmatpush3.bf16.msra.mxu1 %v11367_v11 }
 0x86b   : > { %13528 = vmatprep.subr.bf16.mxu1 %v14146_v60 }
 0x86e   : > { %13529 = vmatpush3.bf16.msra.mxu1 %v11394_v10 }
 0x871   : > { %13531 = vmatmul.mubr.msk.bf16.vlgmr.msra.gmra.mrb[124].mxu1 %vm11388_vm6, %v14097_v58 }
 0x943   : > { %11445 = sbr.rel (!%p14238_p5) target bundleno = 2386 (0x952), region = 109 }
 0x944   : > { %v11430_v5 = vpop.f32.mrb[124].mxu1 }
 0x945   : > { %v11431_v7 = vadd.f32 %v11430_v5, %v11376_v63  ;;  %v13532_v14 = vpop.f32.mrb[125].mxu1 }
 0x946   : > { %v11433_v26 = vpop.f32.mrb[126].mxu1 }
 0x947   : > { %11437 = vst [vmem:[%s865_s26] sm:$0xff] %v11431_v7  ;;  %v11434_v13 = vadd.f32 %v11433_v26, %v11381_v40  ;;  %v13533_v0 = vpop.f32.mrb[127].mxu1 }
 0x949   : > { %11438 = vst [vmem:[%s865_s26 + $0x8] sm:$0x3] %v11434_v13 }
 0x94e   : > { %v11477_v55 = vld [vmem:[%s865_s26] sm:$0xff] }
 0x94f   : > { %11478 = vst [vmem:[%s11447_s23] sm:$0xff] %v11477_v55 }
 0x950   : > { %v11479_v52 = vld [vmem:[%s865_s26 + $0x8] sm:$0xff] }
 0x951   : > { %11480 = vst [vmem:[%s11447_s23 + $0x10] sm:$0xff] %v11479_v52 }
 0x952 PF: > { %p18_p10 = scmp.ge.s32.totalorder %s14225_s21, 4   ;;  %s19834_s17 = smov %s14139_s18 }
 0x953   : > { %s19835_s18 = smov %s14236_s24  ;;  %s19836_s19 = smov %s14225_s21 }
 0x954   :  { %20 = sbr.rel (!%p18_p10) target bundleno = 2 (0x2), region = 178 }

</bundles_post_ra>
